<compile_context>
chip_gen: v5e
topology: v5e:2x2
jax: 0.10.0
libtpu: 0.0.40
codegen_flags: <defaults>
</compile_context>

<pallas_src>
import jax
import jax.numpy as jnp
from jax.experimental import pallas as pl
from jax.experimental.pallas import tpu as pltpu

TILE_B = 8   # batch tile per grid step (multiple of 8 -> clean sublane blocks)


# ----------------------------------------------------------------------------
# Fused forward kernel
# ----------------------------------------------------------------------------
def _fused_kernel(xcol_ref,                       # (8, 8, TB, 18)  f32  im2col'd input
                  w1_ref, b1_ref,                 # (18, 64) bf16, (1, 64) f32
                  w2_ref, b2_ref,                 # (9, 64, 128) bf16, (1, 128) f32
                  wl1_ref, bl1_ref,               # (2048, 256) bf16, (1, 256) f32
                  wl2_ref, bl2_ref,               # (256, 128) bf16, (1, 128) f32
                  wl3_ref, bl3_ref,               # (128, 64) bf16, (1, 64) f32
                  out_ref,                        # (TB, 64) f32
                  a1p_ref):                       # VMEM scratch (10, 10, TB, 64) bf16
    TB = out_ref.shape[0]
    HW = 8
    R = HW * HW * TB                              # rows, ordered (h, w, b)

    # ---- conv1 + ReLU: single K=18 matmul ------------------------------------
    p1 = xcol_ref[...].reshape(R, 18).astype(jnp.bfloat16)
    a1 = jnp.dot(p1, w1_ref[...], preferred_element_type=jnp.float32) + b1_ref[...]
    a1 = jnp.maximum(a1, 0.0).astype(jnp.bfloat16)                  # (R, 64)

    # ---- place conv1 output into zero-padded halo scratch --------------------
    a1p_ref[...] = jnp.zeros(a1p_ref.shape, a1p_ref.dtype)
    a1p_ref[1:9, 1:9, :, :] = a1.reshape(HW, HW, TB, 64)

    # ---- conv2 + ReLU: 9-tap accumulation (K=64 per tap), f32 accumulator ----
    acc2 = jnp.zeros((R, 128), jnp.float32)
    for t in range(9):
        i, j = divmod(t, 3)
        p2 = a1p_ref[i:i + HW, j:j + HW, :, :].reshape(R, 64)       # bf16
        acc2 = acc2 + jnp.dot(p2, w2_ref[t], preferred_element_type=jnp.float32)
    a2 = jnp.maximum(acc2 + b2_ref[...], 0.0)                       # (R, 128), rows (h, w, b)

    # ---- fused 2x2 maxpool + flatten ------------------------------------------
    # pooled chunk for spatial position s = ph*4 + pw occupies lanes [s*128, s*128+128);
    # wl1 is pre-permuted so this matches PyTorch's NCHW flatten ordering.
    def row_block(h, w):                                            # (TB, 128)
        start = (h * HW + w) * TB
        return a2[start:start + TB]

    chunks = []
    for ph in range(4):
        for pw in range(4):
            m = jnp.maximum(
                jnp.maximum(row_block(2 * ph, 2 * pw), row_block(2 * ph, 2 * pw + 1)),
                jnp.maximum(row_block(2 * ph + 1, 2 * pw), row_block(2 * ph + 1, 2 * pw + 1)))
            chunks.append(m)
    flat = jnp.concatenate(chunks, axis=1).astype(jnp.bfloat16)     # (TB, 2048)

    # ---- FC stack (bf16 MXU inputs, f32 accumulate) ---------------------------
    h = jnp.dot(flat, wl1_ref[...], preferred_element_type=jnp.float32) + bl1_ref[...]
    h = jnp.maximum(h, 0.0).astype(jnp.bfloat16)                    # (TB, 256)
    h = jnp.dot(h, wl2_ref[...], preferred_element_type=jnp.float32) + bl2_ref[...]
    h = jnp.maximum(h, 0.0).astype(jnp.bfloat16)                    # (TB, 128)
    h = jnp.dot(h, wl3_ref[...], preferred_element_type=jnp.float32) + bl3_ref[...]
    out_ref[...] = (1.0 / (1.0 + jnp.exp(-h))).astype(out_ref.dtype)  # sigmoid


# ----------------------------------------------------------------------------
# Wrapper: input prep (tiny) + single pallas_call
# ----------------------------------------------------------------------------
def _prep_input(x, b_pad):
    """(B, 2, 8, 8) NCHW -> im2col'd, spatial-major / batch-sublane (8, 8, B_pad, 18)."""
    B = x.shape[0]
    xp = jnp.pad(x.astype(jnp.float32), ((0, b_pad - B), (0, 0), (1, 1), (1, 1)))
    taps = [xp[:, :, i:i + 8, j:j + 8] for i in range(3) for j in range(3)]
    p = jnp.stack(taps, axis=1)                    # (B_pad, 9, 2, 8, 8)
    p = p.transpose(3, 4, 0, 1, 2)                 # (8, 8, B_pad, 9, 2) -> col = tap*2 + c
    return p.reshape(8, 8, b_pad, 18)


def nn_forward(kp, x):
    B = x.shape[0]
    b_pad = ((B + TILE_B - 1) // TILE_B) * TILE_B
    xcol = _prep_input(x, b_pad)

    out = pl.pallas_call(
        _fused_kernel,
        out_shape=jax.ShapeDtypeStruct((b_pad, 64), jnp.float32),
        grid=(b_pad // TILE_B,),
        in_specs=[
            pl.BlockSpec((8, 8, TILE_B, 18), lambda b: (0, 0, b, 0)),   # im2col'd input
            pl.BlockSpec((18, 64), lambda b: (0, 0)),                   # conv1 weight
            pl.BlockSpec((1, 64), lambda b: (0, 0)),                    # conv1 bias
            pl.BlockSpec((9, 64, 128), lambda b: (0, 0, 0)),            # conv2 weight (per tap)
            pl.BlockSpec((1, 128), lambda b: (0, 0)),                   # conv2 bias
            pl.BlockSpec((2048, 256), lambda b: (0, 0)),                # fc1 weight
            pl.BlockSpec((1, 256), lambda b: (0, 0)),                   # fc1 bias
            pl.BlockSpec((256, 128), lambda b: (0, 0)),                 # fc2 weight
            pl.BlockSpec((1, 128), lambda b: (0, 0)),                   # fc2 bias
            pl.BlockSpec((128, 64), lambda b: (0, 0)),                  # fc3 weight
            pl.BlockSpec((1, 64), lambda b: (0, 0)),                    # fc3 bias
        ],
        out_specs=pl.BlockSpec((TILE_B, 64), lambda b: (b, 0)),
        scratch_shapes=[pltpu.VMEM((10, 10, TILE_B, 64), jnp.bfloat16)],
        compiler_params=pltpu.CompilerParams(dimension_semantics=("parallel",)),
    )(xcol, kp["w1"], kp["b1"], kp["w2"], kp["b2"],
      kp["wl1"], kp["bl1"], kp["wl2"], kp["bl2"], kp["wl3"], kp["bl3"])
    return out[:B]


# ----------------------------------------------------------------------------
# Parameters (PyTorch layout) + one-time kernel-layout preparation
# ----------------------------------------------------------------------------
def init_params(key):
    ks = jax.random.split(key, 10)

    def u(k, shape, fan_in):
        bound = float(fan_in) ** -0.5
        return jax.random.uniform(k, shape, jnp.float32, -bound, bound)

    return {
        "c1_w": u(ks[0], (64, 2, 3, 3), 2 * 9),
        "c1_b": u(ks[1], (64,), 2 * 9),
        "c2_w": u(ks[2], (128, 64, 3, 3), 64 * 9),
        "c2_b": u(ks[3], (128,), 64 * 9),
        "l1_w": u(ks[4], (256, 4 * 4 * 128), 4 * 4 * 128),
        "l1_b": u(ks[5], (256,), 4 * 4 * 128),
        "l2_w": u(ks[6], (128, 256), 256),
        "l2_b": u(ks[7], (64 * 2,), 256)[:128].reshape(128,),  # keep shape (128,)
        "l3_w": u(ks[8], (64, 128), 128),
        "l3_b": u(ks[9], (64,), 128),
    }


def prepare_params(params):
    """One-time conversion of PyTorch-layout params into kernel layout (bf16 MXU weights)."""
    bf = lambda a: a.astype(jnp.bfloat16)
    row = lambda a: a.reshape(1, -1).astype(jnp.float32)
    # conv weights: (O, Cin, 3, 3) -> (tap, Cin, O); conv1 flattened to (18, O).
    w1 = bf(jnp.transpose(params["c1_w"], (2, 3, 1, 0)).reshape(18, 64))
    w2 = bf(jnp.transpose(params["c2_w"], (2, 3, 1, 0)).reshape(9, 64, 128))
    # fc1: reorder rows from PyTorch flatten order (c*16 + s) to kernel order (s*128 + c).
    wl1 = bf(jnp.transpose(params["l1_w"].reshape(256, 128, 16), (2, 1, 0)).reshape(2048, 256))
    wl2 = bf(params["l2_w"].T)
    wl3 = bf(params["l3_w"].T)
    return dict(w1=w1, b1=row(params["c1_b"]),
                w2=w2, b2=row(params["c2_b"]),
                wl1=wl1, bl1=row(params["l1_b"]),
                wl2=wl2, bl2=row(params["l2_b"]),
                wl3=wl3, bl3=row(params["l3_b"]))


# ----------------------------------------------------------------------------
# Pure-JAX reference (bf16-rounded weights to match the kernel's MXU inputs)
# ----------------------------------------------------------------------------
def nn_reference(params, x):
    rw = lambda a: a.astype(jnp.bfloat16).astype(jnp.float32)
    dn = ("NCHW", "OIHW", "NCHW")
    y = jax.lax.conv_general_dilated(x, rw(params["c1_w"]), (1, 1), "SAME",
                                     dimension_numbers=dn)
    y = jax.nn.relu(y + params["c1_b"][None, :, None, None])
    y = jax.lax.conv_general_dilated(y, rw(params["c2_w"]), (1, 1), "SAME",
                                     dimension_numbers=dn)
    y = jax.nn.relu(y + params["c2_b"][None, :, None, None])
    y = jax.lax.reduce_window(y, -jnp.inf, jax.lax.max, (1, 1, 2, 2), (1, 1, 2, 2), "VALID")
    y = y.reshape(y.shape[0], -1)
    y = jax.nn.relu(y @ rw(params["l1_w"]).T + params["l1_b"])
    y = jax.nn.relu(y @ rw(params["l2_w"]).T + params["l2_b"])
    return jax.nn.sigmoid(y @ rw(params["l3_w"]).T + params["l3_b"])


if __name__ == "__main__":
    key = jax.random.PRNGKey(0)
    pkey, xkey = jax.random.split(key)
    params = init_params(pkey)
    kparams = prepare_params(params)

    B = 2
    x = jax.random.normal(xkey, (B, 2, 8, 8), dtype=jnp.float32)

    fwd = jax.jit(nn_forward)
    logits = fwd(kparams, x)
    jax.block_until_ready(logits)

    assert logits.shape == (B, 64), logits.shape
    assert logits.dtype == jnp.float32
    assert bool(jnp.all(jnp.isfinite(logits)))
    assert bool(jnp.all((logits >= 0.0) & (logits <= 1.0)))

    ref = nn_reference(params, x)
    err = float(jnp.max(jnp.abs(logits - ref)))
    assert err < 5e-2, f"max abs err vs reference: {err}"
    print("KERNEL_OK")
</pallas_src>

<mosaic_0001>
module attributes {stable_mosaic.version = 11 : i64} {
  func.func @_fused_kernel(%arg0: i32, %arg1: memref<8x8x8x18xf32, #tpu.memory_space<vmem>>, %arg2: memref<18x64xbf16, #tpu.memory_space<vmem>>, %arg3: memref<1x64xf32, #tpu.memory_space<vmem>>, %arg4: memref<9x64x128xbf16, #tpu.memory_space<vmem>>, %arg5: memref<1x128xf32, #tpu.memory_space<vmem>>, %arg6: memref<2048x256xbf16, #tpu.memory_space<vmem>>, %arg7: memref<1x256xf32, #tpu.memory_space<vmem>>, %arg8: memref<256x128xbf16, #tpu.memory_space<vmem>>, %arg9: memref<1x128xf32, #tpu.memory_space<vmem>>, %arg10: memref<128x64xbf16, #tpu.memory_space<vmem>>, %arg11: memref<1x64xf32, #tpu.memory_space<vmem>>, %arg12: memref<8x64xf32, #tpu.memory_space<vmem>>, %arg13: memref<10x10x8x64xbf16, #tpu.memory_space<vmem>>) attributes {dimension_semantics = [#tpu.dimension_semantics<parallel>], iteration_bounds = array<i64: 1>, scalar_prefetch = 0 : i64, scratch_operands = 1 : i64, tpu.core_type = #tpu.core_type<tc>, window_params = [{transform_indices = @transform_0, window_bounds = array<i64: 8, 8, 8, 18>}, {pipeline_mode = #tpu.pipeline_mode<synchronous>, transform_indices = @transform_1, window_bounds = array<i64: 18, 64>}, {pipeline_mode = #tpu.pipeline_mode<synchronous>, transform_indices = @transform_2, window_bounds = array<i64: 1, 64>}, {pipeline_mode = #tpu.pipeline_mode<synchronous>, transform_indices = @transform_3, window_bounds = array<i64: 9, 64, 128>}, {pipeline_mode = #tpu.pipeline_mode<synchronous>, transform_indices = @transform_4, window_bounds = array<i64: 1, 128>}, {pipeline_mode = #tpu.pipeline_mode<synchronous>, transform_indices = @transform_5, window_bounds = array<i64: 2048, 256>}, {pipeline_mode = #tpu.pipeline_mode<synchronous>, transform_indices = @transform_6, window_bounds = array<i64: 1, 256>}, {pipeline_mode = #tpu.pipeline_mode<synchronous>, transform_indices = @transform_7, window_bounds = array<i64: 256, 128>}, {pipeline_mode = #tpu.pipeline_mode<synchronous>, transform_indices = @transform_8, window_bounds = array<i64: 1, 128>}, {pipeline_mode = #tpu.pipeline_mode<synchronous>, transform_indices = @transform_9, window_bounds = array<i64: 128, 64>}, {pipeline_mode = #tpu.pipeline_mode<synchronous>, transform_indices = @transform_10, window_bounds = array<i64: 1, 64>}, {transform_indices = @transform_11, window_bounds = array<i64: 8, 64>}]} {
    %c0 = arith.constant 0 : index
    %c0_0 = arith.constant 0 : index
    %c0_1 = arith.constant 0 : index
    %c0_2 = arith.constant 0 : index
    %0 = vector.load %arg1[%c0, %c0_0, %c0_1, %c0_2] : memref<8x8x8x18xf32, #tpu.memory_space<vmem>>, vector<8x8x8x18xf32>
    %1 = vector.shape_cast %0 : vector<8x8x8x18xf32> to vector<512x18xf32>
    %2 = arith.truncf %1 : vector<512x18xf32> to vector<512x18xbf16>
    %c0_3 = arith.constant 0 : index
    %c0_4 = arith.constant 0 : index
    %3 = vector.load %arg2[%c0_3, %c0_4] : memref<18x64xbf16, #tpu.memory_space<vmem>>, vector<18x64xbf16>
    %cst = arith.constant dense<0.000000e+00> : vector<512x64xf32>
    %4 = tpu.matmul %2, %3, %cst {dimension_numbers = #tpu.dot_dimension_numbers<[1], [0], [0], [1], [0, 0, 1, 1], [], []>} : vector<512x18xbf16>, vector<18x64xbf16>, vector<512x64xf32> -> vector<512x64xf32>
    %c0_5 = arith.constant 0 : index
    %c0_6 = arith.constant 0 : index
    %5 = vector.load %arg3[%c0_5, %c0_6] : memref<1x64xf32, #tpu.memory_space<vmem>>, vector<1x64xf32>
    %6 = vector.broadcast %5 : vector<1x64xf32> to vector<512x64xf32>
    %7 = arith.addf %4, %6 : vector<512x64xf32>
    %cst_7 = arith.constant 0.000000e+00 : f32
    %8 = vector.broadcast %cst_7 : f32 to vector<512x64xf32>
    %9 = arith.maximumf %7, %8 : vector<512x64xf32>
    %10 = arith.truncf %9 : vector<512x64xf32> to vector<512x64xbf16>
    %cst_8 = arith.constant 0.000000e+00 : bf16
    %11 = vector.broadcast %cst_8 : bf16 to vector<10x10x8x64xbf16>
    %c0_9 = arith.constant 0 : index
    %c0_10 = arith.constant 0 : index
    %c0_11 = arith.constant 0 : index
    %c0_12 = arith.constant 0 : index
    %12 = vector.load %arg13[%c0_9, %c0_10, %c0_11, %c0_12] : memref<10x10x8x64xbf16, #tpu.memory_space<vmem>>, vector<10x10x8x64xbf16>
    tpu.vector_store %arg13[%c0_9, %c0_10, %c0_11, %c0_12], %11 {strides = array<i32>} : memref<10x10x8x64xbf16, #tpu.memory_space<vmem>>, vector<10x10x8x64xbf16>,
    %13 = vector.shape_cast %10 : vector<512x64xbf16> to vector<8x8x8x64xbf16>
    %c1 = arith.constant 1 : index
    %c1_13 = arith.constant 1 : index
    %c0_14 = arith.constant 0 : index
    %c0_15 = arith.constant 0 : index
    %14 = vector.load %arg13[%c1, %c1_13, %c0_14, %c0_15] : memref<10x10x8x64xbf16, #tpu.memory_space<vmem>>, vector<8x8x8x64xbf16>
    tpu.vector_store %arg13[%c1, %c1_13, %c0_14, %c0_15], %13 {strides = array<i32>} : memref<10x10x8x64xbf16, #tpu.memory_space<vmem>>, vector<8x8x8x64xbf16>,
    %cst_16 = arith.constant 0.000000e+00 : f32
    %15 = vector.broadcast %cst_16 : f32 to vector<512x128xf32>
    %c0_17 = arith.constant 0 : index
    %c0_18 = arith.constant 0 : index
    %c0_19 = arith.constant 0 : index
    %c0_20 = arith.constant 0 : index
    %16 = vector.load %arg13[%c0_17, %c0_18, %c0_19, %c0_20] : memref<10x10x8x64xbf16, #tpu.memory_space<vmem>>, vector<8x8x8x64xbf16>
    %17 = vector.shape_cast %16 : vector<8x8x8x64xbf16> to vector<512x64xbf16>
    %c0_21 = arith.constant 0 : index
    %c0_22 = arith.constant 0 : index
    %c0_23 = arith.constant 0 : index
    %18 = vector.load %arg4[%c0_21, %c0_22, %c0_23] : memref<9x64x128xbf16, #tpu.memory_space<vmem>>, vector<1x64x128xbf16>
    %19 = vector.shape_cast %18 : vector<1x64x128xbf16> to vector<64x128xbf16>
    %cst_24 = arith.constant dense<0.000000e+00> : vector<512x128xf32>
    %20 = tpu.matmul %17, %19, %cst_24 {dimension_numbers = #tpu.dot_dimension_numbers<[1], [0], [0], [1], [0, 0, 1, 1], [], []>} : vector<512x64xbf16>, vector<64x128xbf16>, vector<512x128xf32> -> vector<512x128xf32>
    %21 = arith.addf %15, %20 : vector<512x128xf32>
    %c0_25 = arith.constant 0 : index
    %c1_26 = arith.constant 1 : index
    %c0_27 = arith.constant 0 : index
    %c0_28 = arith.constant 0 : index
    %22 = vector.load %arg13[%c0_25, %c1_26, %c0_27, %c0_28] : memref<10x10x8x64xbf16, #tpu.memory_space<vmem>>, vector<8x8x8x64xbf16>
    %23 = vector.shape_cast %22 : vector<8x8x8x64xbf16> to vector<512x64xbf16>
    %c1_29 = arith.constant 1 : index
    %c0_30 = arith.constant 0 : index
    %c0_31 = arith.constant 0 : index
    %24 = vector.load %arg4[%c1_29, %c0_30, %c0_31] : memref<9x64x128xbf16, #tpu.memory_space<vmem>>, vector<1x64x128xbf16>
    %25 = vector.shape_cast %24 : vector<1x64x128xbf16> to vector<64x128xbf16>
    %cst_32 = arith.constant dense<0.000000e+00> : vector<512x128xf32>
    %26 = tpu.matmul %23, %25, %cst_32 {dimension_numbers = #tpu.dot_dimension_numbers<[1], [0], [0], [1], [0, 0, 1, 1], [], []>} : vector<512x64xbf16>, vector<64x128xbf16>, vector<512x128xf32> -> vector<512x128xf32>
    %27 = arith.addf %21, %26 : vector<512x128xf32>
    %c0_33 = arith.constant 0 : index
    %c2 = arith.constant 2 : index
    %c0_34 = arith.constant 0 : index
    %c0_35 = arith.constant 0 : index
    %28 = vector.load %arg13[%c0_33, %c2, %c0_34, %c0_35] : memref<10x10x8x64xbf16, #tpu.memory_space<vmem>>, vector<8x8x8x64xbf16>
    %29 = vector.shape_cast %28 : vector<8x8x8x64xbf16> to vector<512x64xbf16>
    %c2_36 = arith.constant 2 : index
    %c0_37 = arith.constant 0 : index
    %c0_38 = arith.constant 0 : index
    %30 = vector.load %arg4[%c2_36, %c0_37, %c0_38] : memref<9x64x128xbf16, #tpu.memory_space<vmem>>, vector<1x64x128xbf16>
    %31 = vector.shape_cast %30 : vector<1x64x128xbf16> to vector<64x128xbf16>
    %cst_39 = arith.constant dense<0.000000e+00> : vector<512x128xf32>
    %32 = tpu.matmul %29, %31, %cst_39 {dimension_numbers = #tpu.dot_dimension_numbers<[1], [0], [0], [1], [0, 0, 1, 1], [], []>} : vector<512x64xbf16>, vector<64x128xbf16>, vector<512x128xf32> -> vector<512x128xf32>
    %33 = arith.addf %27, %32 : vector<512x128xf32>
    %c1_40 = arith.constant 1 : index
    %c0_41 = arith.constant 0 : index
    %c0_42 = arith.constant 0 : index
    %c0_43 = arith.constant 0 : index
    %34 = vector.load %arg13[%c1_40, %c0_41, %c0_42, %c0_43] : memref<10x10x8x64xbf16, #tpu.memory_space<vmem>>, vector<8x8x8x64xbf16>
    %35 = vector.shape_cast %34 : vector<8x8x8x64xbf16> to vector<512x64xbf16>
    %c3 = arith.constant 3 : index
    %c0_44 = arith.constant 0 : index
    %c0_45 = arith.constant 0 : index
    %36 = vector.load %arg4[%c3, %c0_44, %c0_45] : memref<9x64x128xbf16, #tpu.memory_space<vmem>>, vector<1x64x128xbf16>
    %37 = vector.shape_cast %36 : vector<1x64x128xbf16> to vector<64x128xbf16>
    %cst_46 = arith.constant dense<0.000000e+00> : vector<512x128xf32>
    %38 = tpu.matmul %35, %37, %cst_46 {dimension_numbers = #tpu.dot_dimension_numbers<[1], [0], [0], [1], [0, 0, 1, 1], [], []>} : vector<512x64xbf16>, vector<64x128xbf16>, vector<512x128xf32> -> vector<512x128xf32>
    %39 = arith.addf %33, %38 : vector<512x128xf32>
    %c1_47 = arith.constant 1 : index
    %c1_48 = arith.constant 1 : index
    %c0_49 = arith.constant 0 : index
    %c0_50 = arith.constant 0 : index
    %40 = vector.load %arg13[%c1_47, %c1_48, %c0_49, %c0_50] : memref<10x10x8x64xbf16, #tpu.memory_space<vmem>>, vector<8x8x8x64xbf16>
    %41 = vector.shape_cast %40 : vector<8x8x8x64xbf16> to vector<512x64xbf16>
    %c4 = arith.constant 4 : index
    %c0_51 = arith.constant 0 : index
    %c0_52 = arith.constant 0 : index
    %42 = vector.load %arg4[%c4, %c0_51, %c0_52] : memref<9x64x128xbf16, #tpu.memory_space<vmem>>, vector<1x64x128xbf16>
    %43 = vector.shape_cast %42 : vector<1x64x128xbf16> to vector<64x128xbf16>
    %cst_53 = arith.constant dense<0.000000e+00> : vector<512x128xf32>
    %44 = tpu.matmul %41, %43, %cst_53 {dimension_numbers = #tpu.dot_dimension_numbers<[1], [0], [0], [1], [0, 0, 1, 1], [], []>} : vector<512x64xbf16>, vector<64x128xbf16>, vector<512x128xf32> -> vector<512x128xf32>
    %45 = arith.addf %39, %44 : vector<512x128xf32>
    %c1_54 = arith.constant 1 : index
    %c2_55 = arith.constant 2 : index
    %c0_56 = arith.constant 0 : index
    %c0_57 = arith.constant 0 : index
    %46 = vector.load %arg13[%c1_54, %c2_55, %c0_56, %c0_57] : memref<10x10x8x64xbf16, #tpu.memory_space<vmem>>, vector<8x8x8x64xbf16>
    %47 = vector.shape_cast %46 : vector<8x8x8x64xbf16> to vector<512x64xbf16>
    %c5 = arith.constant 5 : index
    %c0_58 = arith.constant 0 : index
    %c0_59 = arith.constant 0 : index
    %48 = vector.load %arg4[%c5, %c0_58, %c0_59] : memref<9x64x128xbf16, #tpu.memory_space<vmem>>, vector<1x64x128xbf16>
    %49 = vector.shape_cast %48 : vector<1x64x128xbf16> to vector<64x128xbf16>
    %cst_60 = arith.constant dense<0.000000e+00> : vector<512x128xf32>
    %50 = tpu.matmul %47, %49, %cst_60 {dimension_numbers = #tpu.dot_dimension_numbers<[1], [0], [0], [1], [0, 0, 1, 1], [], []>} : vector<512x64xbf16>, vector<64x128xbf16>, vector<512x128xf32> -> vector<512x128xf32>
    %51 = arith.addf %45, %50 : vector<512x128xf32>
    %c2_61 = arith.constant 2 : index
    %c0_62 = arith.constant 0 : index
    %c0_63 = arith.constant 0 : index
    %c0_64 = arith.constant 0 : index
    %52 = vector.load %arg13[%c2_61, %c0_62, %c0_63, %c0_64] : memref<10x10x8x64xbf16, #tpu.memory_space<vmem>>, vector<8x8x8x64xbf16>
    %53 = vector.shape_cast %52 : vector<8x8x8x64xbf16> to vector<512x64xbf16>
    %c6 = arith.constant 6 : index
    %c0_65 = arith.constant 0 : index
    %c0_66 = arith.constant 0 : index
    %54 = vector.load %arg4[%c6, %c0_65, %c0_66] : memref<9x64x128xbf16, #tpu.memory_space<vmem>>, vector<1x64x128xbf16>
    %55 = vector.shape_cast %54 : vector<1x64x128xbf16> to vector<64x128xbf16>
    %cst_67 = arith.constant dense<0.000000e+00> : vector<512x128xf32>
    %56 = tpu.matmul %53, %55, %cst_67 {dimension_numbers = #tpu.dot_dimension_numbers<[1], [0], [0], [1], [0, 0, 1, 1], [], []>} : vector<512x64xbf16>, vector<64x128xbf16>, vector<512x128xf32> -> vector<512x128xf32>
    %57 = arith.addf %51, %56 : vector<512x128xf32>
    %c2_68 = arith.constant 2 : index
    %c1_69 = arith.constant 1 : index
    %c0_70 = arith.constant 0 : index
    %c0_71 = arith.constant 0 : index
    %58 = vector.load %arg13[%c2_68, %c1_69, %c0_70, %c0_71] : memref<10x10x8x64xbf16, #tpu.memory_space<vmem>>, vector<8x8x8x64xbf16>
    %59 = vector.shape_cast %58 : vector<8x8x8x64xbf16> to vector<512x64xbf16>
    %c7 = arith.constant 7 : index
    %c0_72 = arith.constant 0 : index
    %c0_73 = arith.constant 0 : index
    %60 = vector.load %arg4[%c7, %c0_72, %c0_73] : memref<9x64x128xbf16, #tpu.memory_space<vmem>>, vector<1x64x128xbf16>
    %61 = vector.shape_cast %60 : vector<1x64x128xbf16> to vector<64x128xbf16>
    %cst_74 = arith.constant dense<0.000000e+00> : vector<512x128xf32>
    %62 = tpu.matmul %59, %61, %cst_74 {dimension_numbers = #tpu.dot_dimension_numbers<[1], [0], [0], [1], [0, 0, 1, 1], [], []>} : vector<512x64xbf16>, vector<64x128xbf16>, vector<512x128xf32> -> vector<512x128xf32>
    %63 = arith.addf %57, %62 : vector<512x128xf32>
    %c2_75 = arith.constant 2 : index
    %c2_76 = arith.constant 2 : index
    %c0_77 = arith.constant 0 : index
    %c0_78 = arith.constant 0 : index
    %64 = vector.load %arg13[%c2_75, %c2_76, %c0_77, %c0_78] : memref<10x10x8x64xbf16, #tpu.memory_space<vmem>>, vector<8x8x8x64xbf16>
    %65 = vector.shape_cast %64 : vector<8x8x8x64xbf16> to vector<512x64xbf16>
    %c8 = arith.constant 8 : index
    %c0_79 = arith.constant 0 : index
    %c0_80 = arith.constant 0 : index
    %66 = vector.load %arg4[%c8, %c0_79, %c0_80] : memref<9x64x128xbf16, #tpu.memory_space<vmem>>, vector<1x64x128xbf16>
    %67 = vector.shape_cast %66 : vector<1x64x128xbf16> to vector<64x128xbf16>
    %cst_81 = arith.constant dense<0.000000e+00> : vector<512x128xf32>
    %68 = tpu.matmul %65, %67, %cst_81 {dimension_numbers = #tpu.dot_dimension_numbers<[1], [0], [0], [1], [0, 0, 1, 1], [], []>} : vector<512x64xbf16>, vector<64x128xbf16>, vector<512x128xf32> -> vector<512x128xf32>
    %69 = arith.addf %63, %68 : vector<512x128xf32>
    %c0_82 = arith.constant 0 : index
    %c0_83 = arith.constant 0 : index
    %70 = vector.load %arg5[%c0_82, %c0_83] : memref<1x128xf32, #tpu.memory_space<vmem>>, vector<1x128xf32>
    %71 = vector.broadcast %70 : vector<1x128xf32> to vector<512x128xf32>
    %72 = arith.addf %69, %71 : vector<512x128xf32>
    %cst_84 = arith.constant 0.000000e+00 : f32
    %73 = vector.broadcast %cst_84 : f32 to vector<512x128xf32>
    %74 = arith.maximumf %72, %73 : vector<512x128xf32>
    %75 = vector.extract_strided_slice %74 {offsets = [0, 0], sizes = [8, 128], strides = [1, 1]} : vector<512x128xf32> to vector<8x128xf32>
    %76 = vector.extract_strided_slice %74 {offsets = [8, 0], sizes = [8, 128], strides = [1, 1]} : vector<512x128xf32> to vector<8x128xf32>
    %77 = arith.maximumf %75, %76 : vector<8x128xf32>
    %78 = vector.extract_strided_slice %74 {offsets = [64, 0], sizes = [8, 128], strides = [1, 1]} : vector<512x128xf32> to vector<8x128xf32>
    %79 = vector.extract_strided_slice %74 {offsets = [72, 0], sizes = [8, 128], strides = [1, 1]} : vector<512x128xf32> to vector<8x128xf32>
    %80 = arith.maximumf %78, %79 : vector<8x128xf32>
    %81 = arith.maximumf %77, %80 : vector<8x128xf32>
    %82 = vector.extract_strided_slice %74 {offsets = [16, 0], sizes = [8, 128], strides = [1, 1]} : vector<512x128xf32> to vector<8x128xf32>
    %83 = vector.extract_strided_slice %74 {offsets = [24, 0], sizes = [8, 128], strides = [1, 1]} : vector<512x128xf32> to vector<8x128xf32>
    %84 = arith.maximumf %82, %83 : vector<8x128xf32>
    %85 = vector.extract_strided_slice %74 {offsets = [80, 0], sizes = [8, 128], strides = [1, 1]} : vector<512x128xf32> to vector<8x128xf32>
    %86 = vector.extract_strided_slice %74 {offsets = [88, 0], sizes = [8, 128], strides = [1, 1]} : vector<512x128xf32> to vector<8x128xf32>
    %87 = arith.maximumf %85, %86 : vector<8x128xf32>
    %88 = arith.maximumf %84, %87 : vector<8x128xf32>
    %89 = vector.extract_strided_slice %74 {offsets = [32, 0], sizes = [8, 128], strides = [1, 1]} : vector<512x128xf32> to vector<8x128xf32>
    %90 = vector.extract_strided_slice %74 {offsets = [40, 0], sizes = [8, 128], strides = [1, 1]} : vector<512x128xf32> to vector<8x128xf32>
    %91 = arith.maximumf %89, %90 : vector<8x128xf32>
    %92 = vector.extract_strided_slice %74 {offsets = [96, 0], sizes = [8, 128], strides = [1, 1]} : vector<512x128xf32> to vector<8x128xf32>
    %93 = vector.extract_strided_slice %74 {offsets = [104, 0], sizes = [8, 128], strides = [1, 1]} : vector<512x128xf32> to vector<8x128xf32>
    %94 = arith.maximumf %92, %93 : vector<8x128xf32>
    %95 = arith.maximumf %91, %94 : vector<8x128xf32>
    %96 = vector.extract_strided_slice %74 {offsets = [48, 0], sizes = [8, 128], strides = [1, 1]} : vector<512x128xf32> to vector<8x128xf32>
    %97 = vector.extract_strided_slice %74 {offsets = [56, 0], sizes = [8, 128], strides = [1, 1]} : vector<512x128xf32> to vector<8x128xf32>
    %98 = arith.maximumf %96, %97 : vector<8x128xf32>
    %99 = vector.extract_strided_slice %74 {offsets = [112, 0], sizes = [8, 128], strides = [1, 1]} : vector<512x128xf32> to vector<8x128xf32>
    %100 = vector.extract_strided_slice %74 {offsets = [120, 0], sizes = [8, 128], strides = [1, 1]} : vector<512x128xf32> to vector<8x128xf32>
    %101 = arith.maximumf %99, %100 : vector<8x128xf32>
    %102 = arith.maximumf %98, %101 : vector<8x128xf32>
    %103 = vector.extract_strided_slice %74 {offsets = [128, 0], sizes = [8, 128], strides = [1, 1]} : vector<512x128xf32> to vector<8x128xf32>
    %104 = vector.extract_strided_slice %74 {offsets = [136, 0], sizes = [8, 128], strides = [1, 1]} : vector<512x128xf32> to vector<8x128xf32>
    %105 = arith.maximumf %103, %104 : vector<8x128xf32>
    %106 = vector.extract_strided_slice %74 {offsets = [192, 0], sizes = [8, 128], strides = [1, 1]} : vector<512x128xf32> to vector<8x128xf32>
    %107 = vector.extract_strided_slice %74 {offsets = [200, 0], sizes = [8, 128], strides = [1, 1]} : vector<512x128xf32> to vector<8x128xf32>
    %108 = arith.maximumf %106, %107 : vector<8x128xf32>
    %109 = arith.maximumf %105, %108 : vector<8x128xf32>
    %110 = vector.extract_strided_slice %74 {offsets = [144, 0], sizes = [8, 128], strides = [1, 1]} : vector<512x128xf32> to vector<8x128xf32>
    %111 = vector.extract_strided_slice %74 {offsets = [152, 0], sizes = [8, 128], strides = [1, 1]} : vector<512x128xf32> to vector<8x128xf32>
    %112 = arith.maximumf %110, %111 : vector<8x128xf32>
    %113 = vector.extract_strided_slice %74 {offsets = [208, 0], sizes = [8, 128], strides = [1, 1]} : vector<512x128xf32> to vector<8x128xf32>
    %114 = vector.extract_strided_slice %74 {offsets = [216, 0], sizes = [8, 128], strides = [1, 1]} : vector<512x128xf32> to vector<8x128xf32>
    %115 = arith.maximumf %113, %114 : vector<8x128xf32>
    %116 = arith.maximumf %112, %115 : vector<8x128xf32>
    %117 = vector.extract_strided_slice %74 {offsets = [160, 0], sizes = [8, 128], strides = [1, 1]} : vector<512x128xf32> to vector<8x128xf32>
    %118 = vector.extract_strided_slice %74 {offsets = [168, 0], sizes = [8, 128], strides = [1, 1]} : vector<512x128xf32> to vector<8x128xf32>
    %119 = arith.maximumf %117, %118 : vector<8x128xf32>
    %120 = vector.extract_strided_slice %74 {offsets = [224, 0], sizes = [8, 128], strides = [1, 1]} : vector<512x128xf32> to vector<8x128xf32>
    %121 = vector.extract_strided_slice %74 {offsets = [232, 0], sizes = [8, 128], strides = [1, 1]} : vector<512x128xf32> to vector<8x128xf32>
    %122 = arith.maximumf %120, %121 : vector<8x128xf32>
    %123 = arith.maximumf %119, %122 : vector<8x128xf32>
    %124 = vector.extract_strided_slice %74 {offsets = [176, 0], sizes = [8, 128], strides = [1, 1]} : vector<512x128xf32> to vector<8x128xf32>
    %125 = vector.extract_strided_slice %74 {offsets = [184, 0], sizes = [8, 128], strides = [1, 1]} : vector<512x128xf32> to vector<8x128xf32>
    %126 = arith.maximumf %124, %125 : vector<8x128xf32>
    %127 = vector.extract_strided_slice %74 {offsets = [240, 0], sizes = [8, 128], strides = [1, 1]} : vector<512x128xf32> to vector<8x128xf32>
    %128 = vector.extract_strided_slice %74 {offsets = [248, 0], sizes = [8, 128], strides = [1, 1]} : vector<512x128xf32> to vector<8x128xf32>
    %129 = arith.maximumf %127, %128 : vector<8x128xf32>
    %130 = arith.maximumf %126, %129 : vector<8x128xf32>
    %131 = vector.extract_strided_slice %74 {offsets = [256, 0], sizes = [8, 128], strides = [1, 1]} : vector<512x128xf32> to vector<8x128xf32>
    %132 = vector.extract_strided_slice %74 {offsets = [264, 0], sizes = [8, 128], strides = [1, 1]} : vector<512x128xf32> to vector<8x128xf32>
    %133 = arith.maximumf %131, %132 : vector<8x128xf32>
    %134 = vector.extract_strided_slice %74 {offsets = [320, 0], sizes = [8, 128], strides = [1, 1]} : vector<512x128xf32> to vector<8x128xf32>
    %135 = vector.extract_strided_slice %74 {offsets = [328, 0], sizes = [8, 128], strides = [1, 1]} : vector<512x128xf32> to vector<8x128xf32>
    %136 = arith.maximumf %134, %135 : vector<8x128xf32>
    %137 = arith.maximumf %133, %136 : vector<8x128xf32>
    %138 = vector.extract_strided_slice %74 {offsets = [272, 0], sizes = [8, 128], strides = [1, 1]} : vector<512x128xf32> to vector<8x128xf32>
    %139 = vector.extract_strided_slice %74 {offsets = [280, 0], sizes = [8, 128], strides = [1, 1]} : vector<512x128xf32> to vector<8x128xf32>
    %140 = arith.maximumf %138, %139 : vector<8x128xf32>
    %141 = vector.extract_strided_slice %74 {offsets = [336, 0], sizes = [8, 128], strides = [1, 1]} : vector<512x128xf32> to vector<8x128xf32>
    %142 = vector.extract_strided_slice %74 {offsets = [344, 0], sizes = [8, 128], strides = [1, 1]} : vector<512x128xf32> to vector<8x128xf32>
    %143 = arith.maximumf %141, %142 : vector<8x128xf32>
    %144 = arith.maximumf %140, %143 : vector<8x128xf32>
    %145 = vector.extract_strided_slice %74 {offsets = [288, 0], sizes = [8, 128], strides = [1, 1]} : vector<512x128xf32> to vector<8x128xf32>
    %146 = vector.extract_strided_slice %74 {offsets = [296, 0], sizes = [8, 128], strides = [1, 1]} : vector<512x128xf32> to vector<8x128xf32>
    %147 = arith.maximumf %145, %146 : vector<8x128xf32>
    %148 = vector.extract_strided_slice %74 {offsets = [352, 0], sizes = [8, 128], strides = [1, 1]} : vector<512x128xf32> to vector<8x128xf32>
    %149 = vector.extract_strided_slice %74 {offsets = [360, 0], sizes = [8, 128], strides = [1, 1]} : vector<512x128xf32> to vector<8x128xf32>
    %150 = arith.maximumf %148, %149 : vector<8x128xf32>
    %151 = arith.maximumf %147, %150 : vector<8x128xf32>
    %152 = vector.extract_strided_slice %74 {offsets = [304, 0], sizes = [8, 128], strides = [1, 1]} : vector<512x128xf32> to vector<8x128xf32>
    %153 = vector.extract_strided_slice %74 {offsets = [312, 0], sizes = [8, 128], strides = [1, 1]} : vector<512x128xf32> to vector<8x128xf32>
    %154 = arith.maximumf %152, %153 : vector<8x128xf32>
    %155 = vector.extract_strided_slice %74 {offsets = [368, 0], sizes = [8, 128], strides = [1, 1]} : vector<512x128xf32> to vector<8x128xf32>
    %156 = vector.extract_strided_slice %74 {offsets = [376, 0], sizes = [8, 128], strides = [1, 1]} : vector<512x128xf32> to vector<8x128xf32>
    %157 = arith.maximumf %155, %156 : vector<8x128xf32>
    %158 = arith.maximumf %154, %157 : vector<8x128xf32>
    %159 = vector.extract_strided_slice %74 {offsets = [384, 0], sizes = [8, 128], strides = [1, 1]} : vector<512x128xf32> to vector<8x128xf32>
    %160 = vector.extract_strided_slice %74 {offsets = [392, 0], sizes = [8, 128], strides = [1, 1]} : vector<512x128xf32> to vector<8x128xf32>
    %161 = arith.maximumf %159, %160 : vector<8x128xf32>
    %162 = vector.extract_strided_slice %74 {offsets = [448, 0], sizes = [8, 128], strides = [1, 1]} : vector<512x128xf32> to vector<8x128xf32>
    %163 = vector.extract_strided_slice %74 {offsets = [456, 0], sizes = [8, 128], strides = [1, 1]} : vector<512x128xf32> to vector<8x128xf32>
    %164 = arith.maximumf %162, %163 : vector<8x128xf32>
    %165 = arith.maximumf %161, %164 : vector<8x128xf32>
    %166 = vector.extract_strided_slice %74 {offsets = [400, 0], sizes = [8, 128], strides = [1, 1]} : vector<512x128xf32> to vector<8x128xf32>
    %167 = vector.extract_strided_slice %74 {offsets = [408, 0], sizes = [8, 128], strides = [1, 1]} : vector<512x128xf32> to vector<8x128xf32>
    %168 = arith.maximumf %166, %167 : vector<8x128xf32>
    %169 = vector.extract_strided_slice %74 {offsets = [464, 0], sizes = [8, 128], strides = [1, 1]} : vector<512x128xf32> to vector<8x128xf32>
    %170 = vector.extract_strided_slice %74 {offsets = [472, 0], sizes = [8, 128], strides = [1, 1]} : vector<512x128xf32> to vector<8x128xf32>
    %171 = arith.maximumf %169, %170 : vector<8x128xf32>
    %172 = arith.maximumf %168, %171 : vector<8x128xf32>
    %173 = vector.extract_strided_slice %74 {offsets = [416, 0], sizes = [8, 128], strides = [1, 1]} : vector<512x128xf32> to vector<8x128xf32>
    %174 = vector.extract_strided_slice %74 {offsets = [424, 0], sizes = [8, 128], strides = [1, 1]} : vector<512x128xf32> to vector<8x128xf32>
    %175 = arith.maximumf %173, %174 : vector<8x128xf32>
    %176 = vector.extract_strided_slice %74 {offsets = [480, 0], sizes = [8, 128], strides = [1, 1]} : vector<512x128xf32> to vector<8x128xf32>
    %177 = vector.extract_strided_slice %74 {offsets = [488, 0], sizes = [8, 128], strides = [1, 1]} : vector<512x128xf32> to vector<8x128xf32>
    %178 = arith.maximumf %176, %177 : vector<8x128xf32>
    %179 = arith.maximumf %175, %178 : vector<8x128xf32>
    %180 = vector.extract_strided_slice %74 {offsets = [432, 0], sizes = [8, 128], strides = [1, 1]} : vector<512x128xf32> to vector<8x128xf32>
    %181 = vector.extract_strided_slice %74 {offsets = [440, 0], sizes = [8, 128], strides = [1, 1]} : vector<512x128xf32> to vector<8x128xf32>
    %182 = arith.maximumf %180, %181 : vector<8x128xf32>
    %183 = vector.extract_strided_slice %74 {offsets = [496, 0], sizes = [8, 128], strides = [1, 1]} : vector<512x128xf32> to vector<8x128xf32>
    %184 = vector.extract_strided_slice %74 {offsets = [504, 0], sizes = [8, 128], strides = [1, 1]} : vector<512x128xf32> to vector<8x128xf32>
    %185 = arith.maximumf %183, %184 : vector<8x128xf32>
    %186 = arith.maximumf %182, %185 : vector<8x128xf32>
    %187 = tpu.concatenate %81, %88, %95, %102, %109, %116, %123, %130, %137, %144, %151, %158, %165, %172, %179, %186 in 1 : vector<8x128xf32>, vector<8x128xf32>, vector<8x128xf32>, vector<8x128xf32>, vector<8x128xf32>, vector<8x128xf32>, vector<8x128xf32>, vector<8x128xf32>, vector<8x128xf32>, vector<8x128xf32>, vector<8x128xf32>, vector<8x128xf32>, vector<8x128xf32>, vector<8x128xf32>, vector<8x128xf32>, vector<8x128xf32> -> vector<8x2048xf32>
    %188 = arith.truncf %187 : vector<8x2048xf32> to vector<8x2048xbf16>
    %c0_85 = arith.constant 0 : index
    %c0_86 = arith.constant 0 : index
    %189 = vector.load %arg6[%c0_85, %c0_86] : memref<2048x256xbf16, #tpu.memory_space<vmem>>, vector<2048x256xbf16>
    %cst_87 = arith.constant dense<0.000000e+00> : vector<8x256xf32>
    %190 = tpu.matmul %188, %189, %cst_87 {dimension_numbers = #tpu.dot_dimension_numbers<[1], [0], [0], [1], [0, 0, 1, 1], [], []>} : vector<8x2048xbf16>, vector<2048x256xbf16>, vector<8x256xf32> -> vector<8x256xf32>
    %c0_88 = arith.constant 0 : index
    %c0_89 = arith.constant 0 : index
    %191 = vector.load %arg7[%c0_88, %c0_89] : memref<1x256xf32, #tpu.memory_space<vmem>>, vector<1x256xf32>
    %192 = vector.broadcast %191 : vector<1x256xf32> to vector<8x256xf32>
    %193 = arith.addf %190, %192 : vector<8x256xf32>
    %cst_90 = arith.constant 0.000000e+00 : f32
    %194 = vector.broadcast %cst_90 : f32 to vector<8x256xf32>
    %195 = arith.maximumf %193, %194 : vector<8x256xf32>
    %196 = arith.truncf %195 : vector<8x256xf32> to vector<8x256xbf16>
    %c0_91 = arith.constant 0 : index
    %c0_92 = arith.constant 0 : index
    %197 = vector.load %arg8[%c0_91, %c0_92] : memref<256x128xbf16, #tpu.memory_space<vmem>>, vector<256x128xbf16>
    %cst_93 = arith.constant dense<0.000000e+00> : vector<8x128xf32>
    %198 = tpu.matmul %196, %197, %cst_93 {dimension_numbers = #tpu.dot_dimension_numbers<[1], [0], [0], [1], [0, 0, 1, 1], [], []>} : vector<8x256xbf16>, vector<256x128xbf16>, vector<8x128xf32> -> vector<8x128xf32>
    %c0_94 = arith.constant 0 : index
    %c0_95 = arith.constant 0 : index
    %199 = vector.load %arg9[%c0_94, %c0_95] : memref<1x128xf32, #tpu.memory_space<vmem>>, vector<1x128xf32>
    %200 = vector.broadcast %199 : vector<1x128xf32> to vector<8x128xf32>
    %201 = arith.addf %198, %200 : vector<8x128xf32>
    %cst_96 = arith.constant 0.000000e+00 : f32
    %202 = vector.broadcast %cst_96 : f32 to vector<8x128xf32>
    %203 = arith.maximumf %201, %202 : vector<8x128xf32>
    %204 = arith.truncf %203 : vector<8x128xf32> to vector<8x128xbf16>
    %c0_97 = arith.constant 0 : index
    %c0_98 = arith.constant 0 : index
    %205 = vector.load %arg10[%c0_97, %c0_98] : memref<128x64xbf16, #tpu.memory_space<vmem>>, vector<128x64xbf16>
    %cst_99 = arith.constant dense<0.000000e+00> : vector<8x64xf32>
    %206 = tpu.matmul %204, %205, %cst_99 {dimension_numbers = #tpu.dot_dimension_numbers<[1], [0], [0], [1], [0, 0, 1, 1], [], []>} : vector<8x128xbf16>, vector<128x64xbf16>, vector<8x64xf32> -> vector<8x64xf32>
    %c0_100 = arith.constant 0 : index
    %c0_101 = arith.constant 0 : index
    %207 = vector.load %arg11[%c0_100, %c0_101] : memref<1x64xf32, #tpu.memory_space<vmem>>, vector<1x64xf32>
    %208 = vector.broadcast %207 : vector<1x64xf32> to vector<8x64xf32>
    %209 = arith.addf %206, %208 : vector<8x64xf32>
    %cst_102 = arith.constant 0.000000e+00 : f32
    %210 = vector.broadcast %cst_102 : f32 to vector<8x64xf32>
    %211 = arith.subf %210, %209 : vector<8x64xf32>
    %212 = math.exp %211 : vector<8x64xf32>
    %cst_103 = arith.constant 1.000000e+00 : f32
    %213 = vector.broadcast %cst_103 : f32 to vector<8x64xf32>
    %214 = arith.addf %213, %212 : vector<8x64xf32>
    %cst_104 = arith.constant 1.000000e+00 : f32
    %215 = vector.broadcast %cst_104 : f32 to vector<8x64xf32>
    %216 = arith.divf %215, %214 : vector<8x64xf32>
    %c0_105 = arith.constant 0 : index
    %c0_106 = arith.constant 0 : index
    %217 = vector.load %arg12[%c0_105, %c0_106] : memref<8x64xf32, #tpu.memory_space<vmem>>, vector<8x64xf32>
    tpu.vector_store %arg12[%c0_105, %c0_106], %216 {strides = array<i32>} : memref<8x64xf32, #tpu.memory_space<vmem>>, vector<8x64xf32>,
    return
  }
  func.func @transform_0(%arg0: i32) -> (i32, i32, i32, i32) {
    %c0_i32 = arith.constant 0 : i32
    %c0_i32_0 = arith.constant 0 : i32
    %c0_i32_1 = arith.constant 0 : i32
    %c0_i32_2 = arith.constant 0 : i32
    return %c0_i32, %c0_i32_0, %arg0, %c0_i32_1 : i32, i32, i32, i32
  }
  func.func @transform_1(%arg0: i32) -> (i32, i32) {
    %c0_i32 = arith.constant 0 : i32
    %c0_i32_0 = arith.constant 0 : i32
    %c0_i32_1 = arith.constant 0 : i32
    return %c0_i32, %c0_i32_0 : i32, i32
  }
  func.func @transform_2(%arg0: i32) -> (i32, i32) {
    %c0_i32 = arith.constant 0 : i32
    %c0_i32_0 = arith.constant 0 : i32
    %c0_i32_1 = arith.constant 0 : i32
    return %c0_i32, %c0_i32_0 : i32, i32
  }
  func.func @transform_3(%arg0: i32) -> (i32, i32, i32) {
    %c0_i32 = arith.constant 0 : i32
    %c0_i32_0 = arith.constant 0 : i32
    %c0_i32_1 = arith.constant 0 : i32
    %c0_i32_2 = arith.constant 0 : i32
    return %c0_i32, %c0_i32_0, %c0_i32_1 : i32, i32, i32
  }
  func.func @transform_4(%arg0: i32) -> (i32, i32) {
    %c0_i32 = arith.constant 0 : i32
    %c0_i32_0 = arith.constant 0 : i32
    %c0_i32_1 = arith.constant 0 : i32
    return %c0_i32, %c0_i32_0 : i32, i32
  }
  func.func @transform_5(%arg0: i32) -> (i32, i32) {
    %c0_i32 = arith.constant 0 : i32
    %c0_i32_0 = arith.constant 0 : i32
    %c0_i32_1 = arith.constant 0 : i32
    return %c0_i32, %c0_i32_0 : i32, i32
  }
  func.func @transform_6(%arg0: i32) -> (i32, i32) {
    %c0_i32 = arith.constant 0 : i32
    %c0_i32_0 = arith.constant 0 : i32
    %c0_i32_1 = arith.constant 0 : i32
    return %c0_i32, %c0_i32_0 : i32, i32
  }
  func.func @transform_7(%arg0: i32) -> (i32, i32) {
    %c0_i32 = arith.constant 0 : i32
    %c0_i32_0 = arith.constant 0 : i32
    %c0_i32_1 = arith.constant 0 : i32
    return %c0_i32, %c0_i32_0 : i32, i32
  }
  func.func @transform_8(%arg0: i32) -> (i32, i32) {
    %c0_i32 = arith.constant 0 : i32
    %c0_i32_0 = arith.constant 0 : i32
    %c0_i32_1 = arith.constant 0 : i32
    return %c0_i32, %c0_i32_0 : i32, i32
  }
  func.func @transform_9(%arg0: i32) -> (i32, i32) {
    %c0_i32 = arith.constant 0 : i32
    %c0_i32_0 = arith.constant 0 : i32
    %c0_i32_1 = arith.constant 0 : i32
    return %c0_i32, %c0_i32_0 : i32, i32
  }
  func.func @transform_10(%arg0: i32) -> (i32, i32) {
    %c0_i32 = arith.constant 0 : i32
    %c0_i32_0 = arith.constant 0 : i32
    %c0_i32_1 = arith.constant 0 : i32
    return %c0_i32, %c0_i32_0 : i32, i32
  }
  func.func @transform_11(%arg0: i32) -> (i32, i32) {
    %c0_i32 = arith.constant 0 : i32
    %c0_i32_0 = arith.constant 0 : i32
    return %arg0, %c0_i32 : i32, i32
  }
}

</mosaic_0001>

<bundles_post_ra>
// kernel: nn_forward.1
= control target key start
LH: loop header
LB: loop body
LE: loop exit
PB: predicated region body
PF: predicated region fallthrough
CT: control target
= control target key end

     0   :  { %vm248_vm0 = vcmask 1040384   ;;  %vm151_vm1 = vcmask 146432   ;;  %vm549_vm2 = vcmask 519168   ;;  %v11713_v20 = vmov 0   ;;  %s15408_s1 = inlined_call_operand.vmem [shape: bf16[18,64], index: 1, kind: input, shape index: {}]   ;;  %s15409_s0 = inlined_call_operand.vmem [shape: f32[8,8,8,18], index: 0, kind: input, shape index: {}]   ;;  %s15410_s2 = inlined_call_operand.vmem [shape: f32[1,64], index: 2, kind: input, shape index: {}]   ;;  %s15411_s3 = inlined_call_operand.vmem [shape: bf16[9,64,128], index: 3, kind: input, shape index: {}]   ;;  %s15412_s4 = inlined_call_operand.vmem [shape: f32[1,128], index: 4, kind: input, shape index: {}]   ;;  %s15413_s5 = inlined_call_operand.vmem [shape: bf16[2048,256], index: 5, kind: input, shape index: {}]   ;;  %s15414_s6 = inlined_call_operand.vmem [shape: f32[1,256], index: 6, kind: input, shape index: {}]   ;;  %s15415_s7 = inlined_call_operand.vmem [shape: bf16[256,128], index: 7, kind: input, shape index: {}]   ;;  %s15416_s8 = inlined_call_operand.vmem [shape: f32[1,128], index: 8, kind: input, shape index: {}]   ;;  %s15417_s9 = inlined_call_operand.vmem [shape: bf16[128,64], index: 9, kind: input, shape index: {}]   ;;  %s15418_s10 = inlined_call_operand.vmem [shape: f32[1,64], index: 10, kind: input, shape index: {}]   ;;  %s15419_s11 = inlined_call_operand.vmem [shape: f32[8,64], index: 11, kind: output, shape index: {}]  }
   0x1   :  { %v137_v0 = vld [vmem:[%s15408_s1 + $0x8] sm:$0x1]  ;;  %v11095_v4 = vld [vmem:[%s15408_s1] sm:$0xff]  ;;  %v41_v8 = vld [vmem:[%s15409_s0 + $0x10] sm:$0xff]  ;;  %550 = vst.msk [vmem:[#allocation2] sm:$0xf] %vm549_vm2, %v11713_v20 }
   0x2   :  { %v147_v1 = vunpack.c.l.b16 %v137_v0  ;;  %v39_v5 = vld [vmem:[%s15409_s0] sm:$0xff]  ;;  %v40_v6 = vld [vmem:[%s15409_s0 + $0x8] sm:$0xff]  ;;  %v42_v9 = vld [vmem:[%s15409_s0 + $0x18] sm:$0xff]  ;;  %551 = vst.msk [vmem:[#allocation2 + $0x4] sm:$0xf] %vm549_vm2, %v11713_v20  ;;  %vm1045_vm3 = vcmask 523264  }
   0x3   :  { %v103_v7 = vpack.c.bf16 %v40_v6, %v39_v5  ;;  %v104_v10 = vpack.c.bf16 %v42_v9, %v41_v8  ;;  %v11131_v11 = vld [vmem:[%s15411_s3 + $0x18] sm:$0xff]  ;;  %v11130_v14 = vld [vmem:[%s15411_s3 + $0x10] sm:$0xff]  ;;  %v43_v16 = vld [vmem:[%s15409_s0 + $0x20] sm:$0xff]  ;;  %552 = vst.msk [vmem:[#allocation2 + $0x8] sm:$0xf] %vm549_vm2, %v11713_v20 }
   0x4   :  { %v149_v2 = vpack.c.b16 %v147_v1, %v147_v1  ;;  %v11203_v12 = vld [vmem:[%s15411_s3 + $0x58] sm:$0xff]  ;;  %1595 = vmatpush.bf16.msra.mxu2 %v11131_v11  ;;  %v11202_v15 = vld [vmem:[%s15411_s3 + $0x50] sm:$0xff]  ;;  %v44_v17 = vld [vmem:[%s15409_s0 + $0x28] sm:$0xff]  ;;  %553 = vst.msk [vmem:[#allocation2 + $0xc] sm:$0xf] %vm549_vm2, %v11713_v20 }
   0x5   :  { %v11167_v13 = vld [vmem:[%s15411_s3 + $0x38] sm:$0xff]  ;;  %2118 = vmatpush.bf16.msra.mxu3 %v11203_v12  ;;  %v105_v18 = vpack.c.bf16 %v44_v17, %v43_v16  ;;  %v11129_v19 = vld [vmem:[%s15411_s3 + $0x8] sm:$0xff]  ;;  %v11166_v21 = vld [vmem:[%s15411_s3 + $0x30] sm:$0xff]  ;;  %554 = vst.msk [vmem:[#allocation2 + $0x10] sm:$0xf] %vm549_vm2, %v11713_v20 }
   0x6   :  { %v250_v3 = vsel %vm248_vm0, %v149_v2, 0  ;;  %1146 = vmatpush.bf16.msra.mxu1 %v11167_v13  ;;  %v11201_v22 = vld [vmem:[%s15411_s3 + $0x48] sm:$0xff]  ;;  %v11128_v23 = vld [vmem:[%s15411_s3] sm:$0xff]  ;;  %555 = vst.msk [vmem:[#allocation2 + $0x14] sm:$0xf] %vm549_vm2, %v11713_v20  ;;  %v45_v29 = vld [vmem:[%s15409_s0 + $0x30] sm:$0xff] }
   0x7   :  { %258 = vmatpush.bf16.msra.mxu0 %v250_v3  ;;  %v11165_v24 = vld [vmem:[%s15411_s3 + $0x28] sm:$0xff]  ;;  %v11200_v25 = vld [vmem:[%s15411_s3 + $0x40] sm:$0xff]  ;;  %556 = vst.msk [vmem:[#allocation2 + $0x18] sm:$0xf] %vm549_vm2, %v11713_v20  ;;  %v46_v30 = vld [vmem:[%s15409_s0 + $0x38] sm:$0xff] }
   0x8   :  { %1596 = vmatpush.bf16.msra.mxu2 %v11130_v14  ;;  %557 = vst.msk [vmem:[#allocation2 + $0x1c] sm:$0xf] %vm549_vm2, %v11713_v20  ;;  %v11164_v28 = vld [vmem:[%s15411_s3 + $0x20] sm:$0xff]  ;;  %v106_v32 = vpack.c.bf16 %v46_v30, %v45_v29  ;;  %v48_v36 = vld [vmem:[%s15409_s0 + $0x48] sm:$0xff]  ;;  %v49_v41 = vld [vmem:[%s15409_s0 + $0x50] sm:$0xff] }
   0x9   :  { %2119 = vmatpush.bf16.msra.mxu3 %v11202_v15  ;;  %v11096_v26 = vld [vmem:[#allocation2] sm:$0xff]  ;;  %558 = vst.msk [vmem:[#allocation2 + $0x20] sm:$0xf] %vm549_vm2, %v11713_v20  ;;  %v50_v42 = vld [vmem:[%s15409_s0 + $0x58] sm:$0xff]  ;;  %v52_v48 = vld [vmem:[%s15409_s0 + $0x68] sm:$0xff] }
   0xa   :  { %1147 = vmatpush.bf16.msra.mxu1 %v11166_v21  ;;  %559 = vst.msk [vmem:[#allocation2 + $0x24] sm:$0xf] %vm549_vm2, %v11713_v20  ;;  %v11132_v31 = vld [vmem:[#allocation2 + $0x4] sm:$0xff]  ;;  %v108_v44 = vpack.c.bf16 %v50_v42, %v49_v41  ;;  %v53_v51 = vld [vmem:[%s15409_s0 + $0x70] sm:$0xff]  ;;  %v54_v52 = vld [vmem:[%s15409_s0 + $0x78] sm:$0xff] }
   0xb   :  { %259 = vmatpush.bf16.msra.mxu0 %v11095_v4  ;;  %560 = vst.msk [vmem:[#allocation2 + $0x28] sm:$0xf] %vm549_vm2, %v11713_v20  ;;  %v11168_v27 = vld [vmem:[#allocation2 + $0x8] sm:$0xff]  ;;  %v47_v35 = vld [vmem:[%s15409_s0 + $0x40] sm:$0xff]  ;;  %v110_v53 = vpack.c.bf16 %v54_v52, %v53_v51  ;;  %v11239_v62 = vld [vmem:[%s15411_s3 + $0x78] sm:$0xff] }
   0xc   :  { %1597 = vmatpush.bf16.msra.mxu2 %v11129_v19  ;;  %561 = vst.msk [vmem:[#allocation2 + $0x2c] sm:$0xf] %vm549_vm2, %v11713_v20  ;;  %v11097_v33 = vld [vmem:[#allocation2 + $0x8] sm:$0xff]  ;;  %v107_v38 = vpack.c.bf16 %v48_v36, %v47_v35  ;;  %v51_v47 = vld [vmem:[%s15409_s0 + $0x60] sm:$0xff]  ;;  %v11275_v63 = vld [vmem:[%s15411_s3 + $0x98] sm:$0xff] }
   0xd   :  { %2120 = vmatpush.bf16.msra.mxu3 %v11201_v22  ;;  %562 = vst.msk [vmem:[#allocation2 + $0x30] sm:$0xf] %vm549_vm2, %v11713_v20  ;;  %v11169_v34 = vld [vmem:[#allocation2 + $0x10] sm:$0xff]  ;;  %v109_v50 = vpack.c.bf16 %v52_v48, %v51_v47  ;;  %v55_v54 = vld [vmem:[%s15409_s0 + $0x80] sm:$0xff]  ;;  %v56_v55 = vld [vmem:[%s15409_s0 + $0x88] sm:$0xff] }
   0xe   :  { %8295 = vmatmul.msk.bf16.vlgmr.msra.gmra.mxu0 %vm151_vm1, %v103_v7  ;;  %1148 = vmatpush.bf16.msra.mxu1 %v11165_v24  ;;  %563 = vst.msk [vmem:[#allocation2 + $0x34] sm:$0xf] %vm549_vm2, %v11713_v20  ;;  %v11133_v37 = vld [vmem:[#allocation2 + $0xc] sm:$0xff]  ;;  %v11134_v43 = vld [vmem:[#allocation2 + $0x14] sm:$0xff]  ;;  %v12079_v56 = vld [vmem:[%s15410_s2] ss:$0 sm:$0xff]  ;;  %v111_v57 = vpack.c.bf16 %v56_v55, %v55_v54 }
   0xf   :  { %564 = vst.msk [vmem:[#allocation2 + $0x38] sm:$0xf] %vm549_vm2, %v11713_v20  ;;  %v11098_v39 = vld [vmem:[#allocation2 + $0x10] sm:$0xff]  ;;  %v11170_v40 = vld [vmem:[#allocation2 + $0x18] sm:$0xff]  ;;  %2705 = vmatpush.bf16.msrb.mxu0 %v11239_v62  ;;  %v59_v16 = vld [vmem:[%s15409_s0 + $0xa0] sm:$0xff] }
  0x10   :  { %1598 = vmatpush.bf16.msra.mxu2 %v11128_v23  ;;  %565 = vst.msk [vmem:[#allocation2 + $0x3c] sm:$0xf] %vm549_vm2, %v11713_v20  ;;  %v11099_v45 = vld [vmem:[#allocation2 + $0x18] sm:$0xff]  ;;  %v57_v3 = vld [vmem:[%s15409_s0 + $0x90] sm:$0xff]  ;;  %v60_v17 = vld [vmem:[%s15409_s0 + $0xa8] sm:$0xff] }
  0x11   :  { %2121 = vmatpush.bf16.msra.mxu3 %v11200_v25  ;;  %566 = vst.msk [vmem:[#allocation2 + $0x40] sm:$0xf] %vm549_vm2, %v11713_v20  ;;  %v11171_v46 = vld [vmem:[#allocation2 + $0x20] sm:$0xff]  ;;  %v58_v4 = vld [vmem:[%s15409_s0 + $0x98] sm:$0xff]  ;;  %v113_v21 = vpack.c.bf16 %v60_v17, %v59_v16  ;;  %v61_v30 = vld [vmem:[%s15409_s0 + $0xb0] sm:$0xff] }
  0x12   :  { %1149 = vmatpush.bf16.msra.mxu1 %v11164_v28  ;;  %567 = vst.msk [vmem:[#allocation2 + $0x44] sm:$0xf] %vm549_vm2, %v11713_v20  ;;  %v11135_v49 = vld [vmem:[#allocation2 + $0x1c] sm:$0xff]  ;;  %v112_v7 = vpack.c.bf16 %v58_v4, %v57_v3 }
  0x13   :  { %8655 = vmatmul.msk.bf16.vlgmr.msra.gmra.mxu2 %vm1045_vm3, %v11096_v26  ;;  %568 = vst.msk [vmem:[#allocation2 + $0x48] sm:$0xf] %vm549_vm2, %v11713_v20  ;;  %v63_v52 = vld [vmem:[%s15409_s0 + $0xc0] sm:$0xff] }
  0x14   :  { %8839 = vmatmul.msk.bf16.vlgmr.msra.gmra.mxu3 %vm1045_vm3, %v11168_v27  ;;  %569 = vst.msk [vmem:[#allocation2 + $0x4c] sm:$0xf] %vm549_vm2, %v11713_v20 }
  0x15   :  { %8479 = vmatmul.msk.bf16.vlgmr.msra.gmra.mxu1 %vm1045_vm3, %v11132_v31  ;;  %570 = vst.msk [vmem:[#allocation2 + $0x50] sm:$0xf] %vm549_vm2, %v11713_v20  ;;  %v62_v31 = vld [vmem:[%s15409_s0 + $0xb8] sm:$0xff] }
  0x16   :  { %571 = vst.msk [vmem:[#allocation2 + $0x54] sm:$0xf] %vm549_vm2, %v11713_v20  ;;  %3291 = vmatpush.bf16.msrb.mxu1 %v11275_v63 }
  0x17   :  { %572 = vst.msk [vmem:[#allocation2 + $0x58] sm:$0xf] %vm549_vm2, %v11713_v20 }
  0x18   :  { %573 = vst.msk [vmem:[#allocation2 + $0x5c] sm:$0xf] %vm549_vm2, %v11713_v20 }
  0x19   :  { %574 = vst.msk [vmem:[#allocation2 + $0x60] sm:$0xf] %vm549_vm2, %v11713_v20 }
  0x1a   :  { %575 = vst.msk [vmem:[#allocation2 + $0x64] sm:$0xf] %vm549_vm2, %v11713_v20 }
  0x1b   :  { %576 = vst.msk [vmem:[#allocation2 + $0x68] sm:$0xf] %vm549_vm2, %v11713_v20 }
  0x1c   :  { %577 = vst.msk [vmem:[#allocation2 + $0x6c] sm:$0xf] %vm549_vm2, %v11713_v20 }
  0x1d   :  { %578 = vst.msk [vmem:[#allocation2 + $0x70] sm:$0xf] %vm549_vm2, %v11713_v20 }
  0x1e   :  { %8296 = vmatmul.msk.bf16.gmra.mxu0 %vm151_vm1, %v104_v10  ;;  %579 = vst.msk [vmem:[#allocation2 + $0x74] sm:$0xf] %vm549_vm2, %v11713_v20 }
  0x1f   :  { %580 = vst.msk [vmem:[#allocation2 + $0x78] sm:$0xf] %vm549_vm2, %v11713_v20 }
  0x20   :  { %581 = vst.msk [vmem:[#allocation2 + $0x7c] sm:$0xf] %vm549_vm2, %v11713_v20 }
  0x21   :  { %582 = vst.msk [vmem:[#allocation2 + $0x80] sm:$0xf] %vm549_vm2, %v11713_v20 }
  0x22   :  { %583 = vst.msk [vmem:[#allocation2 + $0x84] sm:$0xf] %vm549_vm2, %v11713_v20 }
  0x23   :  { %8656 = vmatmul.msk.bf16.gmra.mxu2 %vm1045_vm3, %v11097_v33  ;;  %584 = vst.msk [vmem:[#allocation2 + $0x88] sm:$0xf] %vm549_vm2, %v11713_v20 }
  0x24   :  { %8840 = vmatmul.msk.bf16.gmra.mxu3 %vm1045_vm3, %v11169_v34  ;;  %585 = vst.msk [vmem:[#allocation2 + $0x8c] sm:$0xf] %vm549_vm2, %v11713_v20 }
  0x25   :  { %8480 = vmatmul.msk.bf16.gmra.mxu1 %vm1045_vm3, %v11133_v37  ;;  %586 = vst.msk [vmem:[#allocation2 + $0x90] sm:$0xf] %vm549_vm2, %v11713_v20  ;;  %v114_v37 = vpack.c.bf16 %v62_v31, %v61_v30 }
  0x26   :  { %587 = vst.msk [vmem:[#allocation2 + $0x94] sm:$0xf] %vm549_vm2, %v11713_v20 }
  0x27   :  { %588 = vst.msk [vmem:[#allocation2 + $0x98] sm:$0xf] %vm549_vm2, %v11713_v20 }
  0x28   :  { %589 = vst.msk [vmem:[#allocation2 + $0x9c] sm:$0xf] %vm549_vm2, %v11713_v20 }
  0x29   :  { %590 = vst.msk [vmem:[#allocation2 + $0xa0] sm:$0xf] %vm549_vm2, %v11713_v20 }
  0x2a   :  { %591 = vst.msk [vmem:[#allocation2 + $0xa4] sm:$0xf] %vm549_vm2, %v11713_v20 }
  0x2b   :  { %592 = vst.msk [vmem:[#allocation2 + $0xa8] sm:$0xf] %vm549_vm2, %v11713_v20 }
  0x2c   :  { %593 = vst.msk [vmem:[#allocation2 + $0xac] sm:$0xf] %vm549_vm2, %v11713_v20 }
  0x2d   :  { %594 = vst.msk [vmem:[#allocation2 + $0xb0] sm:$0xf] %vm549_vm2, %v11713_v20 }
  0x2e   :  { %8297 = vmatmul.msk.bf16.gmra.mxu0 %vm151_vm1, %v105_v18  ;;  %595 = vst.msk [vmem:[#allocation2 + $0xb4] sm:$0xf] %vm549_vm2, %v11713_v20 }
  0x2f   :  { %596 = vst.msk [vmem:[#allocation2 + $0xb8] sm:$0xf] %vm549_vm2, %v11713_v20 }
  0x30   :  { %597 = vst.msk [vmem:[#allocation2 + $0xbc] sm:$0xf] %vm549_vm2, %v11713_v20 }
  0x31   :  { %598 = vst.msk [vmem:[#allocation2 + $0xc0] sm:$0xf] %vm549_vm2, %v11713_v20 }
  0x32   :  { %599 = vst.msk [vmem:[#allocation2 + $0xc4] sm:$0xf] %vm549_vm2, %v11713_v20 }
  0x33   :  { %8657 = vmatmul.msk.bf16.gmra.mxu2 %vm1045_vm3, %v11098_v39  ;;  %600 = vst.msk [vmem:[#allocation2 + $0xc8] sm:$0xf] %vm549_vm2, %v11713_v20 }
  0x34   :  { %8841 = vmatmul.msk.bf16.gmra.mxu3 %vm1045_vm3, %v11170_v40  ;;  %601 = vst.msk [vmem:[#allocation2 + $0xcc] sm:$0xf] %vm549_vm2, %v11713_v20 }
  0x35   :  { %8481 = vmatmul.msk.bf16.gmra.mxu1 %vm1045_vm3, %v11134_v43  ;;  %602 = vst.msk [vmem:[#allocation2 + $0xd0] sm:$0xf] %vm549_vm2, %v11713_v20 }
  0x36   :  { %603 = vst.msk [vmem:[#allocation2 + $0xd4] sm:$0xf] %vm549_vm2, %v11713_v20 }
  0x37   :  { %604 = vst.msk [vmem:[#allocation2 + $0xd8] sm:$0xf] %vm549_vm2, %v11713_v20 }
  0x38   :  { %605 = vst.msk [vmem:[#allocation2 + $0xdc] sm:$0xf] %vm549_vm2, %v11713_v20 }
  0x39   :  { %606 = vst.msk [vmem:[#allocation2 + $0xe0] sm:$0xf] %vm549_vm2, %v11713_v20 }
  0x3a   :  { %607 = vst.msk [vmem:[#allocation2 + $0xe4] sm:$0xf] %vm549_vm2, %v11713_v20 }
  0x3b   :  { %608 = vst.msk [vmem:[#allocation2 + $0xe8] sm:$0xf] %vm549_vm2, %v11713_v20 }
  0x3c   :  { %609 = vst.msk [vmem:[#allocation2 + $0xec] sm:$0xf] %vm549_vm2, %v11713_v20 }
  0x3d   :  { %610 = vst.msk [vmem:[#allocation2 + $0xf0] sm:$0xf] %vm549_vm2, %v11713_v20 }
  0x3e   :  { %8298 = vmatmul.msk.bf16.gmra.mxu0 %vm151_vm1, %v106_v32  ;;  %611 = vst.msk [vmem:[#allocation2 + $0xf4] sm:$0xf] %vm549_vm2, %v11713_v20 }
  0x3f   :  { %612 = vst.msk [vmem:[#allocation2 + $0xf8] sm:$0xf] %vm549_vm2, %v11713_v20 }
  0x40   :  { %613 = vst.msk [vmem:[#allocation2 + $0xfc] sm:$0xf] %vm549_vm2, %v11713_v20 }
  0x41   :  { %614 = vst.msk [vmem:[#allocation2 + $0x100] sm:$0xf] %vm549_vm2, %v11713_v20 }
  0x42   :  { %615 = vst.msk [vmem:[#allocation2 + $0x104] sm:$0xf] %vm549_vm2, %v11713_v20 }
  0x43   :  { %8658 = vmatmul.msk.bf16.gmra.mxu2 %vm1045_vm3, %v11099_v45  ;;  %616 = vst.msk [vmem:[#allocation2 + $0x108] sm:$0xf] %vm549_vm2, %v11713_v20 }
  0x44   :  { %8842 = vmatmul.msk.bf16.gmra.mxu3 %vm1045_vm3, %v11171_v46  ;;  %617 = vst.msk [vmem:[#allocation2 + $0x10c] sm:$0xf] %vm549_vm2, %v11713_v20 }
  0x45   :  { %8482 = vmatmul.msk.bf16.gmra.mxu1 %vm1045_vm3, %v11135_v49  ;;  %618 = vst.msk [vmem:[#allocation2 + $0x110] sm:$0xf] %vm549_vm2, %v11713_v20 }
  0x46   :  { %619 = vst.msk [vmem:[#allocation2 + $0x114] sm:$0xf] %vm549_vm2, %v11713_v20 }
  0x47   :  { %620 = vst.msk [vmem:[#allocation2 + $0x118] sm:$0xf] %vm549_vm2, %v11713_v20 }
  0x48   :  { %621 = vst.msk [vmem:[#allocation2 + $0x11c] sm:$0xf] %vm549_vm2, %v11713_v20 }
  0x49   :  { %622 = vst.msk [vmem:[#allocation2 + $0x120] sm:$0xf] %vm549_vm2, %v11713_v20 }
  0x4a   :  { %623 = vst.msk [vmem:[#allocation2 + $0x124] sm:$0xf] %vm549_vm2, %v11713_v20 }
  0x4b   :  { %624 = vst.msk [vmem:[#allocation2 + $0x128] sm:$0xf] %vm549_vm2, %v11713_v20 }
  0x4c   :  { %625 = vst.msk [vmem:[#allocation2 + $0x12c] sm:$0xf] %vm549_vm2, %v11713_v20 }
  0x4d   :  { %626 = vst.msk [vmem:[#allocation2 + $0x130] sm:$0xf] %vm549_vm2, %v11713_v20 }
  0x4e   :  { %8299 = vmatmul.msk.bf16.gmra.mxu0 %vm151_vm1, %v107_v38  ;;  %627 = vst.msk [vmem:[#allocation2 + $0x134] sm:$0xf] %vm549_vm2, %v11713_v20 }
  0x4f   :  { %628 = vst.msk [vmem:[#allocation2 + $0x138] sm:$0xf] %vm549_vm2, %v11713_v20 }
  0x50   :  { %629 = vst.msk [vmem:[#allocation2 + $0x13c] sm:$0xf] %vm549_vm2, %v11713_v20 }
  0x51   :  { %630 = vst.msk [vmem:[#allocation2 + $0x140] sm:$0xf] %vm549_vm2, %v11713_v20 }
  0x52   :  { %631 = vst.msk [vmem:[#allocation2 + $0x144] sm:$0xf] %vm549_vm2, %v11713_v20 }
  0x53   :  { %632 = vst.msk [vmem:[#allocation2 + $0x148] sm:$0xf] %vm549_vm2, %v11713_v20 }
  0x54   :  { %633 = vst.msk [vmem:[#allocation2 + $0x14c] sm:$0xf] %vm549_vm2, %v11713_v20 }
  0x55   :  { %634 = vst.msk [vmem:[#allocation2 + $0x150] sm:$0xf] %vm549_vm2, %v11713_v20 }
  0x56   :  { %635 = vst.msk [vmem:[#allocation2 + $0x154] sm:$0xf] %vm549_vm2, %v11713_v20 }
  0x57   :  { %636 = vst.msk [vmem:[#allocation2 + $0x158] sm:$0xf] %vm549_vm2, %v11713_v20 }
  0x58   :  { %637 = vst.msk [vmem:[#allocation2 + $0x15c] sm:$0xf] %vm549_vm2, %v11713_v20 }
  0x59   :  { %638 = vst.msk [vmem:[#allocation2 + $0x160] sm:$0xf] %vm549_vm2, %v11713_v20 }
  0x5a   :  { %639 = vst.msk [vmem:[#allocation2 + $0x164] sm:$0xf] %vm549_vm2, %v11713_v20 }
  0x5b   :  { %640 = vst.msk [vmem:[#allocation2 + $0x168] sm:$0xf] %vm549_vm2, %v11713_v20 }
  0x5c   :  { %641 = vst.msk [vmem:[#allocation2 + $0x16c] sm:$0xf] %vm549_vm2, %v11713_v20 }
  0x5d   :  { %642 = vst.msk [vmem:[#allocation2 + $0x170] sm:$0xf] %vm549_vm2, %v11713_v20 }
  0x5e   :  { %8300 = vmatmul.msk.bf16.gmra.mxu0 %vm151_vm1, %v108_v44  ;;  %643 = vst.msk [vmem:[#allocation2 + $0x174] sm:$0xf] %vm549_vm2, %v11713_v20 }
  0x5f   :  { %644 = vst.msk [vmem:[#allocation2 + $0x178] sm:$0xf] %vm549_vm2, %v11713_v20 }
  0x60   :  { %645 = vst.msk [vmem:[#allocation2 + $0x17c] sm:$0xf] %vm549_vm2, %v11713_v20 }
  0x61   :  { %646 = vst.msk [vmem:[#allocation2 + $0x180] sm:$0xf] %vm549_vm2, %v11713_v20 }
  0x62   :  { %647 = vst.msk [vmem:[#allocation2 + $0x184] sm:$0xf] %vm549_vm2, %v11713_v20 }
  0x63   :  { %648 = vst.msk [vmem:[#allocation2 + $0x188] sm:$0xf] %vm549_vm2, %v11713_v20 }
  0x64   :  { %649 = vst.msk [vmem:[#allocation2 + $0x18c] sm:$0xf] %vm549_vm2, %v11713_v20 }
  0x6e   :  { %8301 = vmatmul.msk.bf16.gmra.mxu0 %vm151_vm1, %v109_v50 }
  0x7e   :  { %8302 = vmatmul.msk.bf16.gmra.mxu0 %vm151_vm1, %v110_v53  ;;  %v64_v53 = vld [vmem:[%s15409_s0 + $0xc8] sm:$0xff] }
  0x8b   :  { %v261_v58 = vpop.f32.mrf.mxu0 }
  0x8c   :  { %v262_v59 = vadd.f32 %v12079_v56, %v261_v58 }
  0x8e   :  { %v421_v60 = vmax.f32 %v262_v59, 0.0  ;;  %8303 = vmatmul.msk.bf16.gmra.mxu0 %vm151_vm1, %v111_v57 }
  0x90   :  { %v485_v61 = vpack.c.bf16 %v421_v60, %v421_v60  ;;  %v115_v60 = vpack.c.bf16 %v64_v53, %v63_v52 }
  0x92   :  { %651 = vst.msk [vmem:[#allocation2 + $0x2c] sm:$0xf] %vm549_vm2, %v485_v61  ;;  %v1151_v33 = vpop.f32.mrf.mxu1 }
  0x93   :  { %v263_v0 = vpop.f32.mrf.mxu0 }
  0x94   :  { %v264_v1 = vadd.f32 %v12079_v56, %v263_v0 }
  0x96   :  { %v422_v2 = vmax.f32 %v264_v1, 0.0  ;;  %v1600_v36 = vpop.f32.mrf.mxu2 }
  0x97   :  { %v1601_v38 = vadd.f32 %v1600_v36, %v1151_v33  ;;  %v2123_v40 = vpop.f32.mrf.mxu3  ;;  %v68_v33 = vld [vmem:[%s15409_s0 + $0xe8] sm:$0xff] }
  0x98   :  { %v486_v5 = vpack.c.bf16 %v422_v2, %v422_v2 }
  0x99   :  { %v11100_v6 = vld [vmem:[#allocation2 + $0x28] sm:$0xff]  ;;  %v12148_v47 = vadd.f32 %v2123_v40, %v1601_v38 }
  0x9a   :  { %652 = vst.msk [vmem:[#allocation2 + $0x30] sm:$0xf] %vm549_vm2, %v486_v5  ;;  %8659 = vmatmul.msk.bf16.gmra.mxu2 %vm1045_vm3, %v11100_v6  ;;  %v12143_v44 = vpop.f32.mrf.mxu1 }
  0x9b   :  { %v266_v8 = vpop.f32.mrf.mxu0 }
  0x9c   :  { %v267_v9 = vadd.f32 %v12079_v56, %v266_v8 }
  0x9e   :  { %v423_v10 = vmax.f32 %v267_v9, 0.0  ;;  %8304 = vmatmul.msk.bf16.gmra.mxu0 %vm151_vm1, %v112_v7  ;;  %v12145_v46 = vpop.f32.mrf.mxu2 }
  0x9f   :  { %v12151_v49 = vpop.f32.mrf.mxu3 }
  0xa0   :  { %v487_v11 = vpack.c.bf16 %v423_v10, %v423_v10 }
  0xa1   :  { %v11136_v12 = vld [vmem:[#allocation2 + $0x2c] sm:$0xff] }
  0xa2   :  { %653 = vst.msk [vmem:[#allocation2 + $0x34] sm:$0xf] %vm549_vm2, %v487_v11  ;;  %8483 = vmatmul.msk.bf16.gmra.mxu1 %vm1045_vm3, %v11136_v12  ;;  %v1156_v55 = vpop.f32.mrf.mxu1  ;;  %v65_v11 = vld [vmem:[%s15409_s0 + $0xd0] sm:$0xff]  ;;  %v66_v12 = vld [vmem:[%s15409_s0 + $0xd8] sm:$0xff] }
  0xa3   :  { %v268_v13 = vpop.f32.mrf.mxu0 }
  0xa4   :  { %v269_v14 = vadd.f32 %v12079_v56, %v268_v13 }
  0xa6   :  { %v424_v15 = vmax.f32 %v269_v14, 0.0  ;;  %v1605_v59 = vpop.f32.mrf.mxu2 }
  0xa7   :  { %v1606_v61 = vadd.f32 %v1605_v59, %v1156_v55  ;;  %v2128_v63 = vpop.f32.mrf.mxu3 }
  0xa8   :  { %v488_v18 = vpack.c.bf16 %v424_v15, %v424_v15 }
  0xa9   :  { %v11101_v19 = vld [vmem:[#allocation2 + $0x30] sm:$0xff]  ;;  %v12170_v6 = vadd.f32 %v2128_v63, %v1606_v61 }
  0xaa   :  { %v11172_v20 = vld [vmem:[#allocation2 + $0x30] sm:$0xff]  ;;  %654 = vst.msk [vmem:[#allocation2 + $0x38] sm:$0xf] %vm549_vm2, %v488_v18  ;;  %8660 = vmatmul.msk.bf16.gmra.mxu2 %vm1045_vm3, %v11101_v19  ;;  %v12165_v3 = vpop.f32.mrf.mxu1  ;;  %v116_v18 = vpack.c.bf16 %v66_v12, %v65_v11  ;;  %v71_v11 = vld [vmem:[%s15409_s0 + $0x100] sm:$0xff]  ;;  %v72_v12 = vld [vmem:[%s15409_s0 + $0x108] sm:$0xff] }
  0xab   :  { %v271_v22 = vpop.f32.mrf.mxu0  ;;  %8843 = vmatmul.msk.bf16.gmra.mxu3 %vm1045_vm3, %v11172_v20 }
  0xac   :  { %v272_v23 = vadd.f32 %v12079_v56, %v271_v22 }
  0xae   :  { %v425_v24 = vmax.f32 %v272_v23, 0.0  ;;  %8305 = vmatmul.msk.bf16.gmra.mxu0 %vm151_vm1, %v113_v21  ;;  %v12167_v5 = vpop.f32.mrf.mxu2 }
  0xaf   :  { %v12173_v8 = vpop.f32.mrf.mxu3 }
  0xb0   :  { %v489_v25 = vpack.c.bf16 %v425_v24, %v425_v24 }
  0xb1   :  { %v11137_v26 = vld [vmem:[#allocation2 + $0x34] sm:$0xff] }
  0xb2   :  { %655 = vst.msk [vmem:[#allocation2 + $0x3c] sm:$0xf] %vm549_vm2, %v489_v25  ;;  %8484 = vmatmul.msk.bf16.gmra.mxu1 %vm1045_vm3, %v11137_v26  ;;  %v1161_v14 = vpop.f32.mrf.mxu1 }
  0xb3   :  { %v273_v27 = vpop.f32.mrf.mxu0 }
  0xb4   :  { %v274_v28 = vadd.f32 %v12079_v56, %v273_v27 }
  0xb6   :  { %v426_v29 = vmax.f32 %v274_v28, 0.0  ;;  %v1610_v17 = vpop.f32.mrf.mxu2 }
  0xb7   :  { %v1611_v19 = vadd.f32 %v1610_v17, %v1161_v14  ;;  %v2133_v22 = vpop.f32.mrf.mxu3 }
  0xb8   :  { %v490_v32 = vpack.c.bf16 %v426_v29, %v426_v29 }
  0xb9   :  { %v11102_v34 = vld [vmem:[#allocation2 + $0x38] sm:$0xff]  ;;  %v12192_v28 = vadd.f32 %v2133_v22, %v1611_v19  ;;  %v11238_v22 = vld [vmem:[%s15411_s3 + $0x70] sm:$0xff] }
  0xba   :  { %v11173_v35 = vld [vmem:[#allocation2 + $0x38] sm:$0xff]  ;;  %656 = vst.msk [vmem:[#allocation2 + $0x40] sm:$0xf] %vm549_vm2, %v490_v32  ;;  %8661 = vmatmul.msk.bf16.gmra.mxu2 %vm1045_vm3, %v11102_v34  ;;  %v12187_v25 = vpop.f32.mrf.mxu1  ;;  %v67_v32 = vld [vmem:[%s15409_s0 + $0xe0] sm:$0xff]  ;;  %2706 = vmatpush.bf16.msrb.mxu0 %v11238_v22  ;;  %v77_v22 = vld [vmem:[%s15409_s0 + $0x130] sm:$0xff] }
  0xbb   :  { %v276_v39 = vpop.f32.mrf.mxu0  ;;  %8844 = vmatmul.msk.bf16.gmra.mxu3 %vm1045_vm3, %v11173_v35  ;;  %v117_v40 = vpack.c.bf16 %v68_v33, %v67_v32  ;;  %v74_v32 = vld [vmem:[%s15409_s0 + $0x118] sm:$0xff] }
  0xbc   :  { %v277_v41 = vadd.f32 %v12079_v56, %v276_v39 }
  0xbe   :  { %v427_v42 = vmax.f32 %v277_v41, 0.0  ;;  %8306 = vmatmul.msk.bf16.gmra.mxu0 %vm151_vm1, %v114_v37  ;;  %v12189_v27 = vpop.f32.mrf.mxu2 }
  0xbf   :  { %v12202_v34 = vpop.f32.mrf.mxu3 }
  0xc0   :  { %v491_v43 = vpack.c.bf16 %v427_v42, %v427_v42 }
  0xc1   :  { %v11138_v45 = vld [vmem:[#allocation2 + $0x3c] sm:$0xff] }
  0xc2   :  { %657 = vst.msk [vmem:[#allocation2 + $0x44] sm:$0xf] %vm549_vm2, %v491_v43  ;;  %8485 = vmatmul.msk.bf16.gmra.mxu1 %vm1045_vm3, %v11138_v45  ;;  %v1166_v38 = vpop.f32.mrf.mxu1 }
  0xc3   :  { %v278_v48 = vpop.f32.mrf.mxu0 }
  0xc4   :  { %v279_v50 = vadd.f32 %v12079_v56, %v278_v48 }
  0xc6   :  { %v428_v51 = vmax.f32 %v279_v50, 0.0  ;;  %v1615_v39 = vpop.f32.mrf.mxu2 }
  0xc7   :  { %v1616_v41 = vadd.f32 %v1615_v39, %v1166_v38 }
  0xc8   :  { %v492_v54 = vpack.c.bf16 %v428_v51, %v428_v51  ;;  %v2138_v51 = vpop.f32.mrf.mxu3 }
  0xc9   :  { %v11103_v57 = vld [vmem:[#allocation2 + $0x40] sm:$0xff]  ;;  %v12210_v52 = vadd.f32 %v2138_v51, %v1616_v41 }
  0xca   :  { %v11174_v58 = vld [vmem:[#allocation2 + $0x40] sm:$0xff]  ;;  %658 = vst.msk [vmem:[#allocation2 + $0x48] sm:$0xf] %vm549_vm2, %v492_v54  ;;  %8662 = vmatmul.msk.bf16.gmra.mxu2 %vm1045_vm3, %v11103_v57  ;;  %v69_v57 = vld [vmem:[%s15409_s0 + $0xf0] sm:$0xff]  ;;  %v12256_v33 = vpop.f32.mrf.mxu1 }
  0xcb   :  { %v281_v62 = vpop.f32.mrf.mxu0  ;;  %8845 = vmatmul.msk.bf16.gmra.mxu3 %vm1045_vm3, %v11174_v58  ;;  %v70_v58 = vld [vmem:[%s15409_s0 + $0xf8] sm:$0xff] }
  0xcc   :  { %v282_v0 = vadd.f32 %v12079_v56, %v281_v62  ;;  %v118_v62 = vpack.c.bf16 %v70_v58, %v69_v57  ;;  %v75_v58 = vld [vmem:[%s15409_s0 + $0x120] sm:$0xff] }
  0xce   :  { %v429_v1 = vmax.f32 %v282_v0, 0.0  ;;  %8307 = vmatmul.msk.bf16.gmra.mxu0 %vm151_vm1, %v115_v60 }
  0xd0   :  { %v493_v2 = vpack.c.bf16 %v429_v1, %v429_v1 }
  0xd1   :  { %v11139_v4 = vld [vmem:[#allocation2 + $0x44] sm:$0xff] }
  0xd2   :  { %659 = vst.msk [vmem:[#allocation2 + $0x54] sm:$0xf] %vm549_vm2, %v493_v2  ;;  %8486 = vmatmul.msk.bf16.gmra.mxu1 %vm1045_vm3, %v11139_v4  ;;  %v11175_v16 = vld [vmem:[#allocation2 + $0x48] sm:$0xff] }
  0xd3   :  { %v283_v7 = vpop.f32.mrf.mxu0 }
  0xd4   :  { %v284_v9 = vadd.f32 %v12079_v56, %v283_v7 }
  0xd6   :  { %v430_v10 = vmax.f32 %v284_v9, 0.0 }
  0xd8   :  { %v494_v13 = vpack.c.bf16 %v430_v10, %v430_v10 }
  0xd9   :  { %v11104_v15 = vld [vmem:[#allocation2 + $0x50] sm:$0xff] }
  0xda   :  { %660 = vst.msk [vmem:[#allocation2 + $0x58] sm:$0xf] %vm549_vm2, %v494_v13  ;;  %8663 = vmatmul.msk.bf16.gmra.mxu2 %vm1045_vm3, %v11104_v15 }
  0xdb   :  { %v286_v20 = vpop.f32.mrf.mxu0  ;;  %8846 = vmatmul.msk.bf16.gmra.mxu3 %vm1045_vm3, %v11175_v16  ;;  %v119_v16 = vpack.c.bf16 %v72_v12, %v71_v11 }
  0xdc   :  { %v287_v21 = vadd.f32 %v12079_v56, %v286_v20 }
  0xde   :  { %v431_v23 = vmax.f32 %v287_v21, 0.0  ;;  %8308 = vmatmul.msk.bf16.gmra.mxu0 %vm151_vm1, %v116_v18 }
  0xe0   :  { %v495_v24 = vpack.c.bf16 %v431_v23, %v431_v23  ;;  %v11274_v23 = vld [vmem:[%s15411_s3 + $0x90] sm:$0xff] }
  0xe1   :  { %v11140_v26 = vld [vmem:[#allocation2 + $0x54] sm:$0xff]  ;;  %3292 = vmatpush.bf16.msrb.mxu1 %v11274_v23 }
  0xe2   :  { %661 = vst.msk [vmem:[#allocation2 + $0x5c] sm:$0xf] %vm549_vm2, %v495_v24  ;;  %8487 = vmatmul.msk.bf16.gmra.mxu1 %vm1045_vm3, %v11140_v26  ;;  %v78_v23 = vld [vmem:[%s15409_s0 + $0x138] sm:$0xff] }
  0xe3   :  { %v288_v29 = vpop.f32.mrf.mxu0 }
  0xe4   :  { %v289_v30 = vadd.f32 %v12079_v56, %v288_v29  ;;  %v12248_v29 = vpop.f32.mrf.mxu2 }
  0xe6   :  { %v432_v31 = vmax.f32 %v289_v30, 0.0 }
  0xe8   :  { %v496_v35 = vpack.c.bf16 %v432_v31, %v432_v31  ;;  %v73_v31 = vld [vmem:[%s15409_s0 + $0x110] sm:$0xff] }
  0xe9   :  { %v11105_v36 = vld [vmem:[#allocation2 + $0x58] sm:$0xff]  ;;  %v120_v38 = vpack.c.bf16 %v74_v32, %v73_v31 }
  0xea   :  { %v11176_v37 = vld [vmem:[#allocation2 + $0x58] sm:$0xff]  ;;  %662 = vst.msk [vmem:[#allocation2 + $0x60] sm:$0xf] %vm549_vm2, %v496_v35  ;;  %8664 = vmatmul.msk.bf16.gmra.mxu2 %vm1045_vm3, %v11105_v36 }
  0xeb   :  { %v291_v42 = vpop.f32.mrf.mxu0  ;;  %8847 = vmatmul.msk.bf16.gmra.mxu3 %vm1045_vm3, %v11176_v37 }
  0xec   :  { %v292_v43 = vadd.f32 %v12079_v56, %v291_v42 }
  0xee   :  { %v433_v45 = vmax.f32 %v292_v43, 0.0  ;;  %8309 = vmatmul.msk.bf16.gmra.mxu0 %vm151_vm1, %v117_v40 }
  0xf0   :  { %v497_v48 = vpack.c.bf16 %v433_v45, %v433_v45 }
  0xf1   :  { %v11141_v50 = vld [vmem:[#allocation2 + $0x5c] sm:$0xff] }
  0xf2   :  { %663 = vst.msk [vmem:[#allocation2 + $0x64] sm:$0xf] %vm549_vm2, %v497_v48  ;;  %8488 = vmatmul.msk.bf16.gmra.mxu1 %vm1045_vm3, %v11141_v50 }
  0xf3   :  { %v293_v53 = vpop.f32.mrf.mxu0 }
  0xf4   :  { %v294_v54 = vadd.f32 %v12079_v56, %v293_v53 }
  0xf6   :  { %v434_v55 = vmax.f32 %v294_v54, 0.0  ;;  %v12266_v54 = vpop.f32.mrf.mxu3 }
  0xf8   :  { %v498_v59 = vpack.c.bf16 %v434_v55, %v434_v55 }
  0xf9   :  { %v11106_v60 = vld [vmem:[#allocation2 + $0x60] sm:$0xff] }
  0xfa   :  { %v11177_v61 = vld [vmem:[#allocation2 + $0x60] sm:$0xff]  ;;  %664 = vst.msk [vmem:[#allocation2 + $0x68] sm:$0xf] %vm549_vm2, %v498_v59  ;;  %8665 = vmatmul.msk.bf16.gmra.mxu2 %vm1045_vm3, %v11106_v60  ;;  %v76_v59 = vld [vmem:[%s15409_s0 + $0x128] sm:$0xff] }
  0xfb   :  { %v296_v63 = vpop.f32.mrf.mxu0  ;;  %8848 = vmatmul.msk.bf16.gmra.mxu3 %vm1045_vm3, %v11177_v61 }
  0xfc   :  { %v297_v0 = vadd.f32 %v12079_v56, %v296_v63 }
  0xfe   :  { %v435_v1 = vmax.f32 %v297_v0, 0.0  ;;  %8310 = vmatmul.msk.bf16.gmra.mxu0 %vm151_vm1, %v118_v62 }
 0x100   :  { %v499_v2 = vpack.c.bf16 %v435_v1, %v435_v1  ;;  %v121_v1 = vpack.c.bf16 %v76_v59, %v75_v58  ;;  %v79_v59 = vld [vmem:[%s15409_s0 + $0x140] sm:$0xff] }
 0x101   :  { %v11142_v4 = vld [vmem:[#allocation2 + $0x64] sm:$0xff] }
 0x102   :  { %665 = vst.msk [vmem:[#allocation2 + $0x6c] sm:$0xf] %vm549_vm2, %v499_v2  ;;  %8489 = vmatmul.msk.bf16.gmra.mxu1 %vm1045_vm3, %v11142_v4 }
 0x103   :  { %v298_v7 = vpop.f32.mrf.mxu0 }
 0x104   :  { %v299_v9 = vadd.f32 %v12079_v56, %v298_v7 }
 0x106   :  { %v436_v10 = vmax.f32 %v299_v9, 0.0 }
 0x108   :  { %v500_v13 = vpack.c.bf16 %v436_v10, %v436_v10 }
 0x109   :  { %v11107_v14 = vld [vmem:[#allocation2 + $0x68] sm:$0xff] }
 0x10a   :  { %v11178_v15 = vld [vmem:[#allocation2 + $0x68] sm:$0xff]  ;;  %666 = vst.msk [vmem:[#allocation2 + $0x70] sm:$0xf] %vm549_vm2, %v500_v13  ;;  %8666 = vmatmul.msk.bf16.gmra.mxu2 %vm1045_vm3, %v11107_v14 }
 0x10b   :  { %v301_v17 = vpop.f32.mrf.mxu0  ;;  %8849 = vmatmul.msk.bf16.gmra.mxu3 %vm1045_vm3, %v11178_v15 }
 0x10c   :  { %v302_v18 = vadd.f32 %v12079_v56, %v301_v17 }
 0x10e   :  { %v437_v19 = vmax.f32 %v302_v18, 0.0  ;;  %8311 = vmatmul.msk.bf16.gmra.mxu0 %vm151_vm1, %v119_v16 }
 0x110   :  { %v501_v20 = vpack.c.bf16 %v437_v19, %v437_v19 }
 0x111   :  { %v11143_v21 = vld [vmem:[#allocation2 + $0x6c] sm:$0xff] }
 0x112   :  { %667 = vst.msk [vmem:[#allocation2 + $0x7c] sm:$0xf] %vm549_vm2, %v501_v20  ;;  %8490 = vmatmul.msk.bf16.gmra.mxu1 %vm1045_vm3, %v11143_v21  ;;  %v11179_v37 = vld [vmem:[#allocation2 + $0x70] sm:$0xff] }
 0x113   :  { %v303_v24 = vpop.f32.mrf.mxu0 }
 0x114   :  { %v304_v26 = vadd.f32 %v12079_v56, %v303_v24 }
 0x116   :  { %v438_v30 = vmax.f32 %v304_v26, 0.0 }
 0x118   :  { %v502_v35 = vpack.c.bf16 %v438_v30, %v438_v30 }
 0x119   :  { %v11108_v36 = vld [vmem:[#allocation2 + $0x78] sm:$0xff] }
 0x11a   :  { %668 = vst.msk [vmem:[#allocation2 + $0x80] sm:$0xf] %vm549_vm2, %v502_v35  ;;  %8667 = vmatmul.msk.bf16.gmra.mxu2 %vm1045_vm3, %v11108_v36  ;;  %v122_v35 = vpack.c.bf16 %v78_v23, %v77_v22 }
 0x11b   :  { %v306_v39 = vpop.f32.mrf.mxu0  ;;  %8850 = vmatmul.msk.bf16.gmra.mxu3 %vm1045_vm3, %v11179_v37 }
 0x11c   :  { %v307_v40 = vadd.f32 %v12079_v56, %v306_v39 }
 0x11d   :  { %v1620_v42 = vpop.f32.mrf.mxu2 }
 0x11e   :  { %v439_v41 = vmax.f32 %v307_v40, 0.0  ;;  %8312 = vmatmul.msk.bf16.gmra.mxu0 %vm151_vm1, %v120_v38 }
 0x11f   :  { %v1171_v45 = vpop.f32.mrf.mxu1 }
 0x120   :  { %v503_v43 = vpack.c.bf16 %v439_v41, %v439_v41  ;;  %v1621_v48 = vadd.f32 %v1620_v42, %v1171_v45 }
 0x121   :  { %v11144_v50 = vld [vmem:[#allocation2 + $0x7c] sm:$0xff] }
 0x122   :  { %669 = vst.msk [vmem:[#allocation2 + $0x84] sm:$0xf] %vm549_vm2, %v503_v43  ;;  %8491 = vmatmul.msk.bf16.gmra.mxu1 %vm1045_vm3, %v11144_v50 }
 0x123   :  { %v308_v51 = vpop.f32.mrf.mxu0 }
 0x124   :  { %v309_v53 = vadd.f32 %v12079_v56, %v308_v51 }
 0x125   :  { %v1622_v57 = vpop.f32.mrf.mxu2 }
 0x126   :  { %v440_v55 = vmax.f32 %v309_v53, 0.0 }
 0x127   :  { %v1173_v61 = vpop.f32.mrf.mxu1 }
 0x128   :  { %v504_v60 = vpack.c.bf16 %v440_v55, %v440_v55  ;;  %v1623_v62 = vadd.f32 %v1622_v57, %v1173_v61 }
 0x129   :  { %v11109_v63 = vld [vmem:[#allocation2 + $0x80] sm:$0xff] }
 0x12a   :  { %v11180_v0 = vld [vmem:[#allocation2 + $0x80] sm:$0xff]  ;;  %670 = vst.msk [vmem:[#allocation2 + $0x88] sm:$0xf] %vm549_vm2, %v504_v60  ;;  %8668 = vmatmul.msk.bf16.gmra.mxu2 %vm1045_vm3, %v11109_v63  ;;  %v80_v60 = vld [vmem:[%s15409_s0 + $0x148] sm:$0xff] }
 0x12b   :  { %v311_v2 = vpop.f32.mrf.mxu0  ;;  %8851 = vmatmul.msk.bf16.gmra.mxu3 %vm1045_vm3, %v11180_v0 }
 0x12c   :  { %v312_v4 = vadd.f32 %v12079_v56, %v311_v2  ;;  %v123_v2 = vpack.c.bf16 %v80_v60, %v79_v59 }
 0x12d   :  { %v1625_v9 = vpop.f32.mrf.mxu2 }
 0x12e   :  { %v441_v7 = vmax.f32 %v312_v4, 0.0  ;;  %8313 = vmatmul.msk.bf16.gmra.mxu0 %vm151_vm1, %v121_v1  ;;  %v2143_v10 = vpop.f32.mrf.mxu3 }
 0x12f   :  { %v12279_v11 = vadd.f32 %v2143_v10, %v1621_v48  ;;  %v1176_v13 = vpop.f32.mrf.mxu1 }
 0x130   :  { %v505_v12 = vpack.c.bf16 %v441_v7, %v441_v7  ;;  %v1626_v14 = vadd.f32 %v1625_v9, %v1176_v13 }
 0x131   :  { %v11145_v15 = vld [vmem:[#allocation2 + $0x84] sm:$0xff] }
 0x132   :  { %671 = vst.msk [vmem:[#allocation2 + $0x8c] sm:$0xf] %vm549_vm2, %v505_v12  ;;  %8492 = vmatmul.msk.bf16.gmra.mxu1 %vm1045_vm3, %v11145_v15 }
 0x133   :  { %v313_v16 = vpop.f32.mrf.mxu0 }
 0x134   :  { %v314_v17 = vadd.f32 %v12079_v56, %v313_v16 }
 0x135   :  { %v1627_v19 = vpop.f32.mrf.mxu2 }
 0x136   :  { %v442_v18 = vmax.f32 %v314_v17, 0.0  ;;  %v2145_v20 = vpop.f32.mrf.mxu3 }
 0x137   :  { %v12284_v21 = vadd.f32 %v2145_v20, %v1623_v62  ;;  %v1178_v26 = vpop.f32.mrf.mxu1 }
 0x138   :  { %v506_v24 = vpack.c.bf16 %v442_v18, %v442_v18  ;;  %v1628_v30 = vadd.f32 %v1627_v19, %v1178_v26  ;;  %v81_v26 = vld [vmem:[%s15409_s0 + $0x150] sm:$0xff] }
 0x139   :  { %v11110_v31 = vld [vmem:[#allocation2 + $0x88] sm:$0xff] }
 0x13a   :  { %v11181_v32 = vld [vmem:[#allocation2 + $0x88] sm:$0xff]  ;;  %672 = vst.msk [vmem:[#allocation2 + $0x90] sm:$0xf] %vm549_vm2, %v506_v24  ;;  %8669 = vmatmul.msk.bf16.gmra.mxu2 %vm1045_vm3, %v11110_v31 }
 0x13b   :  { %v316_v36 = vpop.f32.mrf.mxu0  ;;  %8852 = vmatmul.msk.bf16.gmra.mxu3 %vm1045_vm3, %v11181_v32 }
 0x13c   :  { %v317_v37 = vadd.f32 %v12079_v56, %v316_v36 }
 0x13d   :  { %v1630_v39 = vpop.f32.mrf.mxu2 }
 0x13e   :  { %v443_v38 = vmax.f32 %v317_v37, 0.0  ;;  %8314 = vmatmul.msk.bf16.gmra.mxu0 %vm151_vm1, %v122_v35  ;;  %v2148_v40 = vpop.f32.mrf.mxu3 }
 0x13f   :  { %v12297_v41 = vadd.f32 %v2148_v40, %v1626_v14  ;;  %v1181_v43 = vpop.f32.mrf.mxu1 }
 0x140   :  { %v507_v42 = vpack.c.bf16 %v443_v38, %v443_v38  ;;  %v1631_v45 = vadd.f32 %v1630_v39, %v1181_v43 }
 0x141   :  { %v11146_v48 = vld [vmem:[#allocation2 + $0x8c] sm:$0xff] }
 0x142   :  { %673 = vst.msk [vmem:[#allocation2 + $0x94] sm:$0xf] %vm549_vm2, %v507_v42  ;;  %8493 = vmatmul.msk.bf16.gmra.mxu1 %vm1045_vm3, %v11146_v48 }
 0x143   :  { %v318_v50 = vpop.f32.mrf.mxu0 }
 0x144   :  { %v319_v51 = vadd.f32 %v12079_v56, %v318_v50 }
 0x145   :  { %v1632_v55 = vpop.f32.mrf.mxu2 }
 0x146   :  { %v444_v53 = vmax.f32 %v319_v51, 0.0  ;;  %v2150_v57 = vpop.f32.mrf.mxu3 }
 0x147   :  { %v12302_v58 = vadd.f32 %v2150_v57, %v1628_v30  ;;  %v1183_v62 = vpop.f32.mrf.mxu1  ;;  %v82_v30 = vld [vmem:[%s15409_s0 + $0x158] sm:$0xff] }
 0x148   :  { %v508_v61 = vpack.c.bf16 %v444_v53, %v444_v53  ;;  %v1633_v63 = vadd.f32 %v1632_v55, %v1183_v62  ;;  %v124_v38 = vpack.c.bf16 %v82_v30, %v81_v26 }
 0x149   :  { %v11111_v0 = vld [vmem:[#allocation2 + $0x90] sm:$0xff] }
 0x14a   :  { %v11182_v1 = vld [vmem:[#allocation2 + $0x90] sm:$0xff]  ;;  %674 = vst.msk [vmem:[#allocation2 + $0x98] sm:$0xf] %vm549_vm2, %v508_v61  ;;  %8670 = vmatmul.msk.bf16.gmra.mxu2 %vm1045_vm3, %v11111_v0  ;;  %v83_v0 = vld [vmem:[%s15409_s0 + $0x160] sm:$0xff] }
 0x14b   :  { %v321_v4 = vpop.f32.mrf.mxu0  ;;  %8853 = vmatmul.msk.bf16.gmra.mxu3 %vm1045_vm3, %v11182_v1  ;;  %v84_v1 = vld [vmem:[%s15409_s0 + $0x168] sm:$0xff] }
 0x14c   :  { %v322_v7 = vadd.f32 %v12079_v56, %v321_v4 }
 0x14d   :  { %v1635_v10 = vpop.f32.mrf.mxu2 }
 0x14e   :  { %v445_v9 = vmax.f32 %v322_v7, 0.0  ;;  %8315 = vmatmul.msk.bf16.gmra.mxu0 %vm151_vm1, %v123_v2  ;;  %v2153_v12 = vpop.f32.mrf.mxu3 }
 0x14f   :  { %v12315_v13 = vadd.f32 %v2153_v12, %v1631_v45  ;;  %v1186_v15 = vpop.f32.mrf.mxu1  ;;  %v125_v12 = vpack.c.bf16 %v84_v1, %v83_v0 }
 0x150   :  { %v509_v14 = vpack.c.bf16 %v445_v9, %v445_v9  ;;  %v1636_v16 = vadd.f32 %v1635_v10, %v1186_v15 }
 0x151   :  { %v11147_v17 = vld [vmem:[#allocation2 + $0x94] sm:$0xff] }
 0x152   :  { %675 = vst.msk [vmem:[#allocation2 + $0xa4] sm:$0xf] %vm549_vm2, %v509_v14  ;;  %8494 = vmatmul.msk.bf16.gmra.mxu1 %vm1045_vm3, %v11147_v17  ;;  %v11183_v37 = vld [vmem:[#allocation2 + $0x98] sm:$0xff] }
 0x153   :  { %v323_v18 = vpop.f32.mrf.mxu0 }
 0x154   :  { %v324_v19 = vadd.f32 %v12079_v56, %v323_v18 }
 0x155   :  { %v1637_v22 = vpop.f32.mrf.mxu2 }
 0x156   :  { %v446_v20 = vmax.f32 %v324_v19, 0.0  ;;  %v2155_v23 = vpop.f32.mrf.mxu3 }
 0x157   :  { %v12320_v24 = vadd.f32 %v2155_v23, %v1633_v63  ;;  %v1188_v32 = vpop.f32.mrf.mxu1 }
 0x158   :  { %v510_v31 = vpack.c.bf16 %v446_v20, %v446_v20  ;;  %v1638_v35 = vadd.f32 %v1637_v22, %v1188_v32 }
 0x159   :  { %v11112_v36 = vld [vmem:[#allocation2 + $0xa0] sm:$0xff] }
 0x15a   :  { %676 = vst.msk [vmem:[#allocation2 + $0xa8] sm:$0xf] %vm549_vm2, %v510_v31  ;;  %8671 = vmatmul.msk.bf16.gmra.mxu2 %vm1045_vm3, %v11112_v36 }
 0x15b   :  { %v326_v39 = vpop.f32.mrf.mxu0  ;;  %8854 = vmatmul.msk.bf16.gmra.mxu3 %vm1045_vm3, %v11183_v37 }
 0x15c   :  { %v327_v40 = vadd.f32 %v12079_v56, %v326_v39  ;;  %v86_v39 = vld [vmem:[%s15409_s0 + $0x178] sm:$0xff] }
 0x15d   :  { %v1640_v43 = vpop.f32.mrf.mxu2 }
 0x15e   :  { %v447_v42 = vmax.f32 %v327_v40, 0.0  ;;  %8316 = vmatmul.msk.bf16.gmra.mxu0 %vm151_vm1, %v124_v38  ;;  %v2158_v45 = vpop.f32.mrf.mxu3  ;;  %v85_v38 = vld [vmem:[%s15409_s0 + $0x170] sm:$0xff] }
 0x15f   :  { %v12333_v48 = vadd.f32 %v2158_v45, %v1636_v16  ;;  %v1191_v51 = vpop.f32.mrf.mxu1 }
 0x160   :  { %v511_v50 = vpack.c.bf16 %v447_v42, %v447_v42  ;;  %v1641_v53 = vadd.f32 %v1640_v43, %v1191_v51  ;;  %v126_v51 = vpack.c.bf16 %v86_v39, %v85_v38 }
 0x161   :  { %v11148_v55 = vld [vmem:[#allocation2 + $0xa4] sm:$0xff] }
 0x162   :  { %677 = vst.msk [vmem:[#allocation2 + $0xac] sm:$0xf] %vm549_vm2, %v511_v50  ;;  %8495 = vmatmul.msk.bf16.gmra.mxu1 %vm1045_vm3, %v11148_v55 }
 0x163   :  { %v328_v57 = vpop.f32.mrf.mxu0 }
 0x164   :  { %v329_v59 = vadd.f32 %v12079_v56, %v328_v57 }
 0x165   :  { %v1642_v61 = vpop.f32.mrf.mxu2 }
 0x166   :  { %v448_v60 = vmax.f32 %v329_v59, 0.0  ;;  %v2160_v62 = vpop.f32.mrf.mxu3 }
 0x167   :  { %v12338_v63 = vadd.f32 %v2160_v62, %v1638_v35  ;;  %v1193_v4 = vpop.f32.mrf.mxu1 }
 0x168   :  { %v512_v2 = vpack.c.bf16 %v448_v60, %v448_v60  ;;  %v1643_v7 = vadd.f32 %v1642_v61, %v1193_v4 }
 0x169   :  { %v11113_v9 = vld [vmem:[#allocation2 + $0xa8] sm:$0xff] }
 0x16a   :  { %v11184_v10 = vld [vmem:[#allocation2 + $0xa8] sm:$0xff]  ;;  %678 = vst.msk [vmem:[#allocation2 + $0xb0] sm:$0xf] %vm549_vm2, %v512_v2  ;;  %8672 = vmatmul.msk.bf16.gmra.mxu2 %vm1045_vm3, %v11113_v9 }
 0x16b   :  { %v331_v14 = vpop.f32.mrf.mxu0  ;;  %8855 = vmatmul.msk.bf16.gmra.mxu3 %vm1045_vm3, %v11184_v10 }
 0x16c   :  { %v332_v15 = vadd.f32 %v12079_v56, %v331_v14 }
 0x16d   :  { %v1645_v17 = vpop.f32.mrf.mxu2 }
 0x16e   :  { %v449_v16 = vmax.f32 %v332_v15, 0.0  ;;  %8317 = vmatmul.msk.bf16.gmra.mxu0 %vm151_vm1, %v125_v12  ;;  %v2163_v18 = vpop.f32.mrf.mxu3  ;;  %v87_v15 = vld [vmem:[%s15409_s0 + $0x180] sm:$0xff] }
 0x16f   :  { %v12351_v19 = vadd.f32 %v2163_v18, %v1641_v53  ;;  %v1196_v22 = vpop.f32.mrf.mxu1 }
 0x170   :  { %v513_v20 = vpack.c.bf16 %v449_v16, %v449_v16  ;;  %v1646_v23 = vadd.f32 %v1645_v17, %v1196_v22  ;;  %v88_v16 = vld [vmem:[%s15409_s0 + $0x188] sm:$0xff] }
 0x171   :  { %v11149_v26 = vld [vmem:[#allocation2 + $0xac] sm:$0xff] }
 0x172   :  { %679 = vst.msk [vmem:[#allocation2 + $0xb4] sm:$0xf] %vm549_vm2, %v513_v20  ;;  %8496 = vmatmul.msk.bf16.gmra.mxu1 %vm1045_vm3, %v11149_v26  ;;  %v127_v26 = vpack.c.bf16 %v88_v16, %v87_v15 }
 0x173   :  { %v333_v30 = vpop.f32.mrf.mxu0 }
 0x174   :  { %v334_v31 = vadd.f32 %v12079_v56, %v333_v30 }
 0x175   :  { %v1647_v35 = vpop.f32.mrf.mxu2 }
 0x176   :  { %v450_v32 = vmax.f32 %v334_v31, 0.0  ;;  %v2165_v36 = vpop.f32.mrf.mxu3 }
 0x177   :  { %v12356_v37 = vadd.f32 %v2165_v36, %v1643_v7  ;;  %v1198_v42 = vpop.f32.mrf.mxu1 }
 0x178   :  { %v514_v40 = vpack.c.bf16 %v450_v32, %v450_v32  ;;  %v1648_v43 = vadd.f32 %v1647_v35, %v1198_v42 }
 0x179   :  { %v11114_v45 = vld [vmem:[#allocation2 + $0xb0] sm:$0xff] }
 0x17a   :  { %v11185_v50 = vld [vmem:[#allocation2 + $0xb0] sm:$0xff]  ;;  %680 = vst.msk [vmem:[#allocation2 + $0xb8] sm:$0xf] %vm549_vm2, %v514_v40  ;;  %8673 = vmatmul.msk.bf16.gmra.mxu2 %vm1045_vm3, %v11114_v45  ;;  %v11237_v45 = vld [vmem:[%s15411_s3 + $0x68] sm:$0xff] }
 0x17b   :  { %v336_v53 = vpop.f32.mrf.mxu0  ;;  %8856 = vmatmul.msk.bf16.gmra.mxu3 %vm1045_vm3, %v11185_v50  ;;  %v11273_v50 = vld [vmem:[%s15411_s3 + $0x88] sm:$0xff]  ;;  %2707 = vmatpush.bf16.msrb.mxu0 %v11237_v45 }
 0x17c   :  { %v337_v55 = vadd.f32 %v12079_v56, %v336_v53  ;;  %3293 = vmatpush.bf16.msrb.mxu1 %v11273_v50 }
 0x17d   :  { %v1650_v59 = vpop.f32.mrf.mxu2 }
 0x17e   :  { %v451_v57 = vmax.f32 %v337_v55, 0.0  ;;  %8318 = vmatmul.msk.bf16.gmra.mxu0 %vm151_vm1, %v126_v51  ;;  %v2168_v60 = vpop.f32.mrf.mxu3 }
 0x17f   :  { %v12369_v61 = vadd.f32 %v2168_v60, %v1646_v23  ;;  %v1201_v0 = vpop.f32.mrf.mxu1 }
 0x180   :  { %v515_v62 = vpack.c.bf16 %v451_v57, %v451_v57  ;;  %v1651_v1 = vadd.f32 %v1650_v59, %v1201_v0  ;;  %v90_v0 = vld [vmem:[%s15409_s0 + $0x198] sm:$0xff] }
 0x181   :  { %v11150_v2 = vld [vmem:[#allocation2 + $0xb4] sm:$0xff] }
 0x182   :  { %681 = vst.msk [vmem:[#allocation2 + $0xbc] sm:$0xf] %vm549_vm2, %v515_v62  ;;  %8497 = vmatmul.msk.bf16.gmra.mxu1 %vm1045_vm3, %v11150_v2  ;;  %v89_v62 = vld [vmem:[%s15409_s0 + $0x190] sm:$0xff] }
 0x183   :  { %v338_v4 = vpop.f32.mrf.mxu0 }
 0x184   :  { %v339_v7 = vadd.f32 %v12079_v56, %v338_v4 }
 0x185   :  { %v1652_v10 = vpop.f32.mrf.mxu2 }
 0x186   :  { %v452_v9 = vmax.f32 %v339_v7, 0.0  ;;  %v2170_v12 = vpop.f32.mrf.mxu3 }
 0x187   :  { %v12374_v14 = vadd.f32 %v2170_v12, %v1648_v43  ;;  %v1203_v18 = vpop.f32.mrf.mxu1 }
 0x188   :  { %v516_v17 = vpack.c.bf16 %v452_v9, %v452_v9  ;;  %v1653_v20 = vadd.f32 %v1652_v10, %v1203_v18  ;;  %v128_v10 = vpack.c.bf16 %v90_v0, %v89_v62 }
 0x189   :  { %v11115_v22 = vld [vmem:[#allocation2 + $0xb8] sm:$0xff] }
 0x18a   :  { %v11186_v23 = vld [vmem:[#allocation2 + $0xb8] sm:$0xff]  ;;  %682 = vst.msk [vmem:[#allocation2 + $0xc0] sm:$0xf] %vm549_vm2, %v516_v17  ;;  %8674 = vmatmul.msk.bf16.gmra.mxu2 %vm1045_vm3, %v11115_v22 }
 0x18b   :  { %v341_v30 = vpop.f32.mrf.mxu0  ;;  %8857 = vmatmul.msk.bf16.gmra.mxu3 %vm1045_vm3, %v11186_v23 }
 0x18c   :  { %v342_v31 = vadd.f32 %v12079_v56, %v341_v30 }
 0x18d   :  { %v1655_v35 = vpop.f32.mrf.mxu2 }
 0x18e   :  { %v453_v32 = vmax.f32 %v342_v31, 0.0  ;;  %8319 = vmatmul.msk.bf16.gmra.mxu0 %vm151_vm1, %v127_v26  ;;  %v2173_v36 = vpop.f32.mrf.mxu3 }
 0x18f   :  { %v12387_v38 = vadd.f32 %v2173_v36, %v1651_v1  ;;  %v1206_v40 = vpop.f32.mrf.mxu1 }
 0x190   :  { %v517_v39 = vpack.c.bf16 %v453_v32, %v453_v32  ;;  %v1656_v42 = vadd.f32 %v1655_v35, %v1206_v40 }
 0x191   :  { %v11151_v43 = vld [vmem:[#allocation2 + $0xbc] sm:$0xff] }
 0x192   :  { %683 = vst.msk [vmem:[#allocation2 + $0xcc] sm:$0xf] %vm549_vm2, %v517_v39  ;;  %8498 = vmatmul.msk.bf16.gmra.mxu1 %vm1045_vm3, %v11151_v43  ;;  %v11187_v9 = vld [vmem:[#allocation2 + $0xc0] sm:$0xff]  ;;  %v92_v43 = vld [vmem:[%s15409_s0 + $0x1a8] sm:$0xff] }
 0x193   :  { %v343_v51 = vpop.f32.mrf.mxu0 }
 0x194   :  { %v344_v53 = vadd.f32 %v12079_v56, %v343_v51 }
 0x195   :  { %v1657_v57 = vpop.f32.mrf.mxu2 }
 0x196   :  { %v454_v55 = vmax.f32 %v344_v53, 0.0  ;;  %v2175_v59 = vpop.f32.mrf.mxu3 }
 0x197   :  { %v12398_v60 = vadd.f32 %v2175_v59, %v1653_v20  ;;  %v1208_v2 = vpop.f32.mrf.mxu1 }
 0x198   :  { %v518_v1 = vpack.c.bf16 %v454_v55, %v454_v55  ;;  %v1658_v4 = vadd.f32 %v1657_v57, %v1208_v2 }
 0x199   :  { %v11116_v7 = vld [vmem:[#allocation2 + $0xc8] sm:$0xff] }
 0x19a   :  { %684 = vst.msk [vmem:[#allocation2 + $0xd0] sm:$0xf] %vm549_vm2, %v518_v1  ;;  %8675 = vmatmul.msk.bf16.gmra.mxu2 %vm1045_vm3, %v11116_v7 }
 0x19b   :  { %v346_v12 = vpop.f32.mrf.mxu0  ;;  %8858 = vmatmul.msk.bf16.gmra.mxu3 %vm1045_vm3, %v11187_v9 }
 0x19c   :  { %v347_v15 = vadd.f32 %v12079_v56, %v346_v12 }
 0x19d   :  { %v1660_v17 = vpop.f32.mrf.mxu2 }
 0x19e   :  { %v455_v16 = vmax.f32 %v347_v15, 0.0  ;;  %8320 = vmatmul.msk.bf16.gmra.mxu0 %vm151_vm1, %v128_v10  ;;  %v2178_v18 = vpop.f32.mrf.mxu3 }
 0x19f   :  { %v12411_v20 = vadd.f32 %v2178_v18, %v1656_v42  ;;  %v1211_v23 = vpop.f32.mrf.mxu1  ;;  %v91_v42 = vld [vmem:[%s15409_s0 + $0x1a0] sm:$0xff] }
 0x1a0   :  { %v519_v22 = vpack.c.bf16 %v455_v16, %v455_v16  ;;  %v1661_v26 = vadd.f32 %v1660_v17, %v1211_v23  ;;  %v129_v57 = vpack.c.bf16 %v92_v43, %v91_v42  ;;  %v12448_v43 = vld [vmem:[%s15410_s2] ss:$0 sm:$0xff] }
 0x1a1   :  { %v11152_v30 = vld [vmem:[#allocation2 + $0xcc] sm:$0xff] }
 0x1a2   :  { %685 = vst.msk [vmem:[#allocation2 + $0xd4] sm:$0xf] %vm549_vm2, %v519_v22  ;;  %8499 = vmatmul.msk.bf16.gmra.mxu1 %vm1045_vm3, %v11152_v30  ;;  %v94_v30 = vld [vmem:[%s15409_s0 + $0x1b8] sm:$0xff] }
 0x1a3   :  { %v348_v31 = vpop.f32.mrf.mxu0 }
 0x1a4   :  { %v349_v32 = vadd.f32 %v12079_v56, %v348_v31 }
 0x1a5   :  { %v1662_v36 = vpop.f32.mrf.mxu2 }
 0x1a6   :  { %v456_v35 = vmax.f32 %v349_v32, 0.0  ;;  %v2180_v39 = vpop.f32.mrf.mxu3 }
 0x1a7   :  { %v12416_v40 = vadd.f32 %v2180_v39, %v1658_v4  ;;  %v1213_v50 = vpop.f32.mrf.mxu1 }
 0x1a8   :  { %v520_v45 = vpack.c.bf16 %v456_v35, %v456_v35  ;;  %v1663_v51 = vadd.f32 %v1662_v36, %v1213_v50 }
 0x1a9   :  { %v11117_v53 = vld [vmem:[#allocation2 + $0xd0] sm:$0xff] }
 0x1aa   :  { %v11188_v55 = vld [vmem:[#allocation2 + $0xd0] sm:$0xff]  ;;  %686 = vst.msk [vmem:[#allocation2 + $0xd8] sm:$0xf] %vm549_vm2, %v520_v45  ;;  %8676 = vmatmul.msk.bf16.gmra.mxu2 %vm1045_vm3, %v11117_v53 }
 0x1ab   :  { %v351_v59 = vpop.f32.mrf.mxu0  ;;  %8859 = vmatmul.msk.bf16.gmra.mxu3 %vm1045_vm3, %v11188_v55 }
 0x1ac   :  { %v352_v62 = vadd.f32 %v12079_v56, %v351_v59 }
 0x1ad   :  { %v1665_v1 = vpop.f32.mrf.mxu2 }
 0x1ae   :  { %v457_v0 = vmax.f32 %v352_v62, 0.0  ;;  %8321 = vmatmul.msk.bf16.gmra.mxu0 %vm151_vm1, %v129_v57  ;;  %v2183_v2 = vpop.f32.mrf.mxu3 }
 0x1af   :  { %v12429_v4 = vadd.f32 %v2183_v2, %v1661_v26  ;;  %v1216_v9 = vpop.f32.mrf.mxu1  ;;  %v93_v26 = vld [vmem:[%s15409_s0 + $0x1b0] sm:$0xff] }
 0x1b0   :  { %v521_v7 = vpack.c.bf16 %v457_v0, %v457_v0  ;;  %v1666_v10 = vadd.f32 %v1665_v1, %v1216_v9 }
 0x1b1   :  { %v11153_v12 = vld [vmem:[#allocation2 + $0xd4] sm:$0xff] }
 0x1b2   :  { %687 = vst.msk [vmem:[#allocation2 + $0xdc] sm:$0xf] %vm549_vm2, %v521_v7  ;;  %8500 = vmatmul.msk.bf16.gmra.mxu1 %vm1045_vm3, %v11153_v12 }
 0x1b3   :  { %v353_v15 = vpop.f32.mrf.mxu0 }
 0x1b4   :  { %v354_v16 = vadd.f32 %v12079_v56, %v353_v15  ;;  %v130_v56 = vpack.c.bf16 %v94_v30, %v93_v26 }
 0x1b5   :  { %v1667_v18 = vpop.f32.mrf.mxu2 }
 0x1b6   :  { %v458_v17 = vmax.f32 %v354_v16, 0.0  ;;  %v2185_v22 = vpop.f32.mrf.mxu3  ;;  %v96_v16 = vld [vmem:[%s15409_s0 + $0x1c8] sm:$0xff] }
 0x1b7   :  { %v12434_v23 = vadd.f32 %v2185_v22, %v1663_v51  ;;  %v1218_v32 = vpop.f32.mrf.mxu1 }
 0x1b8   :  { %v522_v31 = vpack.c.bf16 %v458_v17, %v458_v17  ;;  %v1668_v35 = vadd.f32 %v1667_v18, %v1218_v32 }
 0x1b9   :  { %v11118_v36 = vld [vmem:[#allocation2 + $0xd8] sm:$0xff] }
 0x1ba   :  { %v11189_v39 = vld [vmem:[#allocation2 + $0xd8] sm:$0xff]  ;;  %688 = vst.msk [vmem:[#allocation2 + $0xe0] sm:$0xf] %vm549_vm2, %v522_v31  ;;  %8677 = vmatmul.msk.bf16.gmra.mxu2 %vm1045_vm3, %v11118_v36 }
 0x1bb   :  { %v356_v42 = vpop.f32.mrf.mxu0  ;;  %8860 = vmatmul.msk.bf16.gmra.mxu3 %vm1045_vm3, %v11189_v39 }
 0x1bc   :  { %v357_v45 = vadd.f32 %v12448_v43, %v356_v42 }
 0x1bd   :  { %v1670_v51 = vpop.f32.mrf.mxu2 }
 0x1be   :  { %v459_v50 = vmax.f32 %v357_v45, 0.0  ;;  %8322 = vmatmul.msk.bf16.gmra.mxu0 %vm151_vm1, %v130_v56  ;;  %v2188_v53 = vpop.f32.mrf.mxu3 }
 0x1bf   :  { %v12452_v55 = vadd.f32 %v2188_v53, %v1666_v10  ;;  %v1221_v59 = vpop.f32.mrf.mxu1  ;;  %v95_v10 = vld [vmem:[%s15409_s0 + $0x1c0] sm:$0xff] }
 0x1c0   :  { %v523_v57 = vpack.c.bf16 %v459_v50, %v459_v50  ;;  %v1671_v62 = vadd.f32 %v1670_v51, %v1221_v59  ;;  %v131_v31 = vpack.c.bf16 %v96_v16, %v95_v10 }
 0x1c1   :  { %v11154_v0 = vld [vmem:[#allocation2 + $0xdc] sm:$0xff] }
 0x1c2   :  { %689 = vst.msk [vmem:[#allocation2 + $0xe4] sm:$0xf] %vm549_vm2, %v523_v57  ;;  %8501 = vmatmul.msk.bf16.gmra.mxu1 %vm1045_vm3, %v11154_v0 }
 0x1c3   :  { %v358_v1 = vpop.f32.mrf.mxu0 }
 0x1c4   :  { %v359_v2 = vadd.f32 %v12448_v43, %v358_v1 }
 0x1c5   :  { %v1672_v9 = vpop.f32.mrf.mxu2 }
 0x1c6   :  { %v460_v7 = vmax.f32 %v359_v2, 0.0  ;;  %v2190_v12 = vpop.f32.mrf.mxu3 }
 0x1c7   :  { %v12457_v15 = vadd.f32 %v2190_v12, %v1668_v35  ;;  %v1223_v18 = vpop.f32.mrf.mxu1 }
 0x1c8   :  { %v524_v17 = vpack.c.bf16 %v460_v7, %v460_v7  ;;  %v1673_v22 = vadd.f32 %v1672_v9, %v1223_v18  ;;  %v98_v9 = vld [vmem:[%s15409_s0 + $0x1d8] sm:$0xff] }
 0x1c9   :  { %v11119_v26 = vld [vmem:[#allocation2 + $0xe0] sm:$0xff] }
 0x1ca   :  { %v11190_v30 = vld [vmem:[#allocation2 + $0xe0] sm:$0xff]  ;;  %690 = vst.msk [vmem:[#allocation2 + $0xe8] sm:$0xf] %vm549_vm2, %v524_v17  ;;  %8678 = vmatmul.msk.bf16.gmra.mxu2 %vm1045_vm3, %v11119_v26 }
 0x1cb   :  { %v361_v32 = vpop.f32.mrf.mxu0  ;;  %8861 = vmatmul.msk.bf16.gmra.mxu3 %vm1045_vm3, %v11190_v30 }
 0x1cc   :  { %v362_v35 = vadd.f32 %v12448_v43, %v361_v32 }
 0x1cd   :  { %v1675_v39 = vpop.f32.mrf.mxu2 }
 0x1ce   :  { %v461_v36 = vmax.f32 %v362_v35, 0.0  ;;  %8323 = vmatmul.msk.bf16.gmra.mxu0 %vm151_vm1, %v131_v31  ;;  %v2193_v56 = vpop.f32.mrf.mxu3 }
 0x1cf   :  { %v12470_v42 = vadd.f32 %v2193_v56, %v1671_v62  ;;  %v1226_v50 = vpop.f32.mrf.mxu1  ;;  %v97_v62 = vld [vmem:[%s15409_s0 + $0x1d0] sm:$0xff] }
 0x1d0   :  { %v525_v45 = vpack.c.bf16 %v461_v36, %v461_v36  ;;  %v1676_v51 = vadd.f32 %v1675_v39, %v1226_v50  ;;  %v132_v26 = vpack.c.bf16 %v98_v9, %v97_v62  ;;  %v100_v62 = vld [vmem:[%s15409_s0 + $0x1e8] sm:$0xff] }
 0x1d1   :  { %v11155_v53 = vld [vmem:[#allocation2 + $0xe4] sm:$0xff] }
 0x1d2   :  { %691 = vst.msk [vmem:[#allocation2 + $0xf4] sm:$0xf] %vm549_vm2, %v525_v45  ;;  %8502 = vmatmul.msk.bf16.gmra.mxu1 %vm1045_vm3, %v11155_v53  ;;  %v11191_v18 = vld [vmem:[#allocation2 + $0xe8] sm:$0xff] }
 0x1d3   :  { %v363_v57 = vpop.f32.mrf.mxu0 }
 0x1d4   :  { %v364_v59 = vadd.f32 %v12448_v43, %v363_v57 }
 0x1d5   :  { %v1677_v1 = vpop.f32.mrf.mxu2 }
 0x1d6   :  { %v462_v0 = vmax.f32 %v364_v59, 0.0  ;;  %v2195_v2 = vpop.f32.mrf.mxu3 }
 0x1d7   :  { %v12475_v7 = vadd.f32 %v2195_v2, %v1673_v22  ;;  %v1228_v10 = vpop.f32.mrf.mxu1 }
 0x1d8   :  { %v526_v12 = vpack.c.bf16 %v462_v0, %v462_v0  ;;  %v1678_v16 = vadd.f32 %v1677_v1, %v1228_v10 }
 0x1d9   :  { %v11120_v17 = vld [vmem:[#allocation2 + $0xf0] sm:$0xff] }
 0x1da   :  { %692 = vst.msk [vmem:[#allocation2 + $0xf8] sm:$0xf] %vm549_vm2, %v526_v12  ;;  %8679 = vmatmul.msk.bf16.gmra.mxu2 %vm1045_vm3, %v11120_v17 }
 0x1db   :  { %v366_v30 = vpop.f32.mrf.mxu0  ;;  %8862 = vmatmul.msk.bf16.gmra.mxu3 %vm1045_vm3, %v11191_v18 }
 0x1dc   :  { %v367_v22 = vadd.f32 %v12448_v43, %v366_v30 }
 0x1dd   :  { %v1680_v32 = vpop.f32.mrf.mxu2 }
 0x1de   :  { %v463_v31 = vmax.f32 %v367_v22, 0.0  ;;  %8324 = vmatmul.msk.bf16.gmra.mxu0 %vm151_vm1, %v132_v26  ;;  %v2198_v35 = vpop.f32.mrf.mxu3  ;;  %v11236_v26 = vld [vmem:[%s15411_s3 + $0x60] sm:$0xff] }
 0x1df   :  { %v12488_v36 = vadd.f32 %v2198_v35, %v1676_v51  ;;  %v1231_v56 = vpop.f32.mrf.mxu1  ;;  %v99_v51 = vld [vmem:[%s15409_s0 + $0x1e0] sm:$0xff]  ;;  %2708 = vmatpush.bf16.msrb.mxu0 %v11236_v26 }
 0x1e0   :  { %v527_v39 = vpack.c.bf16 %v463_v31, %v463_v31  ;;  %v1681_v45 = vadd.f32 %v1680_v32, %v1231_v56 }
 0x1e1   :  { %v11156_v50 = vld [vmem:[#allocation2 + $0xf4] sm:$0xff] }
 0x1e2   :  { %693 = vst.msk [vmem:[#allocation2 + $0xfc] sm:$0xf] %vm549_vm2, %v527_v39  ;;  %8503 = vmatmul.msk.bf16.gmra.mxu1 %vm1045_vm3, %v11156_v50 }
 0x1e3   :  { %v368_v53 = vpop.f32.mrf.mxu0 }
 0x1e4   :  { %v369_v57 = vadd.f32 %v12448_v43, %v368_v53 }
 0x1e5   :  { %v1682_v0 = vpop.f32.mrf.mxu2 }
 0x1e6   :  { %v464_v59 = vmax.f32 %v369_v57, 0.0  ;;  %v2200_v1 = vpop.f32.mrf.mxu3 }
 0x1e7   :  { %v12493_v2 = vadd.f32 %v2200_v1, %v1678_v16  ;;  %v1233_v12 = vpop.f32.mrf.mxu1  ;;  %v133_v16 = vpack.c.bf16 %v100_v62, %v99_v51 }
 0x1e8   :  { %v528_v9 = vpack.c.bf16 %v464_v59, %v464_v59  ;;  %v1683_v10 = vadd.f32 %v1682_v0, %v1233_v12  ;;  %v102_v12 = vld [vmem:[%s15409_s0 + $0x1f8] sm:$0xff] }
 0x1e9   :  { %v11121_v17 = vld [vmem:[#allocation2 + $0xf8] sm:$0xff] }
 0x1ea   :  { %v11192_v18 = vld [vmem:[#allocation2 + $0xf8] sm:$0xff]  ;;  %694 = vst.msk [vmem:[#allocation2 + $0x100] sm:$0xf] %vm549_vm2, %v528_v9  ;;  %8680 = vmatmul.msk.bf16.gmra.mxu2 %vm1045_vm3, %v11121_v17 }
 0x1eb   :  { %v371_v30 = vpop.f32.mrf.mxu0  ;;  %8863 = vmatmul.msk.bf16.gmra.mxu3 %vm1045_vm3, %v11192_v18 }
 0x1ec   :  { %v372_v22 = vadd.f32 %v12448_v43, %v371_v30 }
 0x1ed   :  { %v1685_v32 = vpop.f32.mrf.mxu2 }
 0x1ee   :  { %v465_v31 = vmax.f32 %v372_v22, 0.0  ;;  %8325 = vmatmul.msk.bf16.gmra.mxu0 %vm151_vm1, %v133_v16  ;;  %v2203_v35 = vpop.f32.mrf.mxu3 }
 0x1ef   :  { %v12509_v39 = vadd.f32 %v2203_v35, %v1681_v45  ;;  %v1236_v50 = vpop.f32.mrf.mxu1  ;;  %v101_v45 = vld [vmem:[%s15409_s0 + $0x1f0] sm:$0xff] }
 0x1f0   :  { %v529_v56 = vpack.c.bf16 %v465_v31, %v465_v31  ;;  %v1686_v53 = vadd.f32 %v1685_v32, %v1236_v50  ;;  %v134_v22 = vpack.c.bf16 %v102_v12, %v101_v45 }
 0x1f1   :  { %v11157_v57 = vld [vmem:[#allocation2 + $0xfc] sm:$0xff] }
 0x1f2   :  { %695 = vst.msk [vmem:[#allocation2 + $0x104] sm:$0xf] %vm549_vm2, %v529_v56  ;;  %8504 = vmatmul.msk.bf16.gmra.mxu1 %vm1045_vm3, %v11157_v57 }
 0x1f3   :  { %v373_v59 = vpop.f32.mrf.mxu0 }
 0x1f4   :  { %v374_v0 = vadd.f32 %v12448_v43, %v373_v59 }
 0x1f5   :  { %v1687_v51 = vpop.f32.mrf.mxu2 }
 0x1f6   :  { %v466_v1 = vmax.f32 %v374_v0, 0.0  ;;  %v2205_v62 = vpop.f32.mrf.mxu3 }
 0x1f7   :  { %v12514_v9 = vadd.f32 %v2205_v62, %v1683_v10  ;;  %v1238_v18 = vpop.f32.mrf.mxu1 }
 0x1f8   :  { %v530_v17 = vpack.c.bf16 %v466_v1, %v466_v1  ;;  %v1688_v26 = vadd.f32 %v1687_v51, %v1238_v18 }
 0x1f9   :  { %v11122_v16 = vld [vmem:[#allocation2 + $0x100] sm:$0xff] }
 0x1fa   :  { %v11193_v30 = vld [vmem:[#allocation2 + $0x100] sm:$0xff]  ;;  %696 = vst.msk [vmem:[#allocation2 + $0x108] sm:$0xf] %vm549_vm2, %v530_v17  ;;  %8681 = vmatmul.msk.bf16.gmra.mxu2 %vm1045_vm3, %v11122_v16 }
 0x1fb   :  { %v376_v31 = vpop.f32.mrf.mxu0  ;;  %8864 = vmatmul.msk.bf16.gmra.mxu3 %vm1045_vm3, %v11193_v30 }
 0x1fc   :  { %v377_v10 = vadd.f32 %v12448_v43, %v376_v31 }
 0x1fd   :  { %v1690_v35 = vpop.f32.mrf.mxu2 }
 0x1fe   :  { %v467_v32 = vmax.f32 %v377_v10, 0.0  ;;  %8326 = vmatmul.msk.bf16.gmra.mxu0 %vm151_vm1, %v134_v22  ;;  %v2208_v56 = vpop.f32.mrf.mxu3 }
 0x1ff   :  { %v12527_v50 = vadd.f32 %v2208_v56, %v1686_v53  ;;  %v1241_v59 = vpop.f32.mrf.mxu1 }
 0x200   :  { %v531_v57 = vpack.c.bf16 %v467_v32, %v467_v32  ;;  %v1691_v0 = vadd.f32 %v1690_v35, %v1241_v59  ;;  %v11204_v35 = vld [vmem:[#allocation2 + $0x28] sm:$0xff] }
 0x201   :  { %15420 = vst [vmem:[#allocation3_spill] sm:$0xff] %v12527_v50  ;;  %v11158_v1 = vld [vmem:[#allocation2 + $0x104] sm:$0xff] }
 0x202   :  { %697 = vst.msk [vmem:[#allocation2 + $0x10c] sm:$0xf] %vm549_vm2, %v531_v57  ;;  %8505 = vmatmul.msk.bf16.gmra.mxu1 %vm1045_vm3, %v11158_v1 }
 0x203   :  { %v378_v51 = vpop.f32.mrf.mxu0 }
 0x204   :  { %v379_v62 = vadd.f32 %v12448_v43, %v378_v51 }
 0x205   :  { %v1692_v12 = vpop.f32.mrf.mxu2 }
 0x206   :  { %v468_v45 = vmax.f32 %v379_v62, 0.0  ;;  %v2210_v17 = vpop.f32.mrf.mxu3 }
 0x207   :  { %v12532_v18 = vadd.f32 %v2210_v17, %v1688_v26  ;;  %v1243_v30 = vpop.f32.mrf.mxu1 }
 0x208   :  { %v532_v16 = vpack.c.bf16 %v468_v45, %v468_v45  ;;  %v1693_v53 = vadd.f32 %v1692_v12, %v1243_v30  ;;  %v11272_v12 = vld [vmem:[%s15411_s3 + $0x80] sm:$0xff] }
 0x209   :  { %15421 = vst [vmem:[#allocation4_spill] sm:$0xff] %v12532_v18  ;;  %v11123_v22 = vld [vmem:[#allocation2 + $0x108] sm:$0xff]  ;;  %3294 = vmatpush.bf16.msrb.mxu1 %v11272_v12  ;;  %v11319_v18 = vld [vmem:[#allocation2 + $0x90] sm:$0xff] }
 0x20a   :  { %v11194_v31 = vld [vmem:[#allocation2 + $0x108] sm:$0xff]  ;;  %698 = vst.msk [vmem:[#allocation2 + $0x110] sm:$0xf] %vm549_vm2, %v532_v16  ;;  %8682 = vmatmul.msk.bf16.gmra.mxu2 %vm1045_vm3, %v11123_v22 }
 0x20b   :  { %v381_v10 = vpop.f32.mrf.mxu0  ;;  %8865 = vmatmul.msk.bf16.gmra.mxu3 %vm1045_vm3, %v11194_v31 }
 0x20c   :  { %v382_v32 = vadd.f32 %v12448_v43, %v381_v10 }
 0x20d   :  { %v1695_v26 = vpop.f32.mrf.mxu2 }
 0x20e   :  { %v469_v56 = vmax.f32 %v382_v32, 0.0  ;;  %9023 = vmatmul.msk.bf16.vlgmr.msrb.gmra.mxu0 %vm1045_vm3, %v11204_v35  ;;  %v2213_v57 = vpop.f32.mrf.mxu3 }
 0x20f   :  { %v12539_v59 = vadd.f32 %v2213_v57, %v1691_v0  ;;  %v1246_v51 = vpop.f32.mrf.mxu1 }
 0x210   :  { %v533_v1 = vpack.c.bf16 %v469_v56, %v469_v56  ;;  %v1696_v62 = vadd.f32 %v1695_v26, %v1246_v51  ;;  %v11205_v51 = vld [vmem:[#allocation2 + $0x30] sm:$0xff] }
 0x211   :  { %15422 = vst [vmem:[#allocation5_spill] sm:$0xff] %v12539_v59  ;;  %v11159_v45 = vld [vmem:[#allocation2 + $0x10c] sm:$0xff] }
 0x212   :  { %699 = vst.msk [vmem:[#allocation2 + $0x11c] sm:$0xf] %vm549_vm2, %v533_v1  ;;  %8506 = vmatmul.msk.bf16.gmra.mxu1 %vm1045_vm3, %v11159_v45  ;;  %v11195_v26 = vld [vmem:[#allocation2 + $0x110] sm:$0xff]  ;;  %v11318_v59 = vld [vmem:[#allocation2 + $0x88] sm:$0xff] }
 0x213   :  { %v383_v17 = vpop.f32.mrf.mxu0 }
 0x214   :  { %v384_v16 = vadd.f32 %v12448_v43, %v383_v17 }
 0x215   :  { %v1697_v22 = vpop.f32.mrf.mxu2 }
 0x216   :  { %v470_v30 = vmax.f32 %v384_v16, 0.0  ;;  %v2215_v0 = vpop.f32.mrf.mxu3 }
 0x217   :  { %v12547_v31 = vadd.f32 %v2215_v0, %v1693_v53  ;;  %v1248_v32 = vpop.f32.mrf.mxu1 }
 0x218   :  { %v534_v10 = vpack.c.bf16 %v470_v30, %v470_v30  ;;  %v1698_v35 = vadd.f32 %v1697_v22, %v1248_v32 }
 0x219   :  { %15423 = vst [vmem:[#allocation6_spill] sm:$0xff] %v12547_v31  ;;  %v11124_v56 = vld [vmem:[#allocation2 + $0x118] sm:$0xff] }
 0x21a   :  { %700 = vst.msk [vmem:[#allocation2 + $0x120] sm:$0xf] %vm549_vm2, %v534_v10  ;;  %8683 = vmatmul.msk.bf16.gmra.mxu2 %vm1045_vm3, %v11124_v56 }
 0x21b   :  { %v386_v57 = vpop.f32.mrf.mxu0  ;;  %8866 = vmatmul.msk.bf16.gmra.mxu3 %vm1045_vm3, %v11195_v26 }
 0x21c   :  { %v387_v1 = vadd.f32 %v12448_v43, %v386_v57 }
 0x21d   :  { %v1700_v53 = vpop.f32.mrf.mxu2 }
 0x21e   :  { %v471_v45 = vmax.f32 %v387_v1, 0.0  ;;  %9024 = vmatmul.msk.bf16.gmra.mxu0 %vm1045_vm3, %v11205_v51  ;;  %v2218_v12 = vpop.f32.mrf.mxu3 }
 0x21f   :  { %v12554_v17 = vadd.f32 %v2218_v12, %v1696_v62  ;;  %v1251_v30 = vpop.f32.mrf.mxu1 }
 0x220   :  { %v535_v16 = vpack.c.bf16 %v471_v45, %v471_v45  ;;  %v1701_v22 = vadd.f32 %v1700_v53, %v1251_v30  ;;  %v11311_v53 = vld [vmem:[%s15411_s3 + $0xb8] sm:$0xff] }
 0x221   :  { %15424 = vst [vmem:[#allocation7_spill] sm:$0xff] %v12554_v17  ;;  %v11160_v0 = vld [vmem:[#allocation2 + $0x11c] sm:$0xff]  ;;  %3878 = vmatpush.bf16.msrb.mxu2 %v11311_v53 }
 0x222   :  { %701 = vst.msk [vmem:[#allocation2 + $0x124] sm:$0xf] %vm549_vm2, %v535_v16  ;;  %8507 = vmatmul.msk.bf16.gmra.mxu1 %vm1045_vm3, %v11160_v0 }
 0x223   :  { %v388_v10 = vpop.f32.mrf.mxu0 }
 0x224   :  { %v389_v32 = vadd.f32 %v12448_v43, %v388_v10 }
 0x225   :  { %v1702_v26 = vpop.f32.mrf.mxu2 }
 0x226   :  { %v472_v56 = vmax.f32 %v389_v32, 0.0  ;;  %v2220_v57 = vpop.f32.mrf.mxu3  ;;  %v11310_v32 = vld [vmem:[%s15411_s3 + $0xb0] sm:$0xff] }
 0x227   :  { %v12559_v1 = vadd.f32 %v2220_v57, %v1698_v35  ;;  %v1253_v31 = vpop.f32.mrf.mxu1  ;;  %v11206_v35 = vld [vmem:[#allocation2 + $0x38] sm:$0xff]  ;;  %3879 = vmatpush.bf16.msrb.mxu2 %v11310_v32 }
 0x228   :  { %v536_v51 = vpack.c.bf16 %v472_v56, %v472_v56  ;;  %v1703_v62 = vadd.f32 %v1702_v26, %v1253_v31 }
 0x229   :  { %15425 = vst [vmem:[#allocation8_spill] sm:$0xff] %v12559_v1  ;;  %v11125_v12 = vld [vmem:[#allocation2 + $0x120] sm:$0xff] }
 0x22a   :  { %v11196_v45 = vld [vmem:[#allocation2 + $0x120] sm:$0xff]  ;;  %702 = vst.msk [vmem:[#allocation2 + $0x128] sm:$0xf] %vm549_vm2, %v536_v51  ;;  %8684 = vmatmul.msk.bf16.gmra.mxu2 %vm1045_vm3, %v11125_v12 }
 0x22b   :  { %v391_v16 = vpop.f32.mrf.mxu0  ;;  %8867 = vmatmul.msk.bf16.gmra.mxu3 %vm1045_vm3, %v11196_v45  ;;  %v11309_v45 = vld [vmem:[%s15411_s3 + $0xa8] sm:$0xff] }
 0x22c   :  { %v392_v30 = vadd.f32 %v12448_v43, %v391_v16  ;;  %3880 = vmatpush.bf16.msrb.mxu2 %v11309_v45  ;;  %v11347_v45 = vld [vmem:[%s15411_s3 + $0xd8] sm:$0xff] }
 0x22d   :  { %v1705_v31 = vpop.f32.mrf.mxu2  ;;  %4465 = vmatpush.bf16.msrb.mxu3 %v11347_v45  ;;  %v11345_v45 = vld [vmem:[%s15411_s3 + $0xc8] sm:$0xff] }
 0x22e   :  { %v473_v0 = vmax.f32 %v392_v30, 0.0  ;;  %9025 = vmatmul.msk.bf16.gmra.mxu0 %vm1045_vm3, %v11206_v35  ;;  %v2223_v10 = vpop.f32.mrf.mxu3 }
 0x22f   :  { %v12572_v56 = vadd.f32 %v2223_v10, %v1701_v22  ;;  %v1256_v57 = vpop.f32.mrf.mxu1 }
 0x230   :  { %v537_v26 = vpack.c.bf16 %v473_v0, %v473_v0  ;;  %v1706_v51 = vadd.f32 %v1705_v31, %v1256_v57  ;;  %v11308_v0 = vld [vmem:[%s15411_s3 + $0xa0] sm:$0xff] }
 0x231   :  { %15426 = vst [vmem:[#allocation9_spill] sm:$0xff] %v12572_v56  ;;  %v11161_v12 = vld [vmem:[#allocation2 + $0x124] sm:$0xff]  ;;  %3881 = vmatpush.bf16.msrb.mxu2 %v11308_v0  ;;  %v11346_v0 = vld [vmem:[%s15411_s3 + $0xd0] sm:$0xff] }
 0x232   :  { %703 = vst.msk [vmem:[#allocation2 + $0x12c] sm:$0xf] %vm549_vm2, %v537_v26  ;;  %8508 = vmatmul.msk.bf16.gmra.mxu1 %vm1045_vm3, %v11161_v12  ;;  %4466 = vmatpush.bf16.msrb.mxu3 %v11346_v0 }
 0x233   :  { %v393_v53 = vpop.f32.mrf.mxu0 }
 0x234   :  { %v394_v16 = vadd.f32 %v12448_v43, %v393_v53  ;;  %v11207_v53 = vld [vmem:[#allocation2 + $0x40] sm:$0xff] }
 0x235   :  { %v1707_v22 = vpop.f32.mrf.mxu2 }
 0x236   :  { %v474_v30 = vmax.f32 %v394_v16, 0.0  ;;  %v2225_v35 = vpop.f32.mrf.mxu3  ;;  %4467 = vmatpush.bf16.msrb.mxu3 %v11345_v45 }
 0x237   :  { %v12583_v31 = vadd.f32 %v2225_v35, %v1703_v62  ;;  %v1258_v32 = vpop.f32.mrf.mxu1 }
 0x238   :  { %v538_v10 = vpack.c.bf16 %v474_v30, %v474_v30  ;;  %v1708_v26 = vadd.f32 %v1707_v22, %v1258_v32 }
 0x239   :  { %15427 = vst [vmem:[#allocation10_spill] sm:$0xff] %v12583_v31  ;;  %v11126_v57 = vld [vmem:[#allocation2 + $0x128] sm:$0xff] }
 0x23a   :  { %v11197_v56 = vld [vmem:[#allocation2 + $0x128] sm:$0xff]  ;;  %704 = vst.msk [vmem:[#allocation2 + $0x130] sm:$0xf] %vm549_vm2, %v538_v10  ;;  %8685 = vmatmul.msk.bf16.gmra.mxu2 %vm1045_vm3, %v11126_v57 }
 0x23b   :  { %v396_v12 = vpop.f32.mrf.mxu0  ;;  %8868 = vmatmul.msk.bf16.gmra.mxu3 %vm1045_vm3, %v11197_v56 }
 0x23c   :  { %v397_v62 = vadd.f32 %v12448_v43, %v396_v12 }
 0x23d   :  { %v1710_v30 = vpop.f32.mrf.mxu2 }
 0x23e   :  { %v475_v16 = vmax.f32 %v397_v62, 0.0  ;;  %9026 = vmatmul.msk.bf16.gmra.mxu0 %vm1045_vm3, %v11207_v53  ;;  %v2228_v22 = vpop.f32.mrf.mxu3 }
 0x23f   :  { %v12593_v35 = vadd.f32 %v2228_v22, %v1706_v51  ;;  %v1261_v10 = vpop.f32.mrf.mxu1 }
 0x240   :  { %v539_v56 = vpack.c.bf16 %v475_v16, %v475_v16  ;;  %v1711_v32 = vadd.f32 %v1710_v30, %v1261_v10  ;;  %v11344_v30 = vld [vmem:[%s15411_s3 + $0xc0] sm:$0xff] }
 0x241   :  { %15428 = vst [vmem:[#allocation11_spill] sm:$0xff] %v12593_v35  ;;  %v11162_v57 = vld [vmem:[#allocation2 + $0x12c] sm:$0xff]  ;;  %4468 = vmatpush.bf16.msrb.mxu3 %v11344_v30 }
 0x242   :  { %705 = vst.msk [vmem:[#allocation2 + $0x134] sm:$0xf] %vm549_vm2, %v539_v56  ;;  %8509 = vmatmul.msk.bf16.gmra.mxu1 %vm1045_vm3, %v11162_v57 }
 0x243   :  { %v398_v12 = vpop.f32.mrf.mxu0 }
 0x244   :  { %v399_v51 = vadd.f32 %v12448_v43, %v398_v12  ;;  %v11208_v12 = vld [vmem:[#allocation2 + $0x50] sm:$0xff] }
 0x245   :  { %v1712_v53 = vpop.f32.mrf.mxu2 }
 0x246   :  { %v476_v62 = vmax.f32 %v399_v51, 0.0  ;;  %v2230_v22 = vpop.f32.mrf.mxu3 }
 0x247   :  { %v12604_v16 = vadd.f32 %v2230_v22, %v1708_v26  ;;  %v1263_v56 = vpop.f32.mrf.mxu1 }
 0x248   :  { %v540_v0 = vpack.c.bf16 %v476_v62, %v476_v62  ;;  %v1713_v10 = vadd.f32 %v1712_v53, %v1263_v56 }
 0x249   :  { %15429 = vst [vmem:[#allocation12_spill] sm:$0xff] %v12604_v16  ;;  %v11127_v57 = vld [vmem:[#allocation2 + $0x130] sm:$0xff] }
 0x24a   :  { %v11198_v35 = vld [vmem:[#allocation2 + $0x130] sm:$0xff]  ;;  %706 = vst.msk [vmem:[#allocation2 + $0x138] sm:$0xf] %vm549_vm2, %v540_v0  ;;  %8686 = vmatmul.msk.bf16.gmra.mxu2 %vm1045_vm3, %v11127_v57 }
 0x24b   :  { %v401_v31 = vpop.f32.mrf.mxu0  ;;  %8869 = vmatmul.msk.bf16.gmra.mxu3 %vm1045_vm3, %v11198_v35 }
 0x24c   :  { %v402_v26 = vadd.f32 %v12448_v43, %v401_v31 }
 0x24d   :  { %v1715_v51 = vpop.f32.mrf.mxu2 }
 0x24e   :  { %v477_v45 = vmax.f32 %v402_v26, 0.0  ;;  %9027 = vmatmul.msk.bf16.gmra.mxu0 %vm1045_vm3, %v11208_v12  ;;  %v2233_v62 = vpop.f32.mrf.mxu3 }
 0x24f   :  { %v12614_v22 = vadd.f32 %v2233_v62, %v1711_v32  ;;  %v1266_v56 = vpop.f32.mrf.mxu1 }
 0x250   :  { %v541_v53 = vpack.c.bf16 %v477_v45, %v477_v45  ;;  %v1716_v30 = vadd.f32 %v1715_v51, %v1266_v56  ;;  %v11276_v45 = vld [vmem:[#allocation2 + $0x30] sm:$0xff] }
 0x251   :  { %15430 = vst [vmem:[#allocation13_spill] sm:$0xff] %v12614_v22  ;;  %v11163_v16 = vld [vmem:[#allocation2 + $0x134] sm:$0xff] }
 0x252   :  { %707 = vst.msk [vmem:[#allocation2 + $0x144] sm:$0xf] %vm549_vm2, %v541_v53  ;;  %8510 = vmatmul.msk.bf16.gmra.mxu1 %vm1045_vm3, %v11163_v16  ;;  %v11199_v62 = vld [vmem:[#allocation2 + $0x138] sm:$0xff] }
 0x253   :  { %v403_v0 = vpop.f32.mrf.mxu0  ;;  %v11209_v53 = vld [vmem:[#allocation2 + $0x58] sm:$0xff] }
 0x254   :  { %v404_v35 = vadd.f32 %v12448_v43, %v403_v0 }
 0x255   :  { %v1717_v57 = vpop.f32.mrf.mxu2 }
 0x256   :  { %v478_v31 = vmax.f32 %v404_v35, 0.0  ;;  %v2235_v26 = vpop.f32.mrf.mxu3 }
 0x257   :  { %v12619_v1 = vadd.f32 %v2235_v26, %v1713_v10  ;;  %v1268_v17 = vpop.f32.mrf.mxu1  ;;  %v11240_v26 = vld [vmem:[#allocation2 + $0x2c] sm:$0xff] }
 0x258   :  { %v542_v12 = vpack.c.bf16 %v478_v31, %v478_v31  ;;  %v1718_v32 = vadd.f32 %v1717_v57, %v1268_v17 }
 0x259   :  { %15431 = vst [vmem:[#allocation14_spill] sm:$0xff] %v12619_v1 }
 0x25a   :  { %708 = vst.msk [vmem:[#allocation2 + $0x148] sm:$0xf] %vm549_vm2, %v542_v12  ;;  %9391 = vmatmul.msk.bf16.vlgmr.msrb.gmra.mxu2 %vm1045_vm3, %v11276_v45 }
 0x25b   :  { %v406_v51 = vpop.f32.mrf.mxu0  ;;  %8870 = vmatmul.msk.bf16.gmra.mxu3 %vm1045_vm3, %v11199_v62 }
 0x25c   :  { %v407_v16 = vadd.f32 %v12448_v43, %v406_v51 }
 0x25d   :  { %v1720_v10 = vpop.f32.mrf.mxu2 }
 0x25e   :  { %v479_v56 = vmax.f32 %v407_v16, 0.0  ;;  %9028 = vmatmul.msk.bf16.gmra.mxu0 %vm1045_vm3, %v11209_v53  ;;  %v2238_v0 = vpop.f32.mrf.mxu3 }
 0x25f   :  { %v12626_v35 = vadd.f32 %v2238_v0, %v1716_v30  ;;  %v1271_v31 = vpop.f32.mrf.mxu1  ;;  %v11277_v0 = vld [vmem:[#allocation2 + $0x38] sm:$0xff] }
 0x260   :  { %v543_v17 = vpack.c.bf16 %v479_v56, %v479_v56  ;;  %v1721_v57 = vadd.f32 %v1720_v10, %v1271_v31  ;;  %v11312_v56 = vld [vmem:[#allocation2 + $0x50] sm:$0xff]  ;;  %v11210_v31 = vld [vmem:[#allocation2 + $0x60] sm:$0xff] }
 0x261   :  { %15432 = vst [vmem:[#allocation15_spill] sm:$0xff] %v12626_v35 }
 0x262   :  { %709 = vst.msk [vmem:[#allocation2 + $0x14c] sm:$0xf] %vm549_vm2, %v543_v17  ;;  %9207 = vmatmul.msk.bf16.vlgmr.msrb.gmra.mxu1 %vm1045_vm3, %v11240_v26 }
 0x263   :  { %v408_v12 = vpop.f32.mrf.mxu0 }
 0x264   :  { %v409_v62 = vadd.f32 %v12448_v43, %v408_v12 }
 0x265   :  { %v1722_v51 = vpop.f32.mrf.mxu2 }
 0x266   :  { %v480_v45 = vmax.f32 %v409_v62, 0.0  ;;  %v2240_v16 = vpop.f32.mrf.mxu3 }
 0x267   :  { %v12631_v1 = vadd.f32 %v2240_v16, %v1718_v32  ;;  %v1273_v22 = vpop.f32.mrf.mxu1  ;;  %v11241_v16 = vld [vmem:[#allocation2 + $0x34] sm:$0xff] }
 0x268   :  { %v544_v53 = vpack.c.bf16 %v480_v45, %v480_v45  ;;  %v1723_v30 = vadd.f32 %v1722_v51, %v1273_v22 }
 0x269   :  { %15433 = vst [vmem:[#allocation16_spill] sm:$0xff] %v12631_v1 }
 0x26a   :  { %710 = vst.msk [vmem:[#allocation2 + $0x150] sm:$0xf] %vm549_vm2, %v544_v53  ;;  %9392 = vmatmul.msk.bf16.gmra.mxu2 %vm1045_vm3, %v11277_v0 }
 0x26b   :  { %v411_v10 = vpop.f32.mrf.mxu0  ;;  %9575 = vmatmul.msk.bf16.vlgmr.msrb.gmra.mxu3 %vm1045_vm3, %v11312_v56 }
 0x26c   :  { %v412_v17 = vadd.f32 %v12448_v43, %v411_v10 }
 0x26d   :  { %v1725_v32 = vpop.f32.mrf.mxu2 }
 0x26e   :  { %v481_v26 = vmax.f32 %v412_v17, 0.0  ;;  %9029 = vmatmul.msk.bf16.gmra.mxu0 %vm1045_vm3, %v11210_v31  ;;  %v2243_v12 = vpop.f32.mrf.mxu3 }
 0x26f   :  { %v12638_v62 = vadd.f32 %v2243_v12, %v1721_v57  ;;  %v1276_v45 = vpop.f32.mrf.mxu1  ;;  %v11278_v12 = vld [vmem:[#allocation2 + $0x40] sm:$0xff] }
 0x270   :  { %v545_v22 = vpack.c.bf16 %v481_v26, %v481_v26  ;;  %v1726_v51 = vadd.f32 %v1725_v32, %v1276_v45  ;;  %v11313_v26 = vld [vmem:[#allocation2 + $0x58] sm:$0xff]  ;;  %v11211_v45 = vld [vmem:[#allocation2 + $0x68] sm:$0xff] }
 0x271   :  { %15434 = vst [vmem:[#allocation17_spill] sm:$0xff] %v12638_v62 }
 0x272   :  { %711 = vst.msk [vmem:[#allocation2 + $0x154] sm:$0xf] %vm549_vm2, %v545_v22  ;;  %9208 = vmatmul.msk.bf16.gmra.mxu1 %vm1045_vm3, %v11241_v16 }
 0x273   :  { %v413_v53 = vpop.f32.mrf.mxu0 }
 0x274   :  { %v414_v0 = vadd.f32 %v12448_v43, %v413_v53 }
 0x275   :  { %v1727_v10 = vpop.f32.mrf.mxu2 }
 0x276   :  { %v482_v56 = vmax.f32 %v414_v0, 0.0  ;;  %v2245_v17 = vpop.f32.mrf.mxu3 }
 0x277   :  { %v12643_v1 = vadd.f32 %v2245_v17, %v1723_v30  ;;  %v1278_v35 = vpop.f32.mrf.mxu1  ;;  %v11242_v17 = vld [vmem:[#allocation2 + $0x3c] sm:$0xff] }
 0x278   :  { %v546_v31 = vpack.c.bf16 %v482_v56, %v482_v56  ;;  %v1728_v57 = vadd.f32 %v1727_v10, %v1278_v35 }
 0x279   :  { %15435 = vst [vmem:[#allocation18_spill] sm:$0xff] %v12643_v1 }
 0x27a   :  { %712 = vst.msk [vmem:[#allocation2 + $0x158] sm:$0xf] %vm549_vm2, %v546_v31  ;;  %9393 = vmatmul.msk.bf16.gmra.mxu2 %vm1045_vm3, %v11278_v12 }
 0x27b   :  { %v416_v32 = vpop.f32.mrf.mxu0  ;;  %9576 = vmatmul.msk.bf16.gmra.mxu3 %vm1045_vm3, %v11313_v26 }
 0x27c   :  { %v417_v22 = vadd.f32 %v12448_v43, %v416_v32 }
 0x27d   :  { %v1730_v30 = vpop.f32.mrf.mxu2 }
 0x27e   :  { %v483_v16 = vmax.f32 %v417_v22, 0.0  ;;  %9030 = vmatmul.msk.bf16.gmra.mxu0 %vm1045_vm3, %v11211_v45  ;;  %v2248_v53 = vpop.f32.mrf.mxu3 }
 0x27f   :  { %v12650_v0 = vadd.f32 %v2248_v53, %v1726_v51  ;;  %v1281_v56 = vpop.f32.mrf.mxu1  ;;  %v11279_v53 = vld [vmem:[#allocation2 + $0x48] sm:$0xff] }
 0x280   :  { %v547_v35 = vpack.c.bf16 %v483_v16, %v483_v16  ;;  %v1731_v10 = vadd.f32 %v1730_v30, %v1281_v56  ;;  %v11314_v16 = vld [vmem:[#allocation2 + $0x60] sm:$0xff] }
 0x281   :  { %15436 = vst [vmem:[#allocation19_spill] sm:$0xff] %v12650_v0  ;;  %v11317_v0 = vld [vmem:[#allocation2 + $0x80] sm:$0xff] }
 0x282   :  { %713 = vst.msk [vmem:[#allocation2 + $0x15c] sm:$0xf] %vm549_vm2, %v547_v35  ;;  %9209 = vmatmul.msk.bf16.gmra.mxu1 %vm1045_vm3, %v11242_v17 }
 0x283   :  { %v418_v31 = vpop.f32.mrf.mxu0 }
 0x284   :  { %v419_v12 = vadd.f32 %v12448_v43, %v418_v31  ;;  %v11212_v43 = vld [vmem:[#allocation2 + $0x78] sm:$0xff] }
 0x285   :  { %v1732_v32 = vpop.f32.mrf.mxu2 }
 0x286   :  { %v484_v26 = vmax.f32 %v419_v12, 0.0  ;;  %v2250_v22 = vpop.f32.mrf.mxu3 }
 0x287   :  { %v12655_v1 = vadd.f32 %v2250_v22, %v1728_v57  ;;  %v1283_v62 = vpop.f32.mrf.mxu1 }
 0x288   :  { %v548_v45 = vpack.c.bf16 %v484_v26, %v484_v26  ;;  %v1733_v51 = vadd.f32 %v1732_v32, %v1283_v62  ;;  %v11383_v62 = vld [vmem:[%s15411_s3 + $0xf8] sm:$0xff]  ;;  %v11243_v26 = vld [vmem:[#allocation2 + $0x44] sm:$0xff] }
 0x289   :  { %15437 = vst [vmem:[#allocation20_spill] sm:$0xff] %v12655_v1  ;;  %5052 = vmatpush.bf16.msra.mxu0 %v11383_v62  ;;  %v11213_v62 = vld [vmem:[#allocation2 + $0x80] sm:$0xff]  ;;  %v11316_v1 = vld [vmem:[#allocation2 + $0x78] sm:$0xff] }
 0x28a   :  { %714 = vst.msk [vmem:[#allocation2 + $0x160] sm:$0xf] %vm549_vm2, %v548_v45  ;;  %9394 = vmatmul.msk.bf16.gmra.mxu2 %vm1045_vm3, %v11279_v53 }
 0x28b   :  { %v2710_v30 = vpop.f32.mrf.mxu0  ;;  %9577 = vmatmul.msk.bf16.gmra.mxu3 %vm1045_vm3, %v11314_v16 }
 0x28c   :  { %v12661_v35 = vadd.f32 %v2710_v30, %v12148_v47  ;;  %v11419_v47 = vld [vmem:[%s15411_s3 + $0x118] sm:$0xff] }
 0x28d   :  { %v1735_v57 = vpop.f32.mrf.mxu2  ;;  %5639 = vmatpush.bf16.msra.mxu1 %v11419_v47  ;;  %v11280_v30 = vld [vmem:[#allocation2 + $0x58] sm:$0xff] }
 0x28e   :  { %9031 = vmatmul.msk.bf16.gmra.mxu0 %vm1045_vm3, %v11212_v43  ;;  %v2253_v56 = vpop.f32.mrf.mxu3  ;;  %v11315_v43 = vld [vmem:[#allocation2 + $0x68] sm:$0xff] }
 0x28f   :  { %v12664_v17 = vadd.f32 %v2253_v56, %v1731_v10  ;;  %v1286_v31 = vpop.f32.mrf.mxu1 }
 0x290   :  { %v1736_v12 = vadd.f32 %v1735_v57, %v1286_v31 }
 0x291   :  { %15438 = vst [vmem:[#allocation21_spill] sm:$0xff] %v12664_v17  ;;  %v11281_v17 = vld [vmem:[#allocation2 + $0x60] sm:$0xff] }
 0x292   :  { %9210 = vmatmul.msk.bf16.gmra.mxu1 %vm1045_vm3, %v11243_v26 }
 0x293   :  { %v12672_v32 = vpop.f32.mrf.mxu0 }
 0x295   :  { %v1737_v22 = vpop.f32.mrf.mxu2 }
 0x296   :  { %v2255_v10 = vpop.f32.mrf.mxu3 }
 0x297   :  { %v12675_v45 = vadd.f32 %v2255_v10, %v1733_v51  ;;  %v1288_v53 = vpop.f32.mrf.mxu1 }
 0x298   :  { %v1738_v16 = vadd.f32 %v1737_v22, %v1288_v53  ;;  %v11244_v22 = vld [vmem:[#allocation2 + $0x54] sm:$0xff] }
 0x299   :  { %15439 = vst [vmem:[#allocation22_spill] sm:$0xff] %v12675_v45 }
 0x29a   :  { %9395 = vmatmul.msk.bf16.gmra.mxu2 %vm1045_vm3, %v11280_v30 }
 0x29b   :  { %v2715_v57 = vpop.f32.mrf.mxu0  ;;  %9578 = vmatmul.msk.bf16.gmra.mxu3 %vm1045_vm3, %v11315_v43 }
 0x29c   :  { %v12680_v56 = vadd.f32 %v2715_v57, %v12170_v6 }
 0x29d   :  { %v1740_v31 = vpop.f32.mrf.mxu2 }
 0x29e   :  { %9032 = vmatmul.msk.bf16.gmra.mxu0 %vm1045_vm3, %v11213_v62  ;;  %v2258_v26 = vpop.f32.mrf.mxu3 }
 0x29f   :  { %v12683_v47 = vadd.f32 %v2258_v26, %v1736_v12  ;;  %v1291_v51 = vpop.f32.mrf.mxu1 }
 0x2a0   :  { %v1741_v10 = vadd.f32 %v1740_v31, %v1291_v51  ;;  %v11214_v31 = vld [vmem:[#allocation2 + $0x88] sm:$0xff] }
 0x2a1   :  { %15440 = vst [vmem:[#allocation23_spill] sm:$0xff] %v12683_v47  ;;  %v11282_v47 = vld [vmem:[#allocation2 + $0x68] sm:$0xff] }
 0x2a2   :  { %9211 = vmatmul.msk.bf16.gmra.mxu1 %vm1045_vm3, %v11244_v22 }
 0x2a3   :  { %v12685_v53 = vpop.f32.mrf.mxu0 }
 0x2a5   :  { %v1742_v30 = vpop.f32.mrf.mxu2 }
 0x2a6   :  { %v2260_v45 = vpop.f32.mrf.mxu3 }
 0x2a7   :  { %v12688_v43 = vadd.f32 %v2260_v45, %v1738_v16  ;;  %v1293_v6 = vpop.f32.mrf.mxu1 }
 0x2a8   :  { %v1743_v57 = vadd.f32 %v1742_v30, %v1293_v6  ;;  %v11245_v30 = vld [vmem:[#allocation2 + $0x5c] sm:$0xff] }
 0x2a9   :  { %15441 = vst [vmem:[#allocation24_spill] sm:$0xff] %v12688_v43 }
 0x2aa   :  { %9396 = vmatmul.msk.bf16.gmra.mxu2 %vm1045_vm3, %v11281_v17 }
 0x2ab   :  { %v2720_v62 = vpop.f32.mrf.mxu0  ;;  %9579 = vmatmul.msk.bf16.gmra.mxu3 %vm1045_vm3, %v11316_v1 }
 0x2ac   :  { %v12693_v12 = vadd.f32 %v2720_v62, %v12192_v28 }
 0x2ad   :  { %v1745_v26 = vpop.f32.mrf.mxu2 }
 0x2ae   :  { %9033 = vmatmul.msk.bf16.gmra.mxu0 %vm1045_vm3, %v11214_v31  ;;  %v2263_v51 = vpop.f32.mrf.mxu3 }
 0x2af   :  { %v12696_v22 = vadd.f32 %v2263_v51, %v1741_v10  ;;  %v1296_v45 = vpop.f32.mrf.mxu1 }
 0x2b0   :  { %v1746_v16 = vadd.f32 %v1745_v26, %v1296_v45  ;;  %v11215_v26 = vld [vmem:[#allocation2 + $0x90] sm:$0xff] }
 0x2b1   :  { %15442 = vst [vmem:[#allocation25_spill] sm:$0xff] %v12696_v22  ;;  %v11283_v22 = vld [vmem:[#allocation2 + $0x70] sm:$0xff] }
 0x2b2   :  { %9212 = vmatmul.msk.bf16.gmra.mxu1 %vm1045_vm3, %v11245_v30 }
 0x2b3   :  { %v12698_v6 = vpop.f32.mrf.mxu0 }
 0x2b5   :  { %v1747_v17 = vpop.f32.mrf.mxu2 }
 0x2b6   :  { %v2265_v43 = vpop.f32.mrf.mxu3 }
 0x2b7   :  { %v12701_v1 = vadd.f32 %v2265_v43, %v1743_v57  ;;  %v1298_v28 = vpop.f32.mrf.mxu1 }
 0x2b8   :  { %v1748_v62 = vadd.f32 %v1747_v17, %v1298_v28  ;;  %v11246_v17 = vld [vmem:[#allocation2 + $0x64] sm:$0xff] }
 0x2b9   :  { %15443 = vst [vmem:[#allocation26_spill] sm:$0xff] %v12701_v1 }
 0x2ba   :  { %9397 = vmatmul.msk.bf16.gmra.mxu2 %vm1045_vm3, %v11282_v47 }
 0x2bb   :  { %v2725_v31 = vpop.f32.mrf.mxu0  ;;  %9580 = vmatmul.msk.bf16.gmra.mxu3 %vm1045_vm3, %v11317_v0 }
 0x2bc   :  { %v12706_v10 = vadd.f32 %v2725_v31, %v12210_v52 }
 0x2bd   :  { %v1750_v51 = vpop.f32.mrf.mxu2 }
 0x2be   :  { %9034 = vmatmul.msk.bf16.gmra.mxu0 %vm1045_vm3, %v11215_v26  ;;  %v2268_v45 = vpop.f32.mrf.mxu3 }
 0x2bf   :  { %v12709_v30 = vadd.f32 %v2268_v45, %v1746_v16  ;;  %v1301_v43 = vpop.f32.mrf.mxu1 }
 0x2c0   :  { %v1751_v57 = vadd.f32 %v1750_v51, %v1301_v43  ;;  %v11216_v51 = vld [vmem:[#allocation2 + $0xa0] sm:$0xff] }
 0x2c1   :  { %15444 = vst [vmem:[#allocation27_spill] sm:$0xff] %v12709_v30 }
 0x2c2   :  { %9213 = vmatmul.msk.bf16.gmra.mxu1 %vm1045_vm3, %v11246_v17 }
 0x2c3   :  { %v12711_v28 = vpop.f32.mrf.mxu0 }
 0x2c5   :  { %v1752_v47 = vpop.f32.mrf.mxu2 }
 0x2c6   :  { %v2270_v1 = vpop.f32.mrf.mxu3 }
 0x2c7   :  { %v12714_v0 = vadd.f32 %v2270_v1, %v1748_v62  ;;  %v1303_v52 = vpop.f32.mrf.mxu1 }
 0x2c8   :  { %v1753_v31 = vadd.f32 %v1752_v47, %v1303_v52  ;;  %v11247_v47 = vld [vmem:[#allocation2 + $0x6c] sm:$0xff] }
 0x2c9   :  { %15445 = vst [vmem:[#allocation28_spill] sm:$0xff] %v12714_v0 }
 0x2ca   :  { %9398 = vmatmul.msk.bf16.gmra.mxu2 %vm1045_vm3, %v11283_v22 }
 0x2cb   :  { %v2730_v26 = vpop.f32.mrf.mxu0  ;;  %9581 = vmatmul.msk.bf16.gmra.mxu3 %vm1045_vm3, %v11318_v59 }
 0x2cc   :  { %v12719_v16 = vadd.f32 %v2730_v26, %v12279_v11 }
 0x2cd   :  { %v1755_v45 = vpop.f32.mrf.mxu2 }
 0x2ce   :  { %9035 = vmatmul.msk.bf16.gmra.mxu0 %vm1045_vm3, %v11216_v51  ;;  %v2273_v43 = vpop.f32.mrf.mxu3  ;;  %v11284_v51 = vld [vmem:[#allocation2 + $0x80] sm:$0xff] }
 0x2cf   :  { %v12722_v17 = vadd.f32 %v2273_v43, %v1751_v57  ;;  %v1306_v1 = vpop.f32.mrf.mxu1 }
 0x2d0   :  { %v1756_v62 = vadd.f32 %v1755_v45, %v1306_v1  ;;  %v11217_v45 = vld [vmem:[#allocation2 + $0xa8] sm:$0xff] }
 0x2d2   :  { %9214 = vmatmul.msk.bf16.gmra.mxu1 %vm1045_vm3, %v11247_v47 }
 0x2d3   :  { %v2732_v52 = vpop.f32.mrf.mxu0 }
 0x2d4   :  { %v12726_v22 = vadd.f32 %v2732_v52, %v12284_v21  ;;  %v11248_v52 = vld [vmem:[#allocation2 + $0x7c] sm:$0xff] }
 0x2d5   :  { %v1757_v59 = vpop.f32.mrf.mxu2 }
 0x2d6   :  { %v2275_v0 = vpop.f32.mrf.mxu3 }
 0x2d7   :  { %v12728_v11 = vadd.f32 %v2275_v0, %v1753_v31  ;;  %v1308_v26 = vpop.f32.mrf.mxu1  ;;  %v1603_v31 = vadd.f32 %v12145_v46, %v12143_v44  ;;  %v11285_v46 = vld [vmem:[#allocation2 + $0x88] sm:$0xff] }
 0x2d8   :  { %v1758_v30 = vadd.f32 %v1757_v59, %v1308_v26 }
 0x2da   :  { %9399 = vmatmul.msk.bf16.gmra.mxu2 %vm1045_vm3, %v11284_v51 }
 0x2db   :  { %v2735_v50 = vpop.f32.mrf.mxu0  ;;  %9582 = vmatmul.msk.bf16.gmra.mxu3 %vm1045_vm3, %v11319_v18 }
 0x2dc   :  { %v12733_v57 = vadd.f32 %v2735_v50, %v12297_v41  ;;  %v2284_v50 = vadd.f32 %v12151_v49, %v1603_v31  ;;  %v11218_v49 = vld [vmem:[#allocation2 + $0xb0] sm:$0xff] }
 0x2dd   :  { %v3883_v43 = vpop.f32.mrf.mxu2 }
 0x2de   :  { %9036 = vmatmul.msk.bf16.gmra.mxu0 %vm1045_vm3, %v11217_v45  ;;  %v2278_v21 = vpop.f32.mrf.mxu3 }
 0x2df   :  { %v12736_v1 = vadd.f32 %v2278_v21, %v1756_v62  ;;  %v3296_v0 = vpop.f32.mrf.mxu1  ;;  %v2871_v62 = vadd.f32 %v12672_v32, %v2284_v50  ;;  %v11249_v50 = vld [vmem:[#allocation2 + $0x84] sm:$0xff] }
 0x2e0   :  { %v3456_v47 = vadd.f32 %v3296_v0, %v12661_v35  ;;  %v11320_v35 = vld [vmem:[#allocation2 + $0xa0] sm:$0xff] }
 0x2e2   :  { %9215 = vmatmul.msk.bf16.gmra.mxu1 %vm1045_vm3, %v11248_v52  ;;  %v4043_v18 = vadd.f32 %v3883_v43, %v3456_v47  ;;  %v1608_v52 = vadd.f32 %v12167_v5, %v12165_v3  ;;  %v11286_v5 = vld [vmem:[#allocation2 + $0x90] sm:$0xff] }
 0x2e3   :  { %v2737_v59 = vpop.f32.mrf.mxu0 }
 0x2e4   :  { %v12743_v41 = vadd.f32 %v2737_v59, %v12302_v58 }
 0x2e5   :  { %v3885_v51 = vpop.f32.mrf.mxu2 }
 0x2e6   :  { %v2280_v26 = vpop.f32.mrf.mxu3 }
 0x2e7   :  { %v12747_v45 = vadd.f32 %v2280_v26, %v1758_v30  ;;  %v3298_v21 = vpop.f32.mrf.mxu1 }
 0x2e8   :  { %v3457_v44 = vadd.f32 %v3298_v21, %v2871_v62  ;;  %v2286_v62 = vadd.f32 %v12173_v8, %v1608_v52  ;;  %v11219_v8 = vld [vmem:[#allocation2 + $0xb8] sm:$0xff] }
 0x2ea   :  { %9400 = vmatmul.msk.bf16.gmra.mxu2 %vm1045_vm3, %v11285_v46  ;;  %v4044_v43 = vadd.f32 %v3885_v51, %v3457_v44 }
 0x2eb   :  { %v2740_v0 = vpop.f32.mrf.mxu0  ;;  %9583 = vmatmul.msk.bf16.gmra.mxu3 %vm1045_vm3, %v11320_v35 }
 0x2ec   :  { %v12752_v58 = vadd.f32 %v2740_v0, %v12315_v13 }
 0x2ed   :  { %v3888_v31 = vpop.f32.mrf.mxu2 }
 0x2ee   :  { %9037 = vmatmul.msk.bf16.gmra.mxu0 %vm1045_vm3, %v11218_v49  ;;  %v4470_v32 = vpop.f32.mrf.mxu3 }
 0x2ef   :  { %v12755_v30 = vadd.f32 %v4470_v32, %v4043_v18  ;;  %v3301_v47 = vpop.f32.mrf.mxu1  ;;  %v2873_v18 = vadd.f32 %v12685_v53, %v2286_v62 }
 0x2f0   :  { %v3458_v59 = vadd.f32 %v3301_v47, %v12680_v56  ;;  %v11321_v56 = vld [vmem:[#allocation2 + $0xa8] sm:$0xff]  ;;  %v1613_v47 = vadd.f32 %v12189_v27, %v12187_v25  ;;  %v11287_v27 = vld [vmem:[#allocation2 + $0x98] sm:$0xff] }
 0x2f2   :  { %9216 = vmatmul.msk.bf16.gmra.mxu1 %vm1045_vm3, %v11249_v50  ;;  %v4045_v51 = vadd.f32 %v3888_v31, %v3458_v59  ;;  %v11250_v59 = vld [vmem:[#allocation2 + $0x8c] sm:$0xff]  ;;  %v2288_v62 = vadd.f32 %v12202_v34, %v1613_v47 }
 0x2f3   :  { %v2742_v26 = vpop.f32.mrf.mxu0  ;;  %v11220_v34 = vld [vmem:[#allocation2 + $0xc8] sm:$0xff] }
 0x2f4   :  { %v12762_v13 = vadd.f32 %v2742_v26, %v12320_v24 }
 0x2f5   :  { %v3890_v21 = vpop.f32.mrf.mxu2 }
 0x2f6   :  { %v4472_v44 = vpop.f32.mrf.mxu3 }
 0x2f7   :  { %v12766_v46 = vadd.f32 %v4472_v44, %v4044_v43  ;;  %v3303_v35 = vpop.f32.mrf.mxu1 }
 0x2f8   :  { %v3459_v3 = vadd.f32 %v3303_v35, %v2873_v18 }
 0x2fa   :  { %9401 = vmatmul.msk.bf16.gmra.mxu2 %vm1045_vm3, %v11286_v5  ;;  %v4046_v49 = vadd.f32 %v3890_v21, %v3459_v3 }
 0x2fb   :  { %v2745_v0 = vpop.f32.mrf.mxu0  ;;  %9584 = vmatmul.msk.bf16.gmra.mxu3 %vm1045_vm3, %v11321_v56 }
 0x2fc   :  { %v12771_v24 = vadd.f32 %v2745_v0, %v12333_v48 }
 0x2fd   :  { %v3893_v31 = vpop.f32.mrf.mxu2 }
 0x2fe   :  { %9038 = vmatmul.msk.bf16.gmra.mxu0 %vm1045_vm3, %v11219_v8  ;;  %v4475_v53 = vpop.f32.mrf.mxu3 }
 0x2ff   :  { %v12774_v43 = vadd.f32 %v4475_v53, %v4045_v51  ;;  %v3306_v32 = vpop.f32.mrf.mxu1  ;;  %v2875_v51 = vadd.f32 %v12698_v6, %v2288_v62 }
 0x300   :  { %v3460_v52 = vadd.f32 %v3306_v32, %v12693_v12  ;;  %v11322_v12 = vld [vmem:[#allocation2 + $0xb0] sm:$0xff] }
 0x301   :  { %v11251_v32 = vld [vmem:[#allocation2 + $0x94] sm:$0xff] }
 0x302   :  { %9217 = vmatmul.msk.bf16.gmra.mxu1 %vm1045_vm3, %v11250_v59  ;;  %v4047_v26 = vadd.f32 %v3893_v31, %v3460_v52  ;;  %v1618_v31 = vadd.f32 %v12248_v29, %v12256_v33 }
 0x303   :  { %v2747_v50 = vpop.f32.mrf.mxu0 }
 0x304   :  { %v12781_v48 = vadd.f32 %v2747_v50, %v12338_v63  ;;  %v2290_v50 = vadd.f32 %v12266_v54, %v1618_v31  ;;  %v11221_v54 = vld [vmem:[#allocation2 + $0xd0] sm:$0xff] }
 0x305   :  { %v3895_v21 = vpop.f32.mrf.mxu2 }
 0x306   :  { %v4477_v44 = vpop.f32.mrf.mxu3  ;;  %v2877_v33 = vadd.f32 %v12711_v28, %v2290_v50 }
 0x307   :  { %v12785_v18 = vadd.f32 %v4477_v44, %v4046_v49  ;;  %v3308_v35 = vpop.f32.mrf.mxu1  ;;  %v11382_v49 = vld [vmem:[%s15411_s3 + $0xf0] sm:$0xff]  ;;  %v11288_v44 = vld [vmem:[#allocation2 + $0xa8] sm:$0xff] }
 0x308   :  { %v3461_v25 = vadd.f32 %v3308_v35, %v2875_v51  ;;  %5053 = vmatpush.bf16.msra.mxu0 %v11382_v49  ;;  %v11323_v51 = vld [vmem:[#allocation2 + $0xb8] sm:$0xff] }
 0x30a   :  { %9402 = vmatmul.msk.bf16.gmra.mxu2 %vm1045_vm3, %v11287_v27  ;;  %v4048_v5 = vadd.f32 %v3895_v21, %v3461_v25 }
 0x30b   :  { %v2750_v3 = vpop.f32.mrf.mxu0  ;;  %9585 = vmatmul.msk.bf16.gmra.mxu3 %vm1045_vm3, %v11322_v12 }
 0x30c   :  { %v12790_v63 = vadd.f32 %v2750_v3, %v12351_v19  ;;  %v11418_v19 = vld [vmem:[%s15411_s3 + $0x110] sm:$0xff] }
 0x30d   :  { %v3898_v56 = vpop.f32.mrf.mxu2  ;;  %5640 = vmatpush.bf16.msra.mxu1 %v11418_v19  ;;  %v11289_v19 = vld [vmem:[#allocation2 + $0xb0] sm:$0xff] }
 0x30e   :  { %9039 = vmatmul.msk.bf16.gmra.mxu0 %vm1045_vm3, %v11220_v34  ;;  %v4480_v6 = vpop.f32.mrf.mxu3  ;;  %v11252_v34 = vld [vmem:[#allocation2 + $0xa4] sm:$0xff] }
 0x30f   :  { %v12793_v0 = vadd.f32 %v4480_v6, %v4047_v26  ;;  %v3311_v8 = vpop.f32.mrf.mxu1 }
 0x310   :  { %v3462_v53 = vadd.f32 %v3311_v8, %v12706_v10 }
 0x312   :  { %9218 = vmatmul.msk.bf16.gmra.mxu1 %vm1045_vm3, %v11251_v32  ;;  %v4049_v52 = vadd.f32 %v3898_v56, %v3462_v53 }
 0x313   :  { %v2752_v47 = vpop.f32.mrf.mxu0 }
 0x314   :  { %v12806_v59 = vadd.f32 %v2752_v47, %v12356_v37  ;;  %v11324_v47 = vld [vmem:[#allocation2 + $0xc8] sm:$0xff] }
 0x315   :  { %v3900_v26 = vpop.f32.mrf.mxu2 }
 0x316   :  { %v4482_v29 = vpop.f32.mrf.mxu3 }
 0x317   :  { %v12810_v10 = vadd.f32 %v4482_v29, %v4048_v5  ;;  %v3313_v62 = vpop.f32.mrf.mxu1 }
 0x318   :  { %v3463_v21 = vadd.f32 %v3313_v62, %v2877_v33 }
 0x31a   :  { %9403 = vmatmul.msk.bf16.gmra.mxu2 %vm1045_vm3, %v11288_v44  ;;  %v4050_v37 = vadd.f32 %v3900_v26, %v3463_v21  ;;  %v11253_v21 = vld [vmem:[#allocation2 + $0xac] sm:$0xff] }
 0x31b   :  { %v2755_v35 = vpop.f32.mrf.mxu0  ;;  %9586 = vmatmul.msk.bf16.gmra.mxu3 %vm1045_vm3, %v11323_v51 }
 0x31c   :  { %v12815_v25 = vadd.f32 %v2755_v35, %v12369_v61 }
 0x31d   :  { %v3903_v27 = vpop.f32.mrf.mxu2 }
 0x31e   :  { %9040 = vmatmul.msk.bf16.gmra.mxu0 %vm1045_vm3, %v11221_v54  ;;  %v4485_v28 = vpop.f32.mrf.mxu3 }
 0x31f   :  { %v12818_v12 = vadd.f32 %v4485_v28, %v4049_v52  ;;  %v3316_v3 = vpop.f32.mrf.mxu1 }
 0x320   :  { %v3464_v5 = vadd.f32 %v3316_v3, %v12719_v16  ;;  %v11290_v3 = vld [vmem:[#allocation2 + $0xb8] sm:$0xff] }
 0x322   :  { %9219 = vmatmul.msk.bf16.gmra.mxu1 %vm1045_vm3, %v11252_v34  ;;  %v4051_v6 = vadd.f32 %v3903_v27, %v3464_v5  ;;  %v11325_v5 = vld [vmem:[#allocation2 + $0xd0] sm:$0xff] }
 0x323   :  { %v2757_v56 = vpop.f32.mrf.mxu0 }
 0x324   :  { %v12823_v49 = vadd.f32 %v2757_v56, %v12374_v14  ;;  %v11222_v14 = vld [vmem:[#allocation2 + $0xd8] sm:$0xff] }
 0x325   :  { %v3905_v61 = vpop.f32.mrf.mxu2 }
 0x326   :  { %v4487_v8 = vpop.f32.mrf.mxu3 }
 0x327   :  { %v12825_v31 = vadd.f32 %v4487_v8, %v4050_v37  ;;  %v3318_v53 = vpop.f32.mrf.mxu1 }
 0x328   :  { %v3465_v32 = vadd.f32 %v3318_v53, %v12726_v22 }
 0x32a   :  { %9404 = vmatmul.msk.bf16.gmra.mxu2 %vm1045_vm3, %v11289_v19  ;;  %v4052_v16 = vadd.f32 %v3905_v61, %v3465_v32  ;;  %v11254_v32 = vld [vmem:[#allocation2 + $0xb4] sm:$0xff] }
 0x32b   :  { %v2760_v52 = vpop.f32.mrf.mxu0  ;;  %9587 = vmatmul.msk.bf16.gmra.mxu3 %vm1045_vm3, %v11324_v47 }
 0x32c   :  { %v12831_v50 = vadd.f32 %v2760_v52, %v12387_v38 }
 0x32d   :  { %v3908_v26 = vpop.f32.mrf.mxu2 }
 0x32e   :  { %9041 = vmatmul.msk.bf16.gmra.mxu0 %vm1045_vm3, %v11222_v14  ;;  %v4490_v29 = vpop.f32.mrf.mxu3 }
 0x32f   :  { %v12834_v33 = vadd.f32 %v4490_v29, %v4051_v6  ;;  %v3321_v62 = vpop.f32.mrf.mxu1 }
 0x330   :  { %v3466_v22 = vadd.f32 %v3321_v62, %v12733_v57  ;;  %v11291_v62 = vld [vmem:[#allocation2 + $0xc0] sm:$0xff] }
 0x332   :  { %9220 = vmatmul.msk.bf16.gmra.mxu1 %vm1045_vm3, %v11253_v21  ;;  %v4053_v51 = vadd.f32 %v3908_v26, %v3466_v22  ;;  %v11326_v22 = vld [vmem:[#allocation2 + $0xd8] sm:$0xff] }
 0x333   :  { %v2762_v44 = vpop.f32.mrf.mxu0 }
 0x334   :  { %v12839_v35 = vadd.f32 %v2762_v44, %v12398_v60  ;;  %v11223_v60 = vld [vmem:[#allocation2 + $0xe0] sm:$0xff] }
 0x335   :  { %v3910_v38 = vpop.f32.mrf.mxu2 }
 0x336   :  { %v4492_v37 = vpop.f32.mrf.mxu3 }
 0x337   :  { %v12841_v54 = vadd.f32 %v4492_v37, %v4052_v16  ;;  %v3323_v27 = vpop.f32.mrf.mxu1 }
 0x338   :  { %v3467_v28 = vadd.f32 %v3323_v27, %v12743_v41 }
 0x33a   :  { %9405 = vmatmul.msk.bf16.gmra.mxu2 %vm1045_vm3, %v11290_v3  ;;  %v4054_v57 = vadd.f32 %v3910_v38, %v3467_v28  ;;  %v11255_v28 = vld [vmem:[#allocation2 + $0xbc] sm:$0xff] }
 0x33b   :  { %v2765_v34 = vpop.f32.mrf.mxu0  ;;  %9588 = vmatmul.msk.bf16.gmra.mxu3 %vm1045_vm3, %v11325_v5 }
 0x33c   :  { %v12847_v56 = vadd.f32 %v2765_v34, %v12411_v20 }
 0x33d   :  { %v3913_v6 = vpop.f32.mrf.mxu2 }
 0x33e   :  { %9042 = vmatmul.msk.bf16.gmra.mxu0 %vm1045_vm3, %v11223_v60  ;;  %v4495_v61 = vpop.f32.mrf.mxu3 }
 0x33f   :  { %v12850_v8 = vadd.f32 %v4495_v61, %v4053_v51  ;;  %v3326_v53 = vpop.f32.mrf.mxu1 }
 0x340   :  { %v3468_v41 = vadd.f32 %v3326_v53, %v12752_v58  ;;  %v11292_v53 = vld [vmem:[#allocation2 + $0xd0] sm:$0xff] }
 0x342   :  { %9221 = vmatmul.msk.bf16.gmra.mxu1 %vm1045_vm3, %v11254_v32  ;;  %v4055_v47 = vadd.f32 %v3913_v6, %v3468_v41  ;;  %v11327_v41 = vld [vmem:[#allocation2 + $0xe0] sm:$0xff] }
 0x343   :  { %v2767_v19 = vpop.f32.mrf.mxu0 }
 0x344   :  { %v12855_v52 = vadd.f32 %v2767_v19, %v12416_v40  ;;  %v11224_v40 = vld [vmem:[#allocation2 + $0xf0] sm:$0xff] }
 0x345   :  { %v3915_v20 = vpop.f32.mrf.mxu2 }
 0x346   :  { %v4497_v16 = vpop.f32.mrf.mxu3 }
 0x347   :  { %v12857_v14 = vadd.f32 %v4497_v16, %v4054_v57  ;;  %v3328_v26 = vpop.f32.mrf.mxu1 }
 0x348   :  { %v3469_v29 = vadd.f32 %v3328_v26, %v12762_v13 }
 0x34a   :  { %9406 = vmatmul.msk.bf16.gmra.mxu2 %vm1045_vm3, %v11291_v62  ;;  %v4056_v58 = vadd.f32 %v3915_v20, %v3469_v29  ;;  %v11256_v29 = vld [vmem:[#allocation2 + $0xcc] sm:$0xff] }
 0x34b   :  { %v2770_v21 = vpop.f32.mrf.mxu0  ;;  %9589 = vmatmul.msk.bf16.gmra.mxu3 %vm1045_vm3, %v11326_v22 }
 0x34c   :  { %v12863_v44 = vadd.f32 %v2770_v21, %v12429_v4 }
 0x34d   :  { %v3918_v51 = vpop.f32.mrf.mxu2 }
 0x34e   :  { %9043 = vmatmul.msk.bf16.gmra.mxu0 %vm1045_vm3, %v11224_v40  ;;  %v4500_v38 = vpop.f32.mrf.mxu3 }
 0x34f   :  { %v12866_v37 = vadd.f32 %v4500_v38, %v4055_v47  ;;  %v3331_v27 = vpop.f32.mrf.mxu1 }
 0x350   :  { %v3470_v13 = vadd.f32 %v3331_v27, %v12771_v24  ;;  %v11293_v27 = vld [vmem:[#allocation2 + $0xd8] sm:$0xff] }
 0x352   :  { %9222 = vmatmul.msk.bf16.gmra.mxu1 %vm1045_vm3, %v11255_v28  ;;  %v4057_v5 = vadd.f32 %v3918_v51, %v3470_v13  ;;  %v11328_v13 = vld [vmem:[#allocation2 + $0xf0] sm:$0xff] }
 0x353   :  { %v2772_v3 = vpop.f32.mrf.mxu0 }
 0x354   :  { %v12871_v34 = vadd.f32 %v2772_v3, %v12434_v23  ;;  %v11225_v23 = vld [vmem:[#allocation2 + $0xf8] sm:$0xff] }
 0x355   :  { %v3920_v4 = vpop.f32.mrf.mxu2 }
 0x356   :  { %v4502_v57 = vpop.f32.mrf.mxu3 }
 0x357   :  { %v12873_v60 = vadd.f32 %v4502_v57, %v4056_v58  ;;  %v3333_v6 = vpop.f32.mrf.mxu1 }
 0x358   :  { %v3471_v61 = vadd.f32 %v3333_v6, %v12781_v48 }
 0x35a   :  { %9407 = vmatmul.msk.bf16.gmra.mxu2 %vm1045_vm3, %v11292_v53  ;;  %v4058_v24 = vadd.f32 %v3920_v4, %v3471_v61  ;;  %v11257_v61 = vld [vmem:[#allocation2 + $0xd4] sm:$0xff] }
 0x35b   :  { %v2775_v32 = vpop.f32.mrf.mxu0  ;;  %9590 = vmatmul.msk.bf16.gmra.mxu3 %vm1045_vm3, %v11327_v41 }
 0x35c   :  { %v12879_v19 = vadd.f32 %v2775_v32, %v12452_v55 }
 0x35d   :  { %v3923_v47 = vpop.f32.mrf.mxu2 }
 0x35e   :  { %9044 = vmatmul.msk.bf16.gmra.mxu0 %vm1045_vm3, %v11225_v23  ;;  %v4505_v20 = vpop.f32.mrf.mxu3 }
 0x35f   :  { %v12882_v16 = vadd.f32 %v4505_v20, %v4057_v5  ;;  %v3336_v26 = vpop.f32.mrf.mxu1 }
 0x360   :  { %v3472_v48 = vadd.f32 %v3336_v26, %v12790_v63  ;;  %v11294_v26 = vld [vmem:[#allocation2 + $0xe0] sm:$0xff] }
 0x362   :  { %9223 = vmatmul.msk.bf16.gmra.mxu1 %vm1045_vm3, %v11256_v29  ;;  %v4059_v22 = vadd.f32 %v3923_v47, %v3472_v48  ;;  %v11329_v48 = vld [vmem:[#allocation2 + $0xf8] sm:$0xff] }
 0x363   :  { %v2777_v62 = vpop.f32.mrf.mxu0 }
 0x364   :  { %v12887_v21 = vadd.f32 %v2777_v62, %v12457_v15  ;;  %v11226_v15 = vld [vmem:[#allocation2 + $0x100] sm:$0xff] }
 0x365   :  { %v3925_v55 = vpop.f32.mrf.mxu2 }
 0x366   :  { %v4507_v58 = vpop.f32.mrf.mxu3 }
 0x367   :  { %v12889_v40 = vadd.f32 %v4507_v58, %v4058_v24  ;;  %v3338_v51 = vpop.f32.mrf.mxu1 }
 0x368   :  { %v3473_v38 = vadd.f32 %v3338_v51, %v12806_v59 }
 0x36a   :  { %9408 = vmatmul.msk.bf16.gmra.mxu2 %vm1045_vm3, %v11293_v27  ;;  %v4060_v63 = vadd.f32 %v3925_v55, %v3473_v38  ;;  %v11258_v38 = vld [vmem:[#allocation2 + $0xdc] sm:$0xff] }
 0x36b   :  { %v2780_v28 = vpop.f32.mrf.mxu0  ;;  %9591 = vmatmul.msk.bf16.gmra.mxu3 %vm1045_vm3, %v11328_v13 }
 0x36c   :  { %v12895_v3 = vadd.f32 %v2780_v28, %v12470_v42 }
 0x36d   :  { %v3928_v5 = vpop.f32.mrf.mxu2 }
 0x36e   :  { %9045 = vmatmul.msk.bf16.gmra.mxu0 %vm1045_vm3, %v11226_v15  ;;  %v4510_v4 = vpop.f32.mrf.mxu3 }
 0x36f   :  { %v12898_v57 = vadd.f32 %v4510_v4, %v4059_v22  ;;  %v3341_v6 = vpop.f32.mrf.mxu1 }
 0x370   :  { %v3474_v59 = vadd.f32 %v3341_v6, %v12815_v25  ;;  %v11295_v6 = vld [vmem:[#allocation2 + $0xe8] sm:$0xff] }
 0x372   :  { %9224 = vmatmul.msk.bf16.gmra.mxu1 %vm1045_vm3, %v11257_v61  ;;  %v4061_v41 = vadd.f32 %v3928_v5, %v3474_v59  ;;  %v11330_v59 = vld [vmem:[#allocation2 + $0x100] sm:$0xff] }
 0x373   :  { %v2782_v53 = vpop.f32.mrf.mxu0 }
 0x374   :  { %v12903_v32 = vadd.f32 %v2782_v53, %v12475_v7  ;;  %v11227_v7 = vld [vmem:[#allocation2 + $0x108] sm:$0xff] }
 0x375   :  { %v3930_v42 = vpop.f32.mrf.mxu2 }
 0x376   :  { %v4512_v24 = vpop.f32.mrf.mxu3 }
 0x377   :  { %v12905_v23 = vadd.f32 %v4512_v24, %v4060_v63  ;;  %v3343_v47 = vpop.f32.mrf.mxu1 }
 0x378   :  { %v3475_v20 = vadd.f32 %v3343_v47, %v12823_v49 }
 0x37a   :  { %9409 = vmatmul.msk.bf16.gmra.mxu2 %vm1045_vm3, %v11294_v26  ;;  %v4062_v25 = vadd.f32 %v3930_v42, %v3475_v20  ;;  %v11259_v26 = vld [vmem:[#allocation2 + $0xe4] sm:$0xff] }
 0x37b   :  { %v2785_v29 = vpop.f32.mrf.mxu0  ;;  %9592 = vmatmul.msk.bf16.gmra.mxu3 %vm1045_vm3, %v11329_v48 }
 0x37c   :  { %v12911_v62 = vadd.f32 %v2785_v29, %v12488_v36 }
 0x37d   :  { %v3933_v22 = vpop.f32.mrf.mxu2 }
 0x37e   :  { %9046 = vmatmul.msk.bf16.gmra.mxu0 %vm1045_vm3, %v11227_v7  ;;  %v4515_v55 = vpop.f32.mrf.mxu3 }
 0x37f   :  { %v12914_v58 = vadd.f32 %v4515_v55, %v4061_v41  ;;  %v3346_v51 = vpop.f32.mrf.mxu1 }
 0x380   :  { %v3476_v49 = vadd.f32 %v3346_v51, %v12831_v50 }
 0x382   :  { %9225 = vmatmul.msk.bf16.gmra.mxu1 %vm1045_vm3, %v11258_v38  ;;  %v4063_v13 = vadd.f32 %v3933_v22, %v3476_v49  ;;  %v11296_v49 = vld [vmem:[#allocation2 + $0xf8] sm:$0xff]  ;;  %v11331_v38 = vld [vmem:[#allocation2 + $0x108] sm:$0xff] }
 0x383   :  { %v2787_v27 = vpop.f32.mrf.mxu0 }
 0x384   :  { %v12919_v28 = vadd.f32 %v2787_v27, %v12493_v2  ;;  %v11228_v2 = vld [vmem:[#allocation2 + $0x118] sm:$0xff] }
 0x385   :  { %v3935_v36 = vpop.f32.mrf.mxu2 }
 0x386   :  { %v4517_v63 = vpop.f32.mrf.mxu3 }
 0x387   :  { %v12921_v15 = vadd.f32 %v4517_v63, %v4062_v25  ;;  %v3348_v5 = vpop.f32.mrf.mxu1 }
 0x388   :  { %v3477_v4 = vadd.f32 %v3348_v5, %v12839_v35  ;;  %v11381_v35 = vld [vmem:[%s15411_s3 + $0xe8] sm:$0xff] }
 0x389   :  { %5054 = vmatpush.bf16.msra.mxu0 %v11381_v35 }
 0x38a   :  { %9410 = vmatmul.msk.bf16.gmra.mxu2 %vm1045_vm3, %v11295_v6  ;;  %v4064_v50 = vadd.f32 %v3935_v36, %v3477_v4  ;;  %v15446_v36 = vld [vmem:[#allocation3_spill] sm:$0xff] }
 0x38b   :  { %v2790_v61 = vpop.f32.mrf.mxu0  ;;  %9593 = vmatmul.msk.bf16.gmra.mxu3 %vm1045_vm3, %v11330_v59 }
 0x38c   :  { %v12927_v53 = vadd.f32 %v2790_v61, %v12509_v39  ;;  %v11417_v39 = vld [vmem:[%s15411_s3 + $0x108] sm:$0xff]  ;;  %v11260_v61 = vld [vmem:[#allocation2 + $0xf4] sm:$0xff] }
 0x38d   :  { %v3938_v41 = vpop.f32.mrf.mxu2  ;;  %5641 = vmatpush.bf16.msra.mxu1 %v11417_v39 }
 0x38e   :  { %9047 = vmatmul.msk.bf16.gmra.mxu0 %vm1045_vm3, %v11228_v2  ;;  %v4520_v42 = vpop.f32.mrf.mxu3 }
 0x38f   :  { %v12930_v24 = vadd.f32 %v4520_v42, %v4063_v13  ;;  %v3351_v47 = vpop.f32.mrf.mxu1 }
 0x390   :  { %v3478_v20 = vadd.f32 %v3351_v47, %v12847_v56 }
 0x392   :  { %9226 = vmatmul.msk.bf16.gmra.mxu1 %vm1045_vm3, %v11259_v26  ;;  %v4065_v29 = vadd.f32 %v3938_v41, %v3478_v20  ;;  %v15447_v41 = vld [vmem:[#allocation4_spill] sm:$0xff] }
 0x393   :  { %v2792_v48 = vpop.f32.mrf.mxu0 }
 0x394   :  { %v12941_v25 = vadd.f32 %v2792_v48, %v12514_v9  ;;  %v11229_v9 = vld [vmem:[#allocation2 + $0x120] sm:$0xff] }
 0x395   :  { %v3940_v7 = vpop.f32.mrf.mxu2  ;;  %v11297_v48 = vld [vmem:[#allocation2 + $0x100] sm:$0xff] }
 0x396   :  { %v4522_v22 = vpop.f32.mrf.mxu3 }
 0x397   :  { %v12943_v55 = vadd.f32 %v4522_v22, %v4064_v50  ;;  %v3353_v51 = vpop.f32.mrf.mxu1  ;;  %v15448_v22 = vld [vmem:[#allocation5_spill] sm:$0xff] }
 0x398   :  { %v3479_v56 = vadd.f32 %v3353_v51, %v12855_v52 }
 0x39a   :  { %9411 = vmatmul.msk.bf16.gmra.mxu2 %vm1045_vm3, %v11296_v49  ;;  %v4066_v13 = vadd.f32 %v3940_v7, %v3479_v56  ;;  %v11230_v56 = vld [vmem:[#allocation2 + $0x128] sm:$0xff] }
 0x39b   :  { %v2795_v27 = vpop.f32.mrf.mxu0  ;;  %9594 = vmatmul.msk.bf16.gmra.mxu3 %vm1045_vm3, %v11331_v38 }
 0x39c   :  { %v12949_v63 = vadd.f32 %v2795_v27, %v15446_v36  ;;  %v11261_v36 = vld [vmem:[#allocation2 + $0xfc] sm:$0xff] }
 0x39d   :  { %v3943_v5 = vpop.f32.mrf.mxu2 }
 0x39e   :  { %9048 = vmatmul.msk.bf16.gmra.mxu0 %vm1045_vm3, %v11229_v9  ;;  %v4525_v4 = vpop.f32.mrf.mxu3 }
 0x39f   :  { %v12952_v6 = vadd.f32 %v4525_v4, %v4065_v29  ;;  %v3356_v59 = vpop.f32.mrf.mxu1  ;;  %v11332_v29 = vld [vmem:[#allocation2 + $0x118] sm:$0xff]  ;;  %v15449_v4 = vld [vmem:[#allocation6_spill] sm:$0xff] }
 0x3a0   :  { %v3480_v52 = vadd.f32 %v3356_v59, %v12863_v44 }
 0x3a2   :  { %9227 = vmatmul.msk.bf16.gmra.mxu1 %vm1045_vm3, %v11260_v61  ;;  %v4067_v2 = vadd.f32 %v3943_v5, %v3480_v52 }
 0x3a3   :  { %v2797_v50 = vpop.f32.mrf.mxu0 }
 0x3a4   :  { %v12957_v42 = vadd.f32 %v2797_v50, %v15447_v41 }
 0x3a5   :  { %v3945_v35 = vpop.f32.mrf.mxu2 }
 0x3a6   :  { %v4527_v47 = vpop.f32.mrf.mxu3 }
 0x3a7   :  { %v12959_v20 = vadd.f32 %v4527_v47, %v4066_v13  ;;  %v3358_v26 = vpop.f32.mrf.mxu1  ;;  %v11333_v47 = vld [vmem:[#allocation2 + $0x120] sm:$0xff] }
 0x3a8   :  { %v3481_v39 = vadd.f32 %v3358_v26, %v12871_v34 }
 0x3aa   :  { %9412 = vmatmul.msk.bf16.gmra.mxu2 %vm1045_vm3, %v11297_v48  ;;  %v4068_v44 = vadd.f32 %v3945_v35, %v3481_v39  ;;  %v15450_v39 = vld [vmem:[#allocation7_spill] sm:$0xff] }
 0x3ab   :  { %v2800_v7 = vpop.f32.mrf.mxu0  ;;  %9595 = vmatmul.msk.bf16.gmra.mxu3 %vm1045_vm3, %v11332_v29  ;;  %v11231_v29 = vld [vmem:[#allocation2 + $0x130] sm:$0xff] }
 0x3ac   :  { %v12965_v51 = vadd.f32 %v2800_v7, %v15448_v22 }
 0x3ad   :  { %v3948_v49 = vpop.f32.mrf.mxu2 }
 0x3ae   :  { %9049 = vmatmul.msk.bf16.gmra.mxu0 %vm1045_vm3, %v11230_v56  ;;  %v4530_v38 = vpop.f32.mrf.mxu3 }
 0x3af   :  { %v12968_v27 = vadd.f32 %v4530_v38, %v4067_v2  ;;  %v3361_v13 = vpop.f32.mrf.mxu1  ;;  %v11298_v2 = vld [vmem:[#allocation2 + $0x108] sm:$0xff] }
 0x3b0   :  { %v3482_v34 = vadd.f32 %v3361_v13, %v12879_v19 }
 0x3b2   :  { %9228 = vmatmul.msk.bf16.gmra.mxu1 %vm1045_vm3, %v11261_v36  ;;  %v4069_v5 = vadd.f32 %v3948_v49, %v3482_v34  ;;  %v11262_v49 = vld [vmem:[#allocation2 + $0x104] sm:$0xff]  ;;  %v15451_v34 = vld [vmem:[#allocation8_spill] sm:$0xff] }
 0x3b3   :  { %v2802_v9 = vpop.f32.mrf.mxu0 }
 0x3b4   :  { %v12973_v59 = vadd.f32 %v2802_v9, %v15449_v4 }
 0x3b5   :  { %v3950_v52 = vpop.f32.mrf.mxu2 }
 0x3b6   :  { %v4532_v61 = vpop.f32.mrf.mxu3 }
 0x3b7   :  { %v12975_v50 = vadd.f32 %v4532_v61, %v4068_v44  ;;  %v3363_v41 = vpop.f32.mrf.mxu1 }
 0x3b8   :  { %v3483_v35 = vadd.f32 %v3363_v41, %v12887_v21 }
 0x3ba   :  { %9413 = vmatmul.msk.bf16.gmra.mxu2 %vm1045_vm3, %v11298_v2  ;;  %v4070_v19 = vadd.f32 %v3950_v52, %v3483_v35  ;;  %v11334_v35 = vld [vmem:[#allocation2 + $0x128] sm:$0xff] }
 0x3bb   :  { %v2805_v26 = vpop.f32.mrf.mxu0  ;;  %9596 = vmatmul.msk.bf16.gmra.mxu3 %vm1045_vm3, %v11333_v47  ;;  %v15453_v47 = vld [vmem:[#allocation9_spill] sm:$0xff] }
 0x3bc   :  { %v12981_v48 = vadd.f32 %v2805_v26, %v15450_v39  ;;  %v11232_v39 = vld [vmem:[#allocation2 + $0x140] sm:$0xff] }
 0x3bd   :  { %v3953_v7 = vpop.f32.mrf.mxu2 }
 0x3be   :  { %9050 = vmatmul.msk.bf16.gmra.mxu0 %vm1045_vm3, %v11231_v29  ;;  %v4535_v44 = vpop.f32.mrf.mxu3 }
 0x3bf   :  { %v12984_v22 = vadd.f32 %v4535_v44, %v4069_v5  ;;  %v3366_v56 = vpop.f32.mrf.mxu1  ;;  %v11299_v5 = vld [vmem:[#allocation2 + $0x110] sm:$0xff] }
 0x3c0   :  { %v3484_v21 = vadd.f32 %v3366_v56, %v12895_v3  ;;  %v11263_v56 = vld [vmem:[#allocation2 + $0x10c] sm:$0xff] }
 0x3c2   :  { %9229 = vmatmul.msk.bf16.gmra.mxu1 %vm1045_vm3, %v11262_v49  ;;  %v4071_v13 = vadd.f32 %v3953_v7, %v3484_v21 }
 0x3c3   :  { %v2807_v38 = vpop.f32.mrf.mxu0 }
 0x3c4   :  { %v12989_v36 = vadd.f32 %v2807_v38, %v15451_v34  ;;  %v15455_v38 = vld [vmem:[#allocation10_spill] sm:$0xff] }
 0x3c5   :  { %v3955_v9 = vpop.f32.mrf.mxu2 }
 0x3c6   :  { %v4537_v4 = vpop.f32.mrf.mxu3 }
 0x3c7   :  { %v12991_v52 = vadd.f32 %v4537_v4, %v4070_v19  ;;  %v3368_v61 = vpop.f32.mrf.mxu1 }
 0x3c8   :  { %v3485_v41 = vadd.f32 %v3368_v61, %v12903_v32 }
 0x3c9   :  { %15452 = vst [vmem:[#allocation3_spill] sm:$0xff] %v12991_v52 }
 0x3ca   :  { %9414 = vmatmul.msk.bf16.gmra.mxu2 %vm1045_vm3, %v11299_v5  ;;  %v4072_v3 = vadd.f32 %v3955_v9, %v3485_v41 }
 0x3cb   :  { %v2810_v2 = vpop.f32.mrf.mxu0  ;;  %9597 = vmatmul.msk.bf16.gmra.mxu3 %vm1045_vm3, %v11334_v35  ;;  %v11335_v35 = vld [vmem:[#allocation2 + $0x130] sm:$0xff] }
 0x3cc   :  { %v12997_v26 = vadd.f32 %v2810_v2, %v15453_v47  ;;  %v15457_v47 = vld [vmem:[#allocation11_spill] sm:$0xff] }
 0x3cd   :  { %v3958_v29 = vpop.f32.mrf.mxu2 }
 0x3ce   :  { %9051 = vmatmul.msk.bf16.gmra.mxu0 %vm1045_vm3, %v11232_v39  ;;  %v4540_v19 = vpop.f32.mrf.mxu3 }
 0x3cf   :  { %v13000_v7 = vadd.f32 %v4540_v19, %v4071_v13  ;;  %v3371_v44 = vpop.f32.mrf.mxu1  ;;  %v11300_v13 = vld [vmem:[#allocation2 + $0x120] sm:$0xff] }
 0x3d0   :  { %v3486_v32 = vadd.f32 %v3371_v44, %v12911_v62 }
 0x3d1   :  { %15454 = vst [vmem:[#allocation4_spill] sm:$0xff] %v13000_v7 }
 0x3d2   :  { %9230 = vmatmul.msk.bf16.gmra.mxu1 %vm1045_vm3, %v11263_v56  ;;  %v4073_v49 = vadd.f32 %v3958_v29, %v3486_v32  ;;  %v11233_v29 = vld [vmem:[#allocation2 + $0x148] sm:$0xff]  ;;  %v11264_v56 = vld [vmem:[#allocation2 + $0x11c] sm:$0xff] }
 0x3d3   :  { %v2812_v21 = vpop.f32.mrf.mxu0 }
 0x3d4   :  { %v13005_v34 = vadd.f32 %v2812_v21, %v15455_v38 }
 0x3d5   :  { %v3960_v9 = vpop.f32.mrf.mxu2 }
 0x3d6   :  { %v4542_v4 = vpop.f32.mrf.mxu3 }
 0x3d7   :  { %v13007_v61 = vadd.f32 %v4542_v4, %v4072_v3  ;;  %v3373_v41 = vpop.f32.mrf.mxu1  ;;  %v15459_v4 = vld [vmem:[#allocation12_spill] sm:$0xff] }
 0x3d8   :  { %v3487_v5 = vadd.f32 %v3373_v41, %v12919_v28 }
 0x3d9   :  { %15456 = vst [vmem:[#allocation5_spill] sm:$0xff] %v13007_v61 }
 0x3da   :  { %9415 = vmatmul.msk.bf16.gmra.mxu2 %vm1045_vm3, %v11300_v13  ;;  %v4074_v62 = vadd.f32 %v3960_v9, %v3487_v5 }
 0x3db   :  { %v2815_v2 = vpop.f32.mrf.mxu0  ;;  %9598 = vmatmul.msk.bf16.gmra.mxu3 %vm1045_vm3, %v11335_v35 }
 0x3dc   :  { %v13013_v39 = vadd.f32 %v2815_v2, %v15457_v47  ;;  %v11336_v47 = vld [vmem:[#allocation2 + $0x140] sm:$0xff] }
 0x3dd   :  { %v3963_v19 = vpop.f32.mrf.mxu2 }
 0x3de   :  { %9052 = vmatmul.msk.bf16.gmra.mxu0 %vm1045_vm3, %v11233_v29  ;;  %v4545_v3 = vpop.f32.mrf.mxu3 }
 0x3df   :  { %v13016_v44 = vadd.f32 %v4545_v3, %v4073_v49  ;;  %v3376_v32 = vpop.f32.mrf.mxu1  ;;  %v11301_v49 = vld [vmem:[#allocation2 + $0x128] sm:$0xff]  ;;  %v15461_v3 = vld [vmem:[#allocation13_spill] sm:$0xff] }
 0x3e0   :  { %v3488_v28 = vadd.f32 %v3376_v32, %v12927_v53  ;;  %v11380_v53 = vld [vmem:[%s15411_s3 + $0xe0] sm:$0xff] }
 0x3e1   :  { %15458 = vst [vmem:[#allocation6_spill] sm:$0xff] %v13016_v44  ;;  %5055 = vmatpush.bf16.msra.mxu0 %v11380_v53 }
 0x3e2   :  { %9231 = vmatmul.msk.bf16.gmra.mxu1 %vm1045_vm3, %v11264_v56  ;;  %v4075_v38 = vadd.f32 %v3963_v19, %v3488_v28 }
 0x3e3   :  { %v2817_v21 = vpop.f32.mrf.mxu0 }
 0x3e4   :  { %v13021_v9 = vadd.f32 %v2817_v21, %v15459_v4 }
 0x3e5   :  { %v3965_v41 = vpop.f32.mrf.mxu2 }
 0x3e6   :  { %v4547_v5 = vpop.f32.mrf.mxu3 }
 0x3e7   :  { %v13023_v13 = vadd.f32 %v4547_v5, %v4074_v62  ;;  %v3378_v35 = vpop.f32.mrf.mxu1  ;;  %v11234_v62 = vld [vmem:[#allocation2 + $0x150] sm:$0xff]  ;;  %v11265_v5 = vld [vmem:[#allocation2 + $0x124] sm:$0xff] }
 0x3e8   :  { %v3489_v2 = vadd.f32 %v3378_v35, %v12941_v25 }
 0x3e9   :  { %15460 = vst [vmem:[#allocation7_spill] sm:$0xff] %v13023_v13 }
 0x3ea   :  { %9416 = vmatmul.msk.bf16.gmra.mxu2 %vm1045_vm3, %v11301_v49  ;;  %v4076_v19 = vadd.f32 %v3965_v41, %v3489_v2  ;;  %v15462_v41 = vld [vmem:[#allocation14_spill] sm:$0xff] }
 0x3eb   :  { %v2820_v29 = vpop.f32.mrf.mxu0  ;;  %9599 = vmatmul.msk.bf16.gmra.mxu3 %vm1045_vm3, %v11336_v47 }
 0x3ec   :  { %v13032_v32 = vadd.f32 %v2820_v29, %v15461_v3 }
 0x3ed   :  { %v3968_v25 = vpop.f32.mrf.mxu2 }
 0x3ee   :  { %9053 = vmatmul.msk.bf16.gmra.mxu0 %vm1045_vm3, %v11234_v62  ;;  %v4550_v28 = vpop.f32.mrf.mxu3 }
 0x3ef   :  { %v13035_v56 = vadd.f32 %v4550_v28, %v4075_v38  ;;  %v3381_v21 = vpop.f32.mrf.mxu1  ;;  %v11302_v38 = vld [vmem:[#allocation2 + $0x130] sm:$0xff]  ;;  %v11337_v28 = vld [vmem:[#allocation2 + $0x148] sm:$0xff] }
 0x3f0   :  { %v3490_v4 = vadd.f32 %v3381_v21, %v12949_v63  ;;  %v15463_v21 = vld [vmem:[#allocation15_spill] sm:$0xff] }
 0x3f2   :  { %9232 = vmatmul.msk.bf16.gmra.mxu1 %vm1045_vm3, %v11265_v5  ;;  %v4077_v49 = vadd.f32 %v3968_v25, %v3490_v4  ;;  %v11235_v4 = vld [vmem:[#allocation2 + $0x158] sm:$0xff] }
 0x3f3   :  { %v2822_v35 = vpop.f32.mrf.mxu0 }
 0x3f4   :  { %v13040_v2 = vadd.f32 %v2822_v35, %v15462_v41 }
 0x3f5   :  { %v3970_v47 = vpop.f32.mrf.mxu2 }
 0x3f6   :  { %v4552_v29 = vpop.f32.mrf.mxu3 }
 0x3f7   :  { %v13042_v53 = vadd.f32 %v4552_v29, %v4076_v19  ;;  %v3383_v3 = vpop.f32.mrf.mxu1  ;;  %v11266_v29 = vld [vmem:[#allocation2 + $0x12c] sm:$0xff] }
 0x3f8   :  { %v3491_v62 = vadd.f32 %v3383_v3, %v12957_v42 }
 0x3fa   :  { %9417 = vmatmul.msk.bf16.gmra.mxu2 %vm1045_vm3, %v11302_v38  ;;  %v4078_v63 = vadd.f32 %v3970_v47, %v3491_v62 }
 0x3fb   :  { %v2825_v13 = vpop.f32.mrf.mxu0  ;;  %9600 = vmatmul.msk.bf16.gmra.mxu3 %vm1045_vm3, %v11337_v28  ;;  %v15464_v28 = vld [vmem:[#allocation16_spill] sm:$0xff] }
 0x3fc   :  { %v13048_v25 = vadd.f32 %v2825_v13, %v15463_v21 }
 0x3fd   :  { %v3973_v5 = vpop.f32.mrf.mxu2 }
 0x3fe   :  { %9054 = vmatmul.msk.bf16.gmra.mxu0 %vm1045_vm3, %v11235_v4  ;;  %v4555_v19 = vpop.f32.mrf.mxu3 }
 0x3ff   :  { %v13051_v35 = vadd.f32 %v4555_v19, %v4077_v49  ;;  %v3386_v41 = vpop.f32.mrf.mxu1  ;;  %v11303_v49 = vld [vmem:[#allocation2 + $0x138] sm:$0xff]  ;;  %v11338_v19 = vld [vmem:[#allocation2 + $0x150] sm:$0xff] }
 0x400   :  { %v3492_v42 = vadd.f32 %v3386_v41, %v12965_v51  ;;  %v15465_v41 = vld [vmem:[#allocation17_spill] sm:$0xff] }
 0x402   :  { %9233 = vmatmul.msk.bf16.gmra.mxu1 %vm1045_vm3, %v11266_v29  ;;  %v4079_v38 = vadd.f32 %v3973_v5, %v3492_v42  ;;  %v11348_v42 = vld [vmem:[#allocation2 + $0x54] sm:$0xff] }
 0x403   :  { %v2827_v3 = vpop.f32.mrf.mxu0 }
 0x404   :  { %v13056_v47 = vadd.f32 %v2827_v3, %v15464_v28 }
 0x405   :  { %v3975_v13 = vpop.f32.mrf.mxu2 }
 0x406   :  { %v4557_v62 = vpop.f32.mrf.mxu3 }
 0x407   :  { %v13058_v21 = vadd.f32 %v4557_v62, %v4078_v63  ;;  %v3388_v4 = vpop.f32.mrf.mxu1  ;;  %v11267_v62 = vld [vmem:[#allocation2 + $0x134] sm:$0xff] }
 0x408   :  { %v3493_v44 = vadd.f32 %v3388_v4, %v12973_v59  ;;  %v11416_v4 = vld [vmem:[%s15411_s3 + $0x100] sm:$0xff] }
 0x409   :  { %5642 = vmatpush.bf16.msra.mxu1 %v11416_v4 }
 0x40a   :  { %9418 = vmatmul.msk.bf16.gmra.mxu2 %vm1045_vm3, %v11303_v49  ;;  %v4080_v51 = vadd.f32 %v3975_v13, %v3493_v44  ;;  %v15466_v44 = vld [vmem:[#allocation18_spill] sm:$0xff] }
 0x40b   :  { %v2830_v61 = vpop.f32.mrf.mxu0  ;;  %9601 = vmatmul.msk.bf16.gmra.mxu3 %vm1045_vm3, %v11338_v19 }
 0x40c   :  { %v13064_v5 = vadd.f32 %v2830_v61, %v15465_v41 }
 0x40d   :  { %v3978_v29 = vpop.f32.mrf.mxu2 }
 0x40e   :  { %9759 = vmatmul.msk.bf16.vlgmr.msra.gmra.mxu0 %vm1045_vm3, %v11348_v42  ;;  %v4560_v63 = vpop.f32.mrf.mxu3 }
 0x40f   :  { %v13067_v3 = vadd.f32 %v4560_v63, %v4079_v38  ;;  %v3391_v28 = vpop.f32.mrf.mxu1  ;;  %v11304_v63 = vld [vmem:[#allocation2 + $0x148] sm:$0xff] }
 0x410   :  { %v3494_v59 = vadd.f32 %v3391_v28, %v12981_v48  ;;  %v11339_v28 = vld [vmem:[#allocation2 + $0x158] sm:$0xff] }
 0x412   :  { %9234 = vmatmul.msk.bf16.gmra.mxu1 %vm1045_vm3, %v11267_v62  ;;  %v4081_v61 = vadd.f32 %v3978_v29, %v3494_v59  ;;  %v15468_v29 = vld [vmem:[#allocation19_spill] sm:$0xff] }
 0x413   :  { %v2832_v49 = vpop.f32.mrf.mxu0 }
 0x414   :  { %v13075_v13 = vadd.f32 %v2832_v49, %v15466_v44  ;;  %v11349_v49 = vld [vmem:[#allocation2 + $0x5c] sm:$0xff] }
 0x415   :  { %v3980_v19 = vpop.f32.mrf.mxu2 }
 0x416   :  { %v4562_v41 = vpop.f32.mrf.mxu3 }
 0x417   :  { %v13077_v38 = vadd.f32 %v4562_v41, %v4080_v51  ;;  %v3393_v42 = vpop.f32.mrf.mxu1 }
 0x418   :  { %v3495_v48 = vadd.f32 %v3393_v42, %v12989_v36  ;;  %v11268_v42 = vld [vmem:[#allocation2 + $0x144] sm:$0xff] }
 0x419   :  { %15467 = vst [vmem:[#allocation8_spill] sm:$0xff] %v13077_v38 }
 0x41a   :  { %9419 = vmatmul.msk.bf16.gmra.mxu2 %vm1045_vm3, %v11304_v63  ;;  %v4082_v62 = vadd.f32 %v3980_v19, %v3495_v48 }
 0x41b   :  { %v2835_v7 = vpop.f32.mrf.mxu0  ;;  %9602 = vmatmul.msk.bf16.gmra.mxu3 %vm1045_vm3, %v11339_v28  ;;  %v15469_v28 = vld [vmem:[#allocation20_spill] sm:$0xff] }
 0x41c   :  { %v13083_v59 = vadd.f32 %v2835_v7, %v15468_v29 }
 0x41d   :  { %v3983_v4 = vpop.f32.mrf.mxu2 }
 0x41e   :  { %9760 = vmatmul.msk.bf16.gmra.mxu0 %vm1045_vm3, %v11349_v49  ;;  %v4565_v51 = vpop.f32.mrf.mxu3  ;;  %v11340_v49 = vld [vmem:[#allocation2 + $0x168] sm:$0xff] }
 0x41f   :  { %v13086_v44 = vadd.f32 %v4565_v51, %v4081_v61  ;;  %v3396_v41 = vpop.f32.mrf.mxu1  ;;  %v11305_v51 = vld [vmem:[#allocation2 + $0x150] sm:$0xff] }
 0x420   :  { %v3496_v36 = vadd.f32 %v3396_v41, %v12997_v26 }
 0x422   :  { %9235 = vmatmul.msk.bf16.gmra.mxu1 %vm1045_vm3, %v11268_v42  ;;  %v4083_v63 = vadd.f32 %v3983_v4, %v3496_v36  ;;  %v15472_v4 = vld [vmem:[#allocation21_spill] sm:$0xff] }
 0x423   :  { %v2837_v52 = vpop.f32.mrf.mxu0 }
 0x424   :  { %v13091_v19 = vadd.f32 %v2837_v52, %v15469_v28  ;;  %v11350_v52 = vld [vmem:[#allocation2 + $0x64] sm:$0xff] }
 0x425   :  { %v13093_v7 = vpop.f32.mrf.mxu2 }
 0x426   :  { %15470 = vst [vmem:[#allocation9_spill] sm:$0xff] %v13093_v7  ;;  %v4567_v48 = vpop.f32.mrf.mxu3  ;;  %v15474_v7 = vld [vmem:[#allocation22_spill] sm:$0xff] }
 0x427   :  { %v13095_v29 = vadd.f32 %v4567_v48, %v4082_v62  ;;  %v3398_v38 = vpop.f32.mrf.mxu1 }
 0x428   :  { %v13098_v61 = vadd.f32 %v3398_v38, %v13005_v34  ;;  %v11269_v38 = vld [vmem:[#allocation2 + $0x14c] sm:$0xff] }
 0x42a   :  { %15471 = vst [vmem:[#allocation10_spill] sm:$0xff] %v13098_v61  ;;  %9420 = vmatmul.msk.bf16.gmra.mxu2 %vm1045_vm3, %v11305_v51 }
 0x42b   :  { %v2840_v26 = vpop.f32.mrf.mxu0  ;;  %9603 = vmatmul.msk.bf16.gmra.mxu3 %vm1045_vm3, %v11340_v49 }
 0x42c   :  { %v13103_v41 = vadd.f32 %v2840_v26, %v15472_v4 }
 0x42d   :  { %v3988_v36 = vpop.f32.mrf.mxu2 }
 0x42e   :  { %9761 = vmatmul.msk.bf16.gmra.mxu0 %vm1045_vm3, %v11350_v52  ;;  %v4570_v62 = vpop.f32.mrf.mxu3  ;;  %v11341_v52 = vld [vmem:[#allocation2 + $0x170] sm:$0xff] }
 0x42f   :  { %v13106_v42 = vadd.f32 %v4570_v62, %v4083_v63  ;;  %v3401_v28 = vpop.f32.mrf.mxu1  ;;  %v11306_v62 = vld [vmem:[#allocation2 + $0x158] sm:$0xff] }
 0x430   :  { %v3498_v34 = vadd.f32 %v3401_v28, %v13013_v39  ;;  %v15478_v39 = vld [vmem:[#allocation23_spill] sm:$0xff] }
 0x431   :  { %15473 = vst [vmem:[#allocation11_spill] sm:$0xff] %v13106_v42 }
 0x432   :  { %9236 = vmatmul.msk.bf16.gmra.mxu1 %vm1045_vm3, %v11269_v38  ;;  %v4085_v51 = vadd.f32 %v3988_v36, %v3498_v34 }
 0x433   :  { %v2842_v48 = vpop.f32.mrf.mxu0 }
 0x434   :  { %v13111_v49 = vadd.f32 %v2842_v48, %v15474_v7  ;;  %v11351_v7 = vld [vmem:[#allocation2 + $0x6c] sm:$0xff] }
 0x435   :  { %v13113_v26 = vpop.f32.mrf.mxu2 }
 0x436   :  { %15475 = vst [vmem:[#allocation12_spill] sm:$0xff] %v13113_v26  ;;  %v13115_v4 = vpop.f32.mrf.mxu3 }
 0x437   :  { %15476 = vst [vmem:[#allocation13_spill] sm:$0xff] %v13115_v4  ;;  %v3403_v61 = vpop.f32.mrf.mxu1 }
 0x438   :  { %v13118_v63 = vadd.f32 %v3403_v61, %v13021_v9  ;;  %v11270_v61 = vld [vmem:[#allocation2 + $0x154] sm:$0xff] }
 0x43a   :  { %15477 = vst [vmem:[#allocation14_spill] sm:$0xff] %v13118_v63  ;;  %9421 = vmatmul.msk.bf16.gmra.mxu2 %vm1045_vm3, %v11306_v62  ;;  %v15480_v63 = vld [vmem:[#allocation24_spill] sm:$0xff] }
 0x43b   :  { %v2845_v42 = vpop.f32.mrf.mxu0  ;;  %9604 = vmatmul.msk.bf16.gmra.mxu3 %vm1045_vm3, %v11341_v52 }
 0x43c   :  { %v13123_v36 = vadd.f32 %v2845_v42, %v15478_v39 }
 0x43d   :  { %v3993_v28 = vpop.f32.mrf.mxu2 }
 0x43e   :  { %9762 = vmatmul.msk.bf16.gmra.mxu0 %vm1045_vm3, %v11351_v7  ;;  %v4575_v34 = vpop.f32.mrf.mxu3  ;;  %v11342_v7 = vld [vmem:[#allocation2 + $0x178] sm:$0xff] }
 0x43f   :  { %v13126_v38 = vadd.f32 %v4575_v34, %v4085_v51  ;;  %v3406_v48 = vpop.f32.mrf.mxu1  ;;  %v11307_v34 = vld [vmem:[#allocation2 + $0x160] sm:$0xff] }
 0x440   :  { %v3500_v9 = vadd.f32 %v3406_v48, %v13032_v32  ;;  %v15484_v32 = vld [vmem:[#allocation25_spill] sm:$0xff] }
 0x441   :  { %15479 = vst [vmem:[#allocation15_spill] sm:$0xff] %v13126_v38 }
 0x442   :  { %9237 = vmatmul.msk.bf16.gmra.mxu1 %vm1045_vm3, %v11270_v61  ;;  %v4087_v62 = vadd.f32 %v3993_v28, %v3500_v9 }
 0x443   :  { %v2847_v26 = vpop.f32.mrf.mxu0 }
 0x444   :  { %v13131_v52 = vadd.f32 %v2847_v26, %v15480_v63  ;;  %v11352_v26 = vld [vmem:[#allocation2 + $0x7c] sm:$0xff] }
 0x445   :  { %v13133_v42 = vpop.f32.mrf.mxu2 }
 0x446   :  { %15481 = vst [vmem:[#allocation16_spill] sm:$0xff] %v13133_v42  ;;  %v13135_v39 = vpop.f32.mrf.mxu3 }
 0x447   :  { %15482 = vst [vmem:[#allocation17_spill] sm:$0xff] %v13135_v39  ;;  %v3408_v4 = vpop.f32.mrf.mxu1 }
 0x448   :  { %v13138_v51 = vadd.f32 %v3408_v4, %v13040_v2  ;;  %v11271_v4 = vld [vmem:[#allocation2 + $0x15c] sm:$0xff] }
 0x44a   :  { %15483 = vst [vmem:[#allocation18_spill] sm:$0xff] %v13138_v51  ;;  %9422 = vmatmul.msk.bf16.gmra.mxu2 %vm1045_vm3, %v11307_v34  ;;  %v15486_v51 = vld [vmem:[#allocation26_spill] sm:$0xff] }
 0x44b   :  { %v2850_v38 = vpop.f32.mrf.mxu0  ;;  %9605 = vmatmul.msk.bf16.gmra.mxu3 %vm1045_vm3, %v11342_v7 }
 0x44c   :  { %v13143_v28 = vadd.f32 %v2850_v38, %v15484_v32 }
 0x44d   :  { %v3998_v63 = vpop.f32.mrf.mxu2 }
 0x44e   :  { %9763 = vmatmul.msk.bf16.gmra.mxu0 %vm1045_vm3, %v11352_v26  ;;  %v4580_v48 = vpop.f32.mrf.mxu3  ;;  %v11343_v26 = vld [vmem:[#allocation2 + $0x180] sm:$0xff] }
 0x44f   :  { %v13146_v9 = vadd.f32 %v4580_v48, %v4087_v62  ;;  %v3411_v61 = vpop.f32.mrf.mxu1 }
 0x450   :  { %v3502_v2 = vadd.f32 %v3411_v61, %v13048_v25  ;;  %v15490_v25 = vld [vmem:[#allocation27_spill] sm:$0xff] }
 0x451   :  { %15485 = vst [vmem:[#allocation19_spill] sm:$0xff] %v13146_v9 }
 0x452   :  { %9238 = vmatmul.msk.bf16.gmra.mxu1 %vm1045_vm3, %v11271_v4  ;;  %v4089_v34 = vadd.f32 %v3998_v63, %v3502_v2  ;;  %v11353_v4 = vld [vmem:[#allocation2 + $0x84] sm:$0xff] }
 0x453   :  { %v2852_v42 = vpop.f32.mrf.mxu0 }
 0x454   :  { %v13151_v7 = vadd.f32 %v2852_v42, %v15486_v51 }
 0x455   :  { %v13153_v38 = vpop.f32.mrf.mxu2 }
 0x456   :  { %15487 = vst [vmem:[#allocation20_spill] sm:$0xff] %v13153_v38  ;;  %v13155_v32 = vpop.f32.mrf.mxu3 }
 0x457   :  { %15488 = vst [vmem:[#allocation21_spill] sm:$0xff] %v13155_v32  ;;  %v3413_v39 = vpop.f32.mrf.mxu1  ;;  %v11384_v32 = vld [vmem:[#allocation2 + $0x58] sm:$0xff] }
 0x458   :  { %v13158_v62 = vadd.f32 %v3413_v39, %v13056_v47  ;;  %v15492_v39 = vld [vmem:[#allocation28_spill] sm:$0xff] }
 0x45a   :  { %15489 = vst [vmem:[#allocation22_spill] sm:$0xff] %v13158_v62 }
 0x45b   :  { %v2855_v48 = vpop.f32.mrf.mxu0  ;;  %9606 = vmatmul.msk.bf16.gmra.mxu3 %vm1045_vm3, %v11343_v26 }
 0x45c   :  { %v13162_v61 = vadd.f32 %v2855_v48, %v15490_v25 }
 0x45d   :  { %v4003_v42 = vpop.f32.mrf.mxu2 }
 0x45e   :  { %9764 = vmatmul.msk.bf16.gmra.mxu0 %vm1045_vm3, %v11353_v4  ;;  %v4585_v51 = vpop.f32.mrf.mxu3 }
 0x45f   :  { %v13165_v63 = vadd.f32 %v4585_v51, %v4089_v34  ;;  %v3416_v2 = vpop.f32.mrf.mxu1 }
 0x460   :  { %v3504_v38 = vadd.f32 %v3416_v2, %v13064_v5  ;;  %v11354_v5 = vld [vmem:[#allocation2 + $0x8c] sm:$0xff] }
 0x461   :  { %15491 = vst [vmem:[#allocation23_spill] sm:$0xff] %v13165_v63 }
 0x462   :  { %9943 = vmatmul.msk.bf16.vlgmr.msra.gmra.mxu1 %vm1045_vm3, %v11384_v32  ;;  %v4091_v47 = vadd.f32 %v4003_v42, %v3504_v38 }
 0x463   :  { %v2857_v9 = vpop.f32.mrf.mxu0 }
 0x464   :  { %v13170_v26 = vadd.f32 %v2857_v9, %v15492_v39  ;;  %v11385_v39 = vld [vmem:[#allocation2 + $0x60] sm:$0xff] }
 0x465   :  { %v13172_v48 = vpop.f32.mrf.mxu2 }
 0x466   :  { %v13174_v25 = vpop.f32.mrf.mxu3 }
 0x467   :  { %15493 = vst [vmem:[#allocation24_spill] sm:$0xff] %v13174_v25  ;;  %v3418_v4 = vpop.f32.mrf.mxu1 }
 0x468   :  { %v13177_v62 = vadd.f32 %v3418_v4, %v13075_v13 }
 0x46b   :  { %v2860_v34 = vpop.f32.mrf.mxu0 }
 0x46c   :  { %v13180_v51 = vadd.f32 %v2860_v34, %v12722_v17 }
 0x46d   :  { %v4008_v32 = vpop.f32.mrf.mxu2 }
 0x46e   :  { %9765 = vmatmul.msk.bf16.gmra.mxu0 %vm1045_vm3, %v11354_v5  ;;  %v4590_v38 = vpop.f32.mrf.mxu3 }
 0x46f   :  { %v13183_v42 = vadd.f32 %v4590_v38, %v4091_v47  ;;  %v3421_v9 = vpop.f32.mrf.mxu1 }
 0x470   :  { %v3506_v2 = vadd.f32 %v3421_v9, %v13083_v59  ;;  %v11355_v59 = vld [vmem:[#allocation2 + $0x94] sm:$0xff] }
 0x472   :  { %9944 = vmatmul.msk.bf16.gmra.mxu1 %vm1045_vm3, %v11385_v39  ;;  %v4093_v13 = vadd.f32 %v4008_v32, %v3506_v2  ;;  %v11386_v39 = vld [vmem:[#allocation2 + $0x68] sm:$0xff] }
 0x473   :  { %v2862_v25 = vpop.f32.mrf.mxu0 }
 0x474   :  { %v13188_v4 = vadd.f32 %v2862_v25, %v12728_v11 }
 0x475   :  { %v13190_v17 = vpop.f32.mrf.mxu2 }
 0x476   :  { %15494 = vst [vmem:[#allocation25_spill] sm:$0xff] %v13190_v17  ;;  %v13192_v34 = vpop.f32.mrf.mxu3 }
 0x477   :  { %v3423_v5 = vpop.f32.mrf.mxu1 }
 0x478   :  { %v13195_v63 = vadd.f32 %v3423_v5, %v13091_v19 }
 0x47a   :  { %15495 = vst [vmem:[#allocation26_spill] sm:$0xff] %v13195_v63 }
 0x47b   :  { %v2865_v47 = vpop.f32.mrf.mxu0 }
 0x47c   :  { %v13198_v38 = vadd.f32 %v2865_v47, %v12736_v1 }
 0x47d   :  { %v4013_v9 = vpop.f32.mrf.mxu2 }
 0x47e   :  { %9766 = vmatmul.msk.bf16.gmra.mxu0 %vm1045_vm3, %v11355_v59  ;;  %v4595_v32 = vpop.f32.mrf.mxu3 }
 0x47f   :  { %v13201_v2 = vadd.f32 %v4595_v32, %v4093_v13  ;;  %v3426_v11 = vpop.f32.mrf.mxu1 }
 0x480   :  { %v3508_v25 = vadd.f32 %v3426_v11, %v13103_v41  ;;  %v11356_v41 = vld [vmem:[#allocation2 + $0xa4] sm:$0xff] }
 0x482   :  { %9945 = vmatmul.msk.bf16.gmra.mxu1 %vm1045_vm3, %v11386_v39  ;;  %v4095_v19 = vadd.f32 %v4013_v9, %v3508_v25  ;;  %v11387_v39 = vld [vmem:[#allocation2 + $0x70] sm:$0xff] }
 0x483   :  { %v2867_v17 = vpop.f32.mrf.mxu0 }
 0x484   :  { %v13206_v5 = vadd.f32 %v2867_v17, %v12747_v45 }
 0x485   :  { %v13208_v1 = vpop.f32.mrf.mxu2 }
 0x486   :  { %15496 = vst [vmem:[#allocation27_spill] sm:$0xff] %v13208_v1  ;;  %v13210_v47 = vpop.f32.mrf.mxu3 }
 0x487   :  { %v3428_v59 = vpop.f32.mrf.mxu1 }
 0x488   :  { %v13213_v63 = vadd.f32 %v3428_v59, %v13111_v49 }
 0x48a   :  { %15497 = vst [vmem:[#allocation28_spill] sm:$0xff] %v13213_v63 }
 0x48b   :  { %v5057_v13 = vpop.f32.mrf.mxu0 }
 0x48c   :  { %v13216_v32 = vadd.f32 %v5057_v13, %v12755_v30 }
 0x48d   :  { %v4018_v11 = vpop.f32.mrf.mxu2 }
 0x48e   :  { %9767 = vmatmul.msk.bf16.gmra.mxu0 %vm1045_vm3, %v11356_v41  ;;  %v4600_v9 = vpop.f32.mrf.mxu3 }
 0x48f   :  { %v13219_v25 = vadd.f32 %v4600_v9, %v4095_v19  ;;  %v3431_v45 = vpop.f32.mrf.mxu1 }
 0x490   :  { %v3510_v17 = vadd.f32 %v3431_v45, %v13123_v36  ;;  %v11357_v36 = vld [vmem:[#allocation2 + $0xac] sm:$0xff] }
 0x492   :  { %9946 = vmatmul.msk.bf16.gmra.mxu1 %vm1045_vm3, %v11387_v39  ;;  %v4097_v49 = vadd.f32 %v4018_v11, %v3510_v17  ;;  %v11388_v39 = vld [vmem:[#allocation2 + $0x80] sm:$0xff] }
 0x493   :  { %v5059_v1 = vpop.f32.mrf.mxu0 }
 0x494   :  { %v13224_v59 = vadd.f32 %v5059_v1, %v12766_v46 }
 0x495   :  { %v13226_v30 = vpop.f32.mrf.mxu2 }
 0x496   :  { %15498 = vst [vmem:[#allocation29_spill] sm:$0xff] %v13226_v30  ;;  %v13228_v13 = vpop.f32.mrf.mxu3 }
 0x497   :  { %v3433_v41 = vpop.f32.mrf.mxu1 }
 0x498   :  { %v13231_v63 = vadd.f32 %v3433_v41, %v13131_v52  ;;  %v10033_v52 = vld [vmem:[%s15413_s5 + $0x70] sm:$0xf] }
 0x49a   :  { %15499 = vst [vmem:[#allocation30_spill] sm:$0xff] %v13231_v63 }
 0x49b   :  { %v5062_v19 = vpop.f32.mrf.mxu0 }
 0x49c   :  { %v13234_v9 = vadd.f32 %v5062_v19, %v12774_v43  ;;  %v11435_v43 = vld [vmem:[%s15413_s5 + $0x74] sm:$0xf0] }
 0x49d   :  { %v4023_v45 = vpop.f32.mrf.mxu2  ;;  %v10034_v41 = vor.u32 %v11435_v43, %v10033_v52  ;;  %v11358_v43 = vld [vmem:[#allocation2 + $0xb4] sm:$0xff] }
 0x49e   :  { %9768 = vmatmul.msk.bf16.gmra.mxu0 %vm1045_vm3, %v11357_v36  ;;  %v4605_v11 = vpop.f32.mrf.mxu3 }
 0x49f   :  { %v13237_v17 = vadd.f32 %v4605_v11, %v4097_v49  ;;  %v3436_v46 = vpop.f32.mrf.mxu1  ;;  %7606 = vmatpush.bf16.msra.mxu2 %v10034_v41  ;;  %v11451_v11 = vld [vmem:[%s15413_s5 + $0xf4] sm:$0xf0] }
 0x4a0   :  { %v3512_v1 = vadd.f32 %v3436_v46, %v13143_v28  ;;  %v10097_v28 = vld [vmem:[%s15413_s5 + $0xf0] sm:$0xf] }
 0x4a1   :  { %v10098_v46 = vor.u32 %v11451_v11, %v10097_v28 }
 0x4a2   :  { %9947 = vmatmul.msk.bf16.gmra.mxu1 %vm1045_vm3, %v11388_v39  ;;  %v4099_v36 = vadd.f32 %v4023_v45, %v3512_v1 }
 0x4a3   :  { %v5064_v19 = vpop.f32.mrf.mxu0  ;;  %7619 = vmatpush.bf16.msra.mxu3 %v10098_v46 }
 0x4a4   :  { %v13248_v49 = vadd.f32 %v5064_v19, %v12785_v18 }
 0x4a5   :  { %v13256_v30 = vpop.f32.mrf.mxu2 }
 0x4a6   :  { %15500 = vst [vmem:[#allocation31_spill] sm:$0xff] %v13256_v30  ;;  %v13258_v52 = vpop.f32.mrf.mxu3  ;;  %v11389_v30 = vld [vmem:[#allocation2 + $0x88] sm:$0xff] }
 0x4a7   :  { %v3438_v39 = vpop.f32.mrf.mxu1 }
 0x4a8   :  { %v13261_v45 = vadd.f32 %v3438_v39, %v13151_v7 }
 0x4aa   :  { %15501 = vst [vmem:[#allocation32_spill] sm:$0xff] %v13261_v45 }
 0x4ab   :  { %v5067_v18 = vpop.f32.mrf.mxu0 }
 0x4ac   :  { %v13264_v1 = vadd.f32 %v5067_v18, %v12793_v0 }
 0x4ad   :  { %v4028_v41 = vpop.f32.mrf.mxu2 }
 0x4ae   :  { %9769 = vmatmul.msk.bf16.gmra.mxu0 %vm1045_vm3, %v11358_v43  ;;  %v4610_v19 = vpop.f32.mrf.mxu3 }
 0x4af   :  { %v13267_v63 = vadd.f32 %v4610_v19, %v4099_v36  ;;  %v3441_v28 = vpop.f32.mrf.mxu1 }
 0x4b0   :  { %v3514_v11 = vadd.f32 %v3441_v28, %v13162_v61  ;;  %v11359_v61 = vld [vmem:[#allocation2 + $0xbc] sm:$0xff] }
 0x4b2   :  { %9948 = vmatmul.msk.bf16.gmra.mxu1 %vm1045_vm3, %v11389_v30  ;;  %v4101_v7 = vadd.f32 %v4028_v41, %v3514_v11 }
 0x4b3   :  { %v5069_v46 = vpop.f32.mrf.mxu0 }
 0x4b4   :  { %v13272_v39 = vadd.f32 %v5069_v46, %v12810_v10  ;;  %v11390_v46 = vld [vmem:[#allocation2 + $0x90] sm:$0xff] }
 0x4b5   :  { %v13274_v0 = vpop.f32.mrf.mxu2 }
 0x4b6   :  { %15502 = vst [vmem:[#allocation33_spill] sm:$0xff] %v13274_v0  ;;  %v13276_v18 = vpop.f32.mrf.mxu3 }
 0x4b7   :  { %15503 = vst [vmem:[#allocation34_spill] sm:$0xff] %v13276_v18  ;;  %v3443_v43 = vpop.f32.mrf.mxu1 }
 0x4b8   :  { %v13279_v45 = vadd.f32 %v3443_v43, %v13170_v26 }
 0x4ba   :  { %15504 = vst [vmem:[#allocation35_spill] sm:$0xff] %v13279_v45 }
 0x4bb   :  { %v5072_v36 = vpop.f32.mrf.mxu0 }
 0x4bc   :  { %v13282_v19 = vadd.f32 %v5072_v36, %v12818_v12 }
 0x4bd   :  { %v4033_v30 = vpop.f32.mrf.mxu2 }
 0x4be   :  { %9770 = vmatmul.msk.bf16.gmra.mxu0 %vm1045_vm3, %v11359_v61  ;;  %v4615_v41 = vpop.f32.mrf.mxu3 }
 0x4bf   :  { %v13285_v28 = vadd.f32 %v4615_v41, %v4101_v7  ;;  %v3446_v10 = vpop.f32.mrf.mxu1  ;;  %v11360_v41 = vld [vmem:[#allocation2 + $0xcc] sm:$0xff] }
 0x4c0   :  { %v3516_v11 = vadd.f32 %v3446_v10, %v13180_v51 }
 0x4c1   :  { %15505 = vst [vmem:[#allocation36_spill] sm:$0xff] %v13285_v28 }
 0x4c2   :  { %9949 = vmatmul.msk.bf16.gmra.mxu1 %vm1045_vm3, %v11390_v46  ;;  %v4103_v26 = vadd.f32 %v4033_v30, %v3516_v11 }
 0x4c3   :  { %v5074_v0 = vpop.f32.mrf.mxu0 }
 0x4c4   :  { %v13290_v43 = vadd.f32 %v5074_v0, %v12825_v31  ;;  %v11391_v0 = vld [vmem:[#allocation2 + $0x98] sm:$0xff] }
 0x4c5   :  { %v13294_v36 = vpop.f32.mrf.mxu2 }
 0x4c6   :  { %v13292_v12 = vpop.f32.mrf.mxu3  ;;  %15507 = vst [vmem:[#allocation38_spill] sm:$0xff] %v13294_v36 }
 0x4c7   :  { %15506 = vst [vmem:[#allocation37_spill] sm:$0xff] %v13292_v12  ;;  %v3448_v61 = vpop.f32.mrf.mxu1  ;;  %v11392_v12 = vld [vmem:[#allocation2 + $0xa8] sm:$0xff] }
 0x4c8   :  { %v13297_v45 = vadd.f32 %v3448_v61, %v13188_v4 }
 0x4ca   :  { %15508 = vst [vmem:[#allocation39_spill] sm:$0xff] %v13297_v45 }
 0x4cb   :  { %v13299_v7 = vpop.f32.mrf.mxu0 }
 0x4cd   :  { %v4038_v11 = vpop.f32.mrf.mxu2 }
 0x4ce   :  { %9771 = vmatmul.msk.bf16.gmra.mxu0 %vm1045_vm3, %v11360_v41  ;;  %v4620_v51 = vpop.f32.mrf.mxu3 }
 0x4cf   :  { %v13302_v10 = vadd.f32 %v4620_v51, %v4103_v26  ;;  %v3451_v30 = vpop.f32.mrf.mxu1  ;;  %v11361_v26 = vld [vmem:[#allocation2 + $0xd4] sm:$0xff] }
 0x4d0   :  { %v3518_v31 = vadd.f32 %v3451_v30, %v13198_v38 }
 0x4d1   :  { %15509 = vst [vmem:[#allocation40_spill] sm:$0xff] %v13302_v10 }
 0x4d2   :  { %9950 = vmatmul.msk.bf16.gmra.mxu1 %vm1045_vm3, %v11391_v0  ;;  %v4105_v36 = vadd.f32 %v4038_v11, %v3518_v31  ;;  %v10025_v31 = vld [vmem:[%s15413_s5 + $0x60] sm:$0xf] }
 0x4d3   :  { %v13305_v46 = vpop.f32.mrf.mxu0 }
 0x4d6   :  { %v13308_v4 = vpop.f32.mrf.mxu3 }
 0x4d7   :  { %15510 = vst [vmem:[#allocation41_spill] sm:$0xff] %v13308_v4  ;;  %v3453_v61 = vpop.f32.mrf.mxu1 }
 0x4d8   :  { %v13311_v45 = vadd.f32 %v3453_v61, %v13206_v5  ;;  %v13325_v5 = vld [vmem:[%s15412_s4] ss:$0 sm:$0xff] }
 0x4da   :  { %15511 = vst [vmem:[#allocation42_spill] sm:$0xff] %v13311_v45 }
 0x4db   :  { %v13313_v41 = vpop.f32.mrf.mxu0 }
 0x4de   :  { %9772 = vmatmul.msk.bf16.gmra.mxu0 %vm1045_vm3, %v11361_v26  ;;  %v4625_v51 = vpop.f32.mrf.mxu3 }
 0x4df   :  { %v13316_v38 = vadd.f32 %v4625_v51, %v4105_v36  ;;  %v5644_v30 = vpop.f32.mrf.mxu1  ;;  %v11433_v36 = vld [vmem:[%s15413_s5 + $0x64] sm:$0xf0] }
 0x4e0   :  { %v5804_v10 = vadd.f32 %v5644_v30, %v13216_v32  ;;  %v10026_v11 = vor.u32 %v11433_v36, %v10025_v31  ;;  %v10089_v32 = vld [vmem:[%s15413_s5 + $0xe0] sm:$0xf] }
 0x4e1   :  { %15512 = vst [vmem:[#allocation43_spill] sm:$0xff] %v13316_v38  ;;  %v11362_v31 = vld [vmem:[#allocation2 + $0xdc] sm:$0xff] }
 0x4e2   :  { %9951 = vmatmul.msk.bf16.gmra.mxu1 %vm1045_vm3, %v11392_v12  ;;  %v11449_v12 = vld [vmem:[%s15413_s5 + $0xe4] sm:$0xf0]  ;;  %7607 = vmatpush.bf16.msra.mxu2 %v10026_v11  ;;  %v5872_v51 = vadd.f32 %v13325_v5, %v5804_v10  ;;  %v11393_v11 = vld [vmem:[#allocation2 + $0xb0] sm:$0xff] }
 0x4e3   :  { %v13319_v0 = vpop.f32.mrf.mxu0  ;;  %v10090_v61 = vor.u32 %v11449_v12, %v10089_v32 }
 0x4e4   :  { %v5936_v36 = vmax.f32 %v5872_v51, 0.0  ;;  %v11363_v51 = vld [vmem:[#allocation2 + $0xe4] sm:$0xff] }
 0x4e5   :  { %7620 = vmatpush.bf16.msra.mxu3 %v10090_v61 }
 0x4e7   :  { %v5646_v26 = vpop.f32.mrf.mxu1 }
 0x4e8   :  { %v5805_v30 = vadd.f32 %v5646_v26, %v13224_v59 }
 0x4ea   :  { %v5873_v38 = vadd.f32 %v13325_v5, %v5805_v30 }
 0x4eb   :  { %v13342_v45 = vpop.f32.mrf.mxu0 }
 0x4ec   :  { %v5937_v4 = vmax.f32 %v5873_v38, 0.0 }
 0x4ee   :  { %9773 = vmatmul.msk.bf16.gmra.mxu0 %vm1045_vm3, %v11362_v31  ;;  %v13345_v28 = vmax.f32 %v5936_v36, %v5937_v4 }
 0x4ef   :  { %v5649_v18 = vpop.f32.mrf.mxu1 }
 0x4f0   :  { %v5806_v32 = vadd.f32 %v5649_v18, %v13234_v9  ;;  %v10017_v9 = vld [vmem:[%s15413_s5 + $0x50] sm:$0xf]  ;;  %v11431_v18 = vld [vmem:[%s15413_s5 + $0x54] sm:$0xf0] }
 0x4f1   :  { %v10018_v31 = vor.u32 %v11431_v18, %v10017_v9 }
 0x4f2   :  { %9952 = vmatmul.msk.bf16.gmra.mxu1 %vm1045_vm3, %v11393_v11  ;;  %v5874_v10 = vadd.f32 %v13325_v5, %v5806_v32  ;;  %v11394_v11 = vld [vmem:[#allocation2 + $0xb8] sm:$0xff] }
 0x4f3   :  { %v13348_v12 = vpop.f32.mrf.mxu0  ;;  %7608 = vmatpush.bf16.msra.mxu2 %v10018_v31  ;;  %v9993_v31 = vld [vmem:[%s15413_s5 + $0x20] sm:$0xf] }
 0x4f4   :  { %v5938_v4 = vmax.f32 %v5874_v10, 0.0  ;;  %v11429_v10 = vld [vmem:[%s15413_s5 + $0x44] sm:$0xf0] }
 0x4f7   :  { %v5651_v59 = vpop.f32.mrf.mxu1 }
 0x4f8   :  { %v5807_v61 = vadd.f32 %v5651_v59, %v13248_v49  ;;  %v10009_v59 = vld [vmem:[%s15413_s5 + $0x40] sm:$0xf] }
 0x4fa   :  { %v5875_v26 = vadd.f32 %v13325_v5, %v5807_v61  ;;  %v10010_v61 = vor.u32 %v11429_v10, %v10009_v59 }
 0x4fb   :  { %v13354_v38 = vpop.f32.mrf.mxu0 }
 0x4fc   :  { %v5939_v30 = vmax.f32 %v5875_v26, 0.0  ;;  %7609 = vmatpush.bf16.msra.mxu2 %v10010_v61 }
 0x4fe   :  { %9774 = vmatmul.msk.bf16.gmra.mxu0 %vm1045_vm3, %v11363_v51  ;;  %v13363_v36 = vmax.f32 %v5938_v4, %v5939_v30  ;;  %v10001_v51 = vld [vmem:[%s15413_s5 + $0x30] sm:$0xf] }
 0x4ff   :  { %v5654_v49 = vpop.f32.mrf.mxu1 }
 0x500   :  { %v5808_v32 = vadd.f32 %v5654_v49, %v13264_v1  ;;  %v11427_v1 = vld [vmem:[%s15413_s5 + $0x34] sm:$0xf0]  ;;  %v11425_v49 = vld [vmem:[%s15413_s5 + $0x24] sm:$0xf0] }
 0x501   :  { %v10002_v4 = vor.u32 %v11427_v1, %v10001_v51  ;;  %v11364_v51 = vld [vmem:[#allocation2 + $0xf4] sm:$0xff] }
 0x502   :  { %9953 = vmatmul.msk.bf16.gmra.mxu1 %vm1045_vm3, %v11394_v11  ;;  %v5876_v9 = vadd.f32 %v13325_v5, %v5808_v32  ;;  %v9994_v11 = vor.u32 %v11425_v49, %v9993_v31 }
 0x503   :  { %v13372_v26 = vpop.f32.mrf.mxu0  ;;  %7610 = vmatpush.bf16.msra.mxu2 %v10002_v4  ;;  %v11423_v4 = vld [vmem:[%s15413_s5 + $0x14] sm:$0xf0] }
 0x504   :  { %v5940_v32 = vmax.f32 %v5876_v9, 0.0  ;;  %v11447_v9 = vld [vmem:[%s15413_s5 + $0xd4] sm:$0xf0] }
 0x507   :  { %v5656_v30 = vpop.f32.mrf.mxu1  ;;  %7611 = vmatpush.bf16.msra.mxu2 %v9994_v11  ;;  %v11395_v11 = vld [vmem:[#allocation2 + $0xc0] sm:$0xff] }
 0x508   :  { %v5809_v18 = vadd.f32 %v5656_v30, %v13272_v39  ;;  %v9985_v39 = vld [vmem:[%s15413_s5 + $0x10] sm:$0xf] }
 0x509   :  { %v9986_v30 = vor.u32 %v11423_v4, %v9985_v39  ;;  %v11445_v39 = vld [vmem:[%s15413_s5 + $0xc4] sm:$0xf0] }
 0x50a   :  { %v5877_v59 = vadd.f32 %v13325_v5, %v5809_v18 }
 0x50b   :  { %v5097_v10 = vpop.f32.mrf.mxu0  ;;  %7612 = vmatpush.bf16.msra.mxu2 %v9986_v30 }
 0x50c   :  { %v13391_v61 = vadd.f32 %v5097_v10, %v12898_v57  ;;  %v5941_v1 = vmax.f32 %v5877_v59, 0.0  ;;  %v10081_v57 = vld [vmem:[%s15413_s5 + $0xd0] sm:$0xf]  ;;  %v9977_v10 = vld [vmem:[%s15413_s5] sm:$0xf] }
 0x50d   :  { %v10082_v31 = vor.u32 %v11447_v9, %v10081_v57  ;;  %v10065_v57 = vld [vmem:[%s15413_s5 + $0xb0] sm:$0xf]  ;;  %v11443_v9 = vld [vmem:[%s15413_s5 + $0xb4] sm:$0xf0] }
 0x50e   :  { %9775 = vmatmul.msk.bf16.gmra.mxu0 %vm1045_vm3, %v11364_v51  ;;  %v13406_v18 = vmax.f32 %v5940_v32, %v5941_v1  ;;  %v11421_v51 = vld [vmem:[%s15413_s5 + $0x4] sm:$0xf0]  ;;  %v10073_v32 = vld [vmem:[%s15413_s5 + $0xc0] sm:$0xf] }
 0x50f   :  { %v5659_v49 = vpop.f32.mrf.mxu1  ;;  %7621 = vmatpush.bf16.msra.mxu3 %v10082_v31  ;;  %v9978_v1 = vor.u32 %v11421_v51, %v9977_v10  ;;  %v10066_v31 = vor.u32 %v11443_v9, %v10065_v57 }
 0x510   :  { %v5810_v59 = vadd.f32 %v5659_v49, %v13282_v19  ;;  %v10074_v19 = vor.u32 %v11445_v39, %v10073_v32  ;;  %v10161_v49 = vld [vmem:[%s15413_s5 + $0x170] sm:$0xf]  ;;  %v11441_v39 = vld [vmem:[%s15413_s5 + $0xa4] sm:$0xf0] }
 0x511   :  { %7613 = vmatpush.bf16.msra.mxu2 %v9978_v1  ;;  %v10057_v1 = vld [vmem:[%s15413_s5 + $0xa0] sm:$0xf] }
 0x512   :  { %9954 = vmatmul.msk.bf16.gmra.mxu1 %vm1045_vm3, %v11395_v11  ;;  %v5878_v51 = vadd.f32 %v13325_v5, %v5810_v59  ;;  %v11465_v59 = vld [vmem:[%s15413_s5 + $0x164] sm:$0xf0] }
 0x513   :  { %v5099_v4 = vpop.f32.mrf.mxu0  ;;  %7622 = vmatpush.bf16.msra.mxu3 %v10074_v19  ;;  %v10058_v19 = vor.u32 %v11441_v39, %v10057_v1  ;;  %v11439_v1 = vld [vmem:[%s15413_s5 + $0x94] sm:$0xf0] }
 0x514   :  { %v13423_v30 = vadd.f32 %v5099_v4, %v12905_v23  ;;  %v11467_v23 = vld [vmem:[%s15413_s5 + $0x174] sm:$0xf0]  ;;  %v10153_v4 = vld [vmem:[%s15413_s5 + $0x160] sm:$0xf] }
 0x515   :  { %v10162_v11 = vor.u32 %v11467_v23, %v10161_v49  ;;  %v10154_v9 = vor.u32 %v11465_v59, %v10153_v4  ;;  %v11365_v49 = vld [vmem:[#allocation2 + $0xfc] sm:$0xff]  ;;  %v5942_v23 = vmax.f32 %v5878_v51, 0.0  ;;  %v11463_v51 = vld [vmem:[%s15413_s5 + $0x154] sm:$0xf0]  ;;  %v11396_v59 = vld [vmem:[#allocation2 + $0xd0] sm:$0xff] }
 0x517   :  { %v5661_v10 = vpop.f32.mrf.mxu1  ;;  %7623 = vmatpush.bf16.msra.mxu3 %v10066_v31  ;;  %7632 = vmatpush.bf16.msrb.mxu2 %v10162_v11 }
 0x518   :  { %v5811_v32 = vadd.f32 %v5661_v10, %v13290_v43  ;;  %v10049_v10 = vld [vmem:[%s15413_s5 + $0x90] sm:$0xf] }
 0x51a   :  { %v5879_v43 = vadd.f32 %v13325_v5, %v5811_v32  ;;  %v10050_v32 = vor.u32 %v11439_v1, %v10049_v10 }
 0x51b   :  { %v5102_v57 = vpop.f32.mrf.mxu0  ;;  %7624 = vmatpush.bf16.msra.mxu3 %v10058_v19  ;;  %7633 = vmatpush.bf16.msrb.mxu2 %v10154_v9  ;;  %v10137_v9 = vld [vmem:[%s15413_s5 + $0x140] sm:$0xf] }
 0x51c   :  { %v13453_v31 = vadd.f32 %v5102_v57, %v12914_v58  ;;  %v5943_v11 = vmax.f32 %v5879_v43, 0.0  ;;  %v10145_v58 = vld [vmem:[%s15413_s5 + $0x150] sm:$0xf]  ;;  %v10041_v43 = vld [vmem:[%s15413_s5 + $0x80] sm:$0xf] }
 0x51d   :  { %v10146_v4 = vor.u32 %v11463_v51, %v10145_v58  ;;  %v11437_v57 = vld [vmem:[%s15413_s5 + $0x84] sm:$0xf0]  ;;  %v10129_v51 = vld [vmem:[%s15413_s5 + $0x130] sm:$0xf] }
 0x51e   :  { %9776 = vmatmul.msk.bf16.gmra.mxu0 %vm1045_vm3, %v11365_v49  ;;  %v13468_v39 = vmax.f32 %v5942_v23, %v5943_v11  ;;  %v10042_v49 = vor.u32 %v11437_v57, %v10041_v43  ;;  %v11461_v23 = vld [vmem:[%s15413_s5 + $0x144] sm:$0xf0]  ;;  %v5225_v11 = vadd.f32 %v13299_v7, %v12834_v33  ;;  %v10225_v33 = vld [vmem:[%s15413_s5 + $0x1f0] sm:$0xf]  ;;  %v5226_v7 = vadd.f32 %v13305_v46, %v12841_v54 }
 0x51f   :  { %v5664_v19 = vpop.f32.mrf.mxu1  ;;  %7625 = vmatpush.bf16.msra.mxu3 %v10050_v32  ;;  %7634 = vmatpush.bf16.msrb.mxu2 %v10146_v4  ;;  %v10138_v1 = vor.u32 %v11461_v23, %v10137_v9  ;;  %v11459_v4 = vld [vmem:[%s15413_s5 + $0x134] sm:$0xf0]  ;;  %v11457_v23 = vld [vmem:[%s15413_s5 + $0x124] sm:$0xf0] }
 0x520   :  { %v5812_v58 = vadd.f32 %v5664_v19, %v5225_v11  ;;  %v10130_v43 = vor.u32 %v11459_v4, %v10129_v51  ;;  %v10217_v11 = vld [vmem:[%s15413_s5 + $0x1e0] sm:$0xf]  ;;  %v11481_v46 = vld [vmem:[%s15413_s5 + $0x1e4] sm:$0xf0] }
 0x521   :  { %v11366_v4 = vld [vmem:[#allocation2 + $0x104] sm:$0xff] }
 0x522   :  { %9955 = vmatmul.msk.bf16.gmra.mxu1 %vm1045_vm3, %v11396_v59  ;;  %v5880_v57 = vadd.f32 %v13325_v5, %v5812_v58  ;;  %v10218_v58 = vor.u32 %v11481_v46, %v10217_v11  ;;  %v11453_v46 = vld [vmem:[%s15413_s5 + $0x104] sm:$0xf0] }
 0x523   :  { %v5104_v10 = vpop.f32.mrf.mxu0  ;;  %7626 = vmatpush.bf16.msra.mxu3 %v10042_v49  ;;  %7635 = vmatpush.bf16.msrb.mxu2 %v10138_v1  ;;  %v10121_v49 = vld [vmem:[%s15413_s5 + $0x120] sm:$0xf] }
 0x524   :  { %v13486_v32 = vadd.f32 %v5104_v10, %v12921_v15  ;;  %v11483_v15 = vld [vmem:[%s15413_s5 + $0x1f4] sm:$0xf0]  ;;  %v10122_v54 = vor.u32 %v11457_v23, %v10121_v49 }
 0x525   :  { %v10226_v19 = vor.u32 %v11483_v15, %v10225_v33  ;;  %v10113_v15 = vld [vmem:[%s15413_s5 + $0x110] sm:$0xf]  ;;  %v11397_v23 = vld [vmem:[#allocation2 + $0xd8] sm:$0xff] }
 0x527   :  { %v5666_v59 = vpop.f32.mrf.mxu1  ;;  %7636 = vmatpush.bf16.msrb.mxu2 %v10130_v43  ;;  %7645 = vmatpush.bf16.msrb.mxu3 %v10226_v19  ;;  %v5944_v43 = vmax.f32 %v5880_v57, 0.0 }
 0x528   :  { %v5813_v9 = vadd.f32 %v5666_v59, %v5226_v7  ;;  %v11455_v7 = vld [vmem:[%s15413_s5 + $0x114] sm:$0xf0] }
 0x529   :  { %v10114_v19 = vor.u32 %v11455_v7, %v10113_v15  ;;  %v11479_v59 = vld [vmem:[%s15413_s5 + $0x1d4] sm:$0xf0] }
 0x52a   :  { %v5881_v10 = vadd.f32 %v13325_v5, %v5813_v9 }
 0x52b   :  { %v5107_v1 = vpop.f32.mrf.mxu0  ;;  %7637 = vmatpush.bf16.msrb.mxu2 %v10122_v54  ;;  %7646 = vmatpush.bf16.msrb.mxu3 %v10218_v58  ;;  %v10105_v54 = vld [vmem:[%s15413_s5 + $0x100] sm:$0xf]  ;;  %v11477_v58 = vld [vmem:[%s15413_s5 + $0x1c4] sm:$0xf0] }
 0x52c   :  { %v13517_v51 = vadd.f32 %v5107_v1, %v12930_v24  ;;  %v5945_v33 = vmax.f32 %v5881_v10, 0.0  ;;  %v10209_v24 = vld [vmem:[%s15413_s5 + $0x1d0] sm:$0xf]  ;;  %v10201_v10 = vld [vmem:[%s15413_s5 + $0x1c0] sm:$0xf]  ;;  %v10106_v1 = vor.u32 %v11453_v46, %v10105_v54 }
 0x52d   :  { %v10210_v9 = vor.u32 %v11479_v59, %v10209_v24  ;;  %v5228_v24 = vadd.f32 %v13319_v0, %v12857_v14  ;;  %v11367_v14 = vld [vmem:[#allocation2 + $0x10c] sm:$0xff] }
 0x52e   :  { %9777 = vmatmul.msk.bf16.gmra.mxu0 %vm1045_vm3, %v11366_v4  ;;  %v6001_v57 = vmax.f32 %v5944_v43, %v5945_v33  ;;  %v10202_v33 = vor.u32 %v11477_v58, %v10201_v10  ;;  %v11471_v58 = vld [vmem:[%s15413_s5 + $0x194] sm:$0xf0] }
 0x52f   :  { %v5669_v49 = vpop.f32.mrf.mxu1  ;;  %7638 = vmatpush.bf16.msrb.mxu2 %v10114_v19  ;;  %7647 = vmatpush.bf16.msrb.mxu3 %v10210_v9  ;;  %v10193_v19 = vld [vmem:[%s15413_s5 + $0x1b0] sm:$0xf]  ;;  %v10185_v9 = vld [vmem:[%s15413_s5 + $0x1a0] sm:$0xf] }
 0x530   :  { %v6002_v11 = vmax.f32 %v13345_v28, %v6001_v57  ;;  %v5227_v28 = vadd.f32 %v13313_v41, %v12850_v8  ;;  %v11475_v8 = vld [vmem:[%s15413_s5 + $0x1b4] sm:$0xf0] }
 0x531   :  { %v10194_v41 = vor.u32 %v11475_v8, %v10193_v19  ;;  %v10169_v19 = vld [vmem:[%s15413_s5 + $0x180] sm:$0xf]  ;;  %v11469_v8 = vld [vmem:[%s15413_s5 + $0x184] sm:$0xf0] }
 0x532   :  { %v13547_v4 = vpack.c.bf16 %v6002_v11, %v6002_v11  ;;  %9956 = vmatmul.msk.bf16.gmra.mxu1 %vm1045_vm3, %v11397_v23  ;;  %v5814_v7 = vadd.f32 %v5669_v49, %v5227_v28  ;;  %v11473_v49 = vld [vmem:[%s15413_s5 + $0x1a4] sm:$0xf0] }
 0x533   :  { %v5109_v43 = vpop.f32.mrf.mxu0  ;;  %7648 = vmatpush.bf16.msrb.mxu3 %v10202_v33  ;;  %7639 = vmatpush.bf16.msrb.mxu2 %v10106_v1  ;;  %v10186_v23 = vor.u32 %v11473_v49, %v10185_v9  ;;  %v10177_v1 = vld [vmem:[%s15413_s5 + $0x190] sm:$0xf]  ;;  %v5230_v9 = vadd.f32 %v13348_v12, %v12873_v60  ;;  %v5231_v60 = vadd.f32 %v13354_v38, %v12882_v16  ;;  %v11369_v16 = vld [vmem:[#allocation2 + $0x124] sm:$0xff] }
 0x534   :  { %v13551_v15 = vadd.f32 %v5109_v43, %v12943_v55  ;;  %7614 = vmatmul.bf16.vlgmr.msra.gmra.mxu2 %v13547_v4  ;;  %v5882_v55 = vadd.f32 %v13325_v5, %v5814_v7  ;;  %v10178_v28 = vor.u32 %v11471_v58, %v10177_v1  ;;  %v11398_v7 = vld [vmem:[#allocation2 + $0xe0] sm:$0xff]  ;;  %v11399_v58 = vld [vmem:[#allocation2 + $0xe8] sm:$0xff] }
 0x536   :  { %v5946_v0 = vmax.f32 %v5882_v55, 0.0 }
 0x537   :  { %v5671_v59 = vpop.f32.mrf.mxu1  ;;  %7649 = vmatpush.bf16.msrb.mxu3 %v10194_v41  ;;  %v10170_v41 = vor.u32 %v11469_v8, %v10169_v19 }
 0x538   :  { %v5815_v57 = vadd.f32 %v5671_v59, %v5228_v24  ;;  %v5229_v24 = vadd.f32 %v13342_v45, %v12866_v37 }
 0x53a   :  { %v5883_v11 = vadd.f32 %v13325_v5, %v5815_v57 }
 0x53b   :  { %v5112_v54 = vpop.f32.mrf.mxu0  ;;  %7650 = vmatpush.bf16.msrb.mxu3 %v10186_v23 }
 0x53c   :  { %v13571_v46 = vadd.f32 %v5112_v54, %v12952_v6  ;;  %v5947_v10 = vmax.f32 %v5883_v11, 0.0  ;;  %v11368_v54 = vld [vmem:[#allocation2 + $0x11c] sm:$0xff] }
 0x53e   :  { %9778 = vmatmul.msk.bf16.gmra.mxu0 %vm1045_vm3, %v11367_v14  ;;  %v6004_v43 = vmax.f32 %v5946_v0, %v5947_v10 }
 0x53f   :  { %v5674_v33 = vpop.f32.mrf.mxu1  ;;  %7651 = vmatpush.bf16.msrb.mxu3 %v10178_v28 }
 0x540   :  { %v6005_v6 = vmax.f32 %v13363_v36, %v6004_v43  ;;  %v5816_v57 = vadd.f32 %v5674_v33, %v5229_v24  ;;  %v5232_v33 = vadd.f32 %v13372_v26, %v12889_v40  ;;  %v11400_v40 = vld [vmem:[#allocation2 + $0xf8] sm:$0xff] }
 0x542   :  { %v13589_v59 = vpack.c.bf16 %v6005_v6, %v6005_v6  ;;  %9957 = vmatmul.msk.bf16.gmra.mxu1 %vm1045_vm3, %v11398_v7  ;;  %v5884_v23 = vadd.f32 %v13325_v5, %v5816_v57 }
 0x543   :  { %v5114_v55 = vpop.f32.mrf.mxu0  ;;  %7652 = vmatpush.bf16.msrb.mxu3 %v10170_v41 }
 0x544   :  { %v13593_v36 = vadd.f32 %v5114_v55, %v12959_v20  ;;  %7627 = vmatmul.bf16.vlgmr.msra.gmra.mxu3 %v13589_v59  ;;  %v5948_v14 = vmax.f32 %v5884_v23, 0.0 }
 0x547   :  { %v5676_v49 = vpop.f32.mrf.mxu1 }
 0x548   :  { %v5817_v11 = vadd.f32 %v5676_v49, %v5230_v9 }
 0x54a   :  { %v5885_v37 = vadd.f32 %v13325_v5, %v5817_v11 }
 0x54b   :  { %v13600_v45 = vpop.f32.mrf.mxu0 }
 0x54c   :  { %v5949_v0 = vmax.f32 %v5885_v37, 0.0 }
 0x54e   :  { %9779 = vmatmul.msk.bf16.gmra.mxu0 %vm1045_vm3, %v11368_v54  ;;  %v6007_v20 = vmax.f32 %v5948_v14, %v5949_v0 }
 0x54f   :  { %v5679_v10 = vpop.f32.mrf.mxu1 }
 0x550   :  { %v6008_v1 = vmax.f32 %v13406_v18, %v6007_v20  ;;  %v5818_v43 = vadd.f32 %v5679_v10, %v5231_v60 }
 0x552   :  { %v13606_v12 = vpack.c.bf16 %v6008_v1, %v6008_v1  ;;  %9958 = vmatmul.msk.bf16.gmra.mxu1 %vm1045_vm3, %v11399_v58  ;;  %v5886_v7 = vadd.f32 %v13325_v5, %v5818_v43  ;;  %v11401_v58 = vld [vmem:[#allocation2 + $0x100] sm:$0xff]  ;;  %v11499_v43 = vld [vmem:[%s15413_s5 + $0x274] sm:$0xf0] }
 0x553   :  { %v13608_v28 = vpop.f32.mrf.mxu0 }
 0x554   :  { %7640 = vmatmul.bf16.vlgmr.msrb.gmra.mxu2 %v13606_v12  ;;  %v5950_v38 = vmax.f32 %v5886_v7, 0.0 }
 0x557   :  { %v5681_v6 = vpop.f32.mrf.mxu1 }
 0x558   :  { %v5819_v18 = vadd.f32 %v5681_v6, %v5232_v33 }
 0x55a   :  { %v5887_v19 = vadd.f32 %v13325_v5, %v5819_v18  ;;  %v10281_v18 = vld [vmem:[%s15413_s5 + $0x260] sm:$0xf] }
 0x55b   :  { %v13616_v8 = vpop.f32.mrf.mxu0 }
 0x55c   :  { %v5951_v41 = vmax.f32 %v5887_v19, 0.0  ;;  %v11497_v19 = vld [vmem:[%s15413_s5 + $0x264] sm:$0xf0] }
 0x55e   :  { %9780 = vmatmul.msk.bf16.gmra.mxu0 %vm1045_vm3, %v11369_v16  ;;  %v6010_v24 = vmax.f32 %v5950_v38, %v5951_v41  ;;  %v10282_v16 = vor.u32 %v11497_v19, %v10281_v18  ;;  %v10249_v18 = vld [vmem:[%s15413_s5 + $0x220] sm:$0xf]  ;;  %v11489_v19 = vld [vmem:[%s15413_s5 + $0x224] sm:$0xf0] }
 0x55f   :  { %v5684_v55 = vpop.f32.mrf.mxu1 }
 0x560   :  { %v6011_v57 = vmax.f32 %v13468_v39, %v6010_v24  ;;  %v5820_v9 = vadd.f32 %v5684_v55, %v13391_v61  ;;  %v11370_v39 = vld [vmem:[#allocation2 + $0x12c] sm:$0xff]  ;;  %v11371_v24 = vld [vmem:[#allocation2 + $0x134] sm:$0xff] }
 0x562   :  { %v13621_v26 = vpack.c.bf16 %v6011_v57, %v6011_v57  ;;  %9959 = vmatmul.msk.bf16.gmra.mxu1 %vm1045_vm3, %v11400_v40  ;;  %v5888_v11 = vadd.f32 %v13325_v5, %v5820_v9  ;;  %v11495_v9 = vld [vmem:[%s15413_s5 + $0x254] sm:$0xf0] }
 0x563   :  { %v13623_v49 = vpop.f32.mrf.mxu0 }
 0x564   :  { %7653 = vmatmul.bf16.vlgmr.msrb.gmra.mxu3 %v13621_v26  ;;  %v5952_v61 = vmax.f32 %v5888_v11, 0.0 }
 0x567   :  { %v5686_v23 = vpop.f32.mrf.mxu1 }
 0x568   :  { %v5821_v37 = vadd.f32 %v5686_v23, %v13423_v30  ;;  %v10289_v30 = vld [vmem:[%s15413_s5 + $0x270] sm:$0xf] }
 0x569   :  { %v10290_v33 = vor.u32 %v11499_v43, %v10289_v30  ;;  %v10353_v30 = vld [vmem:[%s15413_s5 + $0x2f0] sm:$0xf]  ;;  %v11515_v43 = vld [vmem:[%s15413_s5 + $0x2f4] sm:$0xf0] }
 0x56a   :  { %v5889_v54 = vadd.f32 %v13325_v5, %v5821_v37 }
 0x56b   :  { %v13630_v14 = vpop.f32.mrf.mxu0  ;;  %7658 = vmatpush.bf16.msra.mxu2 %v10290_v33  ;;  %v10354_v33 = vor.u32 %v11515_v43, %v10353_v30  ;;  %v10233_v43 = vld [vmem:[%s15413_s5 + $0x200] sm:$0xf] }
 0x56c   :  { %v5953_v0 = vmax.f32 %v5889_v54, 0.0  ;;  %v11402_v54 = vld [vmem:[#allocation2 + $0x108] sm:$0xff] }
 0x56d   :  { %7671 = vmatpush.bf16.msra.mxu3 %v10354_v33  ;;  %v11485_v33 = vld [vmem:[%s15413_s5 + $0x204] sm:$0xf0] }
 0x56e   :  { %9781 = vmatmul.msk.bf16.gmra.mxu0 %vm1045_vm3, %v11370_v39  ;;  %v13633_v20 = vmax.f32 %v5952_v61, %v5953_v0  ;;  %v10265_v39 = vld [vmem:[%s15413_s5 + $0x240] sm:$0xf]  ;;  %v11493_v61 = vld [vmem:[%s15413_s5 + $0x244] sm:$0xf0] }
 0x56f   :  { %v5689_v10 = vpop.f32.mrf.mxu1  ;;  %7659 = vmatpush.bf16.msra.mxu2 %v10282_v16  ;;  %v10266_v0 = vor.u32 %v11493_v61, %v10265_v39  ;;  %v10345_v16 = vld [vmem:[%s15413_s5 + $0x2e0] sm:$0xf]  ;;  %v11511_v61 = vld [vmem:[%s15413_s5 + $0x2d4] sm:$0xf0] }
 0x570   :  { %v5822_v1 = vadd.f32 %v5689_v10, %v13453_v31 }
 0x572   :  { %9960 = vmatmul.msk.bf16.gmra.mxu1 %vm1045_vm3, %v11401_v58  ;;  %v5890_v7 = vadd.f32 %v13325_v5, %v5822_v1  ;;  %v10257_v1 = vld [vmem:[%s15413_s5 + $0x230] sm:$0xf] }
 0x573   :  { %v13636_v60 = vpop.f32.mrf.mxu0 }
 0x574   :  { %v5954_v55 = vmax.f32 %v5890_v7, 0.0 }
 0x577   :  { %v5691_v6 = vpop.f32.mrf.mxu1 }
 0x578   :  { %v5823_v31 = vadd.f32 %v5691_v6, %v13486_v32  ;;  %v10273_v32 = vld [vmem:[%s15413_s5 + $0x250] sm:$0xf] }
 0x579   :  { %v10274_v40 = vor.u32 %v11495_v9, %v10273_v32  ;;  %v11372_v9 = vld [vmem:[#allocation2 + $0x144] sm:$0xff] }
 0x57a   :  { %v5891_v38 = vadd.f32 %v13325_v5, %v5823_v31 }
 0x57b   :  { %v13654_v41 = vpop.f32.mrf.mxu0  ;;  %7660 = vmatpush.bf16.msra.mxu2 %v10274_v40 }
 0x57c   :  { %v5955_v57 = vmax.f32 %v5891_v38, 0.0  ;;  %v10250_v38 = vor.u32 %v11489_v19, %v10249_v18 }
 0x57e   :  { %9782 = vmatmul.msk.bf16.gmra.mxu0 %vm1045_vm3, %v11371_v24  ;;  %v13663_v23 = vmax.f32 %v5954_v55, %v5955_v57  ;;  %v11513_v24 = vld [vmem:[%s15413_s5 + $0x2e4] sm:$0xf0] }
 0x57f   :  { %v5694_v11 = vpop.f32.mrf.mxu1  ;;  %7661 = vmatpush.bf16.msra.mxu2 %v10266_v0  ;;  %v10346_v57 = vor.u32 %v11513_v24, %v10345_v16  ;;  %v10321_v16 = vld [vmem:[%s15413_s5 + $0x2b0] sm:$0xf] }
 0x580   :  { %v5824_v37 = vadd.f32 %v5694_v11, %v13517_v51  ;;  %v11491_v51 = vld [vmem:[%s15413_s5 + $0x234] sm:$0xf0] }
 0x581   :  { %v10258_v58 = vor.u32 %v11491_v51, %v10257_v1  ;;  %7672 = vmatpush.bf16.msra.mxu3 %v10346_v57 }
 0x582   :  { %9961 = vmatmul.msk.bf16.gmra.mxu1 %vm1045_vm3, %v11402_v54  ;;  %v5892_v7 = vadd.f32 %v13325_v5, %v5824_v37  ;;  %v10241_v37 = vld [vmem:[%s15413_s5 + $0x210] sm:$0xf]  ;;  %v11487_v54 = vld [vmem:[%s15413_s5 + $0x214] sm:$0xf0] }
 0x583   :  { %v13672_v10 = vpop.f32.mrf.mxu0  ;;  %7662 = vmatpush.bf16.msra.mxu2 %v10258_v58  ;;  %v10242_v39 = vor.u32 %v11487_v54, %v10241_v37  ;;  %v11403_v58 = vld [vmem:[#allocation2 + $0x110] sm:$0xff]  ;;  %v11505_v37 = vld [vmem:[%s15413_s5 + $0x2a4] sm:$0xf0] }
 0x584   :  { %v5956_v40 = vmax.f32 %v5892_v7, 0.0  ;;  %v10234_v7 = vor.u32 %v11485_v33, %v10233_v43  ;;  %v10305_v33 = vld [vmem:[%s15413_s5 + $0x290] sm:$0xf] }
 0x587   :  { %v5696_v6 = vpop.f32.mrf.mxu1  ;;  %7663 = vmatpush.bf16.msra.mxu2 %v10250_v38  ;;  %v11507_v38 = vld [vmem:[%s15413_s5 + $0x2b4] sm:$0xf0] }
 0x588   :  { %v5825_v31 = vadd.f32 %v5696_v6, %v13551_v15  ;;  %v10329_v6 = vld [vmem:[%s15413_s5 + $0x2c0] sm:$0xf]  ;;  %v10322_v24 = vor.u32 %v11507_v38, %v10321_v16 }
 0x589   :  { %v11404_v38 = vld [vmem:[#allocation2 + $0x120] sm:$0xff] }
 0x58a   :  { %v5893_v15 = vadd.f32 %v13325_v5, %v5825_v31  ;;  %v11509_v31 = vld [vmem:[%s15413_s5 + $0x2c4] sm:$0xf0] }
 0x58b   :  { %v5137_v55 = vpop.f32.mrf.mxu0  ;;  %7664 = vmatpush.bf16.msra.mxu2 %v10242_v39  ;;  %v10409_v39 = vld [vmem:[%s15413_s5 + $0x360] sm:$0xf] }
 0x58c   :  { %v13703_v32 = vadd.f32 %v5137_v55, %v13035_v56  ;;  %v5957_v11 = vmax.f32 %v5893_v15, 0.0  ;;  %v10337_v56 = vld [vmem:[%s15413_s5 + $0x2d0] sm:$0xf] }
 0x58d   :  { %v10338_v1 = vor.u32 %v11511_v61, %v10337_v56  ;;  %v10417_v15 = vld [vmem:[%s15413_s5 + $0x370] sm:$0xf]  ;;  %v11529_v56 = vld [vmem:[%s15413_s5 + $0x364] sm:$0xf0] }
 0x58e   :  { %9783 = vmatmul.msk.bf16.gmra.mxu0 %vm1045_vm3, %v11372_v9  ;;  %v13718_v0 = vmax.f32 %v5956_v40, %v5957_v11  ;;  %v10313_v11 = vld [vmem:[%s15413_s5 + $0x2a0] sm:$0xf] }
 0x58f   :  { %v5699_v51 = vpop.f32.mrf.mxu1  ;;  %7673 = vmatpush.bf16.msra.mxu3 %v10338_v1  ;;  %7665 = vmatpush.bf16.msra.mxu2 %v10234_v7  ;;  %v10314_v54 = vor.u32 %v11505_v37, %v10313_v11  ;;  %v10410_v1 = vor.u32 %v11529_v56, %v10409_v39  ;;  %v10385_v39 = vld [vmem:[%s15413_s5 + $0x330] sm:$0xf]  ;;  %v11523_v56 = vld [vmem:[%s15413_s5 + $0x334] sm:$0xf0] }
 0x590   :  { %v5826_v30 = vadd.f32 %v5699_v51, %v13571_v46  ;;  %v10330_v46 = vor.u32 %v11509_v31, %v10329_v6  ;;  %v11503_v6 = vld [vmem:[%s15413_s5 + $0x294] sm:$0xf0] }
 0x591   :  { %v10306_v7 = vor.u32 %v11503_v6, %v10305_v33  ;;  %v11527_v31 = vld [vmem:[%s15413_s5 + $0x354] sm:$0xf0]  ;;  %v11521_v33 = vld [vmem:[%s15413_s5 + $0x324] sm:$0xf0]  ;;  %v10473_v6 = vld [vmem:[%s15413_s5 + $0x3e0] sm:$0xf] }
 0x592   :  { %9962 = vmatmul.msk.bf16.gmra.mxu1 %vm1045_vm3, %v11403_v58  ;;  %v5894_v9 = vadd.f32 %v13325_v5, %v5826_v30  ;;  %v11373_v58 = vld [vmem:[#allocation2 + $0x14c] sm:$0xff] }
 0x593   :  { %v5139_v18 = vpop.f32.mrf.mxu0  ;;  %7674 = vmatpush.bf16.msra.mxu3 %v10330_v46 }
 0x594   :  { %v13735_v19 = vadd.f32 %v5139_v18, %v13042_v53  ;;  %v11531_v53 = vld [vmem:[%s15413_s5 + $0x374] sm:$0xf0]  ;;  %v5958_v30 = vmax.f32 %v5894_v9, 0.0  ;;  %v5241_v9 = vadd.f32 %v13600_v45, %v12968_v27  ;;  %v10481_v27 = vld [vmem:[%s15413_s5 + $0x3f0] sm:$0xf]  ;;  %v5242_v45 = vadd.f32 %v13608_v28, %v12975_v50 }
 0x595   :  { %v10418_v55 = vor.u32 %v11531_v53, %v10417_v15  ;;  %v11501_v15 = vld [vmem:[%s15413_s5 + $0x284] sm:$0xf0]  ;;  %v10393_v53 = vld [vmem:[%s15413_s5 + $0x340] sm:$0xf] }
 0x596   :  { %v11545_v28 = vld [vmem:[%s15413_s5 + $0x3e4] sm:$0xf0] }
 0x597   :  { %v5701_v57 = vpop.f32.mrf.mxu1  ;;  %7675 = vmatpush.bf16.msra.mxu3 %v10322_v24  ;;  %7684 = vmatpush.bf16.msrb.mxu2 %v10418_v55  ;;  %v10297_v24 = vld [vmem:[%s15413_s5 + $0x280] sm:$0xf] }
 0x598   :  { %v5827_v40 = vadd.f32 %v5701_v57, %v13593_v36  ;;  %v10298_v55 = vor.u32 %v11501_v15, %v10297_v24  ;;  %v11525_v57 = vld [vmem:[%s15413_s5 + $0x344] sm:$0xf0]  ;;  %v10369_v15 = vld [vmem:[%s15413_s5 + $0x310] sm:$0xf] }
 0x599   :  { %v10394_v11 = vor.u32 %v11525_v57, %v10393_v53  ;;  %v11519_v53 = vld [vmem:[%s15413_s5 + $0x314] sm:$0xf0] }
 0x59a   :  { %v5895_v36 = vadd.f32 %v13325_v5, %v5827_v40  ;;  %v11543_v57 = vld [vmem:[%s15413_s5 + $0x3d4] sm:$0xf0] }
 0x59b   :  { %v5142_v61 = vpop.f32.mrf.mxu0  ;;  %7676 = vmatpush.bf16.msra.mxu3 %v10314_v54  ;;  %7685 = vmatpush.bf16.msrb.mxu2 %v10410_v1 }
 0x59c   :  { %v13765_v51 = vadd.f32 %v5142_v61, %v13051_v35  ;;  %v5959_v43 = vmax.f32 %v5895_v36, 0.0  ;;  %v10401_v35 = vld [vmem:[%s15413_s5 + $0x350] sm:$0xf]  ;;  %v10386_v36 = vor.u32 %v11523_v56, %v10385_v39  ;;  %v11405_v39 = vld [vmem:[#allocation2 + $0x128] sm:$0xff] }
 0x59d   :  { %v10402_v46 = vor.u32 %v11527_v31, %v10401_v35  ;;  %v10474_v31 = vor.u32 %v11545_v28, %v10473_v6  ;;  %v15514_v28 = vld [vmem:[#allocation3_spill] sm:$0xff] }
 0x59e   :  { %9784 = vmatmul.msk.bf16.gmra.mxu0 %vm1045_vm3, %v11373_v58  ;;  %v13780_v18 = vmax.f32 %v5958_v30, %v5959_v43  ;;  %v10377_v43 = vld [vmem:[%s15413_s5 + $0x320] sm:$0xf] }
 0x59f   :  { %v5704_v16 = vpop.f32.mrf.mxu1  ;;  %7677 = vmatpush.bf16.msra.mxu3 %v10306_v7  ;;  %7686 = vmatpush.bf16.msrb.mxu2 %v10402_v46  ;;  %v10378_v50 = vor.u32 %v11521_v33, %v10377_v43  ;;  %v15513_v43 = vld [vmem:[#allocation8_spill] sm:$0xff] }
 0x5a0   :  { %v5828_v54 = vadd.f32 %v5704_v16, %v5241_v9  ;;  %v11374_v16 = vld [vmem:[#allocation2 + $0x154] sm:$0xff] }
 0x5a2   :  { %9963 = vmatmul.msk.bf16.gmra.mxu1 %vm1045_vm3, %v11404_v38  ;;  %v5896_v58 = vadd.f32 %v13325_v5, %v5828_v54 }
 0x5a3   :  { %v5144_v40 = vpop.f32.mrf.mxu0  ;;  %7678 = vmatpush.bf16.msra.mxu3 %v10298_v55  ;;  %7687 = vmatpush.bf16.msrb.mxu2 %v10394_v11  ;;  %v10370_v55 = vor.u32 %v11519_v53, %v10369_v15  ;;  %v13844_v11 = vpop.f32.mrf.mxu2  ;;  %v11537_v15 = vld [vmem:[%s15413_s5 + $0x3a4] sm:$0xf0] }
 0x5a4   :  { %v13798_v37 = vadd.f32 %v5144_v40, %v13058_v21  ;;  %v11547_v21 = vld [vmem:[%s15413_s5 + $0x3f4] sm:$0xf0]  ;;  %v5960_v38 = vmax.f32 %v5896_v58, 0.0 }
 0x5a5   :  { %v10482_v61 = vor.u32 %v11547_v21, %v10481_v27  ;;  %v11517_v27 = vld [vmem:[%s15413_s5 + $0x304] sm:$0xf0]  ;;  %v10457_v21 = vld [vmem:[%s15413_s5 + $0x3c0] sm:$0xf] }
 0x5a7   :  { %v5706_v1 = vpop.f32.mrf.mxu1  ;;  %7688 = vmatpush.bf16.msrb.mxu2 %v10386_v36  ;;  %7697 = vmatpush.bf16.msrb.mxu3 %v10482_v61  ;;  %v10361_v36 = vld [vmem:[%s15413_s5 + $0x300] sm:$0xf]  ;;  %v11541_v61 = vld [vmem:[%s15413_s5 + $0x3c4] sm:$0xf0] }
 0x5a8   :  { %v5829_v30 = vadd.f32 %v5706_v1, %v5242_v45  ;;  %v10362_v45 = vor.u32 %v11517_v27, %v10361_v36 }
 0x5aa   :  { %v5897_v7 = vadd.f32 %v13325_v5, %v5829_v30  ;;  %v10458_v30 = vor.u32 %v11541_v61, %v10457_v21  ;;  %v11406_v61 = vld [vmem:[#allocation2 + $0x130] sm:$0xff] }
 0x5ab   :  { %v5147_v35 = vpop.f32.mrf.mxu0  ;;  %7689 = vmatpush.bf16.msrb.mxu2 %v10378_v50  ;;  %7698 = vmatpush.bf16.msrb.mxu3 %v10474_v31  ;;  %v10449_v50 = vld [vmem:[%s15413_s5 + $0x3b0] sm:$0xf] }
 0x5ac   :  { %v13829_v46 = vadd.f32 %v5147_v35, %v13067_v3  ;;  %v5961_v24 = vmax.f32 %v5897_v7, 0.0  ;;  %v10465_v3 = vld [vmem:[%s15413_s5 + $0x3d0] sm:$0xf]  ;;  %v5244_v7 = vadd.f32 %v13623_v49, %v15514_v28 }
 0x5ad   :  { %v10466_v40 = vor.u32 %v11543_v57, %v10465_v3  ;;  %v11375_v57 = vld [vmem:[#allocation2 + $0x15c] sm:$0xff] }
 0x5ae   :  { %9785 = vmatmul.msk.bf16.gmra.mxu0 %vm1045_vm3, %v11374_v16  ;;  %v6013_v9 = vmax.f32 %v5960_v38, %v5961_v24  ;;  %v10441_v24 = vld [vmem:[%s15413_s5 + $0x3a0] sm:$0xf] }
 0x5af   :  { %v5709_v54 = vpop.f32.mrf.mxu1  ;;  %7690 = vmatpush.bf16.msrb.mxu2 %v10370_v55  ;;  %7699 = vmatpush.bf16.msrb.mxu3 %v10466_v40  ;;  %v10442_v53 = vor.u32 %v11537_v15, %v10441_v24 }
 0x5b0   :  { %v6014_v56 = vmax.f32 %v13633_v20, %v6013_v9  ;;  %v5243_v20 = vadd.f32 %v13616_v8, %v12984_v22  ;;  %v11539_v22 = vld [vmem:[%s15413_s5 + $0x3b4] sm:$0xf0] }
 0x5b1   :  { %v10450_v8 = vor.u32 %v11539_v22, %v10449_v50 }
 0x5b2   :  { %v13861_v1 = vpack.c.bf16 %v6014_v56, %v6014_v56  ;;  %9964 = vmatmul.msk.bf16.gmra.mxu1 %vm1045_vm3, %v11405_v39  ;;  %v5830_v6 = vadd.f32 %v5709_v54, %v5243_v20  ;;  %v10433_v54 = vld [vmem:[%s15413_s5 + $0x390] sm:$0xf]  ;;  %v11535_v39 = vld [vmem:[%s15413_s5 + $0x394] sm:$0xf0]  ;;  %v10425_v20 = vld [vmem:[%s15413_s5 + $0x380] sm:$0xf] }
 0x5b3   :  { %v5149_v58 = vpop.f32.mrf.mxu0  ;;  %7700 = vmatpush.bf16.msrb.mxu3 %v10458_v30  ;;  %7691 = vmatpush.bf16.msrb.mxu2 %v10362_v45  ;;  %v10434_v56 = vor.u32 %v11535_v39, %v10433_v54 }
 0x5b4   :  { %v13865_v33 = vadd.f32 %v5149_v58, %v15513_v43  ;;  %7666 = vmatmul.bf16.vlgmr.msra.gmra.mxu2 %v13861_v1  ;;  %v5898_v16 = vadd.f32 %v13325_v5, %v5830_v6  ;;  %v11533_v58 = vld [vmem:[%s15413_s5 + $0x384] sm:$0xf0]  ;;  %v15515_v43 = vld [vmem:[#allocation4_spill] sm:$0xff] }
 0x5b5   :  { %v10426_v30 = vor.u32 %v11533_v58, %v10425_v20  ;;  %v5245_v6 = vadd.f32 %v13630_v14, %v15515_v43  ;;  %v13920_v14 = vld [vmem:[%s15412_s4] ss:$0 sm:$0xff] }
 0x5b6   :  { %v5962_v9 = vmax.f32 %v5898_v16, 0.0 }
 0x5b7   :  { %v5711_v35 = vpop.f32.mrf.mxu1  ;;  %v7615_v31 = vpop.f32.mrf.mxu2  ;;  %7701 = vmatpush.bf16.msrb.mxu3 %v10450_v8 }
 0x5b8   :  { %v5831_v38 = vadd.f32 %v5711_v35, %v5244_v7  ;;  %v15516_v7 = vld [vmem:[#allocation5_spill] sm:$0xff] }
 0x5b9   :  { %v5246_v35 = vadd.f32 %v13636_v60, %v15516_v7 }
 0x5ba   :  { %v5899_v55 = vadd.f32 %v13325_v5, %v5831_v38  ;;  %v13894_v5 = vpop.f32.mrf.mxu3 }
 0x5bb   :  { %v5152_v3 = vpop.f32.mrf.mxu0  ;;  %7702 = vmatpush.bf16.msrb.mxu3 %v10442_v53 }
 0x5bc   :  { %v13885_v49 = vadd.f32 %v5152_v3, %v13086_v44  ;;  %v5963_v40 = vmax.f32 %v5899_v55, 0.0  ;;  %v6320_v44 = vld [vmem:[%s15414_s6] sm:$0x3]  ;;  %v11376_v55 = vld [vmem:[#allocation2 + $0x16c] sm:$0xff] }
 0x5bd   :  { %v6322_v22 = vperm.slane %v6320_v44, 0 }
 0x5be   :  { %9786 = vmatmul.msk.bf16.gmra.mxu0 %vm1045_vm3, %v11375_v57  ;;  %v6016_v36 = vmax.f32 %v5962_v9, %v5963_v40 }
 0x5bf   :  { %v5714_v27 = vpop.f32.mrf.mxu1  ;;  %v7617_v21 = vpop.f32.mrf.mxu2  ;;  %7703 = vmatpush.bf16.msrb.mxu3 %v10434_v56  ;;  %v7616_v16 = vadd.f32 %v7615_v31, %v6322_v22  ;;  %v11407_v56 = vld [vmem:[#allocation2 + $0x138] sm:$0xff] }
 0x5c0   :  { %v6017_v45 = vmax.f32 %v13663_v23, %v6016_v36  ;;  %v5832_v28 = vadd.f32 %v5714_v27, %v5245_v6  ;;  %v15517_v36 = vld [vmem:[#allocation6_spill] sm:$0xff]  ;;  %v11377_v22 = vld [vmem:[#allocation2 + $0x174] sm:$0xff] }
 0x5c1   :  { %v5247_v44 = vadd.f32 %v13654_v41, %v15517_v36 }
 0x5c2   :  { %v13908_v50 = vpack.c.bf16 %v6017_v45, %v6017_v45  ;;  %9965 = vmatmul.msk.bf16.gmra.mxu1 %vm1045_vm3, %v11406_v61  ;;  %v5900_v15 = vadd.f32 %v13920_v14, %v5832_v28  ;;  %v15518_v61 = vld [vmem:[#allocation7_spill] sm:$0xff] }
 0x5c3   :  { %v5154_v8 = vpop.f32.mrf.mxu0  ;;  %7704 = vmatpush.bf16.msrb.mxu3 %v10426_v30  ;;  %v5248_v20 = vadd.f32 %v13672_v10, %v15518_v61  ;;  %v11409_v61 = vld [vmem:[#allocation2 + $0x150] sm:$0xff] }
 0x5c4   :  { %v13912_v23 = vadd.f32 %v5154_v8, %v13095_v29  ;;  %7679 = vmatmul.bf16.vlgmr.msra.gmra.mxu3 %v13908_v50  ;;  %v5964_v9 = vmax.f32 %v5900_v15, 0.0  ;;  %v11408_v15 = vld [vmem:[#allocation2 + $0x148] sm:$0xff] }
 0x5c7   :  { %v5716_v38 = vpop.f32.mrf.mxu1  ;;  %v7628_v24 = vpop.f32.mrf.mxu3 }
 0x5c8   :  { %v5833_v53 = vadd.f32 %v5716_v38, %v5246_v35  ;;  %v7629_v29 = vadd.f32 %v7628_v24, %v7616_v16 }
 0x5ca   :  { %v5901_v3 = vadd.f32 %v13920_v14, %v5833_v53 }
 0x5cb   :  { %v13924_v57 = vpop.f32.mrf.mxu0 }
 0x5cc   :  { %v5965_v40 = vmax.f32 %v5901_v3, 0.0 }
 0x5ce   :  { %9787 = vmatmul.msk.bf16.gmra.mxu0 %vm1045_vm3, %v11376_v55  ;;  %v6019_v60 = vmax.f32 %v5964_v9, %v5965_v40 }
 0x5cf   :  { %v5719_v31 = vpop.f32.mrf.mxu1  ;;  %v7630_v54 = vpop.f32.mrf.mxu3 }
 0x5d0   :  { %v6020_v39 = vmax.f32 %v13718_v0, %v6019_v60  ;;  %v5834_v45 = vadd.f32 %v5719_v31, %v5247_v44 }
 0x5d2   :  { %v13930_v27 = vpack.c.bf16 %v6020_v39, %v6020_v39  ;;  %9966 = vmatmul.msk.bf16.gmra.mxu1 %vm1045_vm3, %v11407_v56  ;;  %v5902_v0 = vadd.f32 %v13920_v14, %v5834_v45 }
 0x5d3   :  { %v13932_v21 = vpop.f32.mrf.mxu0 }
 0x5d4   :  { %7692 = vmatmul.bf16.vlgmr.msrb.gmra.mxu2 %v13930_v27  ;;  %v5966_v28 = vmax.f32 %v5902_v0, 0.0 }
 0x5d7   :  { %v5721_v58 = vpop.f32.mrf.mxu1  ;;  %v7641_v30 = vpop.f32.mrf.mxu2 }
 0x5d8   :  { %v5835_v43 = vadd.f32 %v5721_v58, %v5248_v20  ;;  %v7642_v6 = vadd.f32 %v7641_v30, %v7629_v29  ;;  %v11563_v58 = vld [vmem:[%s15413_s5 + $0x474] sm:$0xf0] }
 0x5da   :  { %v5903_v41 = vadd.f32 %v13920_v14, %v5835_v43 }
 0x5db   :  { %v13940_v8 = vpop.f32.mrf.mxu0 }
 0x5dc   :  { %v5967_v7 = vmax.f32 %v5903_v41, 0.0  ;;  %v11379_v41 = vld [vmem:[#allocation2 + $0x184] sm:$0xff] }
 0x5de   :  { %9788 = vmatmul.msk.bf16.gmra.mxu0 %vm1045_vm3, %v11377_v22  ;;  %v6022_v35 = vmax.f32 %v5966_v28, %v5967_v7  ;;  %v11561_v22 = vld [vmem:[%s15413_s5 + $0x464] sm:$0xf0] }
 0x5df   :  { %v5724_v16 = vpop.f32.mrf.mxu1  ;;  %v7643_v38 = vpop.f32.mrf.mxu2 }
 0x5e0   :  { %v6023_v10 = vmax.f32 %v13780_v18, %v6022_v35  ;;  %v5836_v24 = vadd.f32 %v5724_v16, %v13703_v32  ;;  %v11378_v18 = vld [vmem:[#allocation2 + $0x17c] sm:$0xff] }
 0x5e2   :  { %v13945_v53 = vpack.c.bf16 %v6023_v10, %v6023_v10  ;;  %9967 = vmatmul.msk.bf16.gmra.mxu1 %vm1045_vm3, %v11408_v15  ;;  %v5904_v9 = vadd.f32 %v13920_v14, %v5836_v24  ;;  %v11559_v10 = vld [vmem:[%s15413_s5 + $0x454] sm:$0xf0] }
 0x5e3   :  { %v13947_v29 = vpop.f32.mrf.mxu0 }
 0x5e4   :  { %7705 = vmatmul.bf16.vlgmr.msrb.gmra.mxu3 %v13945_v53  ;;  %v5968_v54 = vmax.f32 %v5904_v9, 0.0  ;;  %v11410_v9 = vld [vmem:[#allocation2 + $0x158] sm:$0xff] }
 0x5e7   :  { %v5726_v55 = vpop.f32.mrf.mxu1  ;;  %v7654_v3 = vpop.f32.mrf.mxu3 }
 0x5e8   :  { %v5837_v40 = vadd.f32 %v5726_v55, %v13735_v19  ;;  %v13953_v60 = vadd.f32 %v7654_v3, %v7642_v6  ;;  %v10545_v19 = vld [vmem:[%s15413_s5 + $0x470] sm:$0xf]  ;;  %v10537_v6 = vld [vmem:[%s15413_s5 + $0x460] sm:$0xf] }
 0x5e9   :  { %v10546_v30 = vor.u32 %v11563_v58, %v10545_v19  ;;  %v10538_v28 = vor.u32 %v11561_v22, %v10537_v6  ;;  %v11577_v22 = vld [vmem:[%s15413_s5 + $0x4e4] sm:$0xf0] }
 0x5ea   :  { %v5905_v32 = vadd.f32 %v13920_v14, %v5837_v40  ;;  %v10521_v40 = vld [vmem:[%s15413_s5 + $0x440] sm:$0xf] }
 0x5eb   :  { %v13956_v31 = vpop.f32.mrf.mxu0  ;;  %7710 = vmatpush.bf16.msra.mxu2 %v10546_v30 }
 0x5ec   :  { %v5969_v39 = vmax.f32 %v5905_v32, 0.0 }
 0x5ee   :  { %9789 = vmatmul.msk.bf16.gmra.mxu0 %vm1045_vm3, %v11378_v18  ;;  %v13959_v56 = vmax.f32 %v5968_v54, %v5969_v39  ;;  %v11557_v18 = vld [vmem:[%s15413_s5 + $0x444] sm:$0xf0]  ;;  %v10513_v39 = vld [vmem:[%s15413_s5 + $0x430] sm:$0xf] }
 0x5ef   :  { %v5729_v36 = vpop.f32.mrf.mxu1  ;;  %v7656_v44 = vpop.f32.mrf.mxu3  ;;  %7711 = vmatpush.bf16.msra.mxu2 %v10538_v28  ;;  %v10522_v32 = vor.u32 %v11557_v18, %v10521_v40  ;;  %v4092_v40 = vadd.f32 %v13172_v48, %v13177_v62 }
 0x5f0   :  { %v5838_v45 = vadd.f32 %v5729_v36, %v13765_v51  ;;  %v10609_v44 = vld [vmem:[%s15413_s5 + $0x4f0] sm:$0xf] }
 0x5f1   :  { %v4679_v62 = vadd.f32 %v13192_v34, %v4092_v40  ;;  %v11571_v34 = vld [vmem:[%s15413_s5 + $0x4b4] sm:$0xf0]  ;;  %v10561_v40 = vld [vmem:[%s15413_s5 + $0x490] sm:$0xf] }
 0x5f2   :  { %9968 = vmatmul.msk.bf16.gmra.mxu1 %vm1045_vm3, %v11409_v61  ;;  %v5906_v43 = vadd.f32 %v13920_v14, %v5838_v45  ;;  %v11579_v45 = vld [vmem:[%s15413_s5 + $0x4f4] sm:$0xf0] }
 0x5f3   :  { %v13962_v20 = vpop.f32.mrf.mxu0  ;;  %v10610_v61 = vor.u32 %v11579_v45, %v10609_v44  ;;  %v10585_v44 = vld [vmem:[%s15413_s5 + $0x4c0] sm:$0xf] }
 0x5f4   :  { %v5970_v16 = vmax.f32 %v5906_v43, 0.0  ;;  %v11553_v43 = vld [vmem:[%s15413_s5 + $0x424] sm:$0xf0] }
 0x5f5   :  { %7723 = vmatpush.bf16.msra.mxu3 %v10610_v61 }
 0x5f7   :  { %v5731_v0 = vpop.f32.mrf.mxu1 }
 0x5f8   :  { %v5839_v51 = vadd.f32 %v5731_v0, %v13798_v37  ;;  %v10529_v37 = vld [vmem:[%s15413_s5 + $0x450] sm:$0xf]  ;;  %v10505_v0 = vld [vmem:[%s15413_s5 + $0x420] sm:$0xf] }
 0x5f9   :  { %v10530_v24 = vor.u32 %v11559_v10, %v10529_v37  ;;  %v10506_v6 = vor.u32 %v11553_v43, %v10505_v0  ;;  %v10497_v37 = vld [vmem:[%s15413_s5 + $0x410] sm:$0xf]  ;;  %v11551_v10 = vld [vmem:[%s15413_s5 + $0x414] sm:$0xf0] }
 0x5fa   :  { %v5907_v7 = vadd.f32 %v13920_v14, %v5839_v51  ;;  %v10601_v51 = vld [vmem:[%s15413_s5 + $0x4e0] sm:$0xf]  ;;  %v10673_v0 = vld [vmem:[%s15413_s5 + $0x570] sm:$0xf]  ;;  %v11595_v43 = vld [vmem:[%s15413_s5 + $0x574] sm:$0xf0] }
 0x5fb   :  { %v13980_v35 = vpop.f32.mrf.mxu0  ;;  %7712 = vmatpush.bf16.msra.mxu2 %v10530_v24  ;;  %v10602_v28 = vor.u32 %v11577_v22, %v10601_v51  ;;  %v10498_v24 = vor.u32 %v11551_v10, %v10497_v37  ;;  %v10674_v51 = vor.u32 %v11595_v43, %v10673_v0  ;;  %v11593_v37 = vld [vmem:[%s15413_s5 + $0x564] sm:$0xf0] }
 0x5fc   :  { %v5971_v38 = vmax.f32 %v5907_v7, 0.0  ;;  %v11589_v43 = vld [vmem:[%s15413_s5 + $0x544] sm:$0xf0] }
 0x5fd   :  { %7724 = vmatpush.bf16.msra.mxu3 %v10602_v28  ;;  %v11569_v28 = vld [vmem:[%s15413_s5 + $0x4a4] sm:$0xf0] }
 0x5fe   :  { %9790 = vmatmul.msk.bf16.gmra.mxu0 %vm1045_vm3, %v11379_v41  ;;  %v13989_v15 = vmax.f32 %v5970_v16, %v5971_v38 }
 0x5ff   :  { %v5734_v55 = vpop.f32.mrf.mxu1  ;;  %7713 = vmatpush.bf16.msra.mxu2 %v10522_v32  ;;  %v11411_v32 = vld [vmem:[#allocation2 + $0x160] sm:$0xff] }
 0x600   :  { %v5840_v3 = vadd.f32 %v5734_v55, %v13829_v46  ;;  %v11555_v46 = vld [vmem:[%s15413_s5 + $0x434] sm:$0xf0]  ;;  %v10593_v55 = vld [vmem:[%s15413_s5 + $0x4d0] sm:$0xf] }
 0x601   :  { %v10514_v36 = vor.u32 %v11555_v46, %v10513_v39  ;;  %v10489_v46 = vld [vmem:[%s15413_s5 + $0x400] sm:$0xf] }
 0x602   :  { %9969 = vmatmul.msk.bf16.gmra.mxu1 %vm1045_vm3, %v11410_v9  ;;  %v5908_v58 = vadd.f32 %v13920_v14, %v5840_v3 }
 0x603   :  { %v13998_v54 = vpop.f32.mrf.mxu0  ;;  %7714 = vmatpush.bf16.msra.mxu2 %v10514_v36  ;;  %v11549_v36 = vld [vmem:[%s15413_s5 + $0x404] sm:$0xf0] }
 0x604   :  { %v5972_v16 = vmax.f32 %v5908_v58, 0.0  ;;  %v10490_v48 = vor.u32 %v11549_v36, %v10489_v46  ;;  %v10577_v58 = vld [vmem:[%s15413_s5 + $0x4b0] sm:$0xf] }
 0x605   :  { %v11412_v36 = vld [vmem:[#allocation2 + $0x170] sm:$0xff] }
 0x607   :  { %v5736_v19 = vpop.f32.mrf.mxu1  ;;  %7715 = vmatpush.bf16.msra.mxu2 %v10506_v6 }
 0x608   :  { %v5841_v30 = vadd.f32 %v5736_v19, %v13865_v33 }
 0x60a   :  { %v5909_v33 = vadd.f32 %v13920_v14, %v5841_v30  ;;  %v10578_v30 = vor.u32 %v11571_v34, %v10577_v58  ;;  %v11565_v58 = vld [vmem:[%s15413_s5 + $0x484] sm:$0xf0]  ;;  %v10649_v34 = vld [vmem:[%s15413_s5 + $0x540] sm:$0xf] }
 0x60b   :  { %v5177_v41 = vpop.f32.mrf.mxu0  ;;  %7716 = vmatpush.bf16.msra.mxu2 %v10498_v24 }
 0x60c   :  { %v14029_v7 = vadd.f32 %v5177_v41, %v13183_v42  ;;  %v5973_v38 = vmax.f32 %v5909_v33, 0.0  ;;  %v11575_v42 = vld [vmem:[%s15413_s5 + $0x4d4] sm:$0xf0]  ;;  %v10569_v41 = vld [vmem:[%s15413_s5 + $0x4a0] sm:$0xf] }
 0x60d   :  { %v10594_v9 = vor.u32 %v11575_v42, %v10593_v55 }
 0x60e   :  { %v14043_v3 = vmax.f32 %v5972_v16, %v5973_v38  ;;  %v10665_v16 = vld [vmem:[%s15413_s5 + $0x560] sm:$0xf]  ;;  %v10570_v38 = vor.u32 %v11569_v28, %v10569_v41 }
 0x60f   :  { %v5739_v18 = vpop.f32.mrf.mxu1  ;;  %7725 = vmatpush.bf16.msra.mxu3 %v10594_v9  ;;  %7717 = vmatpush.bf16.msra.mxu2 %v10490_v48  ;;  %v10666_v24 = vor.u32 %v11593_v37, %v10665_v16  ;;  %v15520_v48 = vld [vmem:[#allocation25_spill] sm:$0xff]  ;;  %v11683_v16 = vld [vmem:[%s15415_s7 + $0x38] sm:$0xff] }
 0x610   :  { %v5842_v39 = vadd.f32 %v5739_v18, %v13885_v49  ;;  %v11573_v49 = vld [vmem:[%s15413_s5 + $0x4c4] sm:$0xf0]  ;;  %v11567_v18 = vld [vmem:[%s15413_s5 + $0x494] sm:$0xf0]  ;;  %8158 = vmatpush.bf16.msrb.mxu0 %v11683_v16 }
 0x611   :  { %v10586_v61 = vor.u32 %v11573_v49, %v10585_v44 }
 0x612   :  { %9970 = vmatmul.msk.bf16.gmra.mxu1 %vm1045_vm3, %v11411_v32  ;;  %v5910_v22 = vadd.f32 %v13920_v14, %v5842_v39  ;;  %v10562_v32 = vor.u32 %v11567_v18, %v10561_v40  ;;  %v10657_v39 = vld [vmem:[%s15413_s5 + $0x550] sm:$0xf]  ;;  %v11611_v18 = vld [vmem:[%s15413_s5 + $0x5f4] sm:$0xf0] }
 0x613   :  { %v5179_v45 = vpop.f32.mrf.mxu0  ;;  %7726 = vmatpush.bf16.msra.mxu3 %v10586_v61  ;;  %7736 = vmatpush.bf16.msrb.mxu2 %v10674_v51  ;;  %v10553_v61 = vld [vmem:[%s15413_s5 + $0x480] sm:$0xf]  ;;  %v15521_v51 = vld [vmem:[#allocation10_spill] sm:$0xff]  ;;  %v10737_v40 = vld [vmem:[%s15413_s5 + $0x5f0] sm:$0xf] }
 0x614   :  { %v14062_v19 = vadd.f32 %v5179_v45, %v4679_v62  ;;  %v5974_v42 = vmax.f32 %v5910_v22, 0.0  ;;  %v15519_v62 = vld [vmem:[#allocation26_spill] sm:$0xff]  ;;  %v10554_v0 = vor.u32 %v11565_v58, %v10553_v61 }
 0x615   :  { %v4094_v49 = vadd.f32 %v15520_v48, %v15519_v62  ;;  %v10633_v62 = vld [vmem:[%s15413_s5 + $0x520] sm:$0xf]  ;;  %v11585_v48 = vld [vmem:[%s15413_s5 + $0x524] sm:$0xf0] }
 0x617   :  { %v5741_v6 = vpop.f32.mrf.mxu1  ;;  %7727 = vmatpush.bf16.msra.mxu3 %v10578_v30  ;;  %7737 = vmatpush.bf16.msrb.mxu2 %v10666_v24  ;;  %v4681_v30 = vadd.f32 %v13210_v47, %v4094_v49  ;;  %v11691_v47 = vld [vmem:[%s15415_s7 + $0x78] sm:$0xff]  ;;  %v10729_v49 = vld [vmem:[%s15413_s5 + $0x5e0] sm:$0xf] }
 0x618   :  { %v5843_v33 = vadd.f32 %v5741_v6, %v13912_v23  ;;  %v15522_v6 = vld [vmem:[#allocation9_spill] sm:$0xff]  ;;  %8171 = vmatpush.bf16.msrb.mxu1 %v11691_v47  ;;  %v15525_v47 = vld [vmem:[#allocation28_spill] sm:$0xff] }
 0x619   :  { %v4084_v22 = vadd.f32 %v15522_v6, %v15521_v51  ;;  %v10625_v51 = vld [vmem:[%s15413_s5 + $0x510] sm:$0xf]  ;;  %v11583_v6 = vld [vmem:[%s15413_s5 + $0x514] sm:$0xf0] }
 0x61a   :  { %v5911_v23 = vadd.f32 %v13920_v14, %v5843_v33  ;;  %v15523_v33 = vld [vmem:[#allocation11_spill] sm:$0xff] }
 0x61b   :  { %v5182_v10 = vpop.f32.mrf.mxu0  ;;  %7728 = vmatpush.bf16.msra.mxu3 %v10570_v38  ;;  %v5257_v41 = vadd.f32 %v13924_v57, %v15523_v33  ;;  %v10650_v38 = vor.u32 %v11589_v43, %v10649_v34  ;;  %v10641_v57 = vld [vmem:[%s15413_s5 + $0x530] sm:$0xf] }
 0x61c   :  { %v14092_v55 = vadd.f32 %v5182_v10, %v13201_v2  ;;  %v5975_v9 = vmax.f32 %v5911_v23, 0.0  ;;  %v11591_v2 = vld [vmem:[%s15413_s5 + $0x554] sm:$0xf0]  ;;  %v15524_v23 = vld [vmem:[#allocation13_spill] sm:$0xff]  ;;  %v10721_v33 = vld [vmem:[%s15413_s5 + $0x5d0] sm:$0xf] }
 0x61d   :  { %v10658_v44 = vor.u32 %v11591_v2, %v10657_v39  ;;  %v4671_v10 = vadd.f32 %v15524_v23, %v4084_v22  ;;  %v10738_v39 = vor.u32 %v11611_v18, %v10737_v40  ;;  %v10626_v22 = vor.u32 %v11583_v6, %v10625_v51 }
 0x61e   :  { %v14106_v46 = vmax.f32 %v5974_v42, %v5975_v9  ;;  %v11587_v42 = vld [vmem:[%s15413_s5 + $0x534] sm:$0xf0] }
 0x61f   :  { %v5744_v45 = vpop.f32.mrf.mxu1  ;;  %7729 = vmatpush.bf16.msra.mxu3 %v10562_v32  ;;  %7738 = vmatpush.bf16.msrb.mxu2 %v10658_v44  ;;  %v10642_v9 = vor.u32 %v11587_v42, %v10641_v57  ;;  %v5258_v32 = vadd.f32 %v13932_v21, %v4671_v10  ;;  %v10634_v21 = vor.u32 %v11585_v48, %v10633_v62  ;;  %v10617_v57 = vld [vmem:[%s15413_s5 + $0x500] sm:$0xf]  ;;  %v11581_v42 = vld [vmem:[%s15413_s5 + $0x504] sm:$0xf0] }
 0x620   :  { %v5844_v24 = vadd.f32 %v5744_v45, %v5257_v41  ;;  %v11609_v45 = vld [vmem:[%s15413_s5 + $0x5e4] sm:$0xf0]  ;;  %v10618_v18 = vor.u32 %v11581_v42, %v10617_v57  ;;  %v11414_v42 = vld [vmem:[#allocation2 + $0x180] sm:$0xff] }
 0x621   :  { %v10730_v34 = vor.u32 %v11609_v45, %v10729_v49 }
 0x622   :  { %9971 = vmatmul.msk.bf16.gmra.mxu1 %vm1045_vm3, %v11412_v36  ;;  %v5912_v36 = vadd.f32 %v13920_v14, %v5844_v24 }
 0x623   :  { %v5184_v28 = vpop.f32.mrf.mxu0  ;;  %7730 = vmatpush.bf16.msra.mxu3 %v10554_v0  ;;  %7739 = vmatpush.bf16.msrb.mxu2 %v10650_v38  ;;  %v15526_v38 = vld [vmem:[#allocation27_spill] sm:$0xff] }
 0x624   :  { %v14134_v37 = vadd.f32 %v5184_v28, %v4681_v30  ;;  %v5976_v0 = vmax.f32 %v5912_v36, 0.0  ;;  %v11413_v28 = vld [vmem:[#allocation2 + $0x178] sm:$0xff]  ;;  %v4096_v23 = vadd.f32 %v15526_v38, %v15525_v47  ;;  %v15529_v36 = vld [vmem:[#allocation15_spill] sm:$0xff] }
 0x626   :  { %v4683_v40 = vadd.f32 %v13228_v13, %v4096_v23  ;;  %v15530_v13 = vld [vmem:[#allocation17_spill] sm:$0xff] }
 0x627   :  { %v5746_v2 = vpop.f32.mrf.mxu1  ;;  %7749 = vmatpush.bf16.msrb.mxu3 %v10738_v39  ;;  %7740 = vmatpush.bf16.msrb.mxu2 %v10642_v9  ;;  %v10713_v9 = vld [vmem:[%s15413_s5 + $0x5c0] sm:$0xf]  ;;  %v15528_v39 = vld [vmem:[#allocation12_spill] sm:$0xff] }
 0x628   :  { %v5845_v44 = vadd.f32 %v5746_v2, %v5258_v32  ;;  %v15527_v32 = vld [vmem:[#allocation14_spill] sm:$0xff] }
 0x629   :  { %v4086_v2 = vadd.f32 %v15528_v39, %v15527_v32  ;;  %v10681_v39 = vld [vmem:[%s15413_s5 + $0x580] sm:$0xf] }
 0x62a   :  { %v5913_v61 = vadd.f32 %v13920_v14, %v5845_v44  ;;  %v5259_v44 = vadd.f32 %v13940_v8, %v15529_v36  ;;  %v11603_v8 = vld [vmem:[%s15413_s5 + $0x5b4] sm:$0xf0] }
 0x62b   :  { %v5187_v58 = vpop.f32.mrf.mxu0  ;;  %7750 = vmatpush.bf16.msrb.mxu3 %v10730_v34  ;;  %7741 = vmatpush.bf16.msrb.mxu2 %v10634_v21  ;;  %v4673_v45 = vadd.f32 %v15530_v13, %v4086_v2  ;;  %v11597_v2 = vld [vmem:[%s15413_s5 + $0x584] sm:$0xf0] }
 0x62c   :  { %v14165_v30 = vadd.f32 %v5187_v58, %v13219_v25  ;;  %v5977_v43 = vmax.f32 %v5913_v61, 0.0  ;;  %v11607_v25 = vld [vmem:[%s15413_s5 + $0x5d4] sm:$0xf0]  ;;  %v10705_v58 = vld [vmem:[%s15413_s5 + $0x5b0] sm:$0xf] }
 0x62d   :  { %v10722_v16 = vor.u32 %v11607_v25, %v10721_v33  ;;  %v10706_v34 = vor.u32 %v11603_v8, %v10705_v58  ;;  %v10697_v25 = vld [vmem:[%s15413_s5 + $0x5a0] sm:$0xf] }
 0x62e   :  { %v6025_v41 = vmax.f32 %v5976_v0, %v5977_v43  ;;  %v5260_v0 = vadd.f32 %v13947_v29, %v4673_v45  ;;  %v15535_v45 = vld [vmem:[#allocation19_spill] sm:$0xff] }
 0x62f   :  { %v5749_v10 = vpop.f32.mrf.mxu1  ;;  %7751 = vmatpush.bf16.msrb.mxu3 %v10722_v16  ;;  %7742 = vmatpush.bf16.msrb.mxu2 %v10626_v22 }
 0x630   :  { %v6026_v24 = vmax.f32 %v13959_v56, %v6025_v41  ;;  %v11605_v56 = vld [vmem:[%s15413_s5 + $0x5c4] sm:$0xf0]  ;;  %v5846_v61 = vadd.f32 %v5749_v10, %v5259_v44  ;;  %v11599_v10 = vld [vmem:[%s15413_s5 + $0x594] sm:$0xf0]  ;;  %v10682_v44 = vor.u32 %v11597_v2, %v10681_v39 }
 0x631   :  { %v10714_v49 = vor.u32 %v11605_v56, %v10713_v9  ;;  %v11601_v41 = vld [vmem:[%s15413_s5 + $0x5a4] sm:$0xf0] }
 0x632   :  { %v14199_v62 = vpack.c.bf16 %v6026_v24, %v6026_v24  ;;  %9972 = vmatmul.msk.bf16.gmra.mxu1 %vm1045_vm3, %v11413_v28  ;;  %v5914_v6 = vadd.f32 %v13920_v14, %v5846_v61  ;;  %v10698_v28 = vor.u32 %v11601_v41, %v10697_v25  ;;  %v15531_v9 = vld [vmem:[#allocation30_spill] sm:$0xff]  ;;  %v5261_v61 = vadd.f32 %v13956_v31, %v15535_v45 }
 0x633   :  { %v5189_v48 = vpop.f32.mrf.mxu0  ;;  %7752 = vmatpush.bf16.msrb.mxu3 %v10714_v49  ;;  %7743 = vmatpush.bf16.msrb.mxu2 %v10618_v18  ;;  %v15534_v49 = vld [vmem:[#allocation16_spill] sm:$0xff] }
 0x634   :  { %v14202_v21 = vadd.f32 %v5189_v48, %v4683_v40  ;;  %7718 = vmatmul.bf16.vlgmr.msra.gmra.mxu2 %v14199_v62  ;;  %v5978_v38 = vmax.f32 %v5914_v6, 0.0  ;;  %v15532_v40 = vld [vmem:[#allocation29_spill] sm:$0xff]  ;;  %v15533_v48 = vld [vmem:[#allocation18_spill] sm:$0xff] }
 0x635   :  { %v4098_v18 = vadd.f32 %v15532_v40, %v15531_v9  ;;  %v4088_v13 = vadd.f32 %v15534_v49, %v15533_v48  ;;  %v10801_v49 = vld [vmem:[%s15413_s5 + $0x670] sm:$0xf] }
 0x637   :  { %v5751_v43 = vpop.f32.mrf.mxu1  ;;  %v7667_v51 = vpop.f32.mrf.mxu2  ;;  %7753 = vmatpush.bf16.msrb.mxu3 %v10706_v34  ;;  %v4685_v36 = vadd.f32 %v13258_v52, %v4098_v18  ;;  %v15536_v34 = vld [vmem:[#allocation21_spill] sm:$0xff] }
 0x638   :  { %v5847_v22 = vadd.f32 %v5751_v43, %v5260_v0  ;;  %v7668_v33 = vadd.f32 %v7667_v51, %v13953_v60  ;;  %v10689_v60 = vld [vmem:[%s15413_s5 + $0x590] sm:$0xf]  ;;  %v4675_v0 = vadd.f32 %v15536_v34, %v4088_v13  ;;  %v11627_v13 = vld [vmem:[%s15413_s5 + $0x674] sm:$0xf0] }
 0x639   :  { %v10690_v24 = vor.u32 %v11599_v10, %v10689_v60  ;;  %v10802_v45 = vor.u32 %v11627_v13, %v10801_v49  ;;  %v11615_v13 = vld [vmem:[%s15413_s5 + $0x614] sm:$0xf0] }
 0x63a   :  { %v5915_v16 = vadd.f32 %v13920_v14, %v5847_v22  ;;  %v5262_v52 = vadd.f32 %v13962_v20, %v4675_v0  ;;  %v15539_v20 = vld [vmem:[#allocation23_spill] sm:$0xff] }
 0x63b   :  { %v5192_v29 = vpop.f32.mrf.mxu0  ;;  %7754 = vmatpush.bf16.msrb.mxu3 %v10698_v28  ;;  %v5263_v9 = vadd.f32 %v13980_v35, %v15539_v20  ;;  %7762 = vmatpush.bf16.msra.mxu2 %v10802_v45  ;;  %v11619_v20 = vld [vmem:[%s15413_s5 + $0x634] sm:$0xf0] }
 0x63c   :  { %v14223_v47 = vadd.f32 %v5192_v29, %v13237_v17  ;;  %v5979_v23 = vmax.f32 %v5915_v16, 0.0 }
 0x63e   :  { %v6028_v57 = vmax.f32 %v5978_v38, %v5979_v23  ;;  %v11415_v38 = vld [vmem:[#allocation2 + $0x188] sm:$0xff] }
 0x63f   :  { %v5754_v56 = vpop.f32.mrf.mxu1  ;;  %v7669_v17 = vpop.f32.mrf.mxu2  ;;  %7755 = vmatpush.bf16.msrb.mxu3 %v10690_v24  ;;  %v15537_v24 = vld [vmem:[#allocation22_spill] sm:$0xff] }
 0x640   :  { %v6029_v32 = vmax.f32 %v13989_v15, %v6028_v57  ;;  %v5848_v43 = vadd.f32 %v5754_v56, %v5261_v61  ;;  %v15538_v57 = vld [vmem:[#allocation20_spill] sm:$0xff]  ;;  %v11682_v61 = vld [vmem:[%s15415_s7 + $0x30] sm:$0xff] }
 0x641   :  { %8159 = vmatpush.bf16.msrb.mxu0 %v11682_v61  ;;  %v11639_v61 = vld [vmem:[%s15413_s5 + $0x6d4] sm:$0xf0] }
 0x642   :  { %v14245_v58 = vpack.c.bf16 %v6029_v32, %v6029_v32  ;;  %9973 = vmatmul.msk.bf16.gmra.mxu1 %vm1045_vm3, %v11414_v42  ;;  %v5916_v22 = vadd.f32 %v13920_v14, %v5848_v43  ;;  %v4090_v42 = vadd.f32 %v15538_v57, %v15537_v24 }
 0x643   :  { %v5194_v15 = vpop.f32.mrf.mxu0  ;;  %7756 = vmatpush.bf16.msrb.mxu3 %v10682_v44 }
 0x644   :  { %v14248_v8 = vadd.f32 %v5194_v15, %v4685_v36  ;;  %7731 = vmatmul.bf16.vlgmr.msra.gmra.mxu3 %v14245_v58  ;;  %v5980_v28 = vmax.f32 %v5916_v22, 0.0  ;;  %v11690_v15 = vld [vmem:[%s15415_s7 + $0x70] sm:$0xff] }
 0x645   :  { %8172 = vmatpush.bf16.msrb.mxu1 %v11690_v15 }
 0x647   :  { %v5756_v51 = vpop.f32.mrf.mxu1  ;;  %v7680_v6 = vpop.f32.mrf.mxu3 }
 0x648   :  { %v5849_v31 = vadd.f32 %v5756_v51, %v5262_v52  ;;  %v7681_v25 = vadd.f32 %v7680_v6, %v7668_v33  ;;  %v15540_v33 = vld [vmem:[#allocation24_spill] sm:$0xff]  ;;  %v10793_v51 = vld [vmem:[%s15413_s5 + $0x660] sm:$0xf]  ;;  %v11625_v6 = vld [vmem:[%s15413_s5 + $0x664] sm:$0xf0] }
 0x649   :  { %v4677_v18 = vadd.f32 %v15540_v33, %v4090_v42  ;;  %v10794_v22 = vor.u32 %v11625_v6, %v10793_v51  ;;  %v10865_v33 = vld [vmem:[%s15413_s5 + $0x6f0] sm:$0xf]  ;;  %v11613_v51 = vld [vmem:[%s15413_s5 + $0x604] sm:$0xf0]  ;;  %v10841_v6 = vld [vmem:[%s15413_s5 + $0x6c0] sm:$0xf] }
 0x64a   :  { %v5917_v41 = vadd.f32 %v13920_v14, %v5849_v31 }
 0x64b   :  { %v5264_v17 = vadd.f32 %v13998_v54, %v4677_v18  ;;  %7763 = vmatpush.bf16.msra.mxu2 %v10794_v22  ;;  %v11643_v18 = vld [vmem:[%s15413_s5 + $0x6f4] sm:$0xf0] }
 0x64c   :  { %v5981_v16 = vmax.f32 %v5917_v41, 0.0 }
 0x64e   :  { %v6031_v29 = vmax.f32 %v5980_v28, %v5981_v16 }
 0x64f   :  { %v5759_v23 = vpop.f32.mrf.mxu1  ;;  %v7682_v60 = vpop.f32.mrf.mxu3 }
 0x650   :  { %v6032_v10 = vmax.f32 %v14043_v3, %v6031_v29  ;;  %v5850_v56 = vadd.f32 %v5759_v23, %v5263_v9  ;;  %v10777_v23 = vld [vmem:[%s15413_s5 + $0x640] sm:$0xf]  ;;  %v11621_v60 = vld [vmem:[%s15413_s5 + $0x644] sm:$0xf0] }
 0x652   :  { %v14260_v40 = vpack.c.bf16 %v6032_v10, %v6032_v10  ;;  %9974 = vmatmul.msk.bf16.gmra.mxu1 %vm1045_vm3, %v11415_v38  ;;  %v5918_v3 = vadd.f32 %v13920_v14, %v5850_v56  ;;  %v10778_v10 = vor.u32 %v11621_v60, %v10777_v23  ;;  %v10833_v23 = vld [vmem:[%s15413_s5 + $0x6b0] sm:$0xf]  ;;  %v11635_v60 = vld [vmem:[%s15413_s5 + $0x6b4] sm:$0xf0] }
 0x654   :  { %7744 = vmatmul.bf16.vlgmr.msrb.gmra.mxu2 %v14260_v40  ;;  %v5982_v35 = vmax.f32 %v5918_v3, 0.0 }
 0x657   :  { %v5761_v32 = vpop.f32.mrf.mxu1  ;;  %v7693_v39 = vpop.f32.mrf.mxu2 }
 0x658   :  { %v5851_v2 = vadd.f32 %v5761_v32, %v5264_v17  ;;  %v7694_v36 = vadd.f32 %v7693_v39, %v7681_v25  ;;  %v10866_v17 = vor.u32 %v11643_v18, %v10865_v33  ;;  %v10825_v33 = vld [vmem:[%s15413_s5 + $0x6a0] sm:$0xf]  ;;  %v11633_v18 = vld [vmem:[%s15413_s5 + $0x6a4] sm:$0xf0] }
 0x65a   :  { %v5919_v44 = vadd.f32 %v13920_v14, %v5851_v2  ;;  %7775 = vmatpush.bf16.msra.mxu3 %v10866_v17  ;;  %v10761_v2 = vld [vmem:[%s15413_s5 + $0x620] sm:$0xf]  ;;  %v10826_v17 = vor.u32 %v11633_v18, %v10825_v33  ;;  %v11645_v33 = vld [vmem:[%s15413_s5 + $0x704] sm:$0xf0] }
 0x65c   :  { %v5983_v48 = vmax.f32 %v5919_v44, 0.0  ;;  %v10857_v44 = vld [vmem:[%s15413_s5 + $0x6e0] sm:$0xf] }
 0x65e   :  { %v6034_v54 = vmax.f32 %v5982_v35, %v5983_v48  ;;  %v11641_v48 = vld [vmem:[%s15413_s5 + $0x6e4] sm:$0xf0] }
 0x65f   :  { %v5764_v34 = vpop.f32.mrf.mxu1  ;;  %v7695_v0 = vpop.f32.mrf.mxu2  ;;  %v10858_v49 = vor.u32 %v11641_v48, %v10857_v44  ;;  %v10905_v44 = vld [vmem:[%s15413_s5 + $0x740] sm:$0xf] }
 0x660   :  { %v6035_v43 = vmax.f32 %v14106_v46, %v6034_v54  ;;  %v5852_v52 = vadd.f32 %v5764_v34, %v14029_v7  ;;  %v10785_v7 = vld [vmem:[%s15413_s5 + $0x650] sm:$0xf]  ;;  %v11623_v46 = vld [vmem:[%s15413_s5 + $0x654] sm:$0xf0] }
 0x661   :  { %v10786_v25 = vor.u32 %v11623_v46, %v10785_v7  ;;  %7776 = vmatpush.bf16.msra.mxu3 %v10858_v49  ;;  %v10849_v54 = vld [vmem:[%s15413_s5 + $0x6d0] sm:$0xf]  ;;  %v11637_v7 = vld [vmem:[%s15413_s5 + $0x6c4] sm:$0xf0]  ;;  %v11659_v46 = vld [vmem:[%s15413_s5 + $0x774] sm:$0xf0] }
 0x662   :  { %v14288_v31 = vpack.c.bf16 %v6035_v43, %v6035_v43  ;;  %v5920_v16 = vadd.f32 %v13920_v14, %v5852_v52  ;;  %v10850_v15 = vor.u32 %v11639_v61, %v10849_v54  ;;  %v10745_v52 = vld [vmem:[%s15413_s5 + $0x600] sm:$0xf]  ;;  %v11629_v54 = vld [vmem:[%s15413_s5 + $0x684] sm:$0xf0] }
 0x663   :  { %7764 = vmatpush.bf16.msra.mxu2 %v10786_v25  ;;  %v10746_v22 = vor.u32 %v11613_v51, %v10745_v52  ;;  %v11675_v52 = vld [vmem:[%s15413_s5 + $0x7f4] sm:$0xf0] }
 0x664   :  { %7757 = vmatmul.bf16.vlgmr.msrb.gmra.mxu3 %v14288_v31  ;;  %v5984_v57 = vmax.f32 %v5920_v16, 0.0 }
 0x665   :  { %7777 = vmatpush.bf16.msra.mxu3 %v10850_v15  ;;  %v10897_v15 = vld [vmem:[%s15413_s5 + $0x730] sm:$0xf] }
 0x667   :  { %v5766_v41 = vpop.f32.mrf.mxu1  ;;  %v7706_v28 = vpop.f32.mrf.mxu3  ;;  %7765 = vmatpush.bf16.msra.mxu2 %v10778_v10  ;;  %v10834_v10 = vor.u32 %v11635_v60, %v10833_v23 }
 0x668   :  { %v5853_v29 = vadd.f32 %v5766_v41, %v14062_v19  ;;  %v14299_v38 = vadd.f32 %v7706_v28, %v7694_v36  ;;  %v10769_v19 = vld [vmem:[%s15413_s5 + $0x630] sm:$0xf]  ;;  %v11617_v36 = vld [vmem:[%s15413_s5 + $0x624] sm:$0xf0]  ;;  %v10842_v41 = vor.u32 %v11637_v7, %v10841_v6  ;;  %v5197_v6 = vpop.f32.mrf.mxu0 }
 0x669   :  { %v10770_v9 = vor.u32 %v11619_v20, %v10769_v19  ;;  %v10762_v35 = vor.u32 %v11617_v36, %v10761_v2  ;;  %v11631_v2 = vld [vmem:[%s15413_s5 + $0x694] sm:$0xf0] }
 0x66a   :  { %v5921_v24 = vadd.f32 %v13920_v14, %v5853_v29  ;;  %7778 = vmatpush.bf16.msra.mxu3 %v10842_v41 }
 0x66b   :  { %7766 = vmatpush.bf16.msra.mxu2 %v10770_v9 }
 0x66c   :  { %v5985_v42 = vmax.f32 %v5921_v24, 0.0  ;;  %v10921_v24 = vld [vmem:[%s15413_s5 + $0x760] sm:$0xf] }
 0x66e   :  { %v14320_v56 = vmax.f32 %v5984_v57, %v5985_v42  ;;  %v11657_v57 = vld [vmem:[%s15413_s5 + $0x764] sm:$0xf0]  ;;  %7779 = vmatpush.bf16.msra.mxu3 %v10834_v10  ;;  %v10881_v10 = vld [vmem:[%s15413_s5 + $0x710] sm:$0xf] }
 0x66f   :  { %v5769_v32 = vpop.f32.mrf.mxu1  ;;  %v7708_v39 = vpop.f32.mrf.mxu3  ;;  %7767 = vmatpush.bf16.msra.mxu2 %v10762_v35  ;;  %v10922_v19 = vor.u32 %v11657_v57, %v10921_v24  ;;  %v11653_v35 = vld [vmem:[%s15413_s5 + $0x744] sm:$0xf0]  ;;  %v11647_v24 = vld [vmem:[%s15413_s5 + $0x714] sm:$0xf0]  ;;  %v10977_v57 = vld [vmem:[%s15413_s5 + $0x7d0] sm:$0xf] }
 0x670   :  { %v5854_v3 = vadd.f32 %v5769_v32, %v14092_v55  ;;  %v10753_v55 = vld [vmem:[%s15413_s5 + $0x610] sm:$0xf]  ;;  %v11655_v39 = vld [vmem:[%s15413_s5 + $0x754] sm:$0xf0]  ;;  %v10906_v48 = vor.u32 %v11653_v35, %v10905_v44 }
 0x671   :  { %v10754_v45 = vor.u32 %v11615_v13, %v10753_v55  ;;  %v10913_v32 = vld [vmem:[%s15413_s5 + $0x750] sm:$0xf]  ;;  %v11667_v35 = vld [vmem:[%s15413_s5 + $0x7b4] sm:$0xf0] }
 0x672   :  { %v5922_v0 = vadd.f32 %v13920_v14, %v5854_v3  ;;  %7780 = vmatpush.bf16.msra.mxu3 %v10826_v17  ;;  %v10817_v3 = vld [vmem:[%s15413_s5 + $0x690] sm:$0xf]  ;;  %v10969_v17 = vld [vmem:[%s15413_s5 + $0x7c0] sm:$0xf] }
 0x673   :  { %7768 = vmatpush.bf16.msra.mxu2 %v10754_v45  ;;  %v10818_v36 = vor.u32 %v11631_v2, %v10817_v3  ;;  %v10809_v45 = vld [vmem:[%s15413_s5 + $0x680] sm:$0xf]  ;;  %v10961_v44 = vld [vmem:[%s15413_s5 + $0x7b0] sm:$0xf] }
 0x674   :  { %v5986_v16 = vmax.f32 %v5922_v0, 0.0  ;;  %v10810_v61 = vor.u32 %v11629_v54, %v10809_v45  ;;  %v11665_v45 = vld [vmem:[%s15413_s5 + $0x7a4] sm:$0xf0] }
 0x676   :  { %7781 = vmatpush.bf16.msra.mxu3 %v10818_v36 }
 0x677   :  { %v5771_v34 = vpop.f32.mrf.mxu1  ;;  %7769 = vmatpush.bf16.msra.mxu2 %v10746_v22 }
 0x678   :  { %v5855_v43 = vadd.f32 %v5771_v34, %v14134_v37  ;;  %v10929_v37 = vld [vmem:[%s15413_s5 + $0x770] sm:$0xf]  ;;  %v11651_v34 = vld [vmem:[%s15413_s5 + $0x734] sm:$0xf0] }
 0x679   :  { %v10930_v28 = vor.u32 %v11659_v46, %v10929_v37  ;;  %v10889_v37 = vld [vmem:[%s15413_s5 + $0x720] sm:$0xf]  ;;  %v11649_v46 = vld [vmem:[%s15413_s5 + $0x724] sm:$0xf0] }
 0x67a   :  { %v5923_v25 = vadd.f32 %v13920_v14, %v5855_v43  ;;  %v10898_v43 = vor.u32 %v11651_v34, %v10897_v15  ;;  %7782 = vmatpush.bf16.msra.mxu3 %v10810_v61 }
 0x67b   :  { %7788 = vmatpush.bf16.msrb.mxu2 %v10930_v28  ;;  %v10890_v28 = vor.u32 %v11649_v46, %v10889_v37  ;;  %v15543_v46 = vld [vmem:[#allocation34_spill] sm:$0xff] }
 0x67c   :  { %v5987_v29 = vmax.f32 %v5923_v25, 0.0  ;;  %v10985_v25 = vld [vmem:[%s15413_s5 + $0x7e0] sm:$0xf] }
 0x67e   :  { %v14380_v42 = vmax.f32 %v5986_v16, %v5987_v29  ;;  %v11673_v16 = vld [vmem:[%s15413_s5 + $0x7e4] sm:$0xf0] }
 0x67f   :  { %v5774_v20 = vpop.f32.mrf.mxu1  ;;  %7789 = vmatpush.bf16.msrb.mxu2 %v10922_v19  ;;  %v10986_v23 = vor.u32 %v11673_v16, %v10985_v25  ;;  %v10882_v19 = vor.u32 %v11647_v24, %v10881_v10  ;;  %v10937_v16 = vld [vmem:[%s15413_s5 + $0x780] sm:$0xf] }
 0x680   :  { %v5856_v9 = vadd.f32 %v5774_v20, %v14165_v30  ;;  %v10914_v30 = vor.u32 %v11655_v39, %v10913_v32  ;;  %v11671_v20 = vld [vmem:[%s15413_s5 + $0x7d4] sm:$0xf0]  ;;  %v11669_v32 = vld [vmem:[%s15413_s5 + $0x7c4] sm:$0xf0]  ;;  %v5199_v39 = vpop.f32.mrf.mxu0 }
 0x682   :  { %v5924_v55 = vadd.f32 %v13920_v14, %v5856_v9  ;;  %v10873_v9 = vld [vmem:[%s15413_s5 + $0x700] sm:$0xf] }
 0x683   :  { %7790 = vmatpush.bf16.msrb.mxu2 %v10914_v30  ;;  %v10874_v18 = vor.u32 %v11645_v33, %v10873_v9  ;;  %v10970_v30 = vor.u32 %v11669_v32, %v10969_v17  ;;  %v11434_v33 = vld [vmem:[%s15413_s5 + $0x74] sm:$0xf] }
 0x684   :  { %v5988_v22 = vmax.f32 %v5924_v55, 0.0 }
 0x687   :  { %v5776_v49 = vpop.f32.mrf.mxu1  ;;  %7791 = vmatpush.bf16.msrb.mxu2 %v10906_v48 }
 0x688   :  { %v5857_v13 = vadd.f32 %v5776_v49, %v14202_v21  ;;  %v10993_v21 = vld [vmem:[%s15413_s5 + $0x7f0] sm:$0xf]  ;;  %v10962_v49 = vor.u32 %v11667_v35, %v10961_v44  ;;  %v5202_v34 = vpop.f32.mrf.mxu0 }
 0x689   :  { %v10994_v51 = vor.u32 %v11675_v52, %v10993_v21  ;;  %v11663_v21 = vld [vmem:[%s15413_s5 + $0x794] sm:$0xf0] }
 0x68a   :  { %v5925_v0 = vadd.f32 %v13920_v14, %v5857_v13 }
 0x68b   :  { %7792 = vmatpush.bf16.msrb.mxu2 %v10898_v43  ;;  %7801 = vmatpush.bf16.msrb.mxu3 %v10994_v51  ;;  %v15542_v43 = vld [vmem:[#allocation31_spill] sm:$0xff]  ;;  %v5273_v51 = vadd.f32 %v5197_v6, %v13267_v63  ;;  %v11661_v63 = vld [vmem:[%s15413_s5 + $0x784] sm:$0xf0] }
 0x68c   :  { %v5989_v7 = vmax.f32 %v5925_v0, 0.0  ;;  %v15541_v0 = vld [vmem:[#allocation32_spill] sm:$0xff]  ;;  %v10938_v6 = vor.u32 %v11661_v63, %v10937_v16 }
 0x68d   :  { %v4100_v52 = vadd.f32 %v15542_v43, %v15541_v0 }
 0x68e   :  { %v14437_v41 = vmax.f32 %v5988_v22, %v5989_v7  ;;  %v11681_v22 = vld [vmem:[%s15415_s7 + $0x28] sm:$0xff] }
 0x68f   :  { %v5779_v29 = vpop.f32.mrf.mxu1  ;;  %7793 = vmatpush.bf16.msrb.mxu2 %v10890_v28  ;;  %7802 = vmatpush.bf16.msrb.mxu3 %v10986_v23  ;;  %v11689_v7 = vld [vmem:[%s15415_s7 + $0x68] sm:$0xff]  ;;  %v4687_v25 = vadd.f32 %v15543_v46, %v4100_v52 }
 0x690   :  { %v5858_v60 = vadd.f32 %v5779_v29, %v14223_v47  ;;  %v10978_v47 = vor.u32 %v11671_v20, %v10977_v57  ;;  %8160 = vmatpush.bf16.msrb.mxu0 %v11681_v22  ;;  %8173 = vmatpush.bf16.msrb.mxu1 %v11689_v7  ;;  %v5204_v57 = vpop.f32.mrf.mxu0  ;;  %v11428_v7 = vld [vmem:[%s15413_s5 + $0x44] sm:$0xf] }
 0x691   :  { %v5274_v29 = vadd.f32 %v5199_v39, %v4687_v25 }
 0x692   :  { %v5926_v2 = vadd.f32 %v13920_v14, %v5858_v60  ;;  %v14509_v60 = vld [vmem:[%s15412_s4] ss:$0 sm:$0xff] }
 0x693   :  { %7794 = vmatpush.bf16.msrb.mxu2 %v10882_v19  ;;  %7803 = vmatpush.bf16.msrb.mxu3 %v10978_v47 }
 0x694   :  { %v5990_v55 = vmax.f32 %v5926_v2, 0.0 }
 0x697   :  { %v5781_v3 = vpop.f32.mrf.mxu1  ;;  %7795 = vmatpush.bf16.msrb.mxu2 %v10874_v18  ;;  %7804 = vmatpush.bf16.msrb.mxu3 %v10970_v30  ;;  %v10035_v18 = vld [vmem:[%s15413_s5 + $0x78] sm:$0xf0]  ;;  %v15544_v30 = vld [vmem:[#allocation35_spill] sm:$0xff] }
 0x698   :  { %v5859_v36 = vadd.f32 %v5781_v3, %v14248_v8  ;;  %v10953_v8 = vld [vmem:[%s15413_s5 + $0x7a0] sm:$0xf]  ;;  %v10038_v39 = vor.u32 %v11434_v33, %v10035_v18  ;;  %v15549_v33 = vld [vmem:[#allocation38_spill] sm:$0xff] }
 0x699   :  { %v10954_v61 = vor.u32 %v11665_v45, %v10953_v8  ;;  %v15545_v3 = vld [vmem:[#allocation33_spill] sm:$0xff]  ;;  %v5207_v8 = vpop.f32.mrf.mxu0 }
 0x69a   :  { %v5927_v48 = vadd.f32 %v13920_v14, %v5859_v36  ;;  %v10945_v14 = vld [vmem:[%s15413_s5 + $0x790] sm:$0xf]  ;;  %v4102_v2 = vadd.f32 %v15545_v3, %v15544_v30  ;;  %v15546_v36 = vld [vmem:[#allocation36_spill] sm:$0xff]  ;;  %v9995_v30 = vld [vmem:[%s15413_s5 + $0x28] sm:$0xf0] }
 0x69b   :  { %7805 = vmatpush.bf16.msrb.mxu3 %v10962_v49  ;;  %v10946_v37 = vor.u32 %v11663_v21, %v10945_v14  ;;  %v5275_v44 = vadd.f32 %v5202_v34, %v15546_v36  ;;  %v10027_v49 = vld [vmem:[%s15413_s5 + $0x68] sm:$0xf0]  ;;  %v10019_v34 = vld [vmem:[%s15413_s5 + $0x58] sm:$0xf0] }
 0x69c   :  { %v5991_v13 = vmax.f32 %v5927_v48, 0.0  ;;  %v11432_v48 = vld [vmem:[%s15413_s5 + $0x64] sm:$0xf]  ;;  %v10091_v3 = vld [vmem:[%s15413_s5 + $0xe8] sm:$0xf0] }
 0x69d   :  { %v10030_v45 = vor.u32 %v11432_v48, %v10027_v49 }
 0x69e   :  { %v14482_v54 = vmax.f32 %v5990_v55, %v5991_v13  ;;  %v15547_v55 = vld [vmem:[#allocation37_spill] sm:$0xff] }
 0x69f   :  { %v5784_v15 = vpop.f32.mrf.mxu1  ;;  %7806 = vmatpush.bf16.msrb.mxu3 %v10954_v61  ;;  %v4689_v13 = vadd.f32 %v15547_v55, %v4102_v2  ;;  %v15551_v2 = vld [vmem:[#allocation41_spill] sm:$0xff]  ;;  %v11422_v55 = vld [vmem:[%s15413_s5 + $0x14] sm:$0xf] }
 0x6a0   :  { %v5860_v28 = vadd.f32 %v5784_v15, %v5273_v51  ;;  %v11430_v15 = vld [vmem:[%s15413_s5 + $0x54] sm:$0xf] }
 0x6a1   :  { %v5276_v61 = vadd.f32 %v5204_v57, %v4689_v13  ;;  %v10022_v51 = vor.u32 %v11430_v15, %v10019_v34  ;;  %v5209_v16 = vpop.f32.mrf.mxu0 }
 0x6a2   :  { %v5928_v10 = vadd.f32 %v14509_v60, %v5860_v28 }
 0x6a3   :  { %7807 = vmatpush.bf16.msrb.mxu3 %v10946_v37  ;;  %v10011_v37 = vld [vmem:[%s15413_s5 + $0x48] sm:$0xf0] }
 0x6a4   :  { %v5992_v20 = vmax.f32 %v5928_v10, 0.0  ;;  %v10014_v28 = vor.u32 %v11428_v7, %v10011_v37  ;;  %v9979_v37 = vld [vmem:[%s15413_s5 + $0x8] sm:$0xf0] }
 0x6a7   :  { %v5786_v23 = vpop.f32.mrf.mxu1  ;;  %7808 = vmatpush.bf16.msrb.mxu3 %v10938_v6  ;;  %v10003_v6 = vld [vmem:[%s15413_s5 + $0x38] sm:$0xf0] }
 0x6a8   :  { %v5861_v24 = vadd.f32 %v5786_v23, %v5274_v29  ;;  %v11450_v29 = vld [vmem:[%s15413_s5 + $0xf4] sm:$0xf]  ;;  %v10099_v23 = vld [vmem:[%s15413_s5 + $0xf8] sm:$0xf0] }
 0x6aa   :  { %v5929_v19 = vadd.f32 %v14509_v60, %v5861_v24 }
 0x6ac   :  { %v5993_v47 = vmax.f32 %v5929_v19, 0.0 }
 0x6ae   :  { %v6037_v9 = vmax.f32 %v5992_v20, %v5993_v47  ;;  %v10102_v20 = vor.u32 %v11450_v29, %v10099_v23  ;;  %v11424_v47 = vld [vmem:[%s15413_s5 + $0x24] sm:$0xf]  ;;  %v10163_v29 = vld [vmem:[%s15413_s5 + $0x178] sm:$0xf0]  ;;  %v11442_v23 = vld [vmem:[%s15413_s5 + $0xb4] sm:$0xf] }
 0x6af   :  { %v5789_v17 = vpop.f32.mrf.mxu1  ;;  %v9998_v48 = vor.u32 %v11424_v47, %v9995_v30 }
 0x6b0   :  { %v6038_v32 = vmax.f32 %v14320_v56, %v6037_v9  ;;  %v5862_v56 = vadd.f32 %v5789_v17, %v5275_v44  ;;  %v15548_v9 = vld [vmem:[#allocation39_spill] sm:$0xff]  ;;  %v15550_v17 = vld [vmem:[#allocation40_spill] sm:$0xff] }
 0x6b1   :  { %v4104_v18 = vadd.f32 %v15549_v33, %v15548_v9  ;;  %v11464_v9 = vld [vmem:[%s15413_s5 + $0x164] sm:$0xf]  ;;  %v15552_v33 = vld [vmem:[#allocation42_spill] sm:$0xff] }
 0x6b2   :  { %v14523_v35 = vpack.c.bf16 %v6038_v32, %v6038_v32  ;;  %v5930_v0 = vadd.f32 %v14509_v60, %v5862_v56  ;;  %v5277_v32 = vadd.f32 %v5207_v8, %v15550_v17  ;;  %v9987_v8 = vld [vmem:[%s15413_s5 + $0x18] sm:$0xf0]  ;;  %v11446_v56 = vld [vmem:[%s15413_s5 + $0xd4] sm:$0xf] }
 0x6b3   :  { %v4691_v36 = vadd.f32 %v15551_v2, %v4104_v18  ;;  %v4106_v18 = vadd.f32 %v13844_v11, %v15552_v33  ;;  %v15553_v17 = vld [vmem:[#allocation43_spill] sm:$0xff] }
 0x6b4   :  { %7770 = vmatmul.bf16.vlgmr.msra.gmra.mxu2 %v14523_v35  ;;  %v5994_v46 = vmax.f32 %v5930_v0, 0.0  ;;  %v5212_v0 = vpop.f32.mrf.mxu0 }
 0x6b5   :  { %7814 = vmatpush.bf16.msra.mxu2 %v10038_v39  ;;  %v5278_v13 = vadd.f32 %v5209_v16, %v4691_v36  ;;  %v4693_v36 = vadd.f32 %v13894_v5, %v4106_v18  ;;  %v11438_v5 = vld [vmem:[%s15413_s5 + $0x94] sm:$0xf] }
 0x6b7   :  { %v5791_v14 = vpop.f32.mrf.mxu1  ;;  %v7719_v21 = vpop.f32.mrf.mxu2 }
 0x6b8   :  { %v5863_v43 = vadd.f32 %v5791_v14, %v5276_v61  ;;  %v7720_v52 = vadd.f32 %v7719_v21, %v14299_v38  ;;  %v11426_v38 = vld [vmem:[%s15413_s5 + $0x34] sm:$0xf] }
 0x6b9   :  { %7815 = vmatpush.bf16.msra.mxu2 %v10030_v45  ;;  %v10006_v19 = vor.u32 %v11426_v38, %v10003_v6  ;;  %v10083_v45 = vld [vmem:[%s15413_s5 + $0xd8] sm:$0xf0] }
 0x6ba   :  { %v5931_v22 = vadd.f32 %v14509_v60, %v5863_v43  ;;  %v9990_v43 = vor.u32 %v11422_v55, %v9987_v8  ;;  %v10051_v8 = vld [vmem:[%s15413_s5 + $0x98] sm:$0xf0] }
 0x6bc   :  { %v5995_v25 = vmax.f32 %v5931_v22, 0.0  ;;  %v11420_v22 = vld [vmem:[%s15413_s5 + $0x4] sm:$0xf]  ;;  %v5214_v2 = vpop.f32.mrf.mxu0 }
 0x6bd   :  { %7816 = vmatpush.bf16.msra.mxu2 %v10022_v51  ;;  %v10086_v51 = vor.u32 %v11446_v56, %v10083_v45  ;;  %v9982_v38 = vor.u32 %v11420_v22, %v9979_v37  ;;  %v5280_v55 = vadd.f32 %v5214_v2, %v4693_v36  ;;  %v11436_v22 = vld [vmem:[%s15413_s5 + $0x84] sm:$0xf] }
 0x6be   :  { %v6040_v63 = vmax.f32 %v5994_v46, %v5995_v25  ;;  %v11444_v46 = vld [vmem:[%s15413_s5 + $0xc4] sm:$0xf] }
 0x6bf   :  { %v5794_v10 = vpop.f32.mrf.mxu1  ;;  %v7721_v24 = vpop.f32.mrf.mxu2  ;;  %v11680_v37 = vld [vmem:[%s15415_s7 + $0x20] sm:$0xff] }
 0x6c0   :  { %v6041_v57 = vmax.f32 %v14380_v42, %v6040_v63  ;;  %v11448_v42 = vld [vmem:[%s15413_s5 + $0xe4] sm:$0xf]  ;;  %v5864_v44 = vadd.f32 %v5794_v10, %v5277_v32  ;;  %v11466_v63 = vld [vmem:[%s15413_s5 + $0x174] sm:$0xf]  ;;  %v10067_v10 = vld [vmem:[%s15413_s5 + $0xb8] sm:$0xf0]  ;;  %v5279_v32 = vadd.f32 %v5212_v0, %v15553_v17  ;;  %v10054_v0 = vor.u32 %v11438_v5, %v10051_v8  ;;  %8161 = vmatpush.bf16.msrb.mxu0 %v11680_v37 }
 0x6c1   :  { %7817 = vmatpush.bf16.msra.mxu2 %v10014_v28  ;;  %v10094_v49 = vor.u32 %v11448_v42, %v10091_v3  ;;  %v10070_v47 = vor.u32 %v11442_v23, %v10067_v10  ;;  %v10155_v42 = vld [vmem:[%s15413_s5 + $0x168] sm:$0xf0]  ;;  %v11454_v17 = vld [vmem:[%s15413_s5 + $0x114] sm:$0xf] }
 0x6c2   :  { %v14567_v39 = vpack.c.bf16 %v6041_v57, %v6041_v57  ;;  %v5932_v34 = vadd.f32 %v14509_v60, %v5864_v44  ;;  %v10059_v3 = vld [vmem:[%s15413_s5 + $0xa8] sm:$0xf0]  ;;  %v10158_v44 = vor.u32 %v11464_v9, %v10155_v42  ;;  %v11480_v9 = vld [vmem:[%s15413_s5 + $0x1e4] sm:$0xf]  ;;  %v11478_v42 = vld [vmem:[%s15413_s5 + $0x1d4] sm:$0xf] }
 0x6c4   :  { %7783 = vmatmul.bf16.vlgmr.msra.gmra.mxu3 %v14567_v39  ;;  %v5996_v25 = vmax.f32 %v5932_v34, 0.0 }
 0x6c5   :  { %7818 = vmatpush.bf16.msra.mxu2 %v10006_v19  ;;  %7827 = vmatpush.bf16.msra.mxu3 %v10102_v20  ;;  %v10166_v20 = vor.u32 %v11466_v63, %v10163_v29  ;;  %v10131_v63 = vld [vmem:[%s15413_s5 + $0x138] sm:$0xf0] }
 0x6c6   :  { %v10227_v29 = vld [vmem:[%s15413_s5 + $0x1f8] sm:$0xf0] }
 0x6c7   :  { %v5796_v61 = vpop.f32.mrf.mxu1  ;;  %v7732_v15 = vpop.f32.mrf.mxu3 }
 0x6c8   :  { %v5865_v14 = vadd.f32 %v5796_v61, %v5278_v13  ;;  %v7733_v21 = vadd.f32 %v7732_v15, %v7720_v52  ;;  %v10075_v52 = vld [vmem:[%s15413_s5 + $0xc8] sm:$0xf0]  ;;  %v10147_v13 = vld [vmem:[%s15413_s5 + $0x158] sm:$0xf0] }
 0x6c9   :  { %7819 = vmatpush.bf16.msra.mxu2 %v9998_v48  ;;  %7828 = vmatpush.bf16.msra.mxu3 %v10094_v49  ;;  %v10078_v16 = vor.u32 %v11444_v46, %v10075_v52  ;;  %v11462_v49 = vld [vmem:[%s15413_s5 + $0x154] sm:$0xf]  ;;  %v11688_v46 = vld [vmem:[%s15415_s7 + $0x60] sm:$0xff] }
 0x6ca   :  { %v5933_v7 = vadd.f32 %v14509_v60, %v5865_v14  ;;  %v10150_v14 = vor.u32 %v11462_v49, %v10147_v13  ;;  %8174 = vmatpush.bf16.msrb.mxu1 %v11688_v46  ;;  %v10203_v49 = vld [vmem:[%s15413_s5 + $0x1c8] sm:$0xf0]  ;;  %v10291_v13 = vld [vmem:[%s15413_s5 + $0x278] sm:$0xf0] }
 0x6cc   :  { %v5997_v28 = vmax.f32 %v5933_v7, 0.0 }
 0x6cd   :  { %7820 = vmatpush.bf16.msra.mxu2 %v9990_v43  ;;  %7829 = vmatpush.bf16.msra.mxu3 %v10086_v51  ;;  %v11460_v43 = vld [vmem:[%s15413_s5 + $0x144] sm:$0xf]  ;;  %v10139_v51 = vld [vmem:[%s15413_s5 + $0x148] sm:$0xf0] }
 0x6ce   :  { %v6043_v6 = vmax.f32 %v5996_v25, %v5997_v28  ;;  %v10142_v28 = vor.u32 %v11460_v43, %v10139_v51  ;;  %v11472_v51 = vld [vmem:[%s15413_s5 + $0x1a4] sm:$0xf] }
 0x6cf   :  { %v5799_v24 = vpop.f32.mrf.mxu1  ;;  %v7734_v57 = vpop.f32.mrf.mxu3 }
 0x6d0   :  { %v6044_v19 = vmax.f32 %v14437_v41, %v6043_v6  ;;  %v11440_v41 = vld [vmem:[%s15413_s5 + $0xa4] sm:$0xf]  ;;  %v5866_v11 = vadd.f32 %v5799_v24, %v5279_v32  ;;  %v11482_v6 = vld [vmem:[%s15413_s5 + $0x1f4] sm:$0xf]  ;;  %v10115_v32 = vld [vmem:[%s15413_s5 + $0x118] sm:$0xf0] }
 0x6d1   :  { %7821 = vmatpush.bf16.msra.mxu2 %v9982_v38  ;;  %7830 = vmatpush.bf16.msra.mxu3 %v10078_v16  ;;  %v10062_v48 = vor.u32 %v11440_v41, %v10059_v3  ;;  %v11458_v38 = vld [vmem:[%s15413_s5 + $0x134] sm:$0xf]  ;;  %v10230_v57 = vor.u32 %v11482_v6, %v10227_v29  ;;  %v10118_v2 = vor.u32 %v11454_v17, %v10115_v32  ;;  %v10259_v6 = vld [vmem:[%s15413_s5 + $0x238] sm:$0xf0] }
 0x6d2   :  { %v14625_v30 = vpack.c.bf16 %v6044_v19, %v6044_v19  ;;  %v5934_v61 = vadd.f32 %v14509_v60, %v5866_v11  ;;  %v10134_v24 = vor.u32 %v11458_v38, %v10131_v63  ;;  %v11456_v19 = vld [vmem:[%s15413_s5 + $0x124] sm:$0xf]  ;;  %v11490_v63 = vld [vmem:[%s15413_s5 + $0x234] sm:$0xf]  ;;  %v10243_v32 = vld [vmem:[%s15413_s5 + $0x218] sm:$0xf0] }
 0x6d3   :  { %v11452_v11 = vld [vmem:[%s15413_s5 + $0x104] sm:$0xf]  ;;  %v11514_v29 = vld [vmem:[%s15413_s5 + $0x2f4] sm:$0xf] }
 0x6d4   :  { %7796 = vmatmul.bf16.vlgmr.msrb.gmra.mxu2 %v14625_v30  ;;  %v5998_v52 = vmax.f32 %v5934_v61, 0.0  ;;  %v10195_v61 = vld [vmem:[%s15413_s5 + $0x1b8] sm:$0xf0]  ;;  %v11468_v38 = vld [vmem:[%s15413_s5 + $0x184] sm:$0xf] }
 0x6d5   :  { %7840 = vmatpush.bf16.msrb.mxu2 %v10166_v20  ;;  %7831 = vmatpush.bf16.msra.mxu3 %v10070_v47  ;;  %v10123_v47 = vld [vmem:[%s15413_s5 + $0x128] sm:$0xf0]  ;;  %v11486_v17 = vld [vmem:[%s15413_s5 + $0x214] sm:$0xf] }
 0x6d6   :  { %v10126_v33 = vor.u32 %v11456_v19, %v10123_v47  ;;  %v11488_v19 = vld [vmem:[%s15413_s5 + $0x224] sm:$0xf]  ;;  %v10251_v47 = vld [vmem:[%s15413_s5 + $0x228] sm:$0xf0] }
 0x6d7   :  { %v5801_v56 = vpop.f32.mrf.mxu1  ;;  %v7745_v45 = vpop.f32.mrf.mxu2 }
 0x6d8   :  { %v5867_v15 = vadd.f32 %v5801_v56, %v5280_v55  ;;  %v7746_v34 = vadd.f32 %v7745_v45, %v7733_v21  ;;  %v10043_v21 = vld [vmem:[%s15413_s5 + $0x88] sm:$0xf0]  ;;  %v11498_v55 = vld [vmem:[%s15413_s5 + $0x274] sm:$0xf] }
 0x6d9   :  { %7841 = vmatpush.bf16.msrb.mxu2 %v10158_v44  ;;  %7832 = vmatpush.bf16.msra.mxu3 %v10062_v48  ;;  %v10107_v44 = vld [vmem:[%s15413_s5 + $0x108] sm:$0xf0]  ;;  %v11476_v48 = vld [vmem:[%s15413_s5 + $0x1c4] sm:$0xf]  ;;  %v10294_v56 = vor.u32 %v11498_v55, %v10291_v13  ;;  %v11474_v45 = vld [vmem:[%s15413_s5 + $0x1b4] sm:$0xf] }
 0x6da   :  { %v5935_v7 = vadd.f32 %v14509_v60, %v5867_v15  ;;  %v10046_v60 = vor.u32 %v11436_v22, %v10043_v21  ;;  %v10110_v5 = vor.u32 %v11452_v11, %v10107_v44  ;;  %v10206_v8 = vor.u32 %v11476_v48, %v10203_v49  ;;  %v10187_v22 = vld [vmem:[%s15413_s5 + $0x1a8] sm:$0xf0]  ;;  %v10275_v21 = vld [vmem:[%s15413_s5 + $0x258] sm:$0xf0]  ;;  %v11508_v44 = vld [vmem:[%s15413_s5 + $0x2c4] sm:$0xf] }
 0x6db   :  { %v10190_v37 = vor.u32 %v11472_v51, %v10187_v22  ;;  %v10235_v11 = vld [vmem:[%s15413_s5 + $0x208] sm:$0xf0]  ;;  %v11530_v48 = vld [vmem:[%s15413_s5 + $0x374] sm:$0xf]  ;;  %v10419_v49 = vld [vmem:[%s15413_s5 + $0x378] sm:$0xf0] }
 0x6dc   :  { %v5999_v25 = vmax.f32 %v5935_v7, 0.0  ;;  %v11494_v7 = vld [vmem:[%s15413_s5 + $0x254] sm:$0xf]  ;;  %v10403_v51 = vld [vmem:[%s15413_s5 + $0x358] sm:$0xf0] }
 0x6dd   :  { %7842 = vmatpush.bf16.msrb.mxu2 %v10150_v14  ;;  %7833 = vmatpush.bf16.msra.mxu3 %v10054_v0  ;;  %v10283_v14 = vld [vmem:[%s15413_s5 + $0x268] sm:$0xf0]  ;;  %v10198_v0 = vor.u32 %v11474_v45, %v10195_v61  ;;  %v10278_v46 = vor.u32 %v11494_v7, %v10275_v21  ;;  %v11528_v45 = vld [vmem:[%s15413_s5 + $0x364] sm:$0xf]  ;;  %v11502_v21 = vld [vmem:[%s15413_s5 + $0x294] sm:$0xf] }
 0x6de   :  { %v6046_v16 = vmax.f32 %v5998_v52, %v5999_v25  ;;  %v11470_v52 = vld [vmem:[%s15413_s5 + $0x194] sm:$0xf]  ;;  %v10179_v25 = vld [vmem:[%s15413_s5 + $0x198] sm:$0xf0]  ;;  %v10411_v61 = vld [vmem:[%s15413_s5 + $0x368] sm:$0xf0] }
 0x6df   :  { %v7747_v23 = vpop.f32.mrf.mxu2 }
 0x6e0   :  { %v6047_v10 = vmax.f32 %v14482_v54, %v6046_v16  ;;  %v10219_v54 = vld [vmem:[%s15413_s5 + $0x1e8] sm:$0xf0]  ;;  %v10355_v23 = vld [vmem:[%s15413_s5 + $0x2f8] sm:$0xf0] }
 0x6e1   :  { %7843 = vmatpush.bf16.msrb.mxu2 %v10142_v28  ;;  %7834 = vmatpush.bf16.msra.mxu3 %v10046_v60  ;;  %v10222_v18 = vor.u32 %v11480_v9, %v10219_v54  ;;  %v11492_v28 = vld [vmem:[%s15413_s5 + $0x244] sm:$0xf]  ;;  %v10171_v16 = vld [vmem:[%s15413_s5 + $0x188] sm:$0xf0] }
 0x6e2   :  { %v14686_v20 = vpack.c.bf16 %v6047_v10, %v6047_v10  ;;  %v10174_v10 = vor.u32 %v11468_v38, %v10171_v16  ;;  %v11512_v9 = vld [vmem:[%s15413_s5 + $0x2e4] sm:$0xf]  ;;  %v10347_v54 = vld [vmem:[%s15413_s5 + $0x2e8] sm:$0xf0]  ;;  %v11546_v38 = vld [vmem:[%s15413_s5 + $0x3f4] sm:$0xf] }
 0x6e3   :  { %v10483_v16 = vld [vmem:[%s15413_s5 + $0x3f8] sm:$0xf0] }
 0x6e4   :  { %7809 = vmatmul.bf16.vlgmr.msrb.gmra.mxu3 %v14686_v20  ;;  %7822 = vmatmul.bf16.vlgmr.msra.gmra.mxu2 %v13547_v4  ;;  %v10211_v4 = vld [vmem:[%s15413_s5 + $0x1d8] sm:$0xf0] }
 0x6e5   :  { %7844 = vmatpush.bf16.msrb.mxu2 %v10134_v24  ;;  %7853 = vmatpush.bf16.msrb.mxu3 %v10230_v57  ;;  %v10214_v36 = vor.u32 %v11478_v42, %v10211_v4  ;;  %v10262_v24 = vor.u32 %v11490_v63, %v10259_v6  ;;  %v10358_v57 = vor.u32 %v11514_v29, %v10355_v23  ;;  %v11510_v42 = vld [vmem:[%s15413_s5 + $0x2d4] sm:$0xf]  ;;  %v10339_v4 = vld [vmem:[%s15413_s5 + $0x2d8] sm:$0xf0] }
 0x6e6   :  { %v11679_v63 = vld [vmem:[%s15415_s7 + $0x18] sm:$0xff]  ;;  %v10486_v23 = vor.u32 %v11546_v38, %v10483_v16 }
 0x6e7   :  { %v7758_v41 = vpop.f32.mrf.mxu3  ;;  %8162 = vmatpush.bf16.msrb.mxu0 %v11679_v63  ;;  %v11552_v63 = vld [vmem:[%s15413_s5 + $0x424] sm:$0xf] }
 0x6e8   :  { %v14711_v3 = vadd.f32 %v7758_v41, %v7746_v34  ;;  %v11496_v34 = vld [vmem:[%s15413_s5 + $0x264] sm:$0xf]  ;;  %v10246_v41 = vor.u32 %v11486_v17, %v10243_v32  ;;  %v11542_v17 = vld [vmem:[%s15413_s5 + $0x3d4] sm:$0xf]  ;;  %v10467_v32 = vld [vmem:[%s15413_s5 + $0x3d8] sm:$0xf0] }
 0x6e9   :  { %7845 = vmatpush.bf16.msrb.mxu2 %v10126_v33  ;;  %7854 = vmatpush.bf16.msrb.mxu3 %v10222_v18  ;;  %v10286_v43 = vor.u32 %v11496_v34, %v10283_v14  ;;  %v10254_v33 = vor.u32 %v11488_v19, %v10251_v47  ;;  %v10350_v18 = vor.u32 %v11512_v9, %v10347_v54  ;;  %v11504_v14 = vld [vmem:[%s15413_s5 + $0x2a4] sm:$0xf]  ;;  %v10475_v19 = vld [vmem:[%s15413_s5 + $0x3e8] sm:$0xf0]  ;;  %v11687_v47 = vld [vmem:[%s15415_s7 + $0x58] sm:$0xff] }
 0x6ea   :  { %v10414_v34 = vor.u32 %v11528_v45, %v10411_v61  ;;  %8175 = vmatpush.bf16.msrb.mxu1 %v11687_v47  ;;  %v11536_v61 = vld [vmem:[%s15413_s5 + $0x3a4] sm:$0xf]  ;;  %v11574_v47 = vld [vmem:[%s15413_s5 + $0x4d4] sm:$0xf] }
 0x6ed   :  { %7846 = vmatpush.bf16.msrb.mxu2 %v10118_v2  ;;  %7855 = vmatpush.bf16.msrb.mxu3 %v10214_v36  ;;  %v10342_v2 = vor.u32 %v11510_v42, %v10339_v4  ;;  %v11484_v36 = vld [vmem:[%s15413_s5 + $0x204] sm:$0xf]  ;;  %v10470_v4 = vor.u32 %v11542_v17, %v10467_v32  ;;  %v10491_v32 = vld [vmem:[%s15413_s5 + $0x408] sm:$0xf0] }
 0x6ee   :  { %v10238_v55 = vor.u32 %v11484_v36, %v10235_v11  ;;  %v11540_v36 = vld [vmem:[%s15413_s5 + $0x3c4] sm:$0xf]  ;;  %v11562_v11 = vld [vmem:[%s15413_s5 + $0x474] sm:$0xf] }
 0x6ef   :  { %v7760_v15 = vpop.f32.mrf.mxu3  ;;  %v11548_v17 = vld [vmem:[%s15413_s5 + $0x404] sm:$0xf] }
 0x6f1   :  { %7847 = vmatpush.bf16.msrb.mxu2 %v10110_v5  ;;  %7856 = vmatpush.bf16.msrb.mxu3 %v10206_v8  ;;  %v10422_v5 = vor.u32 %v11530_v48, %v10419_v49  ;;  %v11506_v8 = vld [vmem:[%s15413_s5 + $0x2b4] sm:$0xf] }
 0x6f4   :  { %7835 = vmatmul.bf16.vlgmr.msra.gmra.mxu3 %v13589_v59  ;;  %7848 = vmatmul.bf16.vlgmr.msrb.gmra.mxu2 %v13606_v12  ;;  %v10267_v59 = vld [vmem:[%s15413_s5 + $0x248] sm:$0xf0]  ;;  %v10182_v12 = vor.u32 %v11470_v52, %v10179_v25  ;;  %v11500_v25 = vld [vmem:[%s15413_s5 + $0x284] sm:$0xf] }
 0x6f5   :  { %7866 = vmatpush.bf16.msra.mxu2 %v10294_v56  ;;  %7857 = vmatpush.bf16.msrb.mxu3 %v10198_v0  ;;  %v10270_v60 = vor.u32 %v11492_v28, %v10267_v59  ;;  %v10323_v56 = vld [vmem:[%s15413_s5 + $0x2b8] sm:$0xf0]  ;;  %v10315_v0 = vld [vmem:[%s15413_s5 + $0x2a8] sm:$0xf0] }
 0x6f6   :  { %v10326_v15 = vor.u32 %v11506_v8, %v10323_v56  ;;  %v10318_v22 = vor.u32 %v11504_v14, %v10315_v0  ;;  %v10299_v59 = vld [vmem:[%s15413_s5 + $0x288] sm:$0xf0]  ;;  %v10531_v14 = vld [vmem:[%s15413_s5 + $0x458] sm:$0xf0] }
 0x6f7   :  { %v10302_v6 = vor.u32 %v11500_v25, %v10299_v59  ;;  %v10539_v8 = vld [vmem:[%s15413_s5 + $0x468] sm:$0xf0]  ;;  %v10515_v25 = vld [vmem:[%s15413_s5 + $0x438] sm:$0xf0] }
 0x6f8   :  { %v10611_v59 = vld [vmem:[%s15413_s5 + $0x4f8] sm:$0xf0] }
 0x6f9   :  { %7867 = vmatpush.bf16.msra.mxu2 %v10286_v43  ;;  %7858 = vmatpush.bf16.msrb.mxu3 %v10190_v37  ;;  %v11526_v43 = vld [vmem:[%s15413_s5 + $0x354] sm:$0xf]  ;;  %v10307_v37 = vld [vmem:[%s15413_s5 + $0x298] sm:$0xf0] }
 0x6fa   :  { %v10406_v7 = vor.u32 %v11526_v43, %v10403_v51  ;;  %v10310_v52 = vor.u32 %v11502_v21, %v10307_v37  ;;  %v11534_v51 = vld [vmem:[%s15413_s5 + $0x394] sm:$0xf] }
 0x6fd   :  { %7868 = vmatpush.bf16.msra.mxu2 %v10278_v46  ;;  %7859 = vmatpush.bf16.msrb.mxu3 %v10182_v12  ;;  %v11524_v46 = vld [vmem:[%s15413_s5 + $0x344] sm:$0xf]  ;;  %v11522_v12 = vld [vmem:[%s15413_s5 + $0x334] sm:$0xf] }
 0x701   :  { %7869 = vmatpush.bf16.msra.mxu2 %v10270_v60  ;;  %7860 = vmatpush.bf16.msrb.mxu3 %v10174_v10  ;;  %v10387_v60 = vld [vmem:[%s15413_s5 + $0x338] sm:$0xf0]  ;;  %v11520_v10 = vld [vmem:[%s15413_s5 + $0x324] sm:$0xf] }
 0x702   :  { %v10390_v29 = vor.u32 %v11522_v12, %v10387_v60 }
 0x704   :  { %7861 = vmatmul.bf16.vlgmr.msrb.gmra.mxu3 %v13621_v26  ;;  %v10331_v26 = vld [vmem:[%s15413_s5 + $0x2c8] sm:$0xf0] }
 0x705   :  { %7870 = vmatpush.bf16.msra.mxu2 %v10262_v24  ;;  %7879 = vmatpush.bf16.msra.mxu3 %v10358_v57  ;;  %v10334_v13 = vor.u32 %v11508_v44, %v10331_v26  ;;  %v10379_v24 = vld [vmem:[%s15413_s5 + $0x328] sm:$0xf0]  ;;  %v11544_v57 = vld [vmem:[%s15413_s5 + $0x3e4] sm:$0xf]  ;;  %v10547_v44 = vld [vmem:[%s15413_s5 + $0x478] sm:$0xf0] }
 0x706   :  { %v10382_v9 = vor.u32 %v11520_v10, %v10379_v24  ;;  %v10478_v54 = vor.u32 %v11544_v57, %v10475_v19  ;;  %v10550_v49 = vor.u32 %v11562_v11, %v10547_v44  ;;  %v11550_v57 = vld [vmem:[%s15413_s5 + $0x414] sm:$0xf]  ;;  %v10499_v19 = vld [vmem:[%s15413_s5 + $0x418] sm:$0xf0] }
 0x707   :  { %v11570_v44 = vld [vmem:[%s15413_s5 + $0x4b4] sm:$0xf] }
 0x709   :  { %7871 = vmatpush.bf16.msra.mxu2 %v10254_v33  ;;  %7880 = vmatpush.bf16.msra.mxu3 %v10350_v18  ;;  %v11518_v33 = vld [vmem:[%s15413_s5 + $0x314] sm:$0xf]  ;;  %v10371_v18 = vld [vmem:[%s15413_s5 + $0x318] sm:$0xf0] }
 0x70a   :  { %v10374_v42 = vor.u32 %v11518_v33, %v10371_v18  ;;  %v10502_v33 = vor.u32 %v11550_v57, %v10499_v19  ;;  %v11582_v57 = vld [vmem:[%s15413_s5 + $0x514] sm:$0xf]  ;;  %v10627_v19 = vld [vmem:[%s15413_s5 + $0x518] sm:$0xf0] }
 0x70d   :  { %7872 = vmatpush.bf16.msra.mxu2 %v10246_v41  ;;  %7881 = vmatpush.bf16.msra.mxu3 %v10342_v2  ;;  %v11516_v41 = vld [vmem:[%s15413_s5 + $0x304] sm:$0xf]  ;;  %v10363_v2 = vld [vmem:[%s15413_s5 + $0x308] sm:$0xf0] }
 0x70e   :  { %v10366_v26 = vor.u32 %v11516_v41, %v10363_v2  ;;  %v11594_v41 = vld [vmem:[%s15413_s5 + $0x574] sm:$0xf]  ;;  %v10675_v2 = vld [vmem:[%s15413_s5 + $0x578] sm:$0xf0] }
 0x70f   :  { %v10678_v11 = vor.u32 %v11594_v41, %v10675_v2  ;;  %v10803_v41 = vld [vmem:[%s15413_s5 + $0x678] sm:$0xf0] }
 0x711   :  { %7873 = vmatpush.bf16.msra.mxu2 %v10238_v55  ;;  %7882 = vmatpush.bf16.msra.mxu3 %v10334_v13  ;;  %v11538_v55 = vld [vmem:[%s15413_s5 + $0x3b4] sm:$0xf]  ;;  %v10451_v13 = vld [vmem:[%s15413_s5 + $0x3b8] sm:$0xf0] }
 0x712   :  { %v10454_v56 = vor.u32 %v11538_v55, %v10451_v13  ;;  %v11677_v13 = vld [vmem:[%s15415_s7 + $0x8] sm:$0xff] }
 0x714   :  { %7874 = vmatmul.bf16.vlgmr.msra.gmra.mxu2 %v13861_v1  ;;  %v10395_v1 = vld [vmem:[%s15413_s5 + $0x348] sm:$0xf0] }
 0x715   :  { %7892 = vmatpush.bf16.msrb.mxu2 %v10422_v5  ;;  %7883 = vmatpush.bf16.msra.mxu3 %v10326_v15  ;;  %v10398_v28 = vor.u32 %v11524_v46, %v10395_v1  ;;  %v11560_v5 = vld [vmem:[%s15413_s5 + $0x464] sm:$0xf]  ;;  %v10443_v15 = vld [vmem:[%s15413_s5 + $0x3a8] sm:$0xf0] }
 0x716   :  { %v10542_v45 = vor.u32 %v11560_v5, %v10539_v8  ;;  %v10446_v0 = vor.u32 %v11536_v61, %v10443_v15  ;;  %v11532_v46 = vld [vmem:[%s15413_s5 + $0x384] sm:$0xf]  ;;  %v10427_v1 = vld [vmem:[%s15413_s5 + $0x388] sm:$0xf0]  ;;  %v11590_v61 = vld [vmem:[%s15413_s5 + $0x554] sm:$0xf] }
 0x717   :  { %v10430_v60 = vor.u32 %v11532_v46, %v10427_v1  ;;  %v10659_v15 = vld [vmem:[%s15413_s5 + $0x558] sm:$0xf0]  ;;  %v10555_v46 = vld [vmem:[%s15413_s5 + $0x488] sm:$0xf0]  ;;  %v11586_v1 = vld [vmem:[%s15413_s5 + $0x534] sm:$0xf] }
 0x719   :  { %7893 = vmatpush.bf16.msrb.mxu2 %v10414_v34  ;;  %7884 = vmatpush.bf16.msra.mxu3 %v10318_v22  ;;  %v11558_v34 = vld [vmem:[%s15413_s5 + $0x454] sm:$0xf]  ;;  %v10435_v22 = vld [vmem:[%s15413_s5 + $0x398] sm:$0xf0] }
 0x71a   :  { %v10534_v43 = vor.u32 %v11558_v34, %v10531_v14  ;;  %v10438_v21 = vor.u32 %v11534_v51, %v10435_v22  ;;  %v11676_v34 = vld [vmem:[%s15415_s7] sm:$0xff]  ;;  %v10563_v51 = vld [vmem:[%s15413_s5 + $0x498] sm:$0xf0]  ;;  %v10651_v22 = vld [vmem:[%s15413_s5 + $0x548] sm:$0xf0] }
 0x71d   :  { %7894 = vmatpush.bf16.msrb.mxu2 %v10406_v7  ;;  %7885 = vmatpush.bf16.msra.mxu3 %v10310_v52  ;;  %v11556_v7 = vld [vmem:[%s15413_s5 + $0x444] sm:$0xf]  ;;  %v11554_v52 = vld [vmem:[%s15413_s5 + $0x434] sm:$0xf] }
 0x71e   :  { %v10518_v38 = vor.u32 %v11554_v52, %v10515_v25  ;;  %v10643_v52 = vld [vmem:[%s15413_s5 + $0x538] sm:$0xf0]  ;;  %v11610_v25 = vld [vmem:[%s15413_s5 + $0x5f4] sm:$0xf] }
 0x721   :  { %7895 = vmatpush.bf16.msrb.mxu2 %v10398_v28  ;;  %7886 = vmatpush.bf16.msra.mxu3 %v10302_v6  ;;  %v11578_v28 = vld [vmem:[%s15413_s5 + $0x4f4] sm:$0xf]  ;;  %v10507_v6 = vld [vmem:[%s15413_s5 + $0x428] sm:$0xf0] }
 0x722   :  { %v10614_v16 = vor.u32 %v11578_v28, %v10611_v59  ;;  %v10510_v10 = vor.u32 %v11552_v63, %v10507_v6  ;;  %v10739_v28 = vld [vmem:[%s15413_s5 + $0x5f8] sm:$0xf0]  ;;  %v10635_v63 = vld [vmem:[%s15413_s5 + $0x528] sm:$0xf0]  ;;  %v11608_v6 = vld [vmem:[%s15413_s5 + $0x5e4] sm:$0xf] }
 0x724   :  { %7887 = vmatmul.bf16.vlgmr.msra.gmra.mxu3 %v13908_v50  ;;  %v10459_v50 = vld [vmem:[%s15413_s5 + $0x3c8] sm:$0xf0] }
 0x725   :  { %7896 = vmatpush.bf16.msrb.mxu2 %v10390_v29  ;;  %7905 = vmatpush.bf16.msrb.mxu3 %v10486_v23  ;;  %v10462_v48 = vor.u32 %v11540_v36, %v10459_v50  ;;  %v11576_v29 = vld [vmem:[%s15413_s5 + $0x4e4] sm:$0xf]  ;;  %v10603_v23 = vld [vmem:[%s15413_s5 + $0x4e8] sm:$0xf0]  ;;  %v10494_v36 = vor.u32 %v11548_v17, %v10491_v32 }
 0x726   :  { %v10606_v24 = vor.u32 %v11576_v29, %v10603_v23  ;;  %v10731_v29 = vld [vmem:[%s15413_s5 + $0x5e8] sm:$0xf0]  ;;  %v11580_v17 = vld [vmem:[%s15413_s5 + $0x504] sm:$0xf] }
 0x727   :  { %v10619_v32 = vld [vmem:[%s15413_s5 + $0x508] sm:$0xf0] }
 0x728   :  { %v10622_v2 = vor.u32 %v11580_v17, %v10619_v32  ;;  %v10755_v17 = vld [vmem:[%s15413_s5 + $0x618] sm:$0xf0]  ;;  %v11638_v32 = vld [vmem:[%s15413_s5 + $0x6d4] sm:$0xf] }
 0x729   :  { %7897 = vmatpush.bf16.msrb.mxu2 %v10382_v9  ;;  %7906 = vmatpush.bf16.msrb.mxu3 %v10478_v54  ;;  %v10595_v9 = vld [vmem:[%s15413_s5 + $0x4d8] sm:$0xf0] }
 0x72a   :  { %v10598_v18 = vor.u32 %v11574_v47, %v10595_v9  ;;  %v11606_v47 = vld [vmem:[%s15413_s5 + $0x5d4] sm:$0xf]  ;;  %v10723_v9 = vld [vmem:[%s15413_s5 + $0x5d8] sm:$0xf0] }
 0x72d   :  { %7898 = vmatpush.bf16.msrb.mxu2 %v10374_v42  ;;  %7907 = vmatpush.bf16.msrb.mxu3 %v10470_v4  ;;  %v11572_v42 = vld [vmem:[%s15413_s5 + $0x4c4] sm:$0xf]  ;;  %v11678_v4 = vld [vmem:[%s15415_s7 + $0x10] sm:$0xff] }
 0x72e   :  { %8163 = vmatpush.bf16.msrb.mxu0 %v11678_v4  ;;  %v11626_v4 = vld [vmem:[%s15413_s5 + $0x674] sm:$0xf] }
 0x731   :  { %7899 = vmatpush.bf16.msrb.mxu2 %v10366_v26  ;;  %7908 = vmatpush.bf16.msrb.mxu3 %v10462_v48  ;;  %v10579_v26 = vld [vmem:[%s15413_s5 + $0x4b8] sm:$0xf0]  ;;  %v11592_v48 = vld [vmem:[%s15413_s5 + $0x564] sm:$0xf] }
 0x732   :  { %v10582_v5 = vor.u32 %v11570_v44, %v10579_v26  ;;  %8164 = vmatpush.bf16.msrb.mxu0 %v11677_v13  ;;  %v11602_v44 = vld [vmem:[%s15413_s5 + $0x5b4] sm:$0xf]  ;;  %v10707_v26 = vld [vmem:[%s15413_s5 + $0x5b8] sm:$0xf0] }
 0x734   :  { %7900 = vmatmul.bf16.vlgmr.msrb.gmra.mxu2 %v13930_v27  ;;  %v10523_v27 = vld [vmem:[%s15413_s5 + $0x448] sm:$0xf0] }
 0x735   :  { %7918 = vmatpush.bf16.msra.mxu2 %v10550_v49  ;;  %7909 = vmatpush.bf16.msrb.mxu3 %v10454_v56  ;;  %v10526_v37 = vor.u32 %v11556_v7, %v10523_v27  ;;  %v10667_v49 = vld [vmem:[%s15413_s5 + $0x568] sm:$0xf0]  ;;  %v11568_v56 = vld [vmem:[%s15413_s5 + $0x4a4] sm:$0xf] }
 0x736   :  { %v10670_v8 = vor.u32 %v11592_v48, %v10667_v49  ;;  %8165 = vmatpush.bf16.msrb.mxu0 %v11676_v34  ;;  %v11624_v48 = vld [vmem:[%s15413_s5 + $0x664] sm:$0xf]  ;;  %v10795_v49 = vld [vmem:[%s15413_s5 + $0x668] sm:$0xf0] }
 0x737   :  { %v14989_v12 = vpop.f32.mrf.mxu2 }
 0x739   :  { %7919 = vmatpush.bf16.msra.mxu2 %v10542_v45  ;;  %7910 = vmatpush.bf16.msrb.mxu3 %v10446_v0  ;;  %v10571_v45 = vld [vmem:[%s15413_s5 + $0x4a8] sm:$0xf0]  ;;  %v10662_v0 = vor.u32 %v11590_v61, %v10659_v15  ;;  %v10787_v15 = vld [vmem:[%s15413_s5 + $0x658] sm:$0xf0] }
 0x73a   :  { %v10574_v14 = vor.u32 %v11568_v56, %v10571_v45  ;;  %v10699_v56 = vld [vmem:[%s15413_s5 + $0x5a8] sm:$0xf0] }
 0x73d   :  { %7920 = vmatpush.bf16.msra.mxu2 %v10534_v43  ;;  %7911 = vmatpush.bf16.msrb.mxu3 %v10438_v21  ;;  %v11566_v43 = vld [vmem:[%s15413_s5 + $0x494] sm:$0xf] }
 0x73e   :  { %v10566_v27 = vor.u32 %v11566_v43, %v10563_v51  ;;  %v11598_v51 = vld [vmem:[%s15413_s5 + $0x594] sm:$0xf] }
 0x73f   :  { %v7773_v54 = vpop.f32.mrf.mxu2 }
 0x740   :  { %v11686_v54 = vld [vmem:[%s15415_s7 + $0x50] sm:$0xff] }
 0x741   :  { %7921 = vmatpush.bf16.msra.mxu2 %v10526_v37  ;;  %7912 = vmatpush.bf16.msrb.mxu3 %v10430_v60  ;;  %v11564_v37 = vld [vmem:[%s15413_s5 + $0x484] sm:$0xf]  ;;  %v10646_v60 = vor.u32 %v11586_v1, %v10643_v52  ;;  %v11618_v1 = vld [vmem:[%s15413_s5 + $0x634] sm:$0xf] }
 0x742   :  { %v10558_v59 = vor.u32 %v11564_v37, %v10555_v46  ;;  %8176 = vmatpush.bf16.msrb.mxu1 %v11686_v54  ;;  %v11596_v37 = vld [vmem:[%s15413_s5 + $0x584] sm:$0xf]  ;;  %v10683_v46 = vld [vmem:[%s15413_s5 + $0x588] sm:$0xf0]  ;;  %v11614_v54 = vld [vmem:[%s15413_s5 + $0x614] sm:$0xf] }
 0x744   :  { %7913 = vmatmul.bf16.vlgmr.msrb.gmra.mxu3 %v13945_v53  ;;  %v10587_v53 = vld [vmem:[%s15413_s5 + $0x4c8] sm:$0xf0] }
 0x745   :  { %7922 = vmatpush.bf16.msra.mxu2 %v10518_v38  ;;  %7931 = vmatpush.bf16.msra.mxu3 %v10614_v16  ;;  %v10590_v50 = vor.u32 %v11572_v42, %v10587_v53  ;;  %v10742_v38 = vor.u32 %v11610_v25, %v10739_v28  ;;  %v11584_v16 = vld [vmem:[%s15413_s5 + $0x524] sm:$0xf]  ;;  %v10771_v28 = vld [vmem:[%s15413_s5 + $0x638] sm:$0xf0] }
 0x746   :  { %v11604_v42 = vld [vmem:[%s15413_s5 + $0x5c4] sm:$0xf] }
 0x747   :  { %v15049_v55 = vpop.f32.mrf.mxu3 }
 0x749   :  { %7923 = vmatpush.bf16.msra.mxu2 %v10510_v10  ;;  %7932 = vmatpush.bf16.msra.mxu3 %v10606_v24  ;;  %v10638_v10 = vor.u32 %v11584_v16, %v10635_v63  ;;  %v10734_v24 = vor.u32 %v11608_v6, %v10731_v29  ;;  %v11712_v16 = vld [vmem:[%s15414_s6] sm:$0x3]  ;;  %v10774_v6 = vor.u32 %v11618_v1, %v10771_v28  ;;  %v11650_v1 = vld [vmem:[%s15413_s5 + $0x734] sm:$0xf]  ;;  %v10995_v28 = vld [vmem:[%s15413_s5 + $0x7f8] sm:$0xf0] }
 0x74a   :  { %v6323_v63 = vperm.slane %v11712_v16, 1 }
 0x74d   :  { %7924 = vmatpush.bf16.msra.mxu2 %v10502_v33  ;;  %7933 = vmatpush.bf16.msra.mxu3 %v10598_v18  ;;  %v10630_v33 = vor.u32 %v11582_v57, %v10627_v19  ;;  %v10726_v18 = vor.u32 %v11606_v47, %v10723_v9  ;;  %v10859_v57 = vld [vmem:[%s15413_s5 + $0x6e8] sm:$0xf0] }
 0x74f   :  { %v7786_v7 = vpop.f32.mrf.mxu3 }
 0x751   :  { %7925 = vmatpush.bf16.msra.mxu2 %v10494_v36  ;;  %7934 = vmatpush.bf16.msra.mxu3 %v10590_v50  ;;  %v7772_v50 = vadd.f32 %v14989_v12, %v14711_v3  ;;  %v10710_v3 = vor.u32 %v11602_v44, %v10707_v26  ;;  %v10931_v44 = vld [vmem:[%s15413_s5 + $0x778] sm:$0xf0] }
 0x753   :  { %v7785_v13 = vadd.f32 %v15049_v55, %v7772_v50  ;;  %v11622_v55 = vld [vmem:[%s15413_s5 + $0x654] sm:$0xf]  ;;  %v11636_v50 = vld [vmem:[%s15413_s5 + $0x6c4] sm:$0xf] }
 0x754   :  { %7926 = vmatmul.bf16.vlgmr.msra.gmra.mxu2 %v14199_v62  ;;  %v11588_v62 = vld [vmem:[%s15413_s5 + $0x544] sm:$0xf]  ;;  %v10790_v43 = vor.u32 %v11622_v55, %v10787_v15  ;;  %v10827_v15 = vld [vmem:[%s15413_s5 + $0x6a8] sm:$0xf0] }
 0x755   :  { %7944 = vmatpush.bf16.msrb.mxu2 %v10678_v11  ;;  %7935 = vmatpush.bf16.msra.mxu3 %v10582_v5  ;;  %v10654_v21 = vor.u32 %v11588_v62, %v10651_v22  ;;  %v10806_v11 = vor.u32 %v11626_v4, %v10803_v41  ;;  %v10798_v5 = vor.u32 %v11624_v48, %v10795_v49  ;;  %v10691_v62 = vld [vmem:[%s15413_s5 + $0x598] sm:$0xf0]  ;;  %v11620_v22 = vld [vmem:[%s15413_s5 + $0x644] sm:$0xf] }
 0x756   :  { %v10758_v4 = vor.u32 %v11614_v54, %v10755_v17  ;;  %v11632_v55 = vld [vmem:[%s15413_s5 + $0x6a4] sm:$0xf]  ;;  %v10979_v54 = vld [vmem:[%s15413_s5 + $0x7d8] sm:$0xf0] }
 0x757   :  { %v7797_v23 = vpop.f32.mrf.mxu2 }
 0x758   :  { %v7798_v12 = vadd.f32 %v7797_v23, %v7785_v13  ;;  %v11616_v23 = vld [vmem:[%s15413_s5 + $0x624] sm:$0xf] }
 0x759   :  { %7945 = vmatpush.bf16.msrb.mxu2 %v10670_v8  ;;  %7936 = vmatpush.bf16.msra.mxu3 %v10574_v14  ;;  %v11600_v8 = vld [vmem:[%s15413_s5 + $0x5a4] sm:$0xf] }
 0x75a   :  { %v10702_v14 = vor.u32 %v11600_v8, %v10699_v56  ;;  %v11656_v8 = vld [vmem:[%s15413_s5 + $0x764] sm:$0xf]  ;;  %v10923_v56 = vld [vmem:[%s15413_s5 + $0x768] sm:$0xf0] }
 0x75d   :  { %7946 = vmatpush.bf16.msrb.mxu2 %v10662_v0  ;;  %7937 = vmatpush.bf16.msra.mxu3 %v10566_v27  ;;  %v10694_v27 = vor.u32 %v11598_v51, %v10691_v62  ;;  %v11630_v62 = vld [vmem:[%s15413_s5 + $0x694] sm:$0xf] }
 0x75f   :  { %v7799_v53 = vpop.f32.mrf.mxu2 }
 0x761   :  { %7947 = vmatpush.bf16.msrb.mxu2 %v10654_v21  ;;  %7938 = vmatpush.bf16.msra.mxu3 %v10558_v59  ;;  %v11642_v59 = vld [vmem:[%s15413_s5 + $0x6f4] sm:$0xf] }
 0x764   :  { %7939 = vmatmul.bf16.vlgmr.msra.gmra.mxu3 %v14245_v58  ;;  %v10715_v58 = vld [vmem:[%s15413_s5 + $0x5c8] sm:$0xf0] }
 0x765   :  { %7948 = vmatpush.bf16.msrb.mxu2 %v10646_v60  ;;  %7957 = vmatpush.bf16.msrb.mxu3 %v10742_v38  ;;  %v10718_v36 = vor.u32 %v11604_v42, %v10715_v58  ;;  %v10867_v60 = vld [vmem:[%s15413_s5 + $0x6f8] sm:$0xf0]  ;;  %v10686_v38 = vor.u32 %v11596_v37, %v10683_v46  ;;  %v11628_v37 = vld [vmem:[%s15413_s5 + $0x684] sm:$0xf]  ;;  %v10811_v46 = vld [vmem:[%s15413_s5 + $0x688] sm:$0xf0] }
 0x766   :  { %v10870_v29 = vor.u32 %v11642_v59, %v10867_v60  ;;  %v10851_v42 = vld [vmem:[%s15413_s5 + $0x6d8] sm:$0xf0]  ;;  %v10814_v59 = vor.u32 %v11628_v37, %v10811_v46 }
 0x767   :  { %v7810_v45 = vpop.f32.mrf.mxu3  ;;  %v7823_v61 = vpop.f32.mrf.mxu2  ;;  %v10854_v41 = vor.u32 %v11638_v32, %v10851_v42  ;;  %v11644_v32 = vld [vmem:[%s15413_s5 + $0x704] sm:$0xf]  ;;  %v10875_v42 = vld [vmem:[%s15413_s5 + $0x708] sm:$0xf0] }
 0x768   :  { %v7811_v34 = vadd.f32 %v7810_v45, %v7798_v12  ;;  %v7824_v19 = vadd.f32 %v7823_v61, %v6323_v63  ;;  %v11634_v12 = vld [vmem:[%s15413_s5 + $0x6b4] sm:$0xf]  ;;  %v10926_v61 = vor.u32 %v11656_v8, %v10923_v56  ;;  %v11648_v63 = vld [vmem:[%s15413_s5 + $0x724] sm:$0xf] }
 0x769   :  { %7949 = vmatpush.bf16.msrb.mxu2 %v10638_v10  ;;  %7958 = vmatpush.bf16.msrb.mxu3 %v10734_v24  ;;  %v10763_v10 = vld [vmem:[%s15413_s5 + $0x628] sm:$0xf0]  ;;  %v11640_v24 = vld [vmem:[%s15413_s5 + $0x6e4] sm:$0xf] }
 0x76a   :  { %v8022_v0 = vmax.f32 %v7811_v34, 0.0  ;;  %v10766_v47 = vor.u32 %v11616_v23, %v10763_v10  ;;  %v10862_v9 = vor.u32 %v11640_v24, %v10859_v57  ;;  %v11654_v34 = vld [vmem:[%s15413_s5 + $0x754] sm:$0xf]  ;;  %v10987_v23 = vld [vmem:[%s15413_s5 + $0x7e8] sm:$0xf0] }
 0x76b   :  { %v11646_v57 = vld [vmem:[%s15413_s5 + $0x714] sm:$0xf] }
 0x76c   :  { %v8024_v7 = vpack.c.bf16 %v8022_v0, %v8022_v0  ;;  %v10830_v0 = vor.u32 %v11632_v55, %v10827_v15 }
 0x76d   :  { %7950 = vmatpush.bf16.msrb.mxu2 %v10630_v33  ;;  %7959 = vmatpush.bf16.msrb.mxu3 %v10726_v18 }
 0x76e   :  { %8166 = vmatmul.bf16.vlgmr.msrb.gmra.mxu0 %v8024_v7  ;;  %v11652_v7 = vld [vmem:[%s15413_s5 + $0x744] sm:$0xf] }
 0x76f   :  { %v7812_v52 = vpop.f32.mrf.mxu3  ;;  %v7825_v25 = vpop.f32.mrf.mxu2 }
 0x770   :  { %v10899_v52 = vld [vmem:[%s15413_s5 + $0x738] sm:$0xf0]  ;;  %v11674_v25 = vld [vmem:[%s15413_s5 + $0x7f4] sm:$0xf] }
 0x771   :  { %7951 = vmatpush.bf16.msrb.mxu2 %v10622_v2  ;;  %7960 = vmatpush.bf16.msrb.mxu3 %v10718_v36  ;;  %v11612_v2 = vld [vmem:[%s15413_s5 + $0x604] sm:$0xf]  ;;  %v10747_v36 = vld [vmem:[%s15413_s5 + $0x608] sm:$0xf0]  ;;  %v10998_v16 = vor.u32 %v11674_v25, %v10995_v28 }
 0x772   :  { %v10750_v26 = vor.u32 %v11612_v2, %v10747_v36  ;;  %v11666_v36 = vld [vmem:[%s15413_s5 + $0x7b4] sm:$0xf] }
 0x774   :  { %7952 = vmatmul.bf16.vlgmr.msrb.gmra.mxu2 %v14260_v40  ;;  %v10779_v40 = vld [vmem:[%s15413_s5 + $0x648] sm:$0xf0] }
 0x775   :  { %7970 = vmatpush.bf16.msra.mxu2 %v10806_v11  ;;  %7961 = vmatpush.bf16.msrb.mxu3 %v10710_v3  ;;  %v10782_v21 = vor.u32 %v11620_v22, %v10779_v40  ;;  %v11658_v11 = vld [vmem:[%s15413_s5 + $0x774] sm:$0xf]  ;;  %v10819_v22 = vld [vmem:[%s15413_s5 + $0x698] sm:$0xf0] }
 0x776   :  { %v10934_v3 = vor.u32 %v11658_v11, %v10931_v44  ;;  %v11664_v11 = vld [vmem:[%s15413_s5 + $0x7a4] sm:$0xf]  ;;  %v10955_v44 = vld [vmem:[%s15413_s5 + $0x7a8] sm:$0xf0] }
 0x777   :  { %v7836_v33 = vpop.f32.mrf.mxu3  ;;  %v7849_v18 = vpop.f32.mrf.mxu2 }
 0x778   :  { %v7837_v58 = vadd.f32 %v7836_v33, %v7824_v19 }
 0x779   :  { %7971 = vmatpush.bf16.msra.mxu2 %v10798_v5  ;;  %7962 = vmatpush.bf16.msrb.mxu3 %v10702_v14  ;;  %v10835_v5 = vld [vmem:[%s15413_s5 + $0x6b8] sm:$0xf0] }
 0x77a   :  { %v7850_v53 = vadd.f32 %v7849_v18, %v7837_v58  ;;  %v10838_v45 = vor.u32 %v11634_v12, %v10835_v5  ;;  %v10915_v14 = vld [vmem:[%s15413_s5 + $0x758] sm:$0xf0]  ;;  %v11668_v58 = vld [vmem:[%s15413_s5 + $0x7c4] sm:$0xf] }
 0x77b   :  { %v10918_v51 = vor.u32 %v11654_v34, %v10915_v14  ;;  %v11660_v5 = vld [vmem:[%s15413_s5 + $0x784] sm:$0xf] }
 0x77d   :  { %7972 = vmatpush.bf16.msra.mxu2 %v10790_v43  ;;  %7963 = vmatpush.bf16.msrb.mxu3 %v10694_v27  ;;  %v10822_v27 = vor.u32 %v11630_v62, %v10819_v22  ;;  %v11684_v62 = vld [vmem:[%s15415_s7 + $0x40] sm:$0xff] }
 0x77f   :  { %v7838_v49 = vpop.f32.mrf.mxu3  ;;  %v7851_v13 = vpop.f32.mrf.mxu2 }
 0x780   :  { %v11662_v49 = vld [vmem:[%s15413_s5 + $0x794] sm:$0xf]  ;;  %v10947_v13 = vld [vmem:[%s15413_s5 + $0x798] sm:$0xf0] }
 0x781   :  { %7973 = vmatpush.bf16.msra.mxu2 %v10782_v21  ;;  %7964 = vmatpush.bf16.msrb.mxu3 %v10686_v38  ;;  %v10902_v38 = vor.u32 %v11650_v1, %v10899_v52  ;;  %v10950_v12 = vor.u32 %v11662_v49, %v10947_v13 }
 0x784   :  { %7965 = vmatmul.bf16.vlgmr.msrb.gmra.mxu3 %v14288_v31  ;;  %v10843_v31 = vld [vmem:[%s15413_s5 + $0x6c8] sm:$0xf0] }
 0x785   :  { %7974 = vmatpush.bf16.msra.mxu2 %v10774_v6  ;;  %7983 = vmatpush.bf16.msra.mxu3 %v10870_v29  ;;  %v10846_v48 = vor.u32 %v11636_v50, %v10843_v31  ;;  %v10891_v6 = vld [vmem:[%s15413_s5 + $0x728] sm:$0xf0]  ;;  %v11672_v29 = vld [vmem:[%s15413_s5 + $0x7e4] sm:$0xf]  ;;  %v10963_v50 = vld [vmem:[%s15413_s5 + $0x7b8] sm:$0xf0] }
 0x786   :  { %v10894_v10 = vor.u32 %v11648_v63, %v10891_v6  ;;  %v10990_v24 = vor.u32 %v11672_v29, %v10987_v23  ;;  %v10966_v31 = vor.u32 %v11666_v36, %v10963_v50  ;;  %v11696_v6 = vld [vmem:[%s15417_s9 + $0x20] sm:$0xff]  ;;  %v11695_v29 = vld [vmem:[%s15417_s9 + $0x18] sm:$0xff] }
 0x787   :  { %v7862_v43 = vpop.f32.mrf.mxu3  ;;  %v11704_v50 = vld [vmem:[%s15418_s10] ss:$0 sm:$0xff] }
 0x788   :  { %v7863_v40 = vadd.f32 %v7862_v43, %v7850_v53  ;;  %v11685_v53 = vld [vmem:[%s15415_s7 + $0x48] sm:$0xff] }
 0x789   :  { %7975 = vmatpush.bf16.msra.mxu2 %v10766_v47  ;;  %7984 = vmatpush.bf16.msra.mxu3 %v10862_v9  ;;  %v10883_v47 = vld [vmem:[%s15413_s5 + $0x718] sm:$0xf0]  ;;  %v11670_v9 = vld [vmem:[%s15413_s5 + $0x7d4] sm:$0xf] }
 0x78a   :  { %v10886_v18 = vor.u32 %v11646_v57, %v10883_v47  ;;  %v10982_v17 = vor.u32 %v11670_v9, %v10979_v54  ;;  %8177 = vmatpush.bf16.msrb.mxu1 %v11685_v53 }
 0x78d   :  { %7976 = vmatpush.bf16.msra.mxu2 %v10758_v4  ;;  %7985 = vmatpush.bf16.msra.mxu3 %v10854_v41  ;;  %v10878_v4 = vor.u32 %v11644_v32, %v10875_v42  ;;  %v11693_v32 = vld [vmem:[%s15417_s9 + $0x8] sm:$0xff]  ;;  %v11692_v42 = vld [vmem:[%s15417_s9] sm:$0xff] }
 0x78e   :  { %8178 = vmatpush.bf16.msrb.mxu1 %v11684_v62 }
 0x78f   :  { %v7864_v60 = vpop.f32.mrf.mxu3 }
 0x790   :  { %v11698_v60 = vld [vmem:[%s15417_s9 + $0x30] sm:$0xff] }
 0x791   :  { %7977 = vmatpush.bf16.msra.mxu2 %v10750_v26  ;;  %7986 = vmatpush.bf16.msra.mxu3 %v10846_v48  ;;  %v10958_v26 = vor.u32 %v11664_v11, %v10955_v44 }
 0x794   :  { %7978 = vmatmul.bf16.vlgmr.msra.gmra.mxu2 %v14523_v35  ;;  %v10907_v35 = vld [vmem:[%s15413_s5 + $0x748] sm:$0xf0] }
 0x795   :  { %7996 = vmatpush.bf16.msrb.mxu2 %v10934_v3  ;;  %7987 = vmatpush.bf16.msra.mxu3 %v10838_v45  ;;  %v10910_v21 = vor.u32 %v11652_v7, %v10907_v35 }
 0x797   :  { %v7875_v19 = vpop.f32.mrf.mxu2 }
 0x798   :  { %v7876_v33 = vadd.f32 %v7875_v19, %v7863_v40 }
 0x799   :  { %7997 = vmatpush.bf16.msrb.mxu2 %v10926_v61  ;;  %7988 = vmatpush.bf16.msra.mxu3 %v10830_v0 }
 0x79d   :  { %7998 = vmatpush.bf16.msrb.mxu2 %v10918_v51  ;;  %7989 = vmatpush.bf16.msra.mxu3 %v10822_v27 }
 0x79f   :  { %v7877_v2 = vpop.f32.mrf.mxu2 }
 0x7a1   :  { %7999 = vmatpush.bf16.msrb.mxu2 %v10910_v21  ;;  %7990 = vmatpush.bf16.msra.mxu3 %v10814_v59  ;;  %v11699_v59 = vld [vmem:[%s15417_s9 + $0x38] sm:$0xff] }
 0x7a4   :  { %7991 = vmatmul.bf16.vlgmr.msra.gmra.mxu3 %v14567_v39  ;;  %v10971_v39 = vld [vmem:[%s15413_s5 + $0x7c8] sm:$0xf0] }
 0x7a5   :  { %8000 = vmatpush.bf16.msrb.mxu2 %v10902_v38  ;;  %8009 = vmatpush.bf16.msrb.mxu3 %v10998_v16  ;;  %v10974_v41 = vor.u32 %v11668_v58, %v10971_v39  ;;  %v11697_v16 = vld [vmem:[%s15417_s9 + $0x28] sm:$0xff]  ;;  %v11703_v58 = vld [vmem:[%s15416_s8] ss:$0 sm:$0xff] }
 0x7a7   :  { %v7888_v48 = vpop.f32.mrf.mxu3 }
 0x7a8   :  { %v7889_v3 = vadd.f32 %v7888_v48, %v7876_v33 }
 0x7a9   :  { %8001 = vmatpush.bf16.msrb.mxu2 %v10894_v10  ;;  %8010 = vmatpush.bf16.msrb.mxu3 %v10990_v24  ;;  %v11694_v24 = vld [vmem:[%s15417_s9 + $0x10] sm:$0xff] }
 0x7ad   :  { %8002 = vmatpush.bf16.msrb.mxu2 %v10886_v18  ;;  %8011 = vmatpush.bf16.msrb.mxu3 %v10982_v17 }
 0x7af   :  { %v7890_v56 = vpop.f32.mrf.mxu3 }
 0x7b1   :  { %8003 = vmatpush.bf16.msrb.mxu2 %v10878_v4  ;;  %8012 = vmatpush.bf16.msrb.mxu3 %v10974_v41 }
 0x7b4   :  { %8004 = vmatmul.bf16.vlgmr.msrb.gmra.mxu2 %v14625_v30  ;;  %v10939_v30 = vld [vmem:[%s15413_s5 + $0x788] sm:$0xf0] }
 0x7b5   :  { %8013 = vmatpush.bf16.msrb.mxu3 %v10966_v31  ;;  %v10942_v8 = vor.u32 %v11660_v5, %v10939_v30  ;;  %8254 = vmatpush.bf16.msra.mxu2 %v11699_v59 }
 0x7b7   :  { %v7901_v45 = vpop.f32.mrf.mxu2 }
 0x7b8   :  { %v7902_v61 = vadd.f32 %v7901_v45, %v7889_v3 }
 0x7b9   :  { %8014 = vmatpush.bf16.msrb.mxu3 %v10958_v26  ;;  %8255 = vmatpush.bf16.msra.mxu2 %v11698_v60 }
 0x7bd   :  { %8015 = vmatpush.bf16.msrb.mxu3 %v10950_v12  ;;  %8256 = vmatpush.bf16.msra.mxu2 %v11697_v16 }
 0x7bf   :  { %v7903_v55 = vpop.f32.mrf.mxu2 }
 0x7c1   :  { %8016 = vmatpush.bf16.msrb.mxu3 %v10942_v8  ;;  %8257 = vmatpush.bf16.msra.mxu2 %v11696_v6 }
 0x7c4   :  { %8017 = vmatmul.bf16.vlgmr.msrb.gmra.mxu3 %v14686_v20 }
 0x7c5   :  { %8258 = vmatpush.bf16.msra.mxu2 %v11695_v29 }
 0x7c7   :  { %v7914_v15 = vpop.f32.mrf.mxu3 }
 0x7c8   :  { %v7915_v34 = vadd.f32 %v7914_v15, %v7902_v61 }
 0x7c9   :  { %8259 = vmatpush.bf16.msra.mxu2 %v11694_v24 }
 0x7cd   :  { %8260 = vmatpush.bf16.msra.mxu2 %v11693_v32 }
 0x7cf   :  { %v7916_v14 = vpop.f32.mrf.mxu3 }
 0x7d1   :  { %8261 = vmatpush.bf16.msra.mxu2 %v11692_v42 }
 0x7d7   :  { %v7927_v0 = vpop.f32.mrf.mxu2 }
 0x7d8   :  { %v7928_v43 = vadd.f32 %v7927_v0, %v7915_v34 }
 0x7df   :  { %v7929_v51 = vpop.f32.mrf.mxu2 }
 0x7e7   :  { %v7940_v22 = vpop.f32.mrf.mxu3 }
 0x7e8   :  { %v7941_v40 = vadd.f32 %v7940_v22, %v7928_v43 }
 0x7eb   :  { %v8167_v27 = vpop.f32.mrf.mxu0 }
 0x7ec   :  { %v8168_v39 = vadd.f32 %v11703_v58, %v8167_v27 }
 0x7ef   :  { %v7942_v7 = vpop.f32.mrf.mxu3 }
 0x7f3   :  { %v8169_v20 = vpop.f32.mrf.mxu0 }
 0x7f7   :  { %v7953_v35 = vpop.f32.mrf.mxu2 }
 0x7f8   :  { %v7954_v21 = vadd.f32 %v7953_v35, %v7941_v40 }
 0x7ff   :  { %v7955_v37 = vpop.f32.mrf.mxu2 }
 0x807   :  { %v7966_v46 = vpop.f32.mrf.mxu3 }
 0x808   :  { %v7967_v10 = vadd.f32 %v7966_v46, %v7954_v21 }
 0x80f   :  { %v7968_v1 = vpop.f32.mrf.mxu3 }
 0x817   :  { %v7979_v52 = vpop.f32.mrf.mxu2 }
 0x818   :  { %v7980_v57 = vadd.f32 %v7979_v52, %v7967_v10 }
 0x81f   :  { %v7981_v25 = vpop.f32.mrf.mxu2 }
 0x827   :  { %v7992_v28 = vpop.f32.mrf.mxu3 }
 0x828   :  { %v7993_v19 = vadd.f32 %v7992_v28, %v7980_v57 }
 0x82f   :  { %v7994_v38 = vpop.f32.mrf.mxu3 }
 0x837   :  { %v8005_v63 = vpop.f32.mrf.mxu2 }
 0x838   :  { %v8006_v47 = vadd.f32 %v8005_v63, %v7993_v19 }
 0x83f   :  { %v8007_v23 = vpop.f32.mrf.mxu2 }
 0x847   :  { %v8018_v9 = vpop.f32.mrf.mxu3 }
 0x848   :  { %v8019_v54 = vadd.f32 %v8018_v9, %v8006_v47 }
 0x84a   :  { %v8023_v33 = vmax.f32 %v8019_v54, 0.0 }
 0x84c   :  { %v8025_v18 = vpack.c.bf16 %v8023_v33, %v8023_v33 }
 0x84e   :  { %8179 = vmatmul.bf16.vlgmr.msrb.gmra.mxu1 %v8025_v18 }
 0x84f   :  { %v8020_v17 = vpop.f32.mrf.mxu3 }
 0x8cb   :  { %v8180_v53 = vpop.f32.mrf.mxu1 }
 0x8cc   :  { %v8181_v4 = vadd.f32 %v8180_v53, %v8168_v39 }
 0x8ce   :  { %v8184_v41 = vmax.f32 %v8181_v4, 0.0 }
 0x8d0   :  { %v8185_v2 = vpack.c.bf16 %v8184_v41, %v8184_v41 }
 0x8d2   :  { %8262 = vmatmul.bf16.vlgmr.msra.gmra.mxu2 %v8185_v2 }
 0x8d3   :  { %v8182_v36 = vpop.f32.mrf.mxu1 }
 0x955   :  { %v8263_v31 = vpop.f32.mrf.mxu2 }
 0x956   :  { %v8264_v11 = vadd.f32 %v11704_v50, %v8263_v31 }
 0x958   :  { %v8267_v44 = vsub.f32 0.0, %v8264_v11 }
 0x95a   :  { %v8268_v26 = vmul.f32 1.442695, %v8267_v44 }
 0x95c   :  { %11705 = vpow2.f32 %v8268_v26 }
 0x95d   :  { %v8265_v48 = vpop.f32.mrf.mxu2 }
 0x962   :  { %v11706_v49 = vpop.eup %11705 }
 0x963   :  { %v8270_v13 = vadd.f32 1.0, %v11706_v49 }
 0x965   :  { %11707 = vrcp.f32 %v8270_v13  ;;  %v8282_v30 = vand.u32 2147483648, %v8270_v13  ;;  %v8280_v56 = vand.u32 2147483647, %v8270_v13  ;;  %vm8276_vm5 = vweird.f32 %v8270_v13 }
 0x967   :  { %v8283_v61 = vor.u32 1.1754944e-38, %v8282_v30  ;;  %vm8281_vm7 = vcmp.eq.f32.partialorder %v8280_v56, 8.507059e+37 }
 0x96b   :  { %v11708_v3 = vpop.eup %11707 }
 0x96c   :  { %v8272_v12 = vmul.f32 %v11708_v3, %v8270_v13  ;;  %vm8277_vm4 = vweird.f32 %v11708_v3 }
 0x96d   :  { %vm8278_vm6 = vmor %vm8276_vm5, %vm8277_vm4 }
 0x96e   :  { %v8273_v5 = vsub.f32 1.0, %v8272_v12 }
 0x970   :  { %v8274_v8 = vmul.f32 %v11708_v3, %v8273_v5 }
 0x972   :  { %v8275_v45 = vadd.f32 %v11708_v3, %v8274_v8 }
 0x974   :  { %v8279_v55 = vsel %vm8278_vm6, %v11708_v3, %v8275_v45 }
 0x975   :  { %v8284_v15 = vsel %vm8281_vm7, %v8283_v61, %v8279_v55 }
 0x976   :  { %8286 = vst.msk [vmem:[%s15419_s11] sm:$0xff] %vm1045_vm3, %v8284_v15 }

</bundles_post_ra>
